<compile_context>
chip_gen: v7x
topology: tpu7x:2x2x1
jax: 0.10.0
libtpu: 0.0.40
codegen_flags: <defaults>
</compile_context>

<pallas_src>
import numpy as np
import jax
import jax.numpy as jnp
from jax.experimental import pallas as pl
from jax.experimental.pallas import tpu as pltpu

IMG = 64        # spatial size implied by fc1 = 14*14*16
LANES = 256     # lane-padded activation slab width (multiple of 128)


# ----------------------------------------------------------------------------
# Kernels
# ----------------------------------------------------------------------------
def _conv_pool_kernel(x_ref, w_ref, b_ref, selh_ref, selw_ref, o_ref):
    """Fused conv + bias + ReLU + MaxPool (+ output zero/lane padding).

    x_ref   : (1, H_pad, LANES)          padded input slab (f32 or bf16)
    w_ref   : (k, LANES, OW*C_out)       banded conv weight, bf16
    b_ref   : (1, OW*C_out)              bias tiled along W, f32
    selh_ref: (out_h, h_span)            0/1 row-subsample (+row pad), bf16
    selw_ref: (pool_k, OW*C_out, LANES)  0/1 col-subsample (+col/lane pad), bf16
    o_ref   : (1, out_h, LANES)          pooled output slab, bf16
    """
    k = w_ref.shape[0]
    OH = x_ref.shape[1] - k + 1
    h_span = selh_ref.shape[1]
    pool_k = selw_ref.shape[0]

    x = x_ref[0].astype(jnp.bfloat16)
    # convolution: k shifted (OH, LANES) @ (LANES, OW*C_out) MXU matmuls
    acc = jnp.dot(x[0:OH, :], w_ref[0], preferred_element_type=jnp.float32)
    for kh in range(1, k):
        acc = acc + jnp.dot(x[kh:kh + OH, :], w_ref[kh],
                            preferred_element_type=jnp.float32)
    a = jnp.maximum(acc + b_ref[...], 0.0)            # bias + ReLU (f32)

    # max-pool over H: window max via shifted row slices, then row subsample
    m = a[0:h_span, :]
    for dh in range(1, pool_k):
        m = jnp.maximum(m, a[dh:dh + h_span, :])
    mb = m.astype(jnp.bfloat16)                       # exact w.r.t. final bf16
    ph = jnp.dot(selh_ref[...], mb,
                 preferred_element_type=jnp.float32).astype(jnp.bfloat16)

    # max-pool over W: pool_k 0/1 column-select matmuls, max-combined
    pw = jnp.dot(ph, selw_ref[0], preferred_element_type=jnp.float32)
    for dw in range(1, pool_k):
        pw = jnp.maximum(pw, jnp.dot(ph, selw_ref[dw],
                                     preferred_element_type=jnp.float32))
    o_ref[0] = pw.astype(o_ref.dtype)


def _fc_head_kernel(a_ref, w3_ref, b3_ref, w4_ref, b4_ref, w5_ref, b5_ref,
                    o_ref):
    """Fused fc1+ReLU -> fc2+ReLU -> fc3 -> log_softmax for the whole batch."""
    a = a_ref[...].astype(jnp.bfloat16)                             # (N, 3584)
    x = jnp.dot(a, w3_ref[...], preferred_element_type=jnp.float32) + b3_ref[...]
    x = jnp.maximum(x, 0.0).astype(jnp.bfloat16)
    x = jnp.dot(x, w4_ref[...], preferred_element_type=jnp.float32) + b4_ref[...]
    x = jnp.maximum(x, 0.0).astype(jnp.bfloat16)
    z = jnp.dot(x, w5_ref[...], preferred_element_type=jnp.float32) + b5_ref[...]
    # log_softmax over last dim; padded logits carry a -1e9 bias -> exp() == 0
    m = jnp.max(z, axis=-1, keepdims=True)
    s = z - m
    lse = jnp.log(jnp.sum(jnp.exp(s), axis=-1, keepdims=True))
    o_ref[...] = (s - lse).astype(o_ref.dtype)


# ----------------------------------------------------------------------------
# pallas_call wrappers
# ----------------------------------------------------------------------------
def conv_block(x_slab, w_band, bias_row, selh, selw):
    N, H_pad, lanes = x_slab.shape
    k, _, OWC = w_band.shape
    out_h, h_span = selh.shape
    pool_k, _, out_w = selw.shape
    return pl.pallas_call(
        _conv_pool_kernel,
        out_shape=jax.ShapeDtypeStruct((N, out_h, out_w), jnp.bfloat16),
        grid=(N,),
        in_specs=[
            pl.BlockSpec((1, H_pad, lanes), lambda n: (n, 0, 0)),
            pl.BlockSpec((k, lanes, OWC), lambda n: (0, 0, 0)),     # resident
            pl.BlockSpec((1, OWC), lambda n: (0, 0)),
            pl.BlockSpec((out_h, h_span), lambda n: (0, 0)),
            pl.BlockSpec((pool_k, OWC, out_w), lambda n: (0, 0, 0)),
        ],
        out_specs=pl.BlockSpec((1, out_h, out_w), lambda n: (n, 0, 0)),
        compiler_params=pltpu.CompilerParams(
            dimension_semantics=("parallel",)),
    )(x_slab, w_band, bias_row, selh, selw)


def fc_head(a, w3, b3, w4, b4, w5, b5):
    # Whole batch in one no-grid call; every operand is VMEM resident.
    N = a.shape[0]
    return pl.pallas_call(
        _fc_head_kernel,
        out_shape=jax.ShapeDtypeStruct((N, 128), jnp.float32),
    )(a, w3, b3, w4, b4, w5, b5)


# ----------------------------------------------------------------------------
# One-time (host-side) parameter preparation
# ----------------------------------------------------------------------------
def _band_conv_weight(w, W_pad, OW):
    """(C_out, C_in, k, k) torch conv weight -> banded (k, W_pad*C_in, OW*C_out)."""
    C_out, C_in, k, _ = w.shape
    wt = np.transpose(w, (2, 3, 1, 0))             # (kh, kw, C_in, C_out)
    big = np.zeros((k, W_pad * C_in, OW * C_out), np.float32)
    for kh in range(k):
        for kw in range(k):
            for j in range(OW):
                big[kh, (j + kw) * C_in:(j + kw + 1) * C_in,
                    j * C_out:(j + 1) * C_out] = wt[kh, kw]
    return big


def _row_select(out_h, row_off, n_pool, stride, h_span):
    m = np.zeros((out_h, h_span), np.float32)
    for i in range(n_pool):
        m[row_off + i, i * stride] = 1.0
    return m


def _col_select(pool_k, n_in, C, n_pool, stride, out_w, col_off):
    m = np.zeros((pool_k, n_in * C, out_w), np.float32)
    for kw in range(pool_k):
        for j in range(n_pool):
            for c in range(C):
                m[kw, (j * stride + kw) * C + c, col_off + j * C + c] = 1.0
    return m


def prepare_params(params):
    """Banded conv weights (lane-padded to 256 rows), pooling select matrices
    (lane-padded to 256 output cols), lane-padded FC weights with the PyTorch
    NCHW flatten order and slab lane padding baked into fc1.  Done once."""
    w1 = np.asarray(params["w1"], np.float32)   # (6, 3, 5, 5)
    b1 = np.asarray(params["b1"], np.float32)
    w2 = np.asarray(params["w2"], np.float32)   # (16, 6, 5, 5)
    b2 = np.asarray(params["b2"], np.float32)
    w3 = np.asarray(params["w3"], np.float32)   # (120, 3136) in (C,H,W) order
    b3 = np.asarray(params["b3"], np.float32)
    w4 = np.asarray(params["w4"], np.float32)   # (84, 120)
    b4 = np.asarray(params["b4"], np.float32)
    w5 = np.asarray(params["w5"], np.float32)   # (15, 84)
    b5 = np.asarray(params["b5"], np.float32)

    # conv1: 64 -(pad1)-> 66 wide slab (66*3=198 lanes -> 256), OH=OW=62,
    # pool(2,2) -> 31; output slab is written already zero-padded to 33 rows
    # and 33*6=198 (+lane pad to 256) cols for conv2.
    w1b = np.pad(_band_conv_weight(w1, 66, 62), ((0, 0), (0, LANES - 198), (0, 0)))
    # conv2: 33-wide padded slab (198 lanes -> 256), OH=OW=29, pool(3,2) -> 14;
    # output (14, 14*16=224 -> 256 lanes).
    w2b = np.pad(_band_conv_weight(w2, 33, 29), ((0, 0), (0, LANES - 198), (0, 0)))

    prep = {
        "w1": jnp.asarray(w1b, jnp.bfloat16),
        "b1": jnp.asarray(np.tile(b1, 62).reshape(1, 62 * 6)),
        "selh1": jnp.asarray(_row_select(33, 1, 31, 2, 61), jnp.bfloat16),
        "selw1": jnp.asarray(_col_select(2, 62, 6, 31, 2, LANES, 6), jnp.bfloat16),
        "w2": jnp.asarray(w2b, jnp.bfloat16),
        "b2": jnp.asarray(np.tile(b2, 29).reshape(1, 29 * 16)),
        "selh2": jnp.asarray(_row_select(14, 0, 14, 2, 27), jnp.bfloat16),
        "selw2": jnp.asarray(_col_select(3, 29, 16, 14, 2, LANES, 0), jnp.bfloat16),
    }

    # fc1: rows indexed by the flattened (h, lane) of the (14, 256) conv2 slab;
    # reorder input features from PyTorch (c, h, w) to slab (h, w, c) order and
    # zero the lane-pad rows.
    w3_hwc = w3.reshape(120, 16, 14, 14).transpose(2, 3, 1, 0)  # (h, w, c, out)
    w3_slab = np.zeros((14, LANES, 120), np.float32)
    w3_slab[:, :224, :] = w3_hwc.reshape(14, 224, 120)
    w3p = np.pad(w3_slab.reshape(14 * LANES, 120), ((0, 0), (0, 8)))
    prep["w3"] = jnp.asarray(w3p, jnp.bfloat16)
    prep["b3"] = jnp.asarray(np.pad(b3, (0, 8)).reshape(1, 128))

    w4p = np.zeros((128, 128), np.float32)
    w4p[:120, :84] = w4.T
    prep["w4"] = jnp.asarray(w4p, jnp.bfloat16)
    b4p = np.zeros((1, 128), np.float32)
    b4p[0, :84] = b4
    prep["b4"] = jnp.asarray(b4p)

    w5p = np.zeros((128, 128), np.float32)
    w5p[:84, :15] = w5.T
    prep["w5"] = jnp.asarray(w5p, jnp.bfloat16)
    b5p = np.full((1, 128), -1e9, np.float32)   # padded logits masked out
    b5p[0, :15] = b5
    prep["b5"] = jnp.asarray(b5p)
    return prep


def init_params(key):
    """Deterministic synthetic params with PyTorch-default-like fan-in scaling."""
    def uni(k, shape, fan_in):
        bound = 1.0 / jnp.sqrt(jnp.float32(fan_in))
        return jax.random.uniform(k, shape, jnp.float32, -bound, bound)

    ks = jax.random.split(key, 10)
    return {
        "w1": uni(ks[0], (6, 3, 5, 5), 3 * 25),
        "b1": uni(ks[1], (6,), 3 * 25),
        "w2": uni(ks[2], (16, 6, 5, 5), 6 * 25),
        "b2": uni(ks[3], (16,), 6 * 25),
        "w3": uni(ks[4], (120, 14 * 14 * 16), 14 * 14 * 16),
        "b3": uni(ks[5], (120,), 14 * 14 * 16),
        "w4": uni(ks[6], (84, 120), 120),
        "b4": uni(ks[7], (84,), 120),
        "w5": uni(ks[8], (15, 84), 84),
        "b5": uni(ks[9], (15,), 84),
    }


# ----------------------------------------------------------------------------
# Forward pass
# ----------------------------------------------------------------------------
def net_forward(prep, x_nchw):
    N = x_nchw.shape[0]
    # NCHW -> zero-padded, lane-padded NHWC slab (N, 66, 256): the only
    # activation relayout in the whole forward (forced by the NCHW input).
    x = jnp.transpose(x_nchw, (0, 2, 3, 1))
    x = jnp.pad(x, ((0, 0), (1, 1), (1, 1), (0, 0)))
    x = x.reshape(N, 66, 66 * 3)
    x = jnp.pad(x, ((0, 0), (0, 0), (0, LANES - 66 * 3)))

    # conv1 + ReLU + pool1 (output already zero/lane-padded for conv2)
    y = conv_block(x, prep["w1"], prep["b1"], prep["selh1"], prep["selw1"])
    # conv2 + ReLU + pool2: (N, 14, 256) bf16
    y = conv_block(y, prep["w2"], prep["b2"], prep["selh2"], prep["selw2"])

    # fused fc1/fc2/fc3 + log_softmax over the whole batch
    a = y.reshape(N, 14 * LANES)               # free row-major merge
    out = fc_head(a, prep["w3"], prep["b3"], prep["w4"], prep["b4"],
                  prep["w5"], prep["b5"])
    return out[:, :15]


if __name__ == "__main__":
    key = jax.random.PRNGKey(0)
    pkey, xkey = jax.random.split(key)
    params = init_params(pkey)
    prep = prepare_params(params)

    x = jax.random.normal(xkey, (2, 3, IMG, IMG), jnp.float32)  # batch=2, NCHW

    out = jax.jit(net_forward)(prep, x)
    out = jax.block_until_ready(out)

    assert out.shape == (2, 15), out.shape
    assert bool(jnp.all(jnp.isfinite(out)))
    # log_softmax rows must sum (in prob space) to 1
    assert bool(jnp.allclose(jnp.sum(jnp.exp(out), axis=-1), 1.0, atol=1e-4))
    print("KERNEL_OK")
</pallas_src>

<mosaic_0001>
module attributes {stable_mosaic.version = 11 : i64} {
  func.func @_conv_pool_kernel(%arg0: i32, %arg1: memref<1x66x256xf32, #tpu.memory_space<vmem>>, %arg2: memref<5x256x372xbf16, #tpu.memory_space<vmem>>, %arg3: memref<1x372xf32, #tpu.memory_space<vmem>>, %arg4: memref<33x61xbf16, #tpu.memory_space<vmem>>, %arg5: memref<2x372x256xbf16, #tpu.memory_space<vmem>>, %arg6: memref<1x33x256xbf16, #tpu.memory_space<vmem>>) attributes {dimension_semantics = [#tpu.dimension_semantics<parallel>], iteration_bounds = array<i64: 2>, scalar_prefetch = 0 : i64, scratch_operands = 0 : i64, tpu.core_type = #tpu.core_type<tc>, window_params = [{transform_indices = @transform_0, window_bounds = array<i64: 1, 66, 256>}, {pipeline_mode = #tpu.pipeline_mode<synchronous>, transform_indices = @transform_1, window_bounds = array<i64: 5, 256, 372>}, {pipeline_mode = #tpu.pipeline_mode<synchronous>, transform_indices = @transform_2, window_bounds = array<i64: 1, 372>}, {pipeline_mode = #tpu.pipeline_mode<synchronous>, transform_indices = @transform_3, window_bounds = array<i64: 33, 61>}, {pipeline_mode = #tpu.pipeline_mode<synchronous>, transform_indices = @transform_4, window_bounds = array<i64: 2, 372, 256>}, {transform_indices = @transform_5, window_bounds = array<i64: 1, 33, 256>}]} {
    %c0 = arith.constant 0 : index
    %c0_0 = arith.constant 0 : index
    %c0_1 = arith.constant 0 : index
    %0 = vector.load %arg1[%c0, %c0_0, %c0_1] : memref<1x66x256xf32, #tpu.memory_space<vmem>>, vector<1x66x256xf32>
    %1 = vector.shape_cast %0 : vector<1x66x256xf32> to vector<66x256xf32>
    %2 = arith.truncf %1 : vector<66x256xf32> to vector<66x256xbf16>
    %3 = vector.extract_strided_slice %2 {offsets = [0, 0], sizes = [62, 256], strides = [1, 1]} : vector<66x256xbf16> to vector<62x256xbf16>
    %c0_2 = arith.constant 0 : index
    %c0_3 = arith.constant 0 : index
    %c0_4 = arith.constant 0 : index
    %4 = vector.load %arg2[%c0_2, %c0_3, %c0_4] : memref<5x256x372xbf16, #tpu.memory_space<vmem>>, vector<1x256x372xbf16>
    %5 = vector.shape_cast %4 : vector<1x256x372xbf16> to vector<256x372xbf16>
    %cst = arith.constant dense<0.000000e+00> : vector<62x372xf32>
    %6 = tpu.matmul %3, %5, %cst {dimension_numbers = #tpu.dot_dimension_numbers<[1], [0], [0], [1], [0, 0, 1, 1], [], []>} : vector<62x256xbf16>, vector<256x372xbf16>, vector<62x372xf32> -> vector<62x372xf32>
    %7 = vector.extract_strided_slice %2 {offsets = [1, 0], sizes = [62, 256], strides = [1, 1]} : vector<66x256xbf16> to vector<62x256xbf16>
    %c1 = arith.constant 1 : index
    %c0_5 = arith.constant 0 : index
    %c0_6 = arith.constant 0 : index
    %8 = vector.load %arg2[%c1, %c0_5, %c0_6] : memref<5x256x372xbf16, #tpu.memory_space<vmem>>, vector<1x256x372xbf16>
    %9 = vector.shape_cast %8 : vector<1x256x372xbf16> to vector<256x372xbf16>
    %cst_7 = arith.constant dense<0.000000e+00> : vector<62x372xf32>
    %10 = tpu.matmul %7, %9, %cst_7 {dimension_numbers = #tpu.dot_dimension_numbers<[1], [0], [0], [1], [0, 0, 1, 1], [], []>} : vector<62x256xbf16>, vector<256x372xbf16>, vector<62x372xf32> -> vector<62x372xf32>
    %11 = arith.addf %6, %10 : vector<62x372xf32>
    %12 = vector.extract_strided_slice %2 {offsets = [2, 0], sizes = [62, 256], strides = [1, 1]} : vector<66x256xbf16> to vector<62x256xbf16>
    %c2 = arith.constant 2 : index
    %c0_8 = arith.constant 0 : index
    %c0_9 = arith.constant 0 : index
    %13 = vector.load %arg2[%c2, %c0_8, %c0_9] : memref<5x256x372xbf16, #tpu.memory_space<vmem>>, vector<1x256x372xbf16>
    %14 = vector.shape_cast %13 : vector<1x256x372xbf16> to vector<256x372xbf16>
    %cst_10 = arith.constant dense<0.000000e+00> : vector<62x372xf32>
    %15 = tpu.matmul %12, %14, %cst_10 {dimension_numbers = #tpu.dot_dimension_numbers<[1], [0], [0], [1], [0, 0, 1, 1], [], []>} : vector<62x256xbf16>, vector<256x372xbf16>, vector<62x372xf32> -> vector<62x372xf32>
    %16 = arith.addf %11, %15 : vector<62x372xf32>
    %17 = vector.extract_strided_slice %2 {offsets = [3, 0], sizes = [62, 256], strides = [1, 1]} : vector<66x256xbf16> to vector<62x256xbf16>
    %c3 = arith.constant 3 : index
    %c0_11 = arith.constant 0 : index
    %c0_12 = arith.constant 0 : index
    %18 = vector.load %arg2[%c3, %c0_11, %c0_12] : memref<5x256x372xbf16, #tpu.memory_space<vmem>>, vector<1x256x372xbf16>
    %19 = vector.shape_cast %18 : vector<1x256x372xbf16> to vector<256x372xbf16>
    %cst_13 = arith.constant dense<0.000000e+00> : vector<62x372xf32>
    %20 = tpu.matmul %17, %19, %cst_13 {dimension_numbers = #tpu.dot_dimension_numbers<[1], [0], [0], [1], [0, 0, 1, 1], [], []>} : vector<62x256xbf16>, vector<256x372xbf16>, vector<62x372xf32> -> vector<62x372xf32>
    %21 = arith.addf %16, %20 : vector<62x372xf32>
    %22 = vector.extract_strided_slice %2 {offsets = [4, 0], sizes = [62, 256], strides = [1, 1]} : vector<66x256xbf16> to vector<62x256xbf16>
    %c4 = arith.constant 4 : index
    %c0_14 = arith.constant 0 : index
    %c0_15 = arith.constant 0 : index
    %23 = vector.load %arg2[%c4, %c0_14, %c0_15] : memref<5x256x372xbf16, #tpu.memory_space<vmem>>, vector<1x256x372xbf16>
    %24 = vector.shape_cast %23 : vector<1x256x372xbf16> to vector<256x372xbf16>
    %cst_16 = arith.constant dense<0.000000e+00> : vector<62x372xf32>
    %25 = tpu.matmul %22, %24, %cst_16 {dimension_numbers = #tpu.dot_dimension_numbers<[1], [0], [0], [1], [0, 0, 1, 1], [], []>} : vector<62x256xbf16>, vector<256x372xbf16>, vector<62x372xf32> -> vector<62x372xf32>
    %26 = arith.addf %21, %25 : vector<62x372xf32>
    %c0_17 = arith.constant 0 : index
    %c0_18 = arith.constant 0 : index
    %27 = vector.load %arg3[%c0_17, %c0_18] : memref<1x372xf32, #tpu.memory_space<vmem>>, vector<1x372xf32>
    %28 = vector.broadcast %27 : vector<1x372xf32> to vector<62x372xf32>
    %29 = arith.addf %26, %28 : vector<62x372xf32>
    %cst_19 = arith.constant 0.000000e+00 : f32
    %30 = vector.broadcast %cst_19 : f32 to vector<62x372xf32>
    %31 = arith.maximumf %29, %30 : vector<62x372xf32>
    %32 = vector.extract_strided_slice %31 {offsets = [0, 0], sizes = [61, 372], strides = [1, 1]} : vector<62x372xf32> to vector<61x372xf32>
    %33 = vector.extract_strided_slice %31 {offsets = [1, 0], sizes = [61, 372], strides = [1, 1]} : vector<62x372xf32> to vector<61x372xf32>
    %34 = arith.maximumf %32, %33 : vector<61x372xf32>
    %35 = arith.truncf %34 : vector<61x372xf32> to vector<61x372xbf16>
    %c0_20 = arith.constant 0 : index
    %c0_21 = arith.constant 0 : index
    %36 = vector.load %arg4[%c0_20, %c0_21] : memref<33x61xbf16, #tpu.memory_space<vmem>>, vector<33x61xbf16>
    %cst_22 = arith.constant dense<0.000000e+00> : vector<33x372xf32>
    %37 = tpu.matmul %36, %35, %cst_22 {dimension_numbers = #tpu.dot_dimension_numbers<[1], [0], [0], [1], [0, 0, 1, 1], [], []>} : vector<33x61xbf16>, vector<61x372xbf16>, vector<33x372xf32> -> vector<33x372xf32>
    %38 = arith.truncf %37 : vector<33x372xf32> to vector<33x372xbf16>
    %c0_23 = arith.constant 0 : index
    %c0_24 = arith.constant 0 : index
    %c0_25 = arith.constant 0 : index
    %39 = vector.load %arg5[%c0_23, %c0_24, %c0_25] : memref<2x372x256xbf16, #tpu.memory_space<vmem>>, vector<1x372x256xbf16>
    %40 = vector.shape_cast %39 : vector<1x372x256xbf16> to vector<372x256xbf16>
    %cst_26 = arith.constant dense<0.000000e+00> : vector<33x256xf32>
    %41 = tpu.matmul %38, %40, %cst_26 {dimension_numbers = #tpu.dot_dimension_numbers<[1], [0], [0], [1], [0, 0, 1, 1], [], []>} : vector<33x372xbf16>, vector<372x256xbf16>, vector<33x256xf32> -> vector<33x256xf32>
    %c1_27 = arith.constant 1 : index
    %c0_28 = arith.constant 0 : index
    %c0_29 = arith.constant 0 : index
    %42 = vector.load %arg5[%c1_27, %c0_28, %c0_29] : memref<2x372x256xbf16, #tpu.memory_space<vmem>>, vector<1x372x256xbf16>
    %43 = vector.shape_cast %42 : vector<1x372x256xbf16> to vector<372x256xbf16>
    %cst_30 = arith.constant dense<0.000000e+00> : vector<33x256xf32>
    %44 = tpu.matmul %38, %43, %cst_30 {dimension_numbers = #tpu.dot_dimension_numbers<[1], [0], [0], [1], [0, 0, 1, 1], [], []>} : vector<33x372xbf16>, vector<372x256xbf16>, vector<33x256xf32> -> vector<33x256xf32>
    %45 = arith.maximumf %41, %44 : vector<33x256xf32>
    %46 = arith.truncf %45 : vector<33x256xf32> to vector<33x256xbf16>
    %c0_31 = arith.constant 0 : index
    %c0_32 = arith.constant 0 : index
    %c0_33 = arith.constant 0 : index
    %47 = vector.load %arg6[%c0_31, %c0_32, %c0_33] : memref<1x33x256xbf16, #tpu.memory_space<vmem>>, vector<1x33x256xbf16>
    %48 = vector.shape_cast %47 : vector<1x33x256xbf16> to vector<33x256xbf16>
    %49 = vector.shape_cast %46 : vector<33x256xbf16> to vector<1x33x256xbf16>
    tpu.vector_store %arg6[%c0_31, %c0_32, %c0_33], %49 {strides = array<i32>} : memref<1x33x256xbf16, #tpu.memory_space<vmem>>, vector<1x33x256xbf16>,
    return
  }
  func.func @transform_0(%arg0: i32) -> (i32, i32, i32) {
    %c0_i32 = arith.constant 0 : i32
    %c0_i32_0 = arith.constant 0 : i32
    %c0_i32_1 = arith.constant 0 : i32
    return %arg0, %c0_i32, %c0_i32_0 : i32, i32, i32
  }
  func.func @transform_1(%arg0: i32) -> (i32, i32, i32) {
    %c0_i32 = arith.constant 0 : i32
    %c0_i32_0 = arith.constant 0 : i32
    %c0_i32_1 = arith.constant 0 : i32
    %c0_i32_2 = arith.constant 0 : i32
    return %c0_i32, %c0_i32_0, %c0_i32_1 : i32, i32, i32
  }
  func.func @transform_2(%arg0: i32) -> (i32, i32) {
    %c0_i32 = arith.constant 0 : i32
    %c0_i32_0 = arith.constant 0 : i32
    %c0_i32_1 = arith.constant 0 : i32
    return %c0_i32, %c0_i32_0 : i32, i32
  }
  func.func @transform_3(%arg0: i32) -> (i32, i32) {
    %c0_i32 = arith.constant 0 : i32
    %c0_i32_0 = arith.constant 0 : i32
    %c0_i32_1 = arith.constant 0 : i32
    return %c0_i32, %c0_i32_0 : i32, i32
  }
  func.func @transform_4(%arg0: i32) -> (i32, i32, i32) {
    %c0_i32 = arith.constant 0 : i32
    %c0_i32_0 = arith.constant 0 : i32
    %c0_i32_1 = arith.constant 0 : i32
    %c0_i32_2 = arith.constant 0 : i32
    return %c0_i32, %c0_i32_0, %c0_i32_1 : i32, i32, i32
  }
  func.func @transform_5(%arg0: i32) -> (i32, i32, i32) {
    %c0_i32 = arith.constant 0 : i32
    %c0_i32_0 = arith.constant 0 : i32
    %c0_i32_1 = arith.constant 0 : i32
    return %arg0, %c0_i32, %c0_i32_0 : i32, i32, i32
  }
}

module attributes {stable_mosaic.version = 11 : i64} {
  func.func @_conv_pool_kernel(%arg0: i32, %arg1: memref<1x33x256xbf16, #tpu.memory_space<vmem>>, %arg2: memref<5x256x464xbf16, #tpu.memory_space<vmem>>, %arg3: memref<1x464xf32, #tpu.memory_space<vmem>>, %arg4: memref<14x27xbf16, #tpu.memory_space<vmem>>, %arg5: memref<3x464x256xbf16, #tpu.memory_space<vmem>>, %arg6: memref<1x14x256xbf16, #tpu.memory_space<vmem>>) attributes {dimension_semantics = [#tpu.dimension_semantics<parallel>], iteration_bounds = array<i64: 2>, scalar_prefetch = 0 : i64, scratch_operands = 0 : i64, tpu.core_type = #tpu.core_type<tc>, window_params = [{transform_indices = @transform_0, window_bounds = array<i64: 1, 33, 256>}, {pipeline_mode = #tpu.pipeline_mode<synchronous>, transform_indices = @transform_1, window_bounds = array<i64: 5, 256, 464>}, {pipeline_mode = #tpu.pipeline_mode<synchronous>, transform_indices = @transform_2, window_bounds = array<i64: 1, 464>}, {pipeline_mode = #tpu.pipeline_mode<synchronous>, transform_indices = @transform_3, window_bounds = array<i64: 14, 27>}, {pipeline_mode = #tpu.pipeline_mode<synchronous>, transform_indices = @transform_4, window_bounds = array<i64: 3, 464, 256>}, {transform_indices = @transform_5, window_bounds = array<i64: 1, 14, 256>}]} {
    %c0 = arith.constant 0 : index
    %c0_0 = arith.constant 0 : index
    %c0_1 = arith.constant 0 : index
    %0 = vector.load %arg1[%c0, %c0_0, %c0_1] : memref<1x33x256xbf16, #tpu.memory_space<vmem>>, vector<1x33x256xbf16>
    %1 = vector.shape_cast %0 : vector<1x33x256xbf16> to vector<33x256xbf16>
    %2 = vector.extract_strided_slice %1 {offsets = [0, 0], sizes = [29, 256], strides = [1, 1]} : vector<33x256xbf16> to vector<29x256xbf16>
    %c0_2 = arith.constant 0 : index
    %c0_3 = arith.constant 0 : index
    %c0_4 = arith.constant 0 : index
    %3 = vector.load %arg2[%c0_2, %c0_3, %c0_4] : memref<5x256x464xbf16, #tpu.memory_space<vmem>>, vector<1x256x464xbf16>
    %4 = vector.shape_cast %3 : vector<1x256x464xbf16> to vector<256x464xbf16>
    %cst = arith.constant dense<0.000000e+00> : vector<29x464xf32>
    %5 = tpu.matmul %2, %4, %cst {dimension_numbers = #tpu.dot_dimension_numbers<[1], [0], [0], [1], [0, 0, 1, 1], [], []>} : vector<29x256xbf16>, vector<256x464xbf16>, vector<29x464xf32> -> vector<29x464xf32>
    %6 = vector.extract_strided_slice %1 {offsets = [1, 0], sizes = [29, 256], strides = [1, 1]} : vector<33x256xbf16> to vector<29x256xbf16>
    %c1 = arith.constant 1 : index
    %c0_5 = arith.constant 0 : index
    %c0_6 = arith.constant 0 : index
    %7 = vector.load %arg2[%c1, %c0_5, %c0_6] : memref<5x256x464xbf16, #tpu.memory_space<vmem>>, vector<1x256x464xbf16>
    %8 = vector.shape_cast %7 : vector<1x256x464xbf16> to vector<256x464xbf16>
    %cst_7 = arith.constant dense<0.000000e+00> : vector<29x464xf32>
    %9 = tpu.matmul %6, %8, %cst_7 {dimension_numbers = #tpu.dot_dimension_numbers<[1], [0], [0], [1], [0, 0, 1, 1], [], []>} : vector<29x256xbf16>, vector<256x464xbf16>, vector<29x464xf32> -> vector<29x464xf32>
    %10 = arith.addf %5, %9 : vector<29x464xf32>
    %11 = vector.extract_strided_slice %1 {offsets = [2, 0], sizes = [29, 256], strides = [1, 1]} : vector<33x256xbf16> to vector<29x256xbf16>
    %c2 = arith.constant 2 : index
    %c0_8 = arith.constant 0 : index
    %c0_9 = arith.constant 0 : index
    %12 = vector.load %arg2[%c2, %c0_8, %c0_9] : memref<5x256x464xbf16, #tpu.memory_space<vmem>>, vector<1x256x464xbf16>
    %13 = vector.shape_cast %12 : vector<1x256x464xbf16> to vector<256x464xbf16>
    %cst_10 = arith.constant dense<0.000000e+00> : vector<29x464xf32>
    %14 = tpu.matmul %11, %13, %cst_10 {dimension_numbers = #tpu.dot_dimension_numbers<[1], [0], [0], [1], [0, 0, 1, 1], [], []>} : vector<29x256xbf16>, vector<256x464xbf16>, vector<29x464xf32> -> vector<29x464xf32>
    %15 = arith.addf %10, %14 : vector<29x464xf32>
    %16 = vector.extract_strided_slice %1 {offsets = [3, 0], sizes = [29, 256], strides = [1, 1]} : vector<33x256xbf16> to vector<29x256xbf16>
    %c3 = arith.constant 3 : index
    %c0_11 = arith.constant 0 : index
    %c0_12 = arith.constant 0 : index
    %17 = vector.load %arg2[%c3, %c0_11, %c0_12] : memref<5x256x464xbf16, #tpu.memory_space<vmem>>, vector<1x256x464xbf16>
    %18 = vector.shape_cast %17 : vector<1x256x464xbf16> to vector<256x464xbf16>
    %cst_13 = arith.constant dense<0.000000e+00> : vector<29x464xf32>
    %19 = tpu.matmul %16, %18, %cst_13 {dimension_numbers = #tpu.dot_dimension_numbers<[1], [0], [0], [1], [0, 0, 1, 1], [], []>} : vector<29x256xbf16>, vector<256x464xbf16>, vector<29x464xf32> -> vector<29x464xf32>
    %20 = arith.addf %15, %19 : vector<29x464xf32>
    %21 = vector.extract_strided_slice %1 {offsets = [4, 0], sizes = [29, 256], strides = [1, 1]} : vector<33x256xbf16> to vector<29x256xbf16>
    %c4 = arith.constant 4 : index
    %c0_14 = arith.constant 0 : index
    %c0_15 = arith.constant 0 : index
    %22 = vector.load %arg2[%c4, %c0_14, %c0_15] : memref<5x256x464xbf16, #tpu.memory_space<vmem>>, vector<1x256x464xbf16>
    %23 = vector.shape_cast %22 : vector<1x256x464xbf16> to vector<256x464xbf16>
    %cst_16 = arith.constant dense<0.000000e+00> : vector<29x464xf32>
    %24 = tpu.matmul %21, %23, %cst_16 {dimension_numbers = #tpu.dot_dimension_numbers<[1], [0], [0], [1], [0, 0, 1, 1], [], []>} : vector<29x256xbf16>, vector<256x464xbf16>, vector<29x464xf32> -> vector<29x464xf32>
    %25 = arith.addf %20, %24 : vector<29x464xf32>
    %c0_17 = arith.constant 0 : index
    %c0_18 = arith.constant 0 : index
    %26 = vector.load %arg3[%c0_17, %c0_18] : memref<1x464xf32, #tpu.memory_space<vmem>>, vector<1x464xf32>
    %27 = vector.broadcast %26 : vector<1x464xf32> to vector<29x464xf32>
    %28 = arith.addf %25, %27 : vector<29x464xf32>
    %cst_19 = arith.constant 0.000000e+00 : f32
    %29 = vector.broadcast %cst_19 : f32 to vector<29x464xf32>
    %30 = arith.maximumf %28, %29 : vector<29x464xf32>
    %31 = vector.extract_strided_slice %30 {offsets = [0, 0], sizes = [27, 464], strides = [1, 1]} : vector<29x464xf32> to vector<27x464xf32>
    %32 = vector.extract_strided_slice %30 {offsets = [1, 0], sizes = [27, 464], strides = [1, 1]} : vector<29x464xf32> to vector<27x464xf32>
    %33 = arith.maximumf %31, %32 : vector<27x464xf32>
    %34 = vector.extract_strided_slice %30 {offsets = [2, 0], sizes = [27, 464], strides = [1, 1]} : vector<29x464xf32> to vector<27x464xf32>
    %35 = arith.maximumf %33, %34 : vector<27x464xf32>
    %36 = arith.truncf %35 : vector<27x464xf32> to vector<27x464xbf16>
    %c0_20 = arith.constant 0 : index
    %c0_21 = arith.constant 0 : index
    %37 = vector.load %arg4[%c0_20, %c0_21] : memref<14x27xbf16, #tpu.memory_space<vmem>>, vector<14x27xbf16>
    %cst_22 = arith.constant dense<0.000000e+00> : vector<14x464xf32>
    %38 = tpu.matmul %37, %36, %cst_22 {dimension_numbers = #tpu.dot_dimension_numbers<[1], [0], [0], [1], [0, 0, 1, 1], [], []>} : vector<14x27xbf16>, vector<27x464xbf16>, vector<14x464xf32> -> vector<14x464xf32>
    %39 = arith.truncf %38 : vector<14x464xf32> to vector<14x464xbf16>
    %c0_23 = arith.constant 0 : index
    %c0_24 = arith.constant 0 : index
    %c0_25 = arith.constant 0 : index
    %40 = vector.load %arg5[%c0_23, %c0_24, %c0_25] : memref<3x464x256xbf16, #tpu.memory_space<vmem>>, vector<1x464x256xbf16>
    %41 = vector.shape_cast %40 : vector<1x464x256xbf16> to vector<464x256xbf16>
    %cst_26 = arith.constant dense<0.000000e+00> : vector<14x256xf32>
    %42 = tpu.matmul %39, %41, %cst_26 {dimension_numbers = #tpu.dot_dimension_numbers<[1], [0], [0], [1], [0, 0, 1, 1], [], []>} : vector<14x464xbf16>, vector<464x256xbf16>, vector<14x256xf32> -> vector<14x256xf32>
    %c1_27 = arith.constant 1 : index
    %c0_28 = arith.constant 0 : index
    %c0_29 = arith.constant 0 : index
    %43 = vector.load %arg5[%c1_27, %c0_28, %c0_29] : memref<3x464x256xbf16, #tpu.memory_space<vmem>>, vector<1x464x256xbf16>
    %44 = vector.shape_cast %43 : vector<1x464x256xbf16> to vector<464x256xbf16>
    %cst_30 = arith.constant dense<0.000000e+00> : vector<14x256xf32>
    %45 = tpu.matmul %39, %44, %cst_30 {dimension_numbers = #tpu.dot_dimension_numbers<[1], [0], [0], [1], [0, 0, 1, 1], [], []>} : vector<14x464xbf16>, vector<464x256xbf16>, vector<14x256xf32> -> vector<14x256xf32>
    %46 = arith.maximumf %42, %45 : vector<14x256xf32>
    %c2_31 = arith.constant 2 : index
    %c0_32 = arith.constant 0 : index
    %c0_33 = arith.constant 0 : index
    %47 = vector.load %arg5[%c2_31, %c0_32, %c0_33] : memref<3x464x256xbf16, #tpu.memory_space<vmem>>, vector<1x464x256xbf16>
    %48 = vector.shape_cast %47 : vector<1x464x256xbf16> to vector<464x256xbf16>
    %cst_34 = arith.constant dense<0.000000e+00> : vector<14x256xf32>
    %49 = tpu.matmul %39, %48, %cst_34 {dimension_numbers = #tpu.dot_dimension_numbers<[1], [0], [0], [1], [0, 0, 1, 1], [], []>} : vector<14x464xbf16>, vector<464x256xbf16>, vector<14x256xf32> -> vector<14x256xf32>
    %50 = arith.maximumf %46, %49 : vector<14x256xf32>
    %51 = arith.truncf %50 : vector<14x256xf32> to vector<14x256xbf16>
    %c0_35 = arith.constant 0 : index
    %c0_36 = arith.constant 0 : index
    %c0_37 = arith.constant 0 : index
    %52 = vector.load %arg6[%c0_35, %c0_36, %c0_37] : memref<1x14x256xbf16, #tpu.memory_space<vmem>>, vector<1x14x256xbf16>
    %53 = vector.shape_cast %52 : vector<1x14x256xbf16> to vector<14x256xbf16>
    %54 = vector.shape_cast %51 : vector<14x256xbf16> to vector<1x14x256xbf16>
    tpu.vector_store %arg6[%c0_35, %c0_36, %c0_37], %54 {strides = array<i32>} : memref<1x14x256xbf16, #tpu.memory_space<vmem>>, vector<1x14x256xbf16>,
    return
  }
  func.func @transform_0(%arg0: i32) -> (i32, i32, i32) {
    %c0_i32 = arith.constant 0 : i32
    %c0_i32_0 = arith.constant 0 : i32
    %c0_i32_1 = arith.constant 0 : i32
    return %arg0, %c0_i32, %c0_i32_0 : i32, i32, i32
  }
  func.func @transform_1(%arg0: i32) -> (i32, i32, i32) {
    %c0_i32 = arith.constant 0 : i32
    %c0_i32_0 = arith.constant 0 : i32
    %c0_i32_1 = arith.constant 0 : i32
    %c0_i32_2 = arith.constant 0 : i32
    return %c0_i32, %c0_i32_0, %c0_i32_1 : i32, i32, i32
  }
  func.func @transform_2(%arg0: i32) -> (i32, i32) {
    %c0_i32 = arith.constant 0 : i32
    %c0_i32_0 = arith.constant 0 : i32
    %c0_i32_1 = arith.constant 0 : i32
    return %c0_i32, %c0_i32_0 : i32, i32
  }
  func.func @transform_3(%arg0: i32) -> (i32, i32) {
    %c0_i32 = arith.constant 0 : i32
    %c0_i32_0 = arith.constant 0 : i32
    %c0_i32_1 = arith.constant 0 : i32
    return %c0_i32, %c0_i32_0 : i32, i32
  }
  func.func @transform_4(%arg0: i32) -> (i32, i32, i32) {
    %c0_i32 = arith.constant 0 : i32
    %c0_i32_0 = arith.constant 0 : i32
    %c0_i32_1 = arith.constant 0 : i32
    %c0_i32_2 = arith.constant 0 : i32
    return %c0_i32, %c0_i32_0, %c0_i32_1 : i32, i32, i32
  }
  func.func @transform_5(%arg0: i32) -> (i32, i32, i32) {
    %c0_i32 = arith.constant 0 : i32
    %c0_i32_0 = arith.constant 0 : i32
    %c0_i32_1 = arith.constant 0 : i32
    return %arg0, %c0_i32, %c0_i32_0 : i32, i32, i32
  }
}

module attributes {stable_mosaic.version = 11 : i64} {
  func.func @_fc_head_kernel(%arg0: memref<2x3584xbf16, #tpu.memory_space<vmem>>, %arg1: memref<3584x128xbf16, #tpu.memory_space<vmem>>, %arg2: memref<1x128xf32, #tpu.memory_space<vmem>>, %arg3: memref<128x128xbf16, #tpu.memory_space<vmem>>, %arg4: memref<1x128xf32, #tpu.memory_space<vmem>>, %arg5: memref<128x128xbf16, #tpu.memory_space<vmem>>, %arg6: memref<1x128xf32, #tpu.memory_space<vmem>>, %arg7: memref<2x128xf32, #tpu.memory_space<vmem>>) attributes {dimension_semantics = [], scalar_prefetch = 0 : i64, scratch_operands = 0 : i64, tpu.core_type = #tpu.core_type<tc>} {
    %c0 = arith.constant 0 : index
    %c0_0 = arith.constant 0 : index
    %0 = vector.load %arg0[%c0, %c0_0] : memref<2x3584xbf16, #tpu.memory_space<vmem>>, vector<2x3584xbf16>
    %c0_1 = arith.constant 0 : index
    %c0_2 = arith.constant 0 : index
    %1 = vector.load %arg1[%c0_1, %c0_2] : memref<3584x128xbf16, #tpu.memory_space<vmem>>, vector<3584x128xbf16>
    %cst = arith.constant dense<0.000000e+00> : vector<2x128xf32>
    %2 = tpu.matmul %0, %1, %cst {dimension_numbers = #tpu.dot_dimension_numbers<[1], [0], [0], [1], [0, 0, 1, 1], [], []>} : vector<2x3584xbf16>, vector<3584x128xbf16>, vector<2x128xf32> -> vector<2x128xf32>
    %c0_3 = arith.constant 0 : index
    %c0_4 = arith.constant 0 : index
    %3 = vector.load %arg2[%c0_3, %c0_4] : memref<1x128xf32, #tpu.memory_space<vmem>>, vector<1x128xf32>
    %4 = vector.broadcast %3 : vector<1x128xf32> to vector<2x128xf32>
    %5 = arith.addf %2, %4 : vector<2x128xf32>
    %cst_5 = arith.constant 0.000000e+00 : f32
    %6 = vector.broadcast %cst_5 : f32 to vector<2x128xf32>
    %7 = arith.maximumf %5, %6 : vector<2x128xf32>
    %8 = arith.truncf %7 : vector<2x128xf32> to vector<2x128xbf16>
    %c0_6 = arith.constant 0 : index
    %c0_7 = arith.constant 0 : index
    %9 = vector.load %arg3[%c0_6, %c0_7] : memref<128x128xbf16, #tpu.memory_space<vmem>>, vector<128x128xbf16>
    %cst_8 = arith.constant dense<0.000000e+00> : vector<2x128xf32>
    %10 = tpu.matmul %8, %9, %cst_8 {dimension_numbers = #tpu.dot_dimension_numbers<[1], [0], [0], [1], [0, 0, 1, 1], [], []>} : vector<2x128xbf16>, vector<128x128xbf16>, vector<2x128xf32> -> vector<2x128xf32>
    %c0_9 = arith.constant 0 : index
    %c0_10 = arith.constant 0 : index
    %11 = vector.load %arg4[%c0_9, %c0_10] : memref<1x128xf32, #tpu.memory_space<vmem>>, vector<1x128xf32>
    %12 = vector.broadcast %11 : vector<1x128xf32> to vector<2x128xf32>
    %13 = arith.addf %10, %12 : vector<2x128xf32>
    %cst_11 = arith.constant 0.000000e+00 : f32
    %14 = vector.broadcast %cst_11 : f32 to vector<2x128xf32>
    %15 = arith.maximumf %13, %14 : vector<2x128xf32>
    %16 = arith.truncf %15 : vector<2x128xf32> to vector<2x128xbf16>
    %c0_12 = arith.constant 0 : index
    %c0_13 = arith.constant 0 : index
    %17 = vector.load %arg5[%c0_12, %c0_13] : memref<128x128xbf16, #tpu.memory_space<vmem>>, vector<128x128xbf16>
    %cst_14 = arith.constant dense<0.000000e+00> : vector<2x128xf32>
    %18 = tpu.matmul %16, %17, %cst_14 {dimension_numbers = #tpu.dot_dimension_numbers<[1], [0], [0], [1], [0, 0, 1, 1], [], []>} : vector<2x128xbf16>, vector<128x128xbf16>, vector<2x128xf32> -> vector<2x128xf32>
    %c0_15 = arith.constant 0 : index
    %c0_16 = arith.constant 0 : index
    %19 = vector.load %arg6[%c0_15, %c0_16] : memref<1x128xf32, #tpu.memory_space<vmem>>, vector<1x128xf32>
    %20 = vector.broadcast %19 : vector<1x128xf32> to vector<2x128xf32>
    %21 = arith.addf %18, %20 : vector<2x128xf32>
    %cst_17 = arith.constant dense<0xFF800000> : vector<2xf32>
    %22 = vector.multi_reduction <maximumf>, %21, %cst_17 [1] : vector<2x128xf32> to vector<2xf32>
    %23 = vector.shape_cast %22 : vector<2xf32> to vector<2x1xf32>
    %24 = vector.broadcast %23 : vector<2x1xf32> to vector<2x128xf32>
    %25 = arith.subf %21, %24 : vector<2x128xf32>
    %26 = math.exp %25 : vector<2x128xf32>
    %cst_18 = arith.constant dense<0.000000e+00> : vector<2xf32>
    %27 = vector.multi_reduction <add>, %26, %cst_18 [1] : vector<2x128xf32> to vector<2xf32>
    %28 = vector.shape_cast %27 : vector<2xf32> to vector<2x1xf32>
    %29 = math.log %28 : vector<2x1xf32>
    %30 = vector.broadcast %29 : vector<2x1xf32> to vector<2x128xf32>
    %31 = arith.subf %25, %30 : vector<2x128xf32>
    %c0_19 = arith.constant 0 : index
    %c0_20 = arith.constant 0 : index
    %32 = vector.load %arg7[%c0_19, %c0_20] : memref<2x128xf32, #tpu.memory_space<vmem>>, vector<2x128xf32>
    tpu.vector_store %arg7[%c0_19, %c0_20], %31 {strides = array<i32>} : memref<2x128xf32, #tpu.memory_space<vmem>>, vector<2x128xf32>,
    return
  }
}

</mosaic_0001>

<bundles_post_ra>
// kernel: net_forward.3
= control target key start
LH: loop header
LB: loop body
LE: loop exit
PB: predicated region body
PF: predicated region fallthrough
CT: control target
= control target key end

     0   :  { %s5647_s18 = smov 0   ;;  %s7320_s0 = inlined_call_operand.vmem [shape: f32[2,66,256], index: 0, kind: input, shape index: {}]   ;;  %s7321_s1 = inlined_call_operand.vmem [shape: bf16[5,256,372], index: 1, kind: input, shape index: {}]   ;;  %s7322_s2 = inlined_call_operand.vmem [shape: f32[1,372], index: 2, kind: input, shape index: {}]   ;;  %s7323_s3 = inlined_call_operand.vmem [shape: bf16[33,61], index: 3, kind: input, shape index: {}]   ;;  %s7324_s4 = inlined_call_operand.vmem [shape: bf16[2,372,256], index: 4, kind: input, shape index: {}]   ;;  %s7325_s5 = inlined_call_operand.vmem [shape: bf16[2,33,256], index: 5, kind: output, shape index: {}]  }
   0x1 LB: > { %s4104_s19 = sadd.s32 4294967295, %s5611_s18   ;;  %p4108_p0 = scmp.ge.s32.totalorder %s5611_s18, 1  ;;  %s5611_s18 = sphi %s5647_s18, %s15_s18  }
   0x2   : > { %p187_p1 = scmp.lt.s32.totalorder %s5611_s18, 3 }
   0x4   : > { %p188_p2 = pnand %p4108_p0, %p187_p1 }
   0x5   : > { %v5124_v0 = vld [vmem:[%s7321_s1 + $0x184] ss:$12 sps:$4 sm:$0xff] (!%p188_p2)   ;;  %v5126_v1 = vld [vmem:[%s7321_s1 + $0x180] ss:$12 sps:$4 sm:$0xff] (!%p188_p2)   ;;  %v5127_v2 = vld [vmem:[%s7321_s1 + $0xc8] ss:$12 sps:$4 sm:$0xff] (!%p188_p2)  }
   0x6   : > { %191 = sbr.rel (%p188_p2) target bundleno = 1195 (0x4ab), region = 40  ;;  %710 = vmatprep.subr.bf16.mxu0 (!%p188_p2), %v5124_v0  ;;  %v5128_v3 = vld [vmem:[%s7321_s1 + $0x19c] ss:$12 sps:$4 sm:$0xff] (!%p188_p2)   ;;  %4819 = vmatprep.subr.bf16.mxu1 (!%p188_p2), %v5127_v2  ;;  %v5131_v5 = vld [vmem:[%s7321_s1 + $0x198] ss:$12 sps:$4 sm:$0xff] (!%p188_p2)   ;;  %p5693_p3 = scmp.lt.s32.totalorder (!%p188_p2), %s4104_s19, 1 }
   0x7   : > { %711 = vmatpush1.bf16.msra.mxu0 (!%p188_p2), %v5126_v1  ;;  %v5130_v4 = vld [vmem:[%s7321_s1 + $0x8] ss:$12 sps:$4 sm:$0xff] (!%p188_p2)   ;;  %v5132_v6 = vld [vmem:[%s7321_s1 + $0xe0] ss:$12 sps:$4 sm:$0xff] (!%p188_p2)   ;;  %v5136_v9 = vld [vmem:[%s7321_s1 + $0x1b0] ss:$12 sps:$4 sm:$0xff] (!%p188_p2)  }
   0x8   : > { %712 = vmatprep.subr.bf16.mxu0 (!%p188_p2), %v5128_v3  ;;  %4820 = vmatpush3.bf16.msra.mxu1 (!%p188_p2), %v5130_v4  ;;  %v5133_v7 = vld [vmem:[%s7321_s1 + $0x1b4] ss:$12 sps:$4 sm:$0xff] (!%p188_p2)   ;;  %v5137_v10 = vld [vmem:[%s7321_s1 + $0xf8] ss:$12 sps:$4 sm:$0xff] (!%p188_p2)   ;;  %v5142_v14 = vld [vmem:[%s7321_s1 + $0x110] ss:$12 sps:$4 sm:$0xff] (!%p188_p2)  }
   0x9   : > { %4821 = vmatprep.subr.bf16.mxu1 (!%p188_p2), %v5132_v6  ;;  %v5135_v8 = vld [vmem:[%s7321_s1 + $0x20] ss:$12 sps:$4 sm:$0xff] (!%p188_p2)   ;;  %v5140_v12 = vld [vmem:[%s7321_s1 + $0x38] ss:$12 sps:$4 sm:$0xff] (!%p188_p2)   ;;  %v5141_v13 = vld [vmem:[%s7321_s1 + $0x1c8] ss:$12 sps:$4 sm:$0xff] (!%p188_p2)  }
   0xa   : > { %v5138_v11 = vld [vmem:[%s7321_s1 + $0x1cc] ss:$12 sps:$4 sm:$0xff] (!%p188_p2)   ;;  %v5143_v15 = vld [vmem:[%s7321_s1 + $0x1e4] ss:$12 sps:$4 sm:$0xff] (!%p188_p2)   ;;  %v5147_v18 = vld [vmem:[%s7321_s1 + $0x128] ss:$12 sps:$4 sm:$0xff] (!%p188_p2)  }
   0xb   : > { %713 = vmatpush1.bf16.msra.mxu0 (!%p188_p2), %v5131_v5  ;;  %v5145_v16 = vld [vmem:[%s7321_s1 + $0x50] ss:$12 sps:$4 sm:$0xff] (!%p188_p2)   ;;  %v5146_v17 = vld [vmem:[%s7321_s1 + $0x1e0] ss:$12 sps:$4 sm:$0xff] (!%p188_p2)   ;;  %v5150_v20 = vld [vmem:[%s7321_s1 + $0x68] ss:$12 sps:$4 sm:$0xff] (!%p188_p2)  }
   0xc   : > { %714 = vmatprep.subr.bf16.mxu0 (!%p188_p2), %v5133_v7  ;;  %4822 = vmatpush3.bf16.msra.mxu1 (!%p188_p2), %v5135_v8  ;;  %v5148_v19 = vld [vmem:[%s7321_s1 + $0x1fc] ss:$12 sps:$4 sm:$0xff] (!%p188_p2)   ;;  %v5151_v21 = vld [vmem:[%s7321_s1 + $0x1f8] ss:$12 sps:$4 sm:$0xff] (!%p188_p2)   ;;  %v5152_v22 = vld [vmem:[%s7321_s1 + $0x140] ss:$12 sps:$4 sm:$0xff] (!%p188_p2)  }
   0xd   : > { %4823 = vmatprep.subr.bf16.mxu1 %v5137_v10  ;;  %s7328_s19 = smov (!%p5693_p3, %s4104_s19), 1  ;;  %v5153_v23 = vld [vmem:[%s7321_s1 + $0x214] ss:$12 sps:$4 sm:$0xff]   ;;  %v5156_v25 = vld [vmem:[%s7321_s1 + $0x210] ss:$12 sps:$4 sm:$0xff]   ;;  %vm1315_vm1 = vcmask 1046528  }
   0xe   : > { %s5110_s21 = smul.u32 144, %s7328_s19  ;;  %v5155_v24 = vld [vmem:[%s7321_s1 + $0x80] ss:$12 sps:$4 sm:$0xff]   ;;  %v5157_v26 = vld [vmem:[%s7321_s1 + $0x158] ss:$12 sps:$4 sm:$0xff]   ;;  %vm2355_vm3 = vcmask 1045504  }
   0xf   : > { %715 = vmatpush1.bf16.msra.mxu0 %v5136_v9  ;;  %v5158_v27 = vld [vmem:[%s7321_s1 + $0x22c] ss:$12 sps:$4 sm:$0xff]   ;;  %v5161_v29 = vld [vmem:[%s7321_s1 + $0x228] ss:$12 sps:$4 sm:$0xff]   ;;  %v5162_v30 = vld [vmem:[%s7321_s1 + $0x170] ss:$12 sps:$4 sm:$0xff]  }
  0x10   : > { %716 = vmatprep.subr.bf16.mxu0 %v5138_v11  ;;  %4824 = vmatpush3.bf16.msra.mxu1 %v5140_v12  ;;  %v5160_v28 = vld [vmem:[%s7321_s1 + $0x98] ss:$12 sps:$4 sm:$0xff]   ;;  %s5758_s11 = scalar_lea.vmem %s7320_s0, %s5110_s21  ;;  %v5165_v32 = vld [vmem:[%s7321_s1 + $0xb0] ss:$12 sps:$4 sm:$0xff]   ;;  %v5166_v35 = vld [vmem:[%s7321_s1 + $0x240] ss:$12 sps:$4 sm:$0xff]  }
  0x11   : > { %4825 = vmatprep.subr.bf16.mxu1 %v5142_v14  ;;  %v5163_v31 = vld [vmem:[%s7321_s1 + $0x244] ss:$12 sps:$4 sm:$0xff]   ;;  %v227_v33 = vld [vmem:[%s5758_s11 + $0x8] sm:$0xff]  ;;  %v229_v34 = vld [vmem:[%s5758_s11 + $0x18] sm:$0xff]  ;;  %vm383_vm0 = vsmask.f32 7424 }
  0x12   : > { %v5777_v36 = vpack.c.bf16 %v229_v34, %v227_v33  ;;  %v226_v37 = vld [vmem:[%s5758_s11] sm:$0xff]  ;;  %v228_v38 = vld [vmem:[%s5758_s11 + $0x10] sm:$0xff]  ;;  %v5168_v40 = vld [vmem:[%s7321_s1 + $0x25c] ss:$12 sps:$4 sm:$0xff]   ;;  %vm1821_vm2 = vsmask.f32 6400 }
  0x13   : > { %717 = vmatpush1.bf16.msra.mxu0 %v5141_v13  ;;  %v5167_v39 = vld [vmem:[%s7321_s1 + $0x3c8] ss:$12 sps:$4 sm:$0xff]   ;;  %v5788_v41 = vpack.c.bf16 %v228_v38, %v226_v37  ;;  %v5171_v43 = vld [vmem:[%s7321_s1 + $0x258] ss:$12 sps:$4 sm:$0xff]   ;;  %v5172_v45 = vld [vmem:[%s7321_s1 + $0x3e0] ss:$12 sps:$4 sm:$0xff]  }
  0x14   : > { %718 = vmatprep.subr.bf16.mxu0 %v5143_v15  ;;  %4826 = vmatpush3.bf16.msra.mxu1 %v5145_v16  ;;  %v5170_v42 = vld [vmem:[%s7321_s1 + $0x308] ss:$12 sps:$4 sm:$0xff]   ;;  %v399_v44 = vshll.u32 %v5777_v36, 16  ;;  %v5175_v47 = vld [vmem:[%s7321_s1 + $0x320] ss:$12 sps:$4 sm:$0xff]   ;;  %v233_v49 = vld [vmem:[%s5758_s11 + $0x38] sm:$0xff] }
  0x15   : > { %4827 = vmatprep.subr.bf16.mxu1 %v5147_v18  ;;  %1209 = vmatprep.mubr.bf16.mxu1 %v5777_v36  ;;  %v5173_v46 = vld [vmem:[%s7321_s1 + $0x274] ss:$12 sps:$4 sm:$0xff]   ;;  %v231_v48 = vld [vmem:[%s5758_s11 + $0x28] sm:$0xff]  ;;  %v5176_v50 = vld [vmem:[%s7321_s1 + $0x270] ss:$12 sps:$4 sm:$0xff]   ;;  %v397_v54 = vshrl.u32 %v5777_v36, 16 }
  0x16   : > { %v5812_v51 = vpack.c.bf16 %v233_v49, %v231_v48  ;;  %v230_v52 = vld [vmem:[%s5758_s11 + $0x20] sm:$0xff]  ;;  %v232_v53 = vld [vmem:[%s5758_s11 + $0x30] sm:$0xff]  ;;  %v401_v55 = vrot.slane %v399_v44, 1  ;;  %v5178_v57 = vld [vmem:[%s7321_s1 + $0x28c] ss:$12 sps:$4 sm:$0xff]   ;;  %v387_v5 = vshll.u32 %v5788_v41, 16 }
  0x17   : > { %719 = vmatpush1.bf16.msra.mxu0 %v5146_v17  ;;  %v5177_v56 = vld [vmem:[%s7321_s1 + $0x3f8] ss:$12 sps:$4 sm:$0xff]   ;;  %v5826_v58 = vpack.c.bf16 %v232_v53, %v230_v52  ;;  %v5181_v61 = vld [vmem:[%s7321_s1 + $0x288] ss:$12 sps:$4 sm:$0xff]   ;;  %v5182_v63 = vld [vmem:[%s7321_s1 + $0x410] ss:$12 sps:$4 sm:$0xff]  }
  0x18   : > { %720 = vmatprep.subr.bf16.mxu0 %v5148_v19  ;;  %4828 = vmatpush3.bf16.msra.mxu1 %v5150_v20  ;;  %v5180_v59 = vld [vmem:[%s7321_s1 + $0x338] ss:$12 sps:$4 sm:$0xff]   ;;  %v404_v60 = vshll.u32 %v5812_v51, 16  ;;  %v402_v62 = vor.u32 %v401_v55, %v397_v54  ;;  %v5185_v1 = vld [vmem:[%s7321_s1 + $0x350] ss:$12 sps:$4 sm:$0xff]   ;;  %v235_v2 = vld [vmem:[%s5758_s11 + $0x48] sm:$0xff] }
  0x19   : > { %4829 = vmatprep.subr.bf16.mxu1 %v5152_v22  ;;  %v5183_v0 = vld [vmem:[%s7321_s1 + $0x2a4] ss:$12 sps:$4 sm:$0xff]   ;;  %v237_v3 = vld [vmem:[%s5758_s11 + $0x58] sm:$0xff]  ;;  %v5186_v6 = vld [vmem:[%s7321_s1 + $0x2a0] ss:$12 sps:$4 sm:$0xff]   ;;  %v392_v9 = vshll.u32 %v5826_v58, 16 }
  0x1a   : > { %v5850_v4 = vrot.slane %v404_v60, 1  ;;  %v5857_v7 = vpack.c.bf16 %v237_v3, %v235_v2  ;;  %v234_v8 = vld [vmem:[%s5758_s11 + $0x40] sm:$0xff]  ;;  %v236_v10 = vld [vmem:[%s5758_s11 + $0x50] sm:$0xff]  ;;  %v385_v12 = vshrl.u32 %v5788_v41, 16  ;;  %v5188_v14 = vld [vmem:[%s7321_s1 + $0x2bc] ss:$12 sps:$4 sm:$0xff]  }
  0x1b   : > { %721 = vmatpush1.bf16.msra.mxu0 %v5151_v21  ;;  %v5187_v13 = vld [vmem:[%s7321_s1 + $0x428] ss:$12 sps:$4 sm:$0xff]   ;;  %v389_v15 = vrot.slane %v387_v5, 1  ;;  %v1319_v16 = vrot.slane %v5777_v36, 1  ;;  %v5877_v17 = vpack.c.bf16 %v236_v10, %v234_v8  ;;  %v5885_v19 = vrot.slane %v392_v9, 1  ;;  %s5111_s27 = smul.u32 40, %s7328_s19 }
  0x1c   : > { %722 = vmatprep.subr.bf16.mxu0 %v5153_v23  ;;  %4830 = vmatpush3.bf16.msra.mxu1 %v5155_v24  ;;  %v5864_v11 = vsel %vm383_vm0, %v402_v62, %v5850_v4  ;;  %v5190_v18 = vld [vmem:[%s7321_s1 + $0x368] ss:$12 sps:$4 sm:$0xff]   ;;  %v5191_v20 = vld [vmem:[%s7321_s1 + $0x2b8] ss:$12 sps:$4 sm:$0xff]   ;;  %v1320_v21 = vrot.slane %v5812_v51, 1  ;;  %v416_v34 = vshrl.u32 %v5812_v51, 16 }
  0x1d   : > { %4831 = vmatprep.subr.bf16.mxu1 %v5157_v26  ;;  %742 = vmatprep.mubr.bf16.mxu0 %v5864_v11  ;;  %v5192_v22 = vld [vmem:[%s7321_s1 + $0x440] ss:$12 sps:$4 sm:$0xff]   ;;  %v241_v26 = vld [vmem:[%s5758_s11 + $0x78] sm:$0xff]  ;;  %v240_v33 = vld [vmem:[%s5758_s11 + $0x70] sm:$0xff]  ;;  %v408_v37 = vshrl.u32 %v5826_v58, 16  ;;  %v412_v38 = vshll.u32 %v5877_v17, 16  ;;  %v390_v48 = vor.u32 %v389_v15, %v385_v12  ;;  %s7309_s30 = scalar_lea.vmem %s7325_s5, %s5111_s27 }
  0x1e   : > { %v5193_v23 = vld [vmem:[%s7321_s1 + $0x2d4] ss:$12 sps:$4 sm:$0xff]   ;;  %v5204_v52 = vld [vmem:[%s7321_s1 + $0x3b0] ss:$12 sps:$4 sm:$0xff]   ;;  %v418_v55 = vor.u32 %v416_v34, %v5850_v4  ;;  %v1322_v3 = vrot.slane %v5877_v17, 1  ;;  %vm3013_vm4 = vcmask 498688  }
  0x1f   : > { %723 = vmatpush1.bf16.msra.mxu0 %v5156_v25  ;;  %v5195_v24 = vld [vmem:[%s7321_s1 + $0x380] ss:$12 sps:$4 sm:$0xff]   ;;  %v5203_v49 = vld [vmem:[%s7321_s1 + $0x248] ss:$12 sps:$4 sm:$0xff]   ;;  %v414_v2 = vrot.slane %v412_v38, 1  ;;  %v410_v4 = vor.u32 %v408_v37, %v5885_v19  ;;  %vm5616_vm5 = vmmov 0  }
  0x20   : > { %724 = vmatprep.subr.bf16.mxu0 %v5158_v27  ;;  %4832 = vmatpush3.bf16.msra.mxu1 %v5160_v28  ;;  %v239_v25 = vld [vmem:[%s5758_s11 + $0x68] sm:$0xff]  ;;  %v238_v27 = vld [vmem:[%s5758_s11 + $0x60] sm:$0xff]  ;;  %v1316_v28 = vrot.slane %v5788_v41, 1  ;;  %vm3453_vm6 = vcmask 1041408   ;;  %vm3443_vm7 = vcmask 949248   ;;  %vm4039_vm8 = vcmask 1040384  }
  0x21   : > { %4833 = vmatprep.subr.bf16.mxu1 %v5162_v30  ;;  %v420_v30 = vshll.u32 %v5857_v7, 16  ;;  %v5205_v53 = vld [vmem:[%s7321_s1 + $0x188] ss:$12 sps:$4 sm:$0xff]   ;;  %v5209_v62 = vld [vmem:[%s7321_s1 + $0x1a0] ss:$12 sps:$4 sm:$0xff]   ;;  %v6018_v15 = vsel %vm383_vm0, %v410_v4, %v414_v2  ;;  %vm4042_vm10 = vcmask 1044484  }
  0x22   : > { %v5212_v10 = vld [vmem:[%s7321_s1 + $0x4a0] ss:$12 sps:$4 sm:$0xff]   ;;  %v5230_v4 = vld [vmem:[%s7321_s1 + $0x5d8] ss:$12 sps:$4 sm:$0xff]   ;;  %vm4040_vm9 = vsmask.f32 256 }
  0x23   : > { %725 = vmatpush1.bf16.msra.mxu0 %v5161_v29  ;;  %v1317_v29 = vrot.slane %v5826_v58, 1  ;;  %vm4043_vm11 = vsmask.f32 4352  ;;  %vm4041_vm12 = vmand %vm4039_vm8, %vm4040_vm9 }
  0x24   : > { %726 = vmatprep.subr.bf16.mxu0 %v5163_v31  ;;  %4834 = vmatpush3.bf16.msra.mxu1 %v5165_v32  ;;  %v5196_v31 = vld [vmem:[%s7321_s1 + $0x2d0] ss:$12 sps:$4 sm:$0xff]   ;;  %v5910_v32 = vpack.c.bf16 %v241_v26, %v239_v25  ;;  %vm4044_vm13 = vmand %vm4042_vm10, %vm4043_vm11 }
  0x25   : > { %4859 = vmatprep.subr.bf16.mxu1 %v5167_v39  ;;  %v5921_v39 = vrot.slane %v420_v30, 1  ;;  %vm4045_vm14 = vmor %vm4044_vm13, %vm4041_vm12 }
  0x27   : > { %727 = vmatpush1.bf16.msra.mxu0 %v5166_v35  ;;  %1210 = vmatmul.mubr.bf16.vlgmr.msra.gmra.mrb[0].mxu1 %v5788_v41  ;;  %v5197_v35 = vld [vmem:[%s7321_s1 + $0x458] ss:$12 sps:$4 sm:$0xff]  }
  0x28   : > { %728 = vmatprep.subr.bf16.mxu0 %v5168_v40  ;;  %4860 = vmatpush3.bf16.msra.mxu1 %v5170_v42  ;;  %v1324_v40 = vrot.slane %v5857_v7, 1  ;;  %v5198_v42 = vld [vmem:[%s7321_s1 + $0x2ec] ss:$12 sps:$4 sm:$0xff]  }
  0x29   : > { %4861 = vmatprep.subr.bf16.mxu1 %v5172_v45  ;;  %1217 = vmatprep.mubr.bf16.mxu1 %v5812_v51  ;;  %v5931_v45 = vpack.c.bf16 %v240_v33, %v238_v27 }
  0x2a   : > { %v6003_v8 = vsel %vm1315_vm1, %v1320_v21, %v1324_v40 }
  0x2b   : > { %729 = vmatpush1.bf16.msra.mxu0 %v5171_v43  ;;  %v5200_v43 = vld [vmem:[%s7321_s1 + $0x398] ss:$12 sps:$4 sm:$0xff]   ;;  %v428_v25 = vshll.u32 %v5931_v45, 16 }
  0x2c   : > { %730 = vmatprep.subr.bf16.mxu0 %v5173_v46  ;;  %4862 = vmatpush3.bf16.msra.mxu1 %v5175_v47  ;;  %v5201_v46 = vld [vmem:[%s7321_s1 + $0x2e8] ss:$12 sps:$4 sm:$0xff]   ;;  %v5202_v47 = vld [vmem:[%s7321_s1 + $0x470] ss:$12 sps:$4 sm:$0xff]  }
  0x2d   : > { %4863 = vmatprep.subr.bf16.mxu1 %v5177_v56  ;;  %v5206_v56 = vld [vmem:[%s7321_s1 + $0x548] ss:$12 sps:$4 sm:$0xff]   ;;  %v430_v33 = vrot.slane %v428_v25, 1 }
  0x2f   : > { %731 = vmatpush1.bf16.msra.mxu0 %v5176_v50  ;;  %1218 = vmatmul.mubr.bf16.gmra.mrb[4].mxu1 %v5826_v58  ;;  %v5947_v50 = vsel %vm1315_vm1, %v1319_v16, %v1320_v21  ;;  %v5215_v16 = vld [vmem:[%s7321_s1 + $0x290] ss:$12 sps:$4 sm:$0xff]   ;;  %v436_v21 = vshll.u32 %v5910_v32, 16 }
  0x30   : > { %732 = vmatprep.subr.bf16.mxu0 %v5178_v57  ;;  %4864 = vmatpush3.bf16.msra.mxu1 %v5180_v59  ;;  %v5965_v57 = vsel %vm383_vm0, %v390_v48, %v5885_v19  ;;  %v5207_v59 = vld [vmem:[%s7321_s1 + $0x260] ss:$12 sps:$4 sm:$0xff]   ;;  %v5217_v19 = vld [vmem:[%s7321_s1 + $0x1d0] ss:$12 sps:$4 sm:$0xff]   ;;  %v5222_v48 = vld [vmem:[%s7321_s1 + $0x5a8] ss:$12 sps:$4 sm:$0xff]  }
  0x31   : > { %4865 = vmatprep.subr.bf16.mxu1 %v5182_v63  ;;  %1225 = vmatprep.mubr.bf16.mxu1 %v5857_v7  ;;  %v5978_v63 = vsel %vm383_vm0, %v418_v55, %v5921_v39  ;;  %v438_v27 = vrot.slane %v436_v21, 1  ;;  %v443_v55 = vshrl.u32 %v5910_v32, 16 }
  0x33   : > { %733 = vmatpush1.bf16.msra.mxu0 %v5181_v61  ;;  %v5208_v61 = vld [vmem:[%s7321_s1 + $0x488] ss:$12 sps:$4 sm:$0xff]  }
  0x34   : > { %734 = vmatprep.subr.bf16.mxu0 %v5183_v0  ;;  %4866 = vmatpush3.bf16.msra.mxu1 %v5185_v1  ;;  %v5210_v0 = vld [vmem:[%s7321_s1 + $0x560] ss:$12 sps:$4 sm:$0xff]   ;;  %v5987_v1 = vsel %vm1315_vm1, %v1316_v28, %v1317_v29  ;;  %v5219_v28 = vld [vmem:[%s7321_s1 + $0x2a8] ss:$12 sps:$4 sm:$0xff]  }
  0x35   : > { %4867 = vmatprep.subr.bf16.mxu1 %v5187_v13  ;;  %v5213_v13 = vld [vmem:[%s7321_s1 + $0x1b8] ss:$12 sps:$4 sm:$0xff]  }
  0x37   : > { %735 = vmatpush1.bf16.msra.mxu0 %v5186_v6  ;;  %1226 = vmatmul.mubr.bf16.gmra.mrb[8].mxu1 %v5877_v17  ;;  %v5211_v6 = vld [vmem:[%s7321_s1 + $0x278] ss:$12 sps:$4 sm:$0xff]  }
  0x38   : > { %736 = vmatprep.subr.bf16.mxu0 %v5188_v14  ;;  %4868 = vmatpush3.bf16.msra.mxu1 %v5190_v18  ;;  %v5214_v14 = vld [vmem:[%s7321_s1 + $0x578] ss:$12 sps:$4 sm:$0xff]  }
  0x39   : > { %4869 = vmatprep.subr.bf16.mxu1 %v5192_v22  ;;  %1233 = vmatprep.mubr.bf16.mxu1 %v5910_v32  ;;  %v5216_v18 = vld [vmem:[%s7321_s1 + $0x4b8] ss:$12 sps:$4 sm:$0xff]   ;;  %v6035_v22 = vsel %vm1315_vm1, %v1317_v29, %v1322_v3  ;;  %v6051_v29 = vrot.slane %v5910_v32, 1 }
  0x3b   : > { %737 = vmatpush1.bf16.msra.mxu0 %v5191_v20  ;;  %v432_v20 = vshrl.u32 %v5857_v7, 16 }
  0x3c   : > { %738 = vmatprep.subr.bf16.mxu0 %v5193_v23  ;;  %4870 = vmatpush3.bf16.msra.mxu1 %v5195_v24  ;;  %v5218_v23 = vld [vmem:[%s7321_s1 + $0x590] ss:$12 sps:$4 sm:$0xff]   ;;  %v424_v24 = vshrl.u32 %v5877_v17, 16 }
  0x3d   : > { %4871 = vmatprep.subr.bf16.mxu1 %v5197_v35  ;;  %v434_v26 = vor.u32 %v432_v20, %v5921_v39  ;;  %v6058_v35 = vrot.slane %v5931_v45, 1 }
  0x3f   : > { %739 = vmatpush1.bf16.msra.mxu0 %v5196_v31  ;;  %1234 = vmatmul.mubr.bf16.gmra.mrb[12].mxu1 %v5931_v45  ;;  %v426_v31 = vor.u32 %v424_v24, %v414_v2  ;;  %v6062_v39 = vsel %vm383_vm0, %v434_v26, %v438_v27  ;;  %v5227_v2 = vld [vmem:[%s7321_s1 + $0x2d8] ss:$12 sps:$4 sm:$0xff]  }
  0x40   : > { %740 = vmatprep.subr.bf16.mxu0 %v5198_v42  ;;  %4872 = vmatpush3.bf16.msra.mxu1 %v5200_v43  ;;  %v5220_v42 = vld [vmem:[%s7321_s1 + $0x4d0] ss:$12 sps:$4 sm:$0xff]   ;;  %v6071_v43 = vsel %vm1315_vm1, %v1324_v40, %v6051_v29  ;;  %v5223_v40 = vld [vmem:[%s7321_s1 + $0x2c0] ss:$12 sps:$4 sm:$0xff]  }
  0x41   : > { %1699 = vmatprep.mubr.bf16.mxu1 %v5947_v50  ;;  %4873 = vmatprep.subr.bf16.mxu1 %v5202_v47  ;;  %v6078_v47 = vsel %vm383_vm0, %v426_v31, %v430_v33 }
  0x43   : > { %741 = vmatpush1.bf16.msra.mxu0 %v5201_v46  ;;  %v5221_v46 = vld [vmem:[%s7321_s1 + $0x1e8] ss:$12 sps:$4 sm:$0xff]  }
  0x44   : > { %4779 = vmatprep.subr.bf16.mxu0 %v5203_v49  ;;  %4874 = vmatpush3.bf16.msra.mxu1 %v5204_v52  ;;  %v5224_v49 = vld [vmem:[%s7321_s1 + $0x4e8] ss:$12 sps:$4 sm:$0xff]   ;;  %v6093_v52 = vsel %vm1315_vm1, %v1322_v3, %v6058_v35  ;;  %v5228_v3 = vld [vmem:[%s7321_s1 + $0x500] ss:$12 sps:$4 sm:$0xff]  }
  0x45   : > { %4899 = vmatprep.subr.bf16.mxu1 %v5206_v56  ;;  %v440_v56 = vshrl.u32 %v5931_v45, 16 }
  0x46   : > { %743 = vmatmul.mubr.bf16.vlgmr.msra.gmra.mrb[0].mxu0 %v5965_v57 }
  0x47   : > { %4780 = vmatpush3.bf16.msra.mxu0 %v5205_v53  ;;  %752 = vmatprep.mubr.bf16.mxu0 %v5978_v63  ;;  %v5225_v53 = vld [vmem:[%s7321_s1 + $0x200] ss:$12 sps:$4 sm:$0xff]  }
  0x48   : > { %4781 = vmatprep.subr.bf16.mxu0 %v5207_v59  ;;  %1700 = vmatmul.mubr.bf16.vlgmr.msra.gmra.mrb[16].mxu1 %v5987_v1  ;;  %v5226_v59 = vld [vmem:[%s7321_s1 + $0x5c0] ss:$12 sps:$4 sm:$0xff]  }
  0x49   : > { %4900 = vmatpush3.bf16.msra.mxu1 %v5208_v61  ;;  %1707 = vmatprep.mubr.bf16.mxu1 %v6003_v8  ;;  %v1826_v61 = vrot.slane %v392_v9, 2  ;;  %v6119_v9 = vor.u32 %v440_v56, %v430_v33 }
  0x4a   : > { %4901 = vmatprep.subr.bf16.mxu1 %v5210_v0  ;;  %v6107_v0 = vor.u32 %v443_v55, %v438_v27 }
  0x4b   : > { %4782 = vmatpush3.bf16.msra.mxu0 %v5209_v62  ;;  %v1825_v62 = vrot.slane %v408_v37, 1  ;;  %v5229_v37 = vld [vmem:[%s7321_s1 + $0x218] ss:$12 sps:$4 sm:$0xff]  }
  0x4c   : > { %4783 = vmatprep.subr.bf16.mxu0 %v5211_v6  ;;  %v5231_v6 = vld [vmem:[%s7321_s1 + $0x2f0] ss:$12 sps:$4 sm:$0xff]  }
  0x4d   : > { %4902 = vmatpush3.bf16.msra.mxu1 %v5212_v10  ;;  %v5232_v10 = vld [vmem:[%s7321_s1 + $0x518] ss:$12 sps:$4 sm:$0xff]   ;;  %v1827_v26 = vor.u32 %v1826_v61, %v1825_v62  ;;  %v1837_v61 = vrot.slane %v412_v38, 2  ;;  %v5245_v62 = vld [vmem:[%s7321_s1 + $0x30] ss:$12 sps:$4 sm:$0xff]  }
  0x4e   : > { %753 = vmatmul.mubr.bf16.gmra.mrb[4].mxu0 %v6018_v15  ;;  %4903 = vmatprep.subr.bf16.mxu1 %v5214_v14  ;;  %v5234_v14 = vld [vmem:[%s7321_s1 + $0x5f0] ss:$12 sps:$4 sm:$0xff]  }
  0x4f   : > { %4784 = vmatpush3.bf16.msra.mxu0 %v5213_v13  ;;  %762 = vmatprep.mubr.bf16.mxu0 %v6062_v39  ;;  %v5233_v13 = vld [vmem:[%s7321_s1 + $0x230] ss:$12 sps:$4 sm:$0xff]  }
  0x50   : > { %4785 = vmatprep.subr.bf16.mxu0 %v5215_v16  ;;  %1708 = vmatmul.mubr.bf16.gmra.mrb[20].mxu1 %v6035_v22  ;;  %v1822_v16 = vrot.slane %v385_v12, 1  ;;  %v5238_v12 = vld [vmem:[%s7321_s1 + $0x530] ss:$12 sps:$4 sm:$0xff]  }
  0x51   : > { %4904 = vmatpush3.bf16.msra.mxu1 %v5216_v18  ;;  %1715 = vmatprep.mubr.bf16.mxu1 %v6071_v43  ;;  %v1829_v18 = vrot.slane %v397_v54, 1  ;;  %v1833_v54 = vrot.slane %v404_v60, 2  ;;  %v5242_v60 = vld [vmem:[%s7321_s1 + $0x1c] ss:$12 sps:$4 sm:$0xff]  }
  0x52   : > { %4905 = vmatprep.subr.bf16.mxu1 %v5218_v23  ;;  %v5237_v23 = vld [vmem:[%s7321_s1 + $0x4] ss:$12 sps:$4 sm:$0xff]  }
  0x53   : > { %4786 = vmatpush3.bf16.msra.mxu0 %v5217_v19  ;;  %v1830_v19 = vrot.slane %v399_v44, 2  ;;  %v1823_v44 = vrot.slane %v387_v5, 2  ;;  %v5240_v5 = vld [vmem:[%s7321_s1 + $0x18] ss:$12 sps:$4 sm:$0xff]  }
  0x54   : > { %4787 = vmatprep.subr.bf16.mxu0 %v5219_v28  ;;  %v5235_v28 = vld [vmem:[%s7321_s1] ss:$12 sps:$4 sm:$0xff]  }
  0x55   : > { %4906 = vmatpush3.bf16.msra.mxu1 %v5220_v42  ;;  %v1831_v27 = vor.u32 %v1830_v19, %v1829_v18  ;;  %v1824_v33 = vor.u32 %v1823_v44, %v1822_v16  ;;  %v5239_v42 = vld [vmem:[%s7321_s1 + $0x6c8] ss:$12 sps:$4 sm:$0xff]   ;;  %v5257_v16 = vld [vmem:[%s7321_s1 + $0x64] ss:$12 sps:$4 sm:$0xff]   ;;  %v242_v44 = vld [vmem:[%s5758_s11 + $0x80] sm:$0x3] }
  0x56   : > { %763 = vmatmul.mubr.bf16.gmra.mrb[8].mxu0 %v6078_v47  ;;  %4907 = vmatprep.subr.bf16.mxu1 %v5222_v48  ;;  %v5262_v19 = vld [vmem:[%s7321_s1 + $0x7c] ss:$12 sps:$4 sm:$0xff]  }
  0x57   : > { %4788 = vmatpush3.bf16.msra.mxu0 %v5221_v46  ;;  %772 = vmatprep.mubr.bf16.mxu0 %v6107_v0  ;;  %v1840_v46 = vrot.slane %v432_v20, 1  ;;  %v5244_v20 = vld [vmem:[%s7321_s1 + $0x6e0] ss:$12 sps:$4 sm:$0xff]  }
  0x58   : > { %4789 = vmatprep.subr.bf16.mxu0 %v5223_v40  ;;  %1716 = vmatmul.mubr.bf16.gmra.mrb[24].mxu1 %v6093_v52  ;;  %v6180_v40 = vsel %vm1821_vm2, %v1824_v33, %v1827_v26  ;;  %v2360_v33 = vrot.slane %v5812_v51, 2 }
  0x59   : > { %4908 = vmatpush3.bf16.msra.mxu1 %v5224_v49  ;;  %1723 = vmatprep.mubr.bf16.mxu1 %v6051_v29  ;;  %v5243_v49 = vld [vmem:[%s7321_s1 + $0x608] ss:$12 sps:$4 sm:$0xff]  }
  0x5a   : > { %4909 = vmatprep.subr.bf16.mxu1 %v5226_v59 }
  0x5b   : > { %4790 = vmatpush3.bf16.msra.mxu0 %v5225_v53  ;;  %v1836_v53 = vrot.slane %v424_v24, 1  ;;  %v1849_v24 = vrot.slane %v436_v21, 2  ;;  %v5252_v21 = vld [vmem:[%s7321_s1 + $0x4c] ss:$12 sps:$4 sm:$0xff]  }
  0x5c   : > { %4791 = vmatprep.subr.bf16.mxu0 %v5227_v2 }
  0x5d   : > { %4910 = vmatpush3.bf16.msra.mxu1 %v5228_v3  ;;  %v1838_v38 = vor.u32 %v1837_v61, %v1836_v53  ;;  %v5274_v61 = vld [vmem:[%s7321_s1 + $0x770] ss:$12 sps:$4 sm:$0xff]  }
  0x5e   : > { %773 = vmatmul.mubr.bf16.gmra.mrb[12].mxu0 %v6119_v9  ;;  %4911 = vmatprep.subr.bf16.mxu1 %v5230_v4 }
  0x5f   : > { %4792 = vmatpush3.bf16.msra.mxu0 %v5229_v37  ;;  %815 = vmatprep.mubr.bf16.mxu0 %v5864_v11  ;;  %v1832_v11 = vrot.slane %v416_v34, 1  ;;  %v1848_v34 = vrot.slane %v443_v55, 1  ;;  %v5247_v55 = vld [vmem:[%s7321_s1 + $0x34] ss:$12 sps:$4 sm:$0xff]   ;;  %v1844_v37 = vrot.slane %v440_v56, 1  ;;  %v6221_v4 = vsel %vm1821_vm2, %v1827_v26, %v1838_v38 }
  0x60   : > { %4793 = vmatprep.subr.bf16.mxu0 %v5231_v6  ;;  %1724 = vmatmul.mubr.bf16.gmra.mrb[28].mxu1 %v6058_v35  ;;  %v5250_v6 = vld [vmem:[%s7321_s1 + $0x48] ss:$12 sps:$4 sm:$0xff]   ;;  %v5254_v56 = vld [vmem:[%s7321_s1 + $0x710] ss:$12 sps:$4 sm:$0xff]  }
  0x61   : > { %4912 = vmatpush3.bf16.msra.mxu1 %v5232_v10  ;;  %v1834_v31 = vor.u32 %v1833_v54, %v1832_v11  ;;  %v1850_v3 = vor.u32 %v1849_v24, %v1848_v34  ;;  %v5253_v10 = vld [vmem:[%s7321_s1 + $0x638] ss:$12 sps:$4 sm:$0xff]   ;;  %v5263_v26 = vld [vmem:[%s7321_s1 + $0x668] ss:$12 sps:$4 sm:$0xff]  }
  0x62   : > { %4913 = vmatprep.subr.bf16.mxu1 %v5234_v14  ;;  %v243_v11 = vld [vmem:[%s5758_s11 + $0x88] sm:$0x3]  ;;  %v5277_v24 = vld [vmem:[%s7321_s1 + $0xc4] ss:$12 sps:$4 sm:$0xff]  }
  0x63   : > { %4794 = vmatpush3.bf16.msra.mxu0 %v5233_v13  ;;  %v6177_v48 = vsel %vm1821_vm2, %v1831_v27, %v1834_v31  ;;  %v1845_v13 = vrot.slane %v428_v25, 2  ;;  %v5258_v25 = vld [vmem:[%s7321_s1 + $0x650] ss:$12 sps:$4 sm:$0xff]   ;;  %v5264_v27 = vld [vmem:[%s7321_s1 + $0x740] ss:$12 sps:$4 sm:$0xff]   ;;  %v6270_v54 = vpack.c.bf16 %v243_v11, %v243_v11 }
  0x64   : > { %1104 = vmatprep.subr.bf16.mxu0 %v5237_v23  ;;  %2231 = vmatprep.mubr.bf16.mxu1 %v6177_v48  ;;  %v5260_v23 = vld [vmem:[%s7321_s1 + $0x78] ss:$12 sps:$4 sm:$0xff]   ;;  %v5293_v11 = vld [vmem:[%s7321_s1 + $0x13c] ss:$12 sps:$4 sm:$0xff]  }
  0x65   : > { %4914 = vmatpush3.bf16.msra.mxu1 %v5238_v12  ;;  %v1846_v18 = vor.u32 %v1845_v13, %v1844_v37  ;;  %v1858_v34 = vshll.u32 %v6270_v54, 16  ;;  %v5284_v13 = vld [vmem:[%s7321_s1 + $0xf4] ss:$12 sps:$4 sm:$0xff]  }
  0x66   : > { %816 = vmatmul.mubr.bf16.vlgmr.msra.gmra.mrb[16].mxu0 %v5965_v57  ;;  %v1841_v57 = vrot.slane %v420_v30, 2  ;;  %5006 = vmatprep.subr.bf16.mxu1 %v5239_v42  ;;  %v5248_v30 = vld [vmem:[%s7321_s1 + $0x620] ss:$12 sps:$4 sm:$0xff]   ;;  %v2364_v42 = vrot.slane %v5857_v7, 2 }
  0x67   : > { %1105 = vmatpush1.bf16.msra.mxu0 %v5235_v28  ;;  %823 = vmatprep.mubr.bf16.mxu0 %v5978_v63  ;;  %v5249_v63 = vld [vmem:[%s7321_s1 + $0x6f8] ss:$12 sps:$4 sm:$0xff]   ;;  %v6263_v12 = vsel %vm1821_vm2, %v1838_v38, %v1846_v18  ;;  %v5267_v28 = vld [vmem:[%s7321_s1 + $0x94] ss:$12 sps:$4 sm:$0xff]   ;;  %v2357_v38 = vrot.slane %v5826_v58, 2 }
  0x68   : > { %1106 = vmatprep.subr.bf16.mxu0 %v5242_v60  ;;  %2232 = vmatmul.mubr.bf16.vlgmr.msra.gmra.mrb[32].mxu1 %v6180_v40  ;;  %v1842_v59 = vor.u32 %v1841_v57, %v1840_v46  ;;  %v5268_v60 = vld [vmem:[%s7321_s1 + $0x680] ss:$12 sps:$4 sm:$0xff]   ;;  %v1860_v46 = vrot.slane %v1858_v34, 2 }
  0x69   : > { %5014 = vmatpush3.bf16.msra.mxu1 %v5243_v49  ;;  %v5300_v34 = vld [vmem:[%s7321_s1 + $0x300] ss:$12 sps:$4 sm:$0xff]  }
  0x6a   : > { %5007 = vmatprep.subr.bf16.mxu1 %v5244_v20  ;;  %v6209_v2 = vsel %vm1821_vm2, %v1834_v31, %v1842_v59  ;;  %v6236_v14 = vsel %vm1821_vm2, %v1842_v59, %v1850_v3  ;;  %v6276_v31 = vpack.c.bf16 %v242_v44, %v242_v44  ;;  %v5272_v20 = vld [vmem:[%s7321_s1 + $0xac] ss:$12 sps:$4 sm:$0xff]   ;;  %v6297_v57 = vsel %vm1821_vm2, %v1850_v3, %v1860_v46  ;;  %v5281_v3 = vld [vmem:[%s7321_s1 + $0xdc] ss:$12 sps:$4 sm:$0xff]  }
  0x6b   : > { %1107 = vmatpush1.bf16.msra.mxu0 %v5240_v5  ;;  %2239 = vmatprep.mubr.bf16.mxu1 %v6209_v2  ;;  %v5273_v59 = vld [vmem:[%s7321_s1 + $0x698] ss:$12 sps:$4 sm:$0xff]  }
  0x6c   : > { %1108 = vmatprep.subr.bf16.mxu0 %v5247_v55  ;;  %v1853_v5 = vshll.u32 %v6276_v31, 16  ;;  %v5270_v55 = vld [vmem:[%s7321_s1 + $0xa8] ss:$12 sps:$4 sm:$0xff]   ;;  %v5291_v44 = vld [vmem:[%s7321_s1 + $0x138] ss:$12 sps:$4 sm:$0xff]  }
  0x6d   : > { %5015 = vmatpush3.bf16.msra.mxu1 %v5248_v30  ;;  %v6315_v30 = vsel %vm2355_vm3, %v2360_v33, %v2364_v42  ;;  %v5303_v46 = vld [vmem:[%s7321_s1 + $0x318] ss:$12 sps:$4 sm:$0xff]  }
  0x6e   : > { %824 = vmatmul.mubr.bf16.gmra.mrb[20].mxu0 %v6018_v15  ;;  %5008 = vmatprep.subr.bf16.mxu1 %v5249_v63  ;;  %v5255_v15 = vld [vmem:[%s7321_s1 + $0x60] ss:$12 sps:$4 sm:$0xff]   ;;  %v1855_v49 = vrot.slane %v1853_v5, 2  ;;  %v2362_v63 = vrot.slane %v5877_v17, 2  ;;  %v5305_v5 = vld [vmem:[%s7321_s1 + $0x31c] ss:$12 sps:$4 sm:$0xff]  }
  0x6f   : > { %1109 = vmatpush1.bf16.msra.mxu0 %v5245_v62  ;;  %831 = vmatprep.mubr.bf16.mxu0 %v6062_v39  ;;  %v5259_v39 = vld [vmem:[%s7321_s1 + $0x728] ss:$12 sps:$4 sm:$0xff]   ;;  %v5278_v62 = vld [vmem:[%s7321_s1 + $0x6b0] ss:$12 sps:$4 sm:$0xff]  }
  0x70   : > { %1110 = vmatprep.subr.bf16.mxu0 %v5252_v21  ;;  %2240 = vmatmul.mubr.bf16.gmra.mrb[36].mxu1 %v6221_v4  ;;  %v6301_v53 = vsel %vm1821_vm2, %v1846_v18, %v1855_v49  ;;  %v2368_v21 = vrot.slane %v5910_v32, 2  ;;  %v6339_v37 = vsel %vm2355_vm3, %v2357_v38, %v2362_v63  ;;  %v5306_v49 = vld [vmem:[%s7321_s1 + $0x330] ss:$12 sps:$4 sm:$0xff]  }
  0x71   : > { %5016 = vmatpush3.bf16.msra.mxu1 %v5253_v10  ;;  %2247 = vmatprep.mubr.bf16.mxu1 %v6236_v14 }
  0x72   : > { %5009 = vmatprep.subr.bf16.mxu1 %v5254_v56  ;;  %v6345_v10 = vsel %vm2355_vm3, %v2364_v42, %v2368_v21  ;;  %v2366_v56 = vrot.slane %v5931_v45, 2  ;;  %v5299_v42 = vld [vmem:[%s7321_s1 + $0x16c] ss:$12 sps:$4 sm:$0xff]  }
  0x73   : > { %1111 = vmatpush1.bf16.msra.mxu0 %v5250_v6  ;;  %v5279_v6 = vld [vmem:[%s7321_s1 + $0xd8] ss:$12 sps:$4 sm:$0xff]  }
  0x74   : > { %1112 = vmatprep.subr.bf16.mxu0 %v5257_v16  ;;  %v5282_v16 = vld [vmem:[%s7321_s1 + $0xf0] ss:$12 sps:$4 sm:$0xff]   ;;  %v6361_v18 = vsel %vm2355_vm3, %v2362_v63, %v2366_v56 }
  0x75   : > { %5017 = vmatpush3.bf16.msra.mxu1 %v5258_v25  ;;  %v5287_v25 = vld [vmem:[%s7321_s1 + $0x10c] ss:$12 sps:$4 sm:$0xff]   ;;  %v5318_v63 = vld [vmem:[%s7321_s1 + $0x390] ss:$12 sps:$4 sm:$0xff]  }
  0x76   : > { %832 = vmatmul.mubr.bf16.gmra.mrb[24].mxu0 %v6078_v47  ;;  %5010 = vmatprep.subr.bf16.mxu1 %v5259_v39  ;;  %v5265_v47 = vld [vmem:[%s7321_s1 + $0x90] ss:$12 sps:$4 sm:$0xff]   ;;  %v5285_v39 = vld [vmem:[%s7321_s1 + $0x108] ss:$12 sps:$4 sm:$0xff]  }
  0x77   : > { %1113 = vmatpush1.bf16.msra.mxu0 %v5255_v15  ;;  %839 = vmatprep.mubr.bf16.mxu0 %v6107_v0  ;;  %v5269_v0 = vld [vmem:[%s7321_s1 + $0x758] ss:$12 sps:$4 sm:$0xff]   ;;  %v2372_v15 = vrot.slane %v6270_v54, 2 }
  0x78   : > { %1114 = vmatprep.subr.bf16.mxu0 %v5262_v19  ;;  %2248 = vmatmul.mubr.bf16.gmra.mrb[40].mxu1 %v6263_v12 }
  0x79   : > { %5018 = vmatpush3.bf16.msra.mxu1 %v5263_v26  ;;  %2255 = vmatprep.mubr.bf16.mxu1 %v6297_v57  ;;  %v6367_v19 = vsel %vm2355_vm3, %v2368_v21, %v2372_v15  ;;  %v2370_v26 = vrot.slane %v6276_v31, 2  ;;  %v5294_v31 = vld [vmem:[%s7321_s1 + $0x150] ss:$12 sps:$4 sm:$0xff]   ;;  %v5324_v21 = vld [vmem:[%s7321_s1 + $0x3c0] ss:$12 sps:$4 sm:$0xff]  }
  0x7a   : > { %5011 = vmatprep.subr.bf16.mxu1 %v5264_v27  ;;  %v5288_v27 = vld [vmem:[%s7321_s1 + $0x120] ss:$12 sps:$4 sm:$0xff]  }
  0x7b   : > { %1115 = vmatpush1.bf16.msra.mxu0 %v5260_v23  ;;  %v5290_v23 = vld [vmem:[%s7321_s1 + $0x124] ss:$12 sps:$4 sm:$0xff]   ;;  %v6382_v54 = vsel %vm2355_vm3, %v2366_v56, %v2370_v26  ;;  %v5333_v56 = vld [vmem:[%s7321_s1 + $0x408] ss:$12 sps:$4 sm:$0xff]   ;;  %v5336_v15 = vld [vmem:[%s7321_s1 + $0x420] ss:$12 sps:$4 sm:$0xff]  }
  0x7c   : > { %1116 = vmatprep.subr.bf16.mxu0 %v5267_v28  ;;  %v5296_v28 = vld [vmem:[%s7321_s1 + $0x154] ss:$12 sps:$4 sm:$0xff]   ;;  %v5342_v26 = vld [vmem:[%s7321_s1 + $0x450] ss:$12 sps:$4 sm:$0xff]  }
  0x7d   : > { %5019 = vmatpush3.bf16.msra.mxu1 %v5268_v60  ;;  %v5302_v60 = vld [vmem:[%s7321_s1 + $0x304] ss:$12 sps:$4 sm:$0xff]  }
  0x7e   : > { %5012 = vmatprep.subr.bf16.mxu1 %v5269_v0  ;;  %840 = vmatmul.mubr.bf16.gmra.mrb[28].mxu0 %v6119_v9  ;;  %v5275_v9 = vld [vmem:[%s7321_s1 + $0xc0] ss:$12 sps:$4 sm:$0xff]  }
  0x7f   : > { %1117 = vmatpush1.bf16.msra.mxu0 %v5265_v47  ;;  %1136 = vmatprep.mubr.bf16.mxu0 %v5777_v36  ;;  %v5297_v47 = vld [vmem:[%s7321_s1 + $0x168] ss:$12 sps:$4 sm:$0xff]  }
  0x80   : > { %1118 = vmatprep.subr.bf16.mxu0 %v5272_v20  ;;  %2256 = vmatmul.mubr.bf16.gmra.mrb[44].mxu1 %v6301_v53  ;;  %v5308_v0 = vld [vmem:[%s7321_s1 + $0x334] ss:$12 sps:$4 sm:$0xff]   ;;  %v5311_v20 = vld [vmem:[%s7321_s1 + $0x34c] ss:$12 sps:$4 sm:$0xff]  }
  0x81   : > { %5020 = vmatpush3.bf16.msra.mxu1 %v5273_v59  ;;  %2751 = vmatprep.mubr.bf16.mxu1 %v6315_v30  ;;  %v5314_v59 = vld [vmem:[%s7321_s1 + $0x364] ss:$12 sps:$4 sm:$0xff]  }
  0x82   : > { %5013 = vmatprep.subr.bf16.mxu1 %v5274_v61  ;;  %v5312_v61 = vld [vmem:[%s7321_s1 + $0x360] ss:$12 sps:$4 sm:$0xff]  }
  0x83   : > { %1119 = vmatpush1.bf16.msra.mxu0 %v5270_v55  ;;  %v5309_v55 = vld [vmem:[%s7321_s1 + $0x348] ss:$12 sps:$4 sm:$0xff]  }
  0x84   : > { %1120 = vmatprep.subr.bf16.mxu0 %v5277_v24  ;;  %v5317_v24 = vld [vmem:[%s7321_s1 + $0x37c] ss:$12 sps:$4 sm:$0xff]  }
  0x85   : > { %5021 = vmatpush3.bf16.msra.mxu1 %v5278_v62  ;;  %v5320_v62 = vld [vmem:[%s7321_s1 + $0x394] ss:$12 sps:$4 sm:$0xff]  }
  0x87   : > { %1121 = vmatpush1.bf16.msra.mxu0 %v5275_v9  ;;  %v5321_v9 = vld [vmem:[%s7321_s1 + $0x3a8] ss:$12 sps:$4 sm:$0xff]  }
  0x88   : > { %1122 = vmatprep.subr.bf16.mxu0 %v5281_v3  ;;  %2752 = vmatmul.mubr.bf16.vlgmr.msra.gmra.mrb[48].mxu1 %v6339_v37  ;;  %v5329_v3 = vld [vmem:[%s7321_s1 + $0x3dc] ss:$12 sps:$4 sm:$0xff]  }
  0x89   : > { %2759 = vmatprep.mubr.bf16.mxu1 %v6345_v10 }
  0x8b   : > { %1123 = vmatpush1.bf16.msra.mxu0 %v5279_v6  ;;  %v5330_v6 = vld [vmem:[%s7321_s1 + $0x3f0] ss:$12 sps:$4 sm:$0xff]  }
  0x8c   : > { %1124 = vmatprep.subr.bf16.mxu0 %v5284_v13  ;;  %v5335_v13 = vld [vmem:[%s7321_s1 + $0x40c] ss:$12 sps:$4 sm:$0xff]  }
  0x8f   : > { %1125 = vmatpush1.bf16.msra.mxu0 %v5282_v16  ;;  %v5338_v16 = vld [vmem:[%s7321_s1 + $0x424] ss:$12 sps:$4 sm:$0xff]  }
  0x90   : > { %1126 = vmatprep.subr.bf16.mxu0 %v5287_v25  ;;  %2760 = vmatmul.mubr.bf16.gmra.mrb[52].mxu1 %v6361_v18  ;;  %v5341_v25 = vld [vmem:[%s7321_s1 + $0x43c] ss:$12 sps:$4 sm:$0xff]  }
  0x91   : > { %2767 = vmatprep.mubr.bf16.mxu1 %v6367_v19 }
  0x93   : > { %1127 = vmatpush1.bf16.msra.mxu0 %v5285_v39  ;;  %v5339_v39 = vld [vmem:[%s7321_s1 + $0x438] ss:$12 sps:$4 sm:$0xff]  }
  0x94   : > { %1128 = vmatprep.subr.bf16.mxu0 %v5290_v23  ;;  %v5344_v23 = vld [vmem:[%s7321_s1 + $0x454] ss:$12 sps:$4 sm:$0xff]  }
  0x97   : > { %1129 = vmatpush1.bf16.msra.mxu0 %v5288_v27  ;;  %v5347_v27 = vld [vmem:[%s7321_s1 + $0x46c] ss:$12 sps:$4 sm:$0xff]  }
  0x98   : > { %1130 = vmatprep.subr.bf16.mxu0 %v5293_v11  ;;  %2768 = vmatmul.mubr.bf16.gmra.mrb[56].mxu1 %v6382_v54  ;;  %v5345_v11 = vld [vmem:[%s7321_s1 + $0x468] ss:$12 sps:$4 sm:$0xff]  }
  0x9b   : > { %1131 = vmatpush1.bf16.msra.mxu0 %v5291_v44  ;;  %v5350_v44 = vld [vmem:[%s7321_s1 + $0x484] ss:$12 sps:$4 sm:$0xff]  }
  0x9c   : > { %1132 = vmatprep.subr.bf16.mxu0 %v5296_v28  ;;  %v5348_v28 = vld [vmem:[%s7321_s1 + $0x480] ss:$12 sps:$4 sm:$0xff]  }
  0x9f   : > { %1133 = vmatpush1.bf16.msra.mxu0 %v5294_v31  ;;  %v5353_v31 = vld [vmem:[%s7321_s1 + $0x49c] ss:$12 sps:$4 sm:$0xff]  }
  0xa0   : > { %1134 = vmatprep.subr.bf16.mxu0 %v5299_v42  ;;  %v5351_v42 = vld [vmem:[%s7321_s1 + $0x498] ss:$12 sps:$4 sm:$0xff]  }
  0xa3   : > { %1135 = vmatpush1.bf16.msra.mxu0 %v5297_v47  ;;  %v5356_v47 = vld [vmem:[%s7321_s1 + $0x4b4] ss:$12 sps:$4 sm:$0xff]  }
  0xa4   : > { %1594 = vmatprep.subr.bf16.mxu0 %v5302_v60  ;;  %v5354_v60 = vld [vmem:[%s7321_s1 + $0x4b0] ss:$12 sps:$4 sm:$0xff]  }
  0xa6   : > { %1137 = vmatmul.mubr.bf16.vlgmr.msra.gmra.mrb[0].mxu0 %v5788_v41 }
  0xa7   : > { %1595 = vmatpush1.bf16.msra.mxu0 %v5300_v34  ;;  %1146 = vmatprep.mubr.bf16.mxu0 %v5812_v51  ;;  %v5359_v34 = vld [vmem:[%s7321_s1 + $0x4cc] ss:$12 sps:$4 sm:$0xff]   ;;  %v5417_v51 = vld [vmem:[%s7321_s1 + $0x6a8] ss:$12 sps:$4 sm:$0xff]  }
  0xa8   : > { %1596 = vmatprep.subr.bf16.mxu0 %v5305_v5  ;;  %v5360_v5 = vld [vmem:[%s7321_s1 + $0x4e0] ss:$12 sps:$4 sm:$0xff]  }
  0xab   : > { %1597 = vmatpush1.bf16.msra.mxu0 %v5303_v46  ;;  %v5368_v46 = vld [vmem:[%s7321_s1 + $0x514] ss:$12 sps:$4 sm:$0xff]  }
  0xac   : > { %1598 = vmatprep.subr.bf16.mxu0 %v5308_v0  ;;  %v5366_v0 = vld [vmem:[%s7321_s1 + $0x510] ss:$12 sps:$4 sm:$0xff]  }
  0xae   : > { %1147 = vmatmul.mubr.bf16.gmra.mrb[4].mxu0 %v5826_v58 }
  0xaf   : > { %1599 = vmatpush1.bf16.msra.mxu0 %v5306_v49  ;;  %1156 = vmatprep.mubr.bf16.mxu0 %v5857_v7  ;;  %v5315_v7 = vld [vmem:[%s7321_s1 + $0x378] ss:$12 sps:$4 sm:$0xff]  }
  0xb0   : > { %1600 = vmatprep.subr.bf16.mxu0 %v5311_v20 }
  0xb3   : > { %1601 = vmatpush1.bf16.msra.mxu0 %v5309_v55 }
  0xb4   : > { %1602 = vmatprep.subr.bf16.mxu0 %v5314_v59  ;;  %v5369_v59 = vld [vmem:[%s7321_s1 + $0x528] ss:$12 sps:$4 sm:$0xff]  }
  0xb6   : > { %1157 = vmatmul.mubr.bf16.gmra.mrb[8].mxu0 %v5877_v17  ;;  %v5323_v17 = vld [vmem:[%s7321_s1 + $0x3ac] ss:$12 sps:$4 sm:$0xff]  }
  0xb7   : > { %1603 = vmatpush1.bf16.msra.mxu0 %v5312_v61  ;;  %1166 = vmatprep.mubr.bf16.mxu0 %v5910_v32  ;;  %v5326_v32 = vld [vmem:[%s7321_s1 + $0x3c4] ss:$12 sps:$4 sm:$0xff]  }
  0xb8   : > { %1604 = vmatprep.subr.bf16.mxu0 %v5317_v24  ;;  %v5374_v24 = vld [vmem:[%s7321_s1 + $0x544] ss:$12 sps:$4 sm:$0xff]  }
  0xbb   : > { %1605 = vmatpush1.bf16.msra.mxu0 %v5315_v7 }
  0xbc   : > { %1606 = vmatprep.subr.bf16.mxu0 %v5320_v62  ;;  %v5377_v62 = vld [vmem:[%s7321_s1 + $0x55c] ss:$12 sps:$4 sm:$0xff]  }
  0xbe   : > { %1167 = vmatmul.mubr.bf16.gmra.mrb[12].mxu0 %v5931_v45  ;;  %v5327_v45 = vld [vmem:[%s7321_s1 + $0x3d8] ss:$12 sps:$4 sm:$0xff]  }
  0xbf   : > { %1607 = vmatpush1.bf16.msra.mxu0 %v5318_v63  ;;  %1626 = vmatprep.mubr.bf16.mxu0 %v5947_v50  ;;  %v5332_v50 = vld [vmem:[%s7321_s1 + $0x3f4] ss:$12 sps:$4 sm:$0xff]  }
  0xc0   : > { %1608 = vmatprep.subr.bf16.mxu0 %v5323_v17 }
  0xc3   : > { %1609 = vmatpush1.bf16.msra.mxu0 %v5321_v9 }
  0xc4   : > { %1610 = vmatprep.subr.bf16.mxu0 %v5326_v32  ;;  %v5375_v32 = vld [vmem:[%s7321_s1 + $0x558] ss:$12 sps:$4 sm:$0xff]  }
  0xc7   : > { %1611 = vmatpush1.bf16.msra.mxu0 %v5324_v21 }
  0xc8   : > { %1612 = vmatprep.subr.bf16.mxu0 %v5329_v3  ;;  %v5380_v3 = vld [vmem:[%s7321_s1 + $0x574] ss:$12 sps:$4 sm:$0xff]  }
  0xcb   : > { %1613 = vmatpush1.bf16.msra.mxu0 %v5327_v45 }
  0xcc   : > { %1614 = vmatprep.subr.bf16.mxu0 %v5332_v50  ;;  %v5378_v50 = vld [vmem:[%s7321_s1 + $0x570] ss:$12 sps:$4 sm:$0xff]  }
  0xcf   : > { %1615 = vmatpush1.bf16.msra.mxu0 %v5330_v6  ;;  %v5383_v6 = vld [vmem:[%s7321_s1 + $0x58c] ss:$12 sps:$4 sm:$0xff]  }
  0xd0   : > { %1616 = vmatprep.subr.bf16.mxu0 %v5335_v13 }
  0xd3   : > { %1617 = vmatpush1.bf16.msra.mxu0 %v5333_v56 }
  0xd4   : > { %1618 = vmatprep.subr.bf16.mxu0 %v5338_v16 }
  0xd7   : > { %1619 = vmatpush1.bf16.msra.mxu0 %v5336_v15 }
  0xd8   : > { %1620 = vmatprep.subr.bf16.mxu0 %v5341_v25  ;;  %v5381_v25 = vld [vmem:[%s7321_s1 + $0x588] ss:$12 sps:$4 sm:$0xff]  }
  0xdb   : > { %1621 = vmatpush1.bf16.msra.mxu0 %v5339_v39 }
  0xdc   : > { %1622 = vmatprep.subr.bf16.mxu0 %v5344_v23  ;;  %v5386_v23 = vld [vmem:[%s7321_s1 + $0x5a4] ss:$12 sps:$4 sm:$0xff]  }
  0xdf   : > { %1623 = vmatpush1.bf16.msra.mxu0 %v5342_v26 }
  0xe0   : > { %1624 = vmatprep.subr.bf16.mxu0 %v5347_v27  ;;  %v5384_v27 = vld [vmem:[%s7321_s1 + $0x5a0] ss:$12 sps:$4 sm:$0xff]  }
  0xe3   : > { %1625 = vmatpush1.bf16.msra.mxu0 %v5345_v11  ;;  %v5389_v11 = vld [vmem:[%s7321_s1 + $0x5bc] ss:$12 sps:$4 sm:$0xff]  }
  0xe4   : > { %2126 = vmatprep.subr.bf16.mxu0 %v5350_v44 }
  0xe6   : > { %1627 = vmatmul.mubr.bf16.vlgmr.msra.gmra.mrb[0].mxu0 %v5987_v1  ;;  %v5357_v1 = vld [vmem:[%s7321_s1 + $0x4c8] ss:$12 sps:$4 sm:$0xff]  }
  0xe7   : > { %2127 = vmatpush1.bf16.msra.mxu0 %v5348_v28  ;;  %1636 = vmatprep.mubr.bf16.mxu0 %v6003_v8  ;;  %v5362_v8 = vld [vmem:[%s7321_s1 + $0x4e4] ss:$12 sps:$4 sm:$0xff]  }
  0xe8   : > { %2128 = vmatprep.subr.bf16.mxu0 %v5353_v31 }
  0xeb   : > { %2129 = vmatpush1.bf16.msra.mxu0 %v5351_v42 }
  0xec   : > { %2130 = vmatprep.subr.bf16.mxu0 %v5356_v47  ;;  %v5387_v47 = vld [vmem:[%s7321_s1 + $0x5b8] ss:$12 sps:$4 sm:$0xff]  }
  0xee   : > { %1637 = vmatmul.mubr.bf16.gmra.mrb[4].mxu0 %v6035_v22  ;;  %v5365_v22 = vld [vmem:[%s7321_s1 + $0x4fc] ss:$12 sps:$4 sm:$0xff]  }
  0xef   : > { %2131 = vmatpush1.bf16.msra.mxu0 %v5354_v60  ;;  %1646 = vmatprep.mubr.bf16.mxu0 %v6071_v43  ;;  %v5363_v43 = vld [vmem:[%s7321_s1 + $0x4f8] ss:$12 sps:$4 sm:$0xff]  }
  0xf0   : > { %2132 = vmatprep.subr.bf16.mxu0 %v5359_v34  ;;  %v5392_v34 = vld [vmem:[%s7321_s1 + $0x5d4] ss:$12 sps:$4 sm:$0xff]  }
  0xf3   : > { %2133 = vmatpush1.bf16.msra.mxu0 %v5357_v1 }
  0xf4   : > { %2134 = vmatprep.subr.bf16.mxu0 %v5362_v8  ;;  %v5390_v8 = vld [vmem:[%s7321_s1 + $0x5d0] ss:$12 sps:$4 sm:$0xff]  }
  0xf6   : > { %1647 = vmatmul.mubr.bf16.gmra.mrb[8].mxu0 %v6093_v52  ;;  %v5371_v52 = vld [vmem:[%s7321_s1 + $0x52c] ss:$12 sps:$4 sm:$0xff]  }
  0xf7   : > { %2135 = vmatpush1.bf16.msra.mxu0 %v5360_v5  ;;  %1656 = vmatprep.mubr.bf16.mxu0 %v6051_v29  ;;  %v5395_v5 = vld [vmem:[%s7321_s1 + $0x5ec] ss:$12 sps:$4 sm:$0xff]  }
  0xf8   : > { %2136 = vmatprep.subr.bf16.mxu0 %v5365_v22 }
  0xfa   : > { %v4835_v49 = vpop.f32.mrb[0].mxu1 }
  0xfb   : > { %2137 = vmatpush1.bf16.msra.mxu0 %v5363_v43  ;;  %v4836_v20 = vpop.f32.mrb[1].mxu1 }
  0xfc   : > { %2138 = vmatprep.subr.bf16.mxu0 %v5368_v46  ;;  %v6555_v55 = vadd.f32 %v4836_v20, %v4835_v49  ;;  %v4838_v29 = vpop.f32.mrb[2].mxu1  ;;  %v5398_v20 = vld [vmem:[%s7321_s1 + $0x604] ss:$12 sps:$4 sm:$0xff]  }
  0xfd   : > { %v4839_v61 = vpop.f32.mrb[3].mxu1 }
  0xfe   : > { %1657 = vmatmul.mubr.bf16.gmra.mrb[12].mxu0 %v6058_v35  ;;  %v6565_v7 = vadd.f32 %v4839_v61, %v4838_v29  ;;  %v5372_v35 = vld [vmem:[%s7321_s1 + $0x540] ss:$12 sps:$4 sm:$0xff]   ;;  %v5401_v61 = vld [vmem:[%s7321_s1 + $0x61c] ss:$12 sps:$4 sm:$0xff]  }
  0xff   : > { %2139 = vmatpush1.bf16.msra.mxu0 %v5366_v0  ;;  %2158 = vmatprep.mubr.bf16.mxu0 %v6177_v48 }
 0x100   : > { %2140 = vmatprep.subr.bf16.mxu0 %v5371_v52  ;;  %v5393_v52 = vld [vmem:[%s7321_s1 + $0x5e8] ss:$12 sps:$4 sm:$0xff]  }
 0x102   : > { %v4841_v63 = vpop.f32.mrb[4].mxu1 }
 0x103   : > { %2141 = vmatpush1.bf16.msra.mxu0 %v5369_v59  ;;  %v4842_v17 = vpop.f32.mrb[5].mxu1  ;;  %v5396_v59 = vld [vmem:[%s7321_s1 + $0x600] ss:$12 sps:$4 sm:$0xff]  }
 0x104   : > { %2142 = vmatprep.subr.bf16.mxu0 %v5374_v24  ;;  %v6573_v48 = vadd.f32 %v4842_v17, %v4841_v63  ;;  %v4844_v9 = vpop.f32.mrb[6].mxu1  ;;  %v5399_v17 = vld [vmem:[%s7321_s1 + $0x618] ss:$12 sps:$4 sm:$0xff]  }
 0x105   : > { %v4845_v21 = vpop.f32.mrb[7].mxu1 }
 0x106   : > { %v6581_v45 = vadd.f32 %v4845_v21, %v4844_v9 }
 0x107   : > { %2143 = vmatpush1.bf16.msra.mxu0 %v5372_v35 }
 0x108   : > { %2144 = vmatprep.subr.bf16.mxu0 %v5377_v62 }
 0x10a   : > { %v4847_v13 = vpop.f32.mrb[8].mxu1 }
 0x10b   : > { %2145 = vmatpush1.bf16.msra.mxu0 %v5375_v32  ;;  %v4848_v56 = vpop.f32.mrb[9].mxu1  ;;  %v5404_v32 = vld [vmem:[%s7321_s1 + $0x634] ss:$12 sps:$4 sm:$0xff]  }
 0x10c   : > { %2146 = vmatprep.subr.bf16.mxu0 %v5380_v3  ;;  %v6589_v16 = vadd.f32 %v4848_v56, %v4847_v13  ;;  %v4850_v15 = vpop.f32.mrb[10].mxu1  ;;  %v5407_v3 = vld [vmem:[%s7321_s1 + $0x64c] ss:$12 sps:$4 sm:$0xff]   ;;  %v5405_v56 = vld [vmem:[%s7321_s1 + $0x648] ss:$12 sps:$4 sm:$0xff]  }
 0x10d   : > { %v4851_v39 = vpop.f32.mrb[11].mxu1 }
 0x10e   : > { %v6597_v26 = vadd.f32 %v4851_v39, %v4850_v15 }
 0x10f   : > { %2147 = vmatpush1.bf16.msra.mxu0 %v5378_v50 }
 0x110   : > { %2148 = vmatprep.subr.bf16.mxu0 %v5383_v6 }
 0x112   : > { %v4853_v44 = vpop.f32.mrb[12].mxu1 }
 0x113   : > { %2149 = vmatpush1.bf16.msra.mxu0 %v5381_v25  ;;  %v4854_v28 = vpop.f32.mrb[13].mxu1  ;;  %v5410_v25 = vld [vmem:[%s7321_s1 + $0x664] ss:$12 sps:$4 sm:$0xff]  }
 0x114   : > { %2150 = vmatprep.subr.bf16.mxu0 %v5386_v23  ;;  %v6605_v31 = vadd.f32 %v4854_v28, %v4853_v44  ;;  %v4856_v42 = vpop.f32.mrb[14].mxu1  ;;  %v5411_v28 = vld [vmem:[%s7321_s1 + $0x678] ss:$12 sps:$4 sm:$0xff]  }
 0x115   : > { %v4857_v60 = vpop.f32.mrb[15].mxu1 }
 0x116   : > { %v6613_v1 = vadd.f32 %v4857_v60, %v4856_v42  ;;  %v5416_v60 = vld [vmem:[%s7321_s1 + $0x694] ss:$12 sps:$4 sm:$0xff]  }
 0x117   : > { %2151 = vmatpush1.bf16.msra.mxu0 %v5384_v27  ;;  %v5413_v27 = vld [vmem:[%s7321_s1 + $0x67c] ss:$12 sps:$4 sm:$0xff]  }
 0x118   : > { %2152 = vmatprep.subr.bf16.mxu0 %v5389_v11 }
 0x11b   : > { %2153 = vmatpush1.bf16.msra.mxu0 %v5387_v47  ;;  %v4875_v22 = vpop.f32.mrb[16].mxu1 }
 0x11c   : > { %2154 = vmatprep.subr.bf16.mxu0 %v5392_v34  ;;  %v4876_v43 = vpop.f32.mrb[17].mxu1  ;;  %v2359_v34 = vrot.slane %v5777_v36, 2 }
 0x11d   : > { %v6621_v46 = vadd.f32 %v4876_v43, %v4875_v22  ;;  %v4878_v0 = vpop.f32.mrb[18].mxu1  ;;  %v5414_v43 = vld [vmem:[%s7321_s1 + $0x690] ss:$12 sps:$4 sm:$0xff]  }
 0x11e   : > { %v4879_v49 = vpop.f32.mrb[19].mxu1  ;;  %v6695_v36 = vsel %vm2355_vm3, %v2359_v34, %v2360_v33 }
 0x11f   : > { %2155 = vmatpush1.bf16.msra.mxu0 %v5390_v8  ;;  %v6629_v29 = vadd.f32 %v4879_v49, %v4878_v0 }
 0x120   : > { %2156 = vmatprep.subr.bf16.mxu0 %v5395_v5 }
 0x123   : > { %2157 = vmatpush1.bf16.msra.mxu0 %v5393_v52  ;;  %v4881_v24 = vpop.f32.mrb[20].mxu1  ;;  %v5419_v52 = vld [vmem:[%s7321_s1 + $0x6ac] ss:$12 sps:$4 sm:$0xff]  }
 0x124   : > { %2638 = vmatprep.subr.bf16.mxu0 %v5398_v20  ;;  %v4882_v35 = vpop.f32.mrb[21].mxu1 }
 0x125   : > { %v6638_v62 = vadd.f32 %v4882_v35, %v4881_v24  ;;  %v4884_v63 = vpop.f32.mrb[22].mxu1 }
 0x126   : > { %2159 = vmatmul.mubr.bf16.vlgmr.msra.gmra.mrb[0].mxu0 %v6180_v40  ;;  %v4885_v9 = vpop.f32.mrb[23].mxu1  ;;  %v5402_v40 = vld [vmem:[%s7321_s1 + $0x630] ss:$12 sps:$4 sm:$0xff]  }
 0x127   : > { %2639 = vmatpush1.bf16.msra.mxu0 %v5396_v59  ;;  %2168 = vmatprep.mubr.bf16.mxu0 %v6209_v2  ;;  %v6647_v21 = vadd.f32 %v4885_v9, %v4884_v63 }
 0x128   : > { %2640 = vmatprep.subr.bf16.mxu0 %v5401_v61 }
 0x12b   : > { %2641 = vmatpush1.bf16.msra.mxu0 %v5399_v17  ;;  %v4887_v50 = vpop.f32.mrb[24].mxu1 }
 0x12c   : > { %2642 = vmatprep.subr.bf16.mxu0 %v5404_v32  ;;  %v4888_v6 = vpop.f32.mrb[25].mxu1 }
 0x12d   : > { %v6655_v2 = vadd.f32 %v4888_v6, %v4887_v50  ;;  %v4890_v13 = vpop.f32.mrb[26].mxu1  ;;  %v5425_v6 = vld [vmem:[%s7321_s1 + $0x6dc] ss:$12 sps:$4 sm:$0xff]  }
 0x12e   : > { %2169 = vmatmul.mubr.bf16.gmra.mrb[4].mxu0 %v6221_v4  ;;  %v4891_v15 = vpop.f32.mrb[27].mxu1  ;;  %v5408_v4 = vld [vmem:[%s7321_s1 + $0x660] ss:$12 sps:$4 sm:$0xff]  }
 0x12f   : > { %2643 = vmatpush1.bf16.msra.mxu0 %v5402_v40  ;;  %2178 = vmatprep.mubr.bf16.mxu0 %v6236_v14  ;;  %v6665_v39 = vadd.f32 %v4891_v15, %v4890_v13  ;;  %v5420_v40 = vld [vmem:[%s7321_s1 + $0x6c0] ss:$12 sps:$4 sm:$0xff]  }
 0x130   : > { %2644 = vmatprep.subr.bf16.mxu0 %v5407_v3 }
 0x133   : > { %2645 = vmatpush1.bf16.msra.mxu0 %v5405_v56  ;;  %v4893_v23 = vpop.f32.mrb[28].mxu1 }
 0x134   : > { %2646 = vmatprep.subr.bf16.mxu0 %v5410_v25  ;;  %v4894_v11 = vpop.f32.mrb[29].mxu1 }
 0x135   : > { %v6673_v14 = vadd.f32 %v4894_v11, %v4893_v23  ;;  %v4896_v44 = vpop.f32.mrb[30].mxu1 }
 0x136   : > { %2179 = vmatmul.mubr.bf16.gmra.mrb[8].mxu0 %v6263_v12  ;;  %v4897_v42 = vpop.f32.mrb[31].mxu1 }
 0x137   : > { %2647 = vmatpush1.bf16.msra.mxu0 %v5408_v4  ;;  %2188 = vmatprep.mubr.bf16.mxu0 %v6297_v57  ;;  %v6680_v47 = vadd.f32 %v4897_v42, %v4896_v44  ;;  %v5428_v42 = vld [vmem:[%s7321_s1 + $0x6f4] ss:$12 sps:$4 sm:$0xff]  }
 0x138   : > { %2648 = vmatprep.subr.bf16.mxu0 %v5413_v27  ;;  %v5423_v27 = vld [vmem:[%s7321_s1 + $0x6d8] ss:$12 sps:$4 sm:$0xff]  }
 0x139   : > { %v4795_v8 = vpop.f32.mrb[16].mxu0 }
 0x13a   : > { %v4796_v5 = vpop.f32.mrb[17].mxu0 }
 0x13b   : > { %v4797_v12 = vadd.f32 %v4796_v5, %v4795_v8  ;;  %v4798_v22 = vpop.f32.mrb[18].mxu0  ;;  %2649 = vmatpush1.bf16.msra.mxu0 %v5411_v28  ;;  %v4915_v57 = vpop.f32.mrb[32].mxu1 }
 0x13c   : > { %v4799_v0 = vpop.f32.mrb[19].mxu0  ;;  %2650 = vmatprep.subr.bf16.mxu0 %v5416_v60  ;;  %v4916_v59 = vpop.f32.mrb[33].mxu1 }
 0x13d   : > { %v1212_v49 = vadd.f32 %v6555_v55, %v4797_v12  ;;  %v4800_v20 = vadd.f32 %v4799_v0, %v4798_v22  ;;  %v4917_v61 = vadd.f32 %v4916_v59, %v4915_v57  ;;  %v4918_v24 = vpop.f32.mrb[34].mxu1  ;;  %v5422_v55 = vld [vmem:[%s7321_s1 + $0x6c4] ss:$12 sps:$4 sm:$0xff]  }
 0x13e   : > { %2189 = vmatmul.mubr.bf16.gmra.mrb[12].mxu0 %v6301_v53  ;;  %v4919_v17 = vpop.f32.mrb[35].mxu1  ;;  %v5426_v12 = vld [vmem:[%s7321_s1 + $0x6f0] ss:$12 sps:$4 sm:$0xff]  }
 0x13f   : > { %v1215_v35 = vadd.f32 %v6565_v7, %v4800_v20  ;;  %v1734_v63 = vadd.f32 %v6621_v46, %v1212_v49  ;;  %2651 = vmatpush1.bf16.msra.mxu0 %v5414_v43  ;;  %2670 = vmatprep.mubr.bf16.mxu0 %v6695_v36  ;;  %v4920_v33 = vadd.f32 %v4919_v17, %v4918_v24  ;;  %v5431_v43 = vld [vmem:[%s7321_s1 + $0x70c] ss:$12 sps:$4 sm:$0xff]   ;;  %v5434_v17 = vld [vmem:[%s7321_s1 + $0x724] ss:$12 sps:$4 sm:$0xff]  }
 0x140   : > { %2652 = vmatprep.subr.bf16.mxu0 %v5419_v52 }
 0x141   : > { %v6708_v9 = vadd.f32 %v4917_v61, %v1734_v63  ;;  %v1737_v53 = vadd.f32 %v6629_v29, %v1215_v35  ;;  %v4801_v7 = vpop.f32.mrb[20].mxu0  ;;  %v5429_v61 = vld [vmem:[%s7321_s1 + $0x708] ss:$12 sps:$4 sm:$0xff]  }
 0x142   : > { %v4802_v46 = vpop.f32.mrb[21].mxu0 }
 0x143   : > { %v6711_v32 = vadd.f32 %v4920_v33, %v1737_v53  ;;  %2653 = vmatpush1.bf16.msra.mxu0 %v5417_v51  ;;  %v4803_v3 = vadd.f32 %v4802_v46, %v4801_v7  ;;  %v4804_v50 = vpop.f32.mrb[22].mxu0  ;;  %v4921_v13 = vpop.f32.mrb[36].mxu1  ;;  %v5432_v53 = vld [vmem:[%s7321_s1 + $0x720] ss:$12 sps:$4 sm:$0xff]  }
 0x144   : > { %2654 = vmatprep.subr.bf16.mxu0 %v5422_v55  ;;  %v4805_v56 = vpop.f32.mrb[23].mxu0  ;;  %v4922_v15 = vpop.f32.mrb[37].mxu1  ;;  %v2802_v55 = vlaneseq }
 0x145   : > { %v1220_v29 = vadd.f32 %v6573_v48, %v4803_v3  ;;  %v4806_v25 = vadd.f32 %v4805_v56, %v4804_v50  ;;  %v4923_v4 = vadd.f32 %v4922_v15, %v4921_v13  ;;  %v4924_v23 = vpop.f32.mrb[38].mxu1 }
 0x146   : > { %v4925_v11 = vpop.f32.mrb[39].mxu1  ;;  %v6759_v56 = vshrl.u32 %v2802_v55, 7 }
 0x147   : > { %2655 = vmatpush1.bf16.msra.mxu0 %v5420_v40  ;;  %v1740_v44 = vadd.f32 %v6638_v62, %v1220_v29  ;;  %v1223_v28 = vadd.f32 %v6581_v45, %v4806_v25  ;;  %v4926_v60 = vadd.f32 %v4925_v11, %v4924_v23  ;;  %v5435_v29 = vld [vmem:[%s7321_s1 + $0x738] ss:$12 sps:$4 sm:$0xff]  }
 0x148   : > { %2656 = vmatprep.subr.bf16.mxu0 %v5425_v6 }
 0x149   : > { %v1743_v48 = vadd.f32 %v6647_v21, %v1223_v28  ;;  %v4807_v34 = vpop.f32.mrb[24].mxu0  ;;  %v6729_v8 = vadd.f32 %v4923_v4, %v1740_v44 }
 0x14a   : > { %v4808_v5 = vpop.f32.mrb[25].mxu0 }
 0x14b   : > { %2657 = vmatpush1.bf16.msra.mxu0 %v5423_v27  ;;  %v4809_v62 = vadd.f32 %v4808_v5, %v4807_v34  ;;  %v6734_v22 = vadd.f32 %v4926_v60, %v1743_v48  ;;  %v4810_v45 = vpop.f32.mrb[26].mxu0  ;;  %v4927_v0 = vpop.f32.mrb[40].mxu1  ;;  %v5440_v27 = vld [vmem:[%s7321_s1 + $0x754] ss:$12 sps:$4 sm:$0xff]   ;;  %v5438_v60 = vld [vmem:[%s7321_s1 + $0x750] ss:$12 sps:$4 sm:$0xff]  }
 0x14c   : > { %2658 = vmatprep.subr.bf16.mxu0 %v5428_v42  ;;  %v4811_v21 = vpop.f32.mrb[27].mxu0  ;;  %v4928_v57 = vpop.f32.mrb[41].mxu1  ;;  %v2812_v42 = vsub.s32 2, %v6759_v56 }
 0x14d   : > { %v1228_v52 = vadd.f32 %v6589_v16, %v4809_v62  ;;  %v4812_v49 = vadd.f32 %v4811_v21, %v4810_v45  ;;  %v4929_v20 = vadd.f32 %v4928_v57, %v4927_v0  ;;  %v4930_v59 = vpop.f32.mrb[42].mxu1  ;;  %v5441_v0 = vld [vmem:[%s7321_s1 + $0x768] ss:$12 sps:$4 sm:$0xff]   ;;  %v2356_v21 = vrot.slane %v5788_v41, 2 }
 0x14e   : > { %v4931_v24 = vpop.f32.mrb[43].mxu1  ;;  %v5589_v41 = vld [vmem:[%s7321_s1 + $0x6c8] ss:$12 sps:$4 sm:$0xff]  }
 0x14f   : > { %2659 = vmatpush1.bf16.msra.mxu0 %v5426_v12  ;;  %v1746_v35 = vadd.f32 %v6655_v2, %v1228_v52  ;;  %v1231_v63 = vadd.f32 %v6597_v26, %v4812_v49  ;;  %v4932_v51 = vadd.f32 %v4931_v24, %v4930_v59  ;;  %v5437_v26 = vld [vmem:[%s7321_s1 + $0x73c] ss:$12 sps:$4 sm:$0xff]   ;;  %v6800_v59 = vsel %vm2355_vm3, %v2356_v21, %v2357_v38 }
 0x150   : > { %2660 = vmatprep.subr.bf16.mxu0 %v5431_v43  ;;  %v5590_v38 = vld [vmem:[%s7321_s1 + $0x608] ss:$12 sps:$4 sm:$0xff]  }
 0x151   : > { %v1749_v16 = vadd.f32 %v6665_v39, %v1231_v63  ;;  %v6749_v33 = vadd.f32 %v4929_v20, %v1746_v35  ;;  %v4813_v7 = vpop.f32.mrb[28].mxu0 }
 0x152   : > { %v4814_v40 = vpop.f32.mrb[29].mxu0 }
 0x153   : > { %2661 = vmatpush1.bf16.msra.mxu0 %v5429_v61  ;;  %v6754_v2 = vadd.f32 %v4932_v51, %v1749_v16  ;;  %v4933_v46 = vpop.f32.mrb[44].mxu1  ;;  %v4815_v39 = vadd.f32 %v4814_v40, %v4813_v7  ;;  %v4816_v50 = vpop.f32.mrb[30].mxu0 }
 0x154   : > { %2662 = vmatprep.subr.bf16.mxu0 %v5434_v17  ;;  %v4934_v3 = vpop.f32.mrb[45].mxu1  ;;  %v4817_v15 = vpop.f32.mrb[31].mxu0 }
 0x155   : > { %v4935_v6 = vadd.f32 %v4934_v3, %v4933_v46  ;;  %v4936_v13 = vpop.f32.mrb[46].mxu1  ;;  %v1236_v4 = vadd.f32 %v6605_v31, %v4815_v39  ;;  %v4818_v23 = vadd.f32 %v4817_v15, %v4816_v50  ;;  %v6777_v31 = vld [vmem:[%s7322_s2] sm:$0x7] }
 0x156   : > { %v4937_v25 = vpop.f32.mrb[47].mxu1  ;;  %v6788_v45 = vrot.slane %v6777_v31, %v2812_v42 }
 0x157   : > { %2663 = vmatpush1.bf16.msra.mxu0 %v5432_v53  ;;  %v4938_v11 = vadd.f32 %v4937_v25, %v4936_v13  ;;  %v1752_v44 = vadd.f32 %v6673_v14, %v1236_v4  ;;  %v1239_v28 = vadd.f32 %v6613_v1, %v4818_v23  ;;  %v5443_v1 = vld [vmem:[%s7321_s1 + $0x76c] ss:$12 sps:$4 sm:$0xff]  }
 0x158   : > { %2664 = vmatprep.subr.bf16.mxu0 %v5437_v26  ;;  %v5591_v53 = vld [vmem:[%s7321_s1 + $0x6e0] ss:$12 sps:$4 sm:$0xff]   ;;  %v5594_v4 = vld [vmem:[%s7321_s1 + $0x638] ss:$12 sps:$4 sm:$0xff]  }
 0x159   : > { %v6779_v48 = vadd.f32 %v4935_v6, %v1752_v44  ;;  %v1755_v34 = vadd.f32 %v6680_v47, %v1239_v28  ;;  %v5593_v6 = vld [vmem:[%s7321_s1 + $0x6f8] ss:$12 sps:$4 sm:$0xff]   ;;  %v5595_v44 = vld [vmem:[%s7321_s1 + $0x710] ss:$12 sps:$4 sm:$0xff]  }
 0x15b   : > { %2665 = vmatpush1.bf16.msra.mxu0 %v5435_v29  ;;  %v4961_v14 = vpop.f32.mrb[48].mxu1  ;;  %v6785_v12 = vadd.f32 %v4938_v11, %v1755_v34 }
 0x15c   : > { %2666 = vmatprep.subr.bf16.mxu0 %v5440_v27  ;;  %v4962_v5 = vpop.f32.mrb[49].mxu1 }
 0x15d   : > { %v4963_v62 = vadd.f32 %v4962_v5, %v4961_v14  ;;  %v4964_v43 = vpop.f32.mrb[50].mxu1 }
 0x15e   : > { %v4965_v47 = vpop.f32.mrb[51].mxu1 }
 0x15f   : > { %2667 = vmatpush1.bf16.msra.mxu0 %v5438_v60  ;;  %v2784_v57 = vadd.f32 %v4963_v62, %v6729_v8  ;;  %v4966_v52 = vadd.f32 %v4965_v47, %v4964_v43  ;;  %v5597_v43 = vld [vmem:[%s7321_s1 + $0x728] ss:$12 sps:$4 sm:$0xff]  }
 0x160   : > { %2668 = vmatprep.subr.bf16.mxu0 %v5443_v1  ;;  %v5598_v47 = vld [vmem:[%s7321_s1 + $0x668] ss:$12 sps:$4 sm:$0xff]  }
 0x161   : > { %v2825_v49 = vadd.f32 %v6788_v45, %v2784_v57  ;;  %v2787_v20 = vadd.f32 %v4966_v52, %v6734_v22  ;;  %v5599_v57 = vld [vmem:[%s7321_s1 + $0x740] ss:$12 sps:$4 sm:$0xff]  }
 0x163   : > { %2669 = vmatpush1.bf16.msra.mxu0 %v5441_v0  ;;  %v2849_v61 = vmax.f32 %v2825_v49, 0.0  ;;  %v2828_v24 = vadd.f32 %v6788_v45, %v2787_v20  ;;  %v4967_v35 = vpop.f32.mrb[52].mxu1 }
 0x164   : > { %4939 = vmatprep.subr.bf16.mxu0 %v5589_v41  ;;  %v4968_v8 = vpop.f32.mrb[53].mxu1 }
 0x165   : > { %v6806_v63 = vrot.slane %v2849_v61, 1  ;;  %v2852_v17 = vmax.f32 %v2828_v24, 0.0  ;;  %v4969_v22 = vadd.f32 %v4968_v8, %v4967_v35  ;;  %v4970_v58 = vpop.f32.mrb[54].mxu1  ;;  %v5601_v35 = vld [vmem:[%s7321_s1 + $0x758] ss:$12 sps:$4 sm:$0xff]  }
 0x166   : > { %2671 = vmatmul.mubr.bf16.vlgmr.msra.gmra.mrb[0].mxu0 %v6800_v59  ;;  %v4971_v51 = vpop.f32.mrb[55].mxu1  ;;  %v5602_v8 = vld [vmem:[%s7321_s1 + $0x698] ss:$12 sps:$4 sm:$0xff]  }
 0x167   : > { %4940 = vmatpush3.bf16.msra.mxu0 %v5590_v38  ;;  %2680 = vmatprep.mubr.bf16.mxu0 %v6315_v30  ;;  %v2909_v16 = vrot.slane %v2852_v17, 1  ;;  %v2790_v55 = vadd.f32 %v4969_v22, %v6749_v33  ;;  %v4972_v7 = vadd.f32 %v4971_v51, %v4970_v58  ;;  %v5592_v30 = vld [vmem:[%s7321_s1 + $0x620] ss:$12 sps:$4 sm:$0xff]   ;;  %v5604_v22 = vld [vmem:[%s7321_s1 + $0x6b0] ss:$12 sps:$4 sm:$0xff]   ;;  %v2804_v58 = vsub.s32 0, %v6759_v56 }
 0x168   : > { %4941 = vmatprep.subr.bf16.mxu0 %v5591_v53  ;;  %v2808_v38 = vsub.s32 1, %v6759_v56 }
 0x169   : > { %v2831_v26 = vadd.f32 %v6788_v45, %v2790_v55  ;;  %v2793_v46 = vadd.f32 %v4972_v7, %v6754_v2  ;;  %v2910_v40 = vsel %vm1315_vm1, %v6806_v63, %v2909_v16 }
 0x16a   : > { %v6824_v3 = vmax.f32 %v2849_v61, %v2910_v40  ;;  %v6901_v51 = vrot.slane %v6777_v31, %v2808_v38 }
 0x16b   : > { %4942 = vmatpush3.bf16.msra.mxu0 %v5592_v30  ;;  %v2855_v33 = vmax.f32 %v2831_v26, 0.0  ;;  %v2834_v39 = vadd.f32 %v6788_v45, %v2793_v46  ;;  %v4973_v50 = vpop.f32.mrb[56].mxu1 }
 0x16c   : > { %4943 = vmatprep.subr.bf16.mxu0 %v5593_v6  ;;  %v4974_v2 = vpop.f32.mrb[57].mxu1 }
 0x16d   : > { %v2915_v13 = vrot.slane %v2855_v33, 1  ;;  %v2858_v15 = vmax.f32 %v2834_v39, 0.0  ;;  %v4975_v29 = vadd.f32 %v4974_v2, %v4973_v50  ;;  %v4976_v25 = vpop.f32.mrb[58].mxu1 }
 0x16e   : > { %2681 = vmatmul.mubr.bf16.gmra.mrb[4].mxu0 %v6339_v37  ;;  %v4977_v23 = vpop.f32.mrb[59].mxu1 }
 0x16f   : > { %4944 = vmatpush3.bf16.msra.mxu0 %v5594_v4  ;;  %2690 = vmatprep.mubr.bf16.mxu0 %v6345_v10  ;;  %v2921_v27 = vrot.slane %v2858_v15, 1  ;;  %v2796_v11 = vadd.f32 %v4975_v29, %v6779_v48  ;;  %v4978_v28 = vadd.f32 %v4977_v23, %v4976_v25  ;;  %v2916_v37 = vsel %vm1315_vm1, %v2909_v16, %v2915_v13  ;;  %v5596_v48 = vld [vmem:[%s7321_s1 + $0x650] ss:$12 sps:$4 sm:$0xff]  }
 0x170   : > { %4945 = vmatprep.subr.bf16.mxu0 %v5595_v44  ;;  %v6840_v42 = vmax.f32 %v2852_v17, %v2916_v37  ;;  %v5603_v17 = vld [vmem:[%s7321_s1 + $0x770] ss:$12 sps:$4 sm:$0xff]  }
 0x171   : > { %v2837_v60 = vadd.f32 %v6788_v45, %v2796_v11  ;;  %v2799_v34 = vadd.f32 %v4978_v28, %v6785_v12  ;;  %v2922_v10 = vsel %vm1315_vm1, %v2915_v13, %v2921_v27 }
 0x172   : > { %v2988_v14 = vpack.c.bf16 %v6840_v42, %v6824_v3  ;;  %v6850_v1 = vmax.f32 %v2855_v33, %v2922_v10  ;;  %v5447_v3 = vld [vmem:[%s7324_s4] ss:$8 sps:$4 sm:$0xff]   ;;  %v5452_v42 = vld [vmem:[%s7324_s4 + $0x14] ss:$8 sps:$4 sm:$0xff]  }
 0x173   : > { %4946 = vmatpush3.bf16.msra.mxu0 %v5596_v48  ;;  %v2861_v5 = vmax.f32 %v2837_v60, 0.0  ;;  %v2840_v62 = vadd.f32 %v6788_v45, %v2799_v34 }
 0x174   : > { %4947 = vmatprep.subr.bf16.mxu0 %v5597_v43 }
 0x175   : > { %v2927_v12 = vrot.slane %v2861_v5, 1  ;;  %v2864_v0 = vmax.f32 %v2840_v62, 0.0 }
 0x176   : > { %2691 = vmatmul.mubr.bf16.gmra.mrb[8].mxu0 %v6361_v18 }
 0x177   : > { %4948 = vmatpush3.bf16.msra.mxu0 %v5598_v47  ;;  %2700 = vmatprep.mubr.bf16.mxu0 %v6367_v19  ;;  %v2933_v21 = vrot.slane %v2864_v0, 1  ;;  %v2928_v52 = vsel %vm1315_vm1, %v2921_v27, %v2927_v12  ;;  %v5600_v19 = vld [vmem:[%s7321_s1 + $0x680] ss:$12 sps:$4 sm:$0xff]  }
 0x178   : > { %4949 = vmatprep.subr.bf16.mxu0 %v5599_v57  ;;  %v6865_v49 = vmax.f32 %v2858_v15, %v2928_v52 }
 0x179   : > { %v2934_v20 = vsel %vm1315_vm1, %v2927_v12, %v2933_v21  ;;  %v6868_v18 = vmax.f32 %v2864_v0, %v2933_v21 }
 0x17a   : > { %v6870_v61 = vmax.f32 %v2861_v5, %v2934_v20  ;;  %v2991_v24 = vpack.c.bf16 %v6865_v49, %v6850_v1  ;;  %v5455_v1 = vld [vmem:[%s7324_s4 + $0x24] ss:$8 sps:$4 sm:$0xff]   ;;  %v5453_v49 = vld [vmem:[%s7324_s4 + $0x20] ss:$8 sps:$4 sm:$0xff]  }
 0x17b   : > { %4950 = vmatpush3.bf16.msra.mxu0 %v5600_v19 }
 0x17c   : > { %4951 = vmatprep.subr.bf16.mxu0 %v5601_v35  ;;  %v2994_v41 = vpack.c.bf16 %v6868_v18, %v6870_v61  ;;  %v5458_v18 = vld [vmem:[%s7324_s4 + $0x34] ss:$8 sps:$4 sm:$0xff]   ;;  %v5456_v61 = vld [vmem:[%s7324_s4 + $0x30] ss:$8 sps:$4 sm:$0xff]  }
 0x17e   : > { %2701 = vmatmul.mubr.bf16.gmra.mrb[12].mxu0 %v6382_v54  ;;  %v5613_v54 = vmov 0  }
 0x17f   : > { %4952 = vmatpush3.bf16.msra.mxu0 %v5602_v8  ;;  %2743 = vmatprep.mubr.bf16.mxu0 %v6695_v36  ;;  %v6898_v36 = vrot.slane %v6777_v31, %v2804_v58 }
 0x180   : > { %4953 = vmatprep.subr.bf16.mxu0 %v5603_v17  ;;  %3067 = vmatprep.mubr.bf16.mxu1 %v5613_v54 }
 0x183   : > { %4954 = vmatpush3.bf16.msra.mxu0 %v5604_v22 }
 0x186   : > { %2744 = vmatmul.mubr.bf16.vlgmr.msra.gmra.mrb[32].mxu0 %v6800_v59 }
 0x239   : > { %v2672_v16 = vpop.f32.mrb[0].mxu0 }
 0x23a   : > { %v2817_v55 = vadd.f32 %v6898_v36, %v2672_v16  ;;  %v2674_v53 = vpop.f32.mrb[1].mxu0 }
 0x23b   : > { %v2818_v7 = vadd.f32 %v6901_v51, %v2674_v53  ;;  %v2676_v59 = vpop.f32.mrb[2].mxu0 }
 0x23c   : > { %v2841_v26 = vmax.f32 %v2817_v55, 0.0  ;;  %v2820_v46 = vadd.f32 %v6898_v36, %v2676_v59  ;;  %v2678_v40 = vpop.f32.mrb[3].mxu0 }
 0x23d   : > { %v2842_v30 = vmax.f32 %v2818_v7, 0.0  ;;  %v2821_v56 = vadd.f32 %v6901_v51, %v2678_v40 }
 0x23e   : > { %v2844_v33 = vmax.f32 %v2820_v46, 0.0  ;;  %v2890_v50 = vrot.slane %v2841_v26, 1 }
 0x23f   : > { %v2845_v39 = vmax.f32 %v2821_v56, 0.0  ;;  %v2893_v31 = vrot.slane %v2842_v30, 1 }
 0x240   : > { %v2891_v6 = vrot.slane %v2844_v33, 1 }
 0x241   : > { %v2894_v2 = vrot.slane %v2845_v39, 1  ;;  %v2682_v13 = vpop.f32.mrb[4].mxu0 }
 0x242   : > { %v2892_v15 = vsel %vm1315_vm1, %v2890_v50, %v2891_v6  ;;  %v2823_v29 = vadd.f32 %v6898_v36, %v2682_v13  ;;  %v2684_v25 = vpop.f32.mrb[5].mxu0 }
 0x243   : > { %v2959_v4 = vmax.f32 %v2841_v26, %v2892_v15  ;;  %v2824_v23 = vadd.f32 %v6901_v51, %v2684_v25  ;;  %v2686_v27 = vpop.f32.mrb[6].mxu0  ;;  %v2895_v11 = vsel %vm1315_vm1, %v2893_v31, %v2894_v2 }
 0x244   : > { %v2847_v44 = vmax.f32 %v2823_v29, 0.0  ;;  %v2826_v28 = vadd.f32 %v6898_v36, %v2686_v27  ;;  %v2688_v37 = vpop.f32.mrb[7].mxu0  ;;  %v2960_v60 = vmax.f32 %v2842_v30, %v2895_v11 }
 0x245   : > { %v2848_v34 = vmax.f32 %v2824_v23, 0.0  ;;  %v2827_v10 = vadd.f32 %v6901_v51, %v2688_v37 }
 0x246   : > { %v2899_v48 = vrot.slane %v2847_v44, 1  ;;  %v2850_v5 = vmax.f32 %v2826_v28, 0.0 }
 0x247   : > { %v2901_v62 = vrot.slane %v2848_v34, 1  ;;  %v2851_v43 = vmax.f32 %v2827_v10, 0.0 }
 0x248   : > { %v2900_v12 = vsel %vm1315_vm1, %v2891_v6, %v2899_v48  ;;  %v2905_v0 = vrot.slane %v2850_v5, 1 }
 0x249   : > { %v2962_v47 = vmax.f32 %v2844_v33, %v2900_v12  ;;  %v2907_v21 = vrot.slane %v2851_v43, 1  ;;  %v2692_v57 = vpop.f32.mrb[8].mxu0  ;;  %v2902_v52 = vsel %vm1315_vm1, %v2894_v2, %v2901_v62 }
 0x24a   : > { %v2906_v20 = vsel %vm1315_vm1, %v2899_v48, %v2905_v0  ;;  %v2829_v19 = vadd.f32 %v6898_v36, %v2692_v57  ;;  %v2694_v35 = vpop.f32.mrb[9].mxu0  ;;  %v2963_v8 = vmax.f32 %v2845_v39, %v2902_v52 }
 0x24b   : > { %v2965_v17 = vmax.f32 %v2847_v44, %v2906_v20  ;;  %v2830_v22 = vadd.f32 %v6901_v51, %v2694_v35  ;;  %v2696_v58 = vpop.f32.mrb[10].mxu0  ;;  %v2983_v38 = vpack.c.bf16 %v2962_v47, %v2959_v4  ;;  %v2908_v16 = vsel %vm1315_vm1, %v2901_v62, %v2907_v21 }
 0x24c   : > { %v2853_v55 = vmax.f32 %v2829_v19, 0.0  ;;  %v2832_v53 = vadd.f32 %v6898_v36, %v2696_v58  ;;  %v2698_v7 = vpop.f32.mrb[11].mxu0  ;;  %v2984_v59 = vpack.c.bf16 %v2963_v8, %v2960_v60  ;;  %v2966_v26 = vmax.f32 %v2848_v34, %v2908_v16 }
 0x24d   : > { %v2854_v46 = vmax.f32 %v2830_v22, 0.0  ;;  %v2833_v40 = vadd.f32 %v6901_v51, %v2698_v7 }
 0x24e   : > { %v2911_v30 = vrot.slane %v2853_v55, 1  ;;  %v2856_v56 = vmax.f32 %v2832_v53, 0.0  ;;  %3035 = vmatprep.subr.bf16.mxu1 %v2984_v59 }
 0x24f   : > { %v2913_v33 = vrot.slane %v2854_v46, 1  ;;  %v2857_v39 = vmax.f32 %v2833_v40, 0.0  ;;  %3036 = vmatpush1.bf16.msra.mxu1 %v2983_v38  ;;  %v5614_v40 = vmov 65535  }
 0x250   : > { %v2912_v50 = vsel %vm1315_vm1, %v2905_v0, %v2911_v30  ;;  %v2917_v6 = vrot.slane %v2856_v56, 1 }
 0x251   : > { %v2968_v31 = vmax.f32 %v2850_v5, %v2912_v50  ;;  %v2919_v2 = vrot.slane %v2857_v39, 1  ;;  %v2702_v13 = vpop.f32.mrb[12].mxu0  ;;  %v2914_v15 = vsel %vm1315_vm1, %v2907_v21, %v2913_v33 }
 0x252   : > { %v2918_v29 = vsel %vm1315_vm1, %v2911_v30, %v2917_v6  ;;  %v2835_v25 = vadd.f32 %v6898_v36, %v2702_v13  ;;  %v2704_v4 = vpop.f32.mrb[13].mxu0  ;;  %v2969_v23 = vmax.f32 %v2851_v43, %v2914_v15  ;;  %v3024_v30 = vsel %vm2355_vm3, 4294967295, %v5614_v40 }
 0x253   : > { %v2971_v27 = vmax.f32 %v2853_v55, %v2918_v29  ;;  %v2836_v11 = vadd.f32 %v6901_v51, %v2704_v4  ;;  %v2706_v44 = vpop.f32.mrb[14].mxu0  ;;  %v2986_v28 = vpack.c.bf16 %v2968_v31, %v2965_v17  ;;  %v2920_v37 = vsel %vm1315_vm1, %v2913_v33, %v2919_v2 }
 0x254   : > { %v2859_v60 = vmax.f32 %v2835_v25, 0.0  ;;  %v2838_v34 = vadd.f32 %v6898_v36, %v2706_v44  ;;  %v2708_v10 = vpop.f32.mrb[15].mxu0  ;;  %v2987_v48 = vpack.c.bf16 %v2969_v23, %v2966_v26  ;;  %v2972_v5 = vmax.f32 %v2854_v46, %v2920_v37 }
 0x255   : > { %v2860_v62 = vmax.f32 %v2836_v11, 0.0  ;;  %v2839_v12 = vadd.f32 %v6901_v51, %v2708_v10  ;;  %v5615_v23 = vmov 0.0  }
 0x256   : > { %v2923_v0 = vrot.slane %v2859_v60, 1  ;;  %v2862_v47 = vmax.f32 %v2838_v34, 0.0  ;;  %3037 = vmatprep.subr.bf16.mxu1 %v2987_v48  ;;  %v5449_v34 = vld [vmem:[%s7324_s4 + $0x4] ss:$8 sps:$4 sm:$0xff]   ;;  %v5464_v48 = vld [vmem:[%s7324_s4 + $0x54] ss:$8 sps:$4 sm:$0xff]  }
 0x257   : > { %v2925_v43 = vrot.slane %v2860_v62, 1  ;;  %v2863_v21 = vmax.f32 %v2839_v12, 0.0  ;;  %3038 = vmatpush1.bf16.msra.mxu1 %v2986_v28  ;;  %v5465_v12 = vld [vmem:[%s7324_s4 + $0x60] ss:$8 sps:$4 sm:$0xff]  }
 0x258   : > { %v2924_v57 = vsel %vm1315_vm1, %v2917_v6, %v2923_v0  ;;  %v2929_v52 = vrot.slane %v2862_v47, 1 }
 0x259   : > { %v2974_v20 = vmax.f32 %v2856_v56, %v2924_v57  ;;  %v2931_v19 = vrot.slane %v2863_v21, 1  ;;  %v4955_v35 = vpop.f32.mrb[32].mxu0  ;;  %v2926_v36 = vsel %vm1315_vm1, %v2919_v2, %v2925_v43  ;;  %v3025_v2 = vsel %vm1315_vm1, %v3024_v30, 0  ;;  %v5476_v57 = vld [vmem:[%s7324_s4 + $0x94] ss:$8 sps:$4 sm:$0xff]  }
 0x25a   : > { %v2930_v8 = vsel %vm1315_vm1, %v2923_v0, %v2929_v52  ;;  %v2980_v17 = vmax.f32 %v2862_v47, %v2929_v52  ;;  %v4956_v22 = vpop.f32.mrb[33].mxu0  ;;  %v2975_v58 = vmax.f32 %v2857_v39, %v2926_v36  ;;  %v3033_v10 = vand.u32 %v3025_v2, %v2994_v41  ;;  %v5459_v41 = vld [vmem:[%s7324_s4 + $0x40] ss:$8 sps:$4 sm:$0xff]   ;;  %v5470_v0 = vld [vmem:[%s7324_s4 + $0x74] ss:$8 sps:$4 sm:$0xff]  }
 0x25b   : > { %v2977_v51 = vmax.f32 %v2859_v60, %v2930_v8  ;;  %v2932_v38 = vsel %vm1315_vm1, %v2925_v43, %v2931_v19  ;;  %v2981_v16 = vmax.f32 %v2863_v21, %v2931_v19  ;;  %v4957_v55 = vadd.f32 %v4956_v22, %v4955_v35  ;;  %v4958_v53 = vpop.f32.mrb[34].mxu0  ;;  %v5445_v60 = vld [vmem:[%s7323_s3 + $0x8] sm:$0xff]   ;;  %v5468_v47 = vld [vmem:[%s7324_s4 + $0x70] ss:$8 sps:$4 sm:$0xff]   ;;  %v5482_v35 = vld [vmem:[%s7324_s4 + $0xb4] ss:$8 sps:$4 sm:$0xff]  }
 0x25c   : > { %v2978_v7 = vmax.f32 %v2860_v62, %v2932_v38  ;;  %v4959_v59 = vpop.f32.mrb[35].mxu0  ;;  %v2990_v26 = vpack.c.bf16 %v2975_v58, %v2972_v5  ;;  %v2989_v46 = vpack.c.bf16 %v2974_v20, %v2971_v27  ;;  %v5462_v5 = vld [vmem:[%s7324_s4 + $0x50] ss:$8 sps:$4 sm:$0xff]   ;;  %v5467_v62 = vld [vmem:[%s7324_s4 + $0x64] ss:$8 sps:$4 sm:$0xff]  }
 0x25d   : > { %v2992_v56 = vpack.c.bf16 %v2980_v17, %v2977_v51  ;;  %v2778_v33 = vadd.f32 %v4957_v55, %v6708_v9  ;;  %v4960_v50 = vadd.f32 %v4959_v59, %v4958_v53  ;;  %v5444_v9 = vld [vmem:[%s7323_s3] sm:$0xff]   ;;  %v5474_v52 = vld [vmem:[%s7324_s4 + $0x90] ss:$8 sps:$4 sm:$0xff]   ;;  %v5488_v22 = vld [vmem:[%s7324_s4 + $0xd4] ss:$8 sps:$4 sm:$0xff]  }
 0x25e   : > { %v2993_v6 = vpack.c.bf16 %v2981_v16, %v2978_v7  ;;  %3039 = vmatprep.subr.bf16.mxu1 %v2990_v26  ;;  %v5473_v43 = vld [vmem:[%s7324_s4 + $0x84] ss:$8 sps:$4 sm:$0xff]   ;;  %v5471_v21 = vld [vmem:[%s7324_s4 + $0x80] ss:$8 sps:$4 sm:$0xff]   ;;  %v5480_v36 = vld [vmem:[%s7324_s4 + $0xb0] ss:$8 sps:$4 sm:$0xff]  }
 0x25f   : > { %v2819_v39 = vadd.f32 %v6788_v45, %v2778_v33  ;;  %v2781_v31 = vadd.f32 %v4960_v50, %v6711_v32  ;;  %3040 = vmatpush1.bf16.msra.mxu1 %v2989_v46  ;;  %v3027_v25 = vand.u32 %v3025_v2, %v2992_v56  ;;  %v5479_v20 = vld [vmem:[%s7324_s4 + $0xa4] ss:$8 sps:$4 sm:$0xff]   ;;  %v5477_v19 = vld [vmem:[%s7324_s4 + $0xa0] ss:$8 sps:$4 sm:$0xff]   ;;  %v5486_v58 = vld [vmem:[%s7324_s4 + $0xd0] ss:$8 sps:$4 sm:$0xff]  }
 0x260   : > { %v3030_v13 = vand.u32 %v3025_v2, %v2993_v6  ;;  %v5485_v8 = vld [vmem:[%s7324_s4 + $0xc4] ss:$8 sps:$4 sm:$0xff]   ;;  %v5483_v17 = vld [vmem:[%s7324_s4 + $0xc0] ss:$8 sps:$4 sm:$0xff]   ;;  %v5494_v16 = vld [vmem:[%s7324_s4 + $0xf4] ss:$8 sps:$4 sm:$0xff]  }
 0x261   : > { %v2843_v15 = vmax.f32 %v2819_v39, 0.0  ;;  %v2822_v29 = vadd.f32 %v6788_v45, %v2781_v31  ;;  %v5491_v51 = vld [vmem:[%s7324_s4 + $0xe4] ss:$8 sps:$4 sm:$0xff]   ;;  %v5489_v38 = vld [vmem:[%s7324_s4 + $0xe0] ss:$8 sps:$4 sm:$0xff]  }
 0x262   : > { %3041 = vmatprep.subr.bf16.mxu1 %v3030_v13  ;;  %v5492_v55 = vld [vmem:[%s7324_s4 + $0xf0] ss:$8 sps:$4 sm:$0xff]   ;;  %v5497_v53 = vld [vmem:[%s7324_s4 + $0x104] ss:$8 sps:$4 sm:$0xff]   ;;  %v5495_v56 = vld [vmem:[%s7324_s4 + $0x100] ss:$8 sps:$4 sm:$0xff]  }
 0x263   : > { %v2846_v4 = vmax.f32 %v2822_v29, 0.0  ;;  %3042 = vmatpush1.bf16.msra.mxu1 %v3027_v25  ;;  %v2896_v27 = vrot.slane %v2843_v15, 1  ;;  %v5500_v33 = vld [vmem:[%s7324_s4 + $0x114] ss:$8 sps:$4 sm:$0xff]   ;;  %v5498_v50 = vld [vmem:[%s7324_s4 + $0x110] ss:$8 sps:$4 sm:$0xff]  }
 0x264   : > { %4986 = vmatprep.subr.bf16.mxu1 %v5615_v23  ;;  %v5503_v39 = vld [vmem:[%s7324_s4 + $0x124] ss:$8 sps:$4 sm:$0xff]   ;;  %v5501_v29 = vld [vmem:[%s7324_s4 + $0x120] ss:$8 sps:$4 sm:$0xff]  }
 0x265   : > { %v2897_v32 = vrot.slane %v2846_v4, 1 }
 0x266   : > { %4610 = vmatmul.mubr.msk.bf16.vlgmr.msra.gmra.mrb[60].mxu1 %vm3013_vm4, %v5444_v9 }
 0x267   : > { %v2904_v11 = vsel %vm1315_vm1, %v2897_v32, %v6806_v63  ;;  %v2898_v45 = vsel %vm1315_vm1, %v2896_v27, %v2897_v32  ;;  %3077 = vmatprep.mubr.bf16.mxu1 %v5613_v54  ;;  %v5446_v63 = vld [vmem:[%s7323_s3 + $0x10] ss:$0 sps:$4 sm:$0x11]   ;;  %v5509_v27 = vld [vmem:[%s7324_s4 + $0x144] ss:$8 sps:$4 sm:$0xff]  }
 0x268   : > { %v2964_v44 = vmax.f32 %v2846_v4, %v2904_v11  ;;  %v2961_v28 = vmax.f32 %v2843_v15, %v2898_v45  ;;  %v5504_v4 = vld [vmem:[%s7324_s4 + $0x130] ss:$8 sps:$4 sm:$0xff]  }
 0x26a   : > { %v2985_v37 = vpack.c.bf16 %v2964_v44, %v2961_v28 }
 0x26c   : > { %4987 = vmatpush3.bf16.msra.mxu1 %v2985_v37  ;;  %v5507_v37 = vld [vmem:[%s7324_s4 + $0x140] ss:$8 sps:$4 sm:$0xff]  }
 0x26d   : > { %4988 = vmatprep.subr.bf16.mxu1 %v5615_v23 }
 0x26e   : > { %4611 = vmatmul.mubr.msk.bf16.gmra.mrb[64].mxu1 %vm3013_vm4, %v5445_v60 }
 0x26f   : > { %3087 = vmatprep.mubr.bf16.mxu1 %v5613_v54 }
 0x270   : > { %4989 = vmatpush3.bf16.msra.mxu1 %v2988_v14  ;;  %v5450_v14 = vld [vmem:[%s7324_s4 + $0x10] ss:$8 sps:$4 sm:$0xff]  }
 0x271   : > { %4990 = vmatprep.subr.bf16.mxu1 %v5615_v23 }
 0x274   : > { %4991 = vmatpush3.bf16.msra.mxu1 %v2991_v24  ;;  %v5461_v24 = vld [vmem:[%s7324_s4 + $0x44] ss:$8 sps:$4 sm:$0xff]  }
 0x275   : > { %4992 = vmatprep.subr.bf16.mxu1 %v5615_v23 }
 0x276   : > { %4612 = vmatmul.mubr.msk.bf16.gmra.mrb[68].mxu1 %vm3013_vm4, %v5446_v63 }
 0x277   : > { %4994 = vmatprep.mubr.msk.bf16.mxu1 %vm5616_vm5, %v5615_v23 }
 0x278   : > { %4993 = vmatpush3.bf16.msra.mxu1 %v3033_v10  ;;  %v5515_v10 = vld [vmem:[%s7324_s4 + $0x164] ss:$8 sps:$4 sm:$0xff]  }
 0x279   : > { %3460 = vmatprep.subr.bf16.mxu1 %v5449_v34 }
 0x27e   : > { %4995 = vmatmul.mubr.msk.bf16.vlgmr.msra.gmra.mrb[72].mxu1 %vm3013_vm4, %v5444_v9  ;;  %v5506_v9 = vld [vmem:[%s7324_s4 + $0x134] ss:$8 sps:$4 sm:$0xff]  }
 0x27f   : > { %4998 = vmatprep.mubr.msk.bf16.mxu1 %vm5616_vm5, %v5615_v23  ;;  %3461 = vmatpush1.bf16.msra.mxu1 %v5447_v3 }
 0x280   : > { %3462 = vmatprep.subr.bf16.mxu1 %v5452_v42  ;;  %v3207_v42 = vld [vmem:[%s7324_s4 + $0x170] sm:$0x33] }
 0x283   : > { %3463 = vmatpush1.bf16.msra.mxu1 %v5450_v14 }
 0x284   : > { %3464 = vmatprep.subr.bf16.mxu1 %v5455_v1 }
 0x286   : > { %4999 = vmatmul.mubr.msk.bf16.gmra.mrb[76].mxu1 %vm3013_vm4, %v5445_v60  ;;  %v5512_v60 = vld [vmem:[%s7324_s4 + $0x154] ss:$8 sps:$4 sm:$0xff]  }
 0x287   : > { %5002 = vmatprep.mubr.msk.bf16.mxu1 %vm5616_vm5, %v5615_v23  ;;  %3465 = vmatpush1.bf16.msra.mxu1 %v5453_v49 }
 0x288   : > { %3466 = vmatprep.subr.bf16.mxu1 %v5458_v18  ;;  %v5513_v18 = vld [vmem:[%s7324_s4 + $0x160] ss:$8 sps:$4 sm:$0xff]  }
 0x28b   : > { %3467 = vmatpush1.bf16.msra.mxu1 %v5456_v61  ;;  %v4663_v61 = vcombine.high %v3207_v42, %v3207_v42 }
 0x28c   : > { %3468 = vmatprep.subr.bf16.mxu1 %v5461_v24  ;;  %v4662_v24 = vcombine.low %v3207_v42, %v3207_v42  ;;  %v5586_v42 = vld [vmem:[%s7324_s4 + $0x2dc] ss:$8 sps:$4 sm:$0xff]  }
 0x28e   : > { %5003 = vmatmul.mubr.msk.bf16.gmra.mrb[80].mxu1 %vm3013_vm4, %v5446_v63  ;;  %v5510_v63 = vld [vmem:[%s7324_s4 + $0x150] ss:$8 sps:$4 sm:$0xff]  }
 0x28f   : > { %3469 = vmatpush1.bf16.msra.mxu1 %v5459_v41 }
 0x290   : > { %3470 = vmatprep.subr.bf16.mxu1 %v5464_v48  ;;  %v3455_v48 = vsel %vm3453_vm6, %v4662_v24, 0 }
 0x293   : > { %3471 = vmatpush1.bf16.msra.mxu1 %v5462_v5  ;;  %v5520_v5 = vld [vmem:[%s7324_s4 + $0x17c] ss:$8 sps:$4 sm:$0xff]  }
 0x294   : > { %3472 = vmatprep.subr.bf16.mxu1 %v5467_v62 }
 0x297   : > { %3473 = vmatpush1.bf16.msra.mxu1 %v5465_v12 }
 0x298   : > { %3474 = vmatprep.subr.bf16.mxu1 %v5470_v0 }
 0x29b   : > { %3475 = vmatpush1.bf16.msra.mxu1 %v5468_v47 }
 0x29c   : > { %3476 = vmatprep.subr.bf16.mxu1 %v5473_v43  ;;  %v5518_v43 = vld [vmem:[%s7324_s4 + $0x178] ss:$8 sps:$4 sm:$0xff]  }
 0x29f   : > { %3477 = vmatpush1.bf16.msra.mxu1 %v5471_v21  ;;  %v5523_v21 = vld [vmem:[%s7324_s4 + $0x18c] ss:$8 sps:$4 sm:$0xff]  }
 0x2a0   : > { %3478 = vmatprep.subr.bf16.mxu1 %v5476_v57  ;;  %v5521_v57 = vld [vmem:[%s7324_s4 + $0x188] ss:$8 sps:$4 sm:$0xff]  }
 0x2a3   : > { %3479 = vmatpush1.bf16.msra.mxu1 %v5474_v52 }
 0x2a4   : > { %3480 = vmatprep.subr.bf16.mxu1 %v5479_v20  ;;  %v5526_v20 = vld [vmem:[%s7324_s4 + $0x19c] ss:$8 sps:$4 sm:$0xff]  }
 0x2a7   : > { %3481 = vmatpush1.bf16.msra.mxu1 %v5477_v19 }
 0x2a8   : > { %3482 = vmatprep.subr.bf16.mxu1 %v5482_v35 }
 0x2ab   : > { %3483 = vmatpush1.bf16.msra.mxu1 %v5480_v36 }
 0x2ac   : > { %3484 = vmatprep.subr.bf16.mxu1 %v5485_v8  ;;  %v5524_v8 = vld [vmem:[%s7324_s4 + $0x198] ss:$8 sps:$4 sm:$0xff]  }
 0x2af   : > { %3485 = vmatpush1.bf16.msra.mxu1 %v5483_v17  ;;  %v5529_v17 = vld [vmem:[%s7324_s4 + $0x1ac] ss:$8 sps:$4 sm:$0xff]  }
 0x2b0   : > { %3486 = vmatprep.subr.bf16.mxu1 %v5488_v22  ;;  %v5527_v22 = vld [vmem:[%s7324_s4 + $0x1a8] ss:$8 sps:$4 sm:$0xff]  }
 0x2b3   : > { %3487 = vmatpush1.bf16.msra.mxu1 %v5486_v58  ;;  %v5532_v58 = vld [vmem:[%s7324_s4 + $0x1bc] ss:$8 sps:$4 sm:$0xff]  }
 0x2b4   : > { %3488 = vmatprep.subr.bf16.mxu1 %v5491_v51 }
 0x2b7   : > { %3489 = vmatpush1.bf16.msra.mxu1 %v5489_v38  ;;  %v5530_v38 = vld [vmem:[%s7324_s4 + $0x1b8] ss:$8 sps:$4 sm:$0xff]  }
 0x2b8   : > { %3490 = vmatprep.subr.bf16.mxu1 %v5494_v16  ;;  %v5535_v16 = vld [vmem:[%s7324_s4 + $0x1cc] ss:$8 sps:$4 sm:$0xff]  }
 0x2bb   : > { %3491 = vmatpush1.bf16.msra.mxu1 %v5492_v55  ;;  %v5533_v55 = vld [vmem:[%s7324_s4 + $0x1c8] ss:$8 sps:$4 sm:$0xff]  }
 0x2bc   : > { %3521 = vmatprep.subr.bf16.mxu1 %v5497_v53  ;;  %v5538_v53 = vld [vmem:[%s7324_s4 + $0x1dc] ss:$8 sps:$4 sm:$0xff]  }
 0x339   : > { %v3069_v7 = vpop.f32.mrb[60].mxu1 }
 0x33a   : > { %v3071_v59 = vpop.f32.mrb[61].mxu1 }
 0x33b   : > { %v3073_v26 = vpop.f32.mrb[62].mxu1 }
 0x33c   : > { %v7070_v46 = vpack.c.bf16 %v3073_v26, %v3069_v7  ;;  %v3075_v40 = vpop.f32.mrb[63].mxu1  ;;  %v5536_v7 = vld [vmem:[%s7324_s4 + $0x1d8] ss:$8 sps:$4 sm:$0xff]   ;;  %v5539_v26 = vld [vmem:[%s7324_s4 + $0x1e8] ss:$8 sps:$4 sm:$0xff]  }
 0x33d   : > { %v7072_v30 = vpack.c.bf16 %v3075_v40, %v3071_v59  ;;  %v5541_v59 = vld [vmem:[%s7324_s4 + $0x1ec] ss:$8 sps:$4 sm:$0xff]   ;;  %v5544_v40 = vld [vmem:[%s7324_s4 + $0x1fc] ss:$8 sps:$4 sm:$0xff]  }
 0x33f   : > { %3492 = vmatprep.mubr.bf16.mxu1 %v7072_v30 }
 0x340   : > { %3493 = vmatmul.mubr.bf16.vlgmr.msra.gmra.mrb[84].mxu1 %v7070_v46 }
 0x341   : > { %3522 = vmatpush1.bf16.msra.mxu1 %v5495_v56  ;;  %v3079_v6 = vpop.f32.mrb[64].mxu1  ;;  %v5547_v56 = vld [vmem:[%s7324_s4 + $0x20c] ss:$8 sps:$4 sm:$0xff]  }
 0x342   : > { %3523 = vmatprep.subr.bf16.mxu1 %v5500_v33  ;;  %v3081_v31 = vpop.f32.mrb[65].mxu1  ;;  %v5545_v33 = vld [vmem:[%s7324_s4 + $0x208] ss:$8 sps:$4 sm:$0xff]  }
 0x343   : > { %v3083_v2 = vpop.f32.mrb[66].mxu1 }
 0x344   : > { %v7088_v13 = vpack.c.bf16 %v3083_v2, %v3079_v6  ;;  %v3085_v15 = vpop.f32.mrb[67].mxu1  ;;  %v5548_v6 = vld [vmem:[%s7324_s4 + $0x218] ss:$8 sps:$4 sm:$0xff]   ;;  %v5556_v2 = vld [vmem:[%s7324_s4 + $0x23c] ss:$8 sps:$4 sm:$0xff]  }
 0x345   : > { %3524 = vmatpush1.bf16.msra.mxu1 %v5498_v50  ;;  %v7093_v25 = vpack.c.bf16 %v3085_v15, %v3081_v31  ;;  %v5550_v50 = vld [vmem:[%s7324_s4 + $0x21c] ss:$8 sps:$4 sm:$0xff]   ;;  %v5551_v31 = vld [vmem:[%s7324_s4 + $0x228] ss:$8 sps:$4 sm:$0xff]   ;;  %v5554_v15 = vld [vmem:[%s7324_s4 + $0x238] ss:$8 sps:$4 sm:$0xff]  }
 0x346   : > { %3525 = vmatprep.subr.bf16.mxu1 %v5503_v39  ;;  %v5553_v39 = vld [vmem:[%s7324_s4 + $0x22c] ss:$8 sps:$4 sm:$0xff]  }
 0x347   : > { %3502 = vmatprep.mubr.bf16.mxu1 %v7093_v25 }
 0x348   : > { %3503 = vmatmul.mubr.bf16.gmra.mrb[88].mxu1 %v7088_v13 }
 0x349   : > { %3526 = vmatpush1.bf16.msra.mxu1 %v5501_v29  ;;  %v3089_v23 = vpop.f32.mrb[68].mxu1  ;;  %v5559_v29 = vld [vmem:[%s7324_s4 + $0x24c] ss:$8 sps:$4 sm:$0xff]  }
 0x34a   : > { %3527 = vmatprep.subr.bf16.mxu1 %v5506_v9  ;;  %v3091_v32 = vpop.f32.mrb[69].mxu1  ;;  %v7108_v44 = vpack.c.bf16 %v3089_v23, %v3089_v23  ;;  %v5557_v9 = vld [vmem:[%s7324_s4 + $0x248] ss:$8 sps:$4 sm:$0xff]   ;;  %v5560_v23 = vld [vmem:[%s7324_s4 + $0x258] ss:$8 sps:$4 sm:$0xff]  }
 0x34b   : > { %v7106_v11 = vpack.c.bf16 %v3091_v32, %v3091_v32  ;;  %v3093_v45 = vpop.f32.mrb[70].mxu1  ;;  %v5563_v32 = vld [vmem:[%s7324_s4 + $0x268] ss:$8 sps:$4 sm:$0xff]  }
 0x34c   : > { %v3094_v28 = vpop.f32.mrb[71].mxu1  ;;  %v5568_v45 = vld [vmem:[%s7324_s4 + $0x27c] ss:$8 sps:$4 sm:$0xff]  }
 0x34d   : > { %3528 = vmatpush1.bf16.msra.mxu1 %v5504_v4  ;;  %3512 = vmatprep.mubr.bf16.mxu1 %v7106_v11  ;;  %v5562_v4 = vld [vmem:[%s7324_s4 + $0x25c] ss:$8 sps:$4 sm:$0xff]   ;;  %v5566_v28 = vld [vmem:[%s7324_s4 + $0x278] ss:$8 sps:$4 sm:$0xff]  }
 0x34e   : > { %3529 = vmatprep.subr.bf16.mxu1 %v5509_v27  ;;  %v5565_v27 = vld [vmem:[%s7324_s4 + $0x26c] ss:$8 sps:$4 sm:$0xff]  }
 0x350   : > { %3513 = vmatmul.mubr.bf16.gmra.mrb[92].mxu1 %v7108_v44 }
 0x351   : > { %3530 = vmatpush1.bf16.msra.mxu1 %v5507_v37  ;;  %v3130_v34 = vpop.f32.mrb[72].mxu1  ;;  %3553 = vmatprep.mubr.bf16.mxu1 %v5613_v54  ;;  %v5571_v37 = vld [vmem:[%s7324_s4 + $0x28c] ss:$8 sps:$4 sm:$0xff]  }
 0x352   : > { %3531 = vmatprep.subr.bf16.mxu1 %v5512_v60  ;;  %v4996_v3 = vpop.f32.mrb[73].mxu1  ;;  %v5569_v60 = vld [vmem:[%s7324_s4 + $0x288] ss:$8 sps:$4 sm:$0xff]  }
 0x353   : > { %v3133_v14 = vpop.f32.mrb[74].mxu1  ;;  %v5578_v3 = vld [vmem:[%s7324_s4 + $0x2b8] ss:$8 sps:$4 sm:$0xff]  }
 0x354   : > { %v7128_v1 = vpack.c.bf16 %v3133_v14, %v3130_v34  ;;  %v4997_v49 = vpop.f32.mrb[75].mxu1  ;;  %v5572_v34 = vld [vmem:[%s7324_s4 + $0x298] ss:$8 sps:$4 sm:$0xff]   ;;  %v4714_v14 = vld [vmem:[%s7324_s4 + $0x2e8] sm:$0x33] }
 0x355   : > { %3532 = vmatpush1.bf16.msra.mxu1 %v5510_v63  ;;  %v5574_v63 = vld [vmem:[%s7324_s4 + $0x29c] ss:$8 sps:$4 sm:$0xff]   ;;  %v4762_v49 = vcombine.high %v4714_v14, %v4714_v14 }
 0x356   : > { %3533 = vmatprep.subr.bf16.mxu1 %v5515_v10  ;;  %v5580_v10 = vld [vmem:[%s7324_s4 + $0x2bc] ss:$8 sps:$4 sm:$0xff]  }
 0x359   : > { %3534 = vmatpush1.bf16.msra.mxu1 %v5513_v18  ;;  %v3138_v41 = vpop.f32.mrb[76].mxu1  ;;  %v4761_v18 = vcombine.low %v4714_v14, %v4714_v14 }
 0x35a   : > { %4664 = vmatprep.subr.msk.bf16.mxu1 %vm3453_vm6, %v4663_v61  ;;  %v5000_v62 = vpop.f32.mrb[77].mxu1 }
 0x35b   : > { %v3141_v12 = vpop.f32.mrb[78].mxu1  ;;  %v3866_v61 = vsel %vm3453_vm6, %v4761_v18, 0 }
 0x35c   : > { %v7138_v0 = vpack.c.bf16 %v3141_v12, %v3138_v41  ;;  %v5001_v47 = vpop.f32.mrb[79].mxu1 }
 0x35d   : > { %3536 = vmatpush1.bf16.msra.mxu1 %v3455_v48 }
 0x35e   : > { %3871 = vmatprep.subr.bf16.mxu1 %v5520_v5 }
 0x360   : > { %4665 = vmatmul.mubr.msk.bf16.vlgmr.msra.gmra.mrb[84].mxu1 %vm3443_vm7, %v7128_v1 }
 0x361   : > { %3872 = vmatpush1.bf16.msra.mxu1 %v5518_v43  ;;  %3563 = vmatprep.mubr.bf16.mxu1 %v5613_v54  ;;  %v3146_v52 = vpop.f32.mrb[80].mxu1 }
 0x362   : > { %3873 = vmatprep.subr.bf16.mxu1 %v5523_v21  ;;  %v5004_v19 = vpop.f32.mrb[81].mxu1  ;;  %v7170_v51 = vpack.c.bf16 %v3146_v52, %v3146_v52 }
 0x363   : > { %v3149_v35 = vpop.f32.mrb[82].mxu1 }
 0x364   : > { %v5005_v36 = vpop.f32.mrb[83].mxu1 }
 0x365   : > { %3874 = vmatpush1.bf16.msra.mxu1 %v5521_v57 }
 0x366   : > { %3875 = vmatprep.subr.bf16.mxu1 %v5526_v20 }
 0x368   : > { %4666 = vmatmul.mubr.msk.bf16.gmra.mrb[88].mxu1 %vm3443_vm7, %v7138_v0 }
 0x369   : > { %3876 = vmatpush1.bf16.msra.mxu1 %v5524_v8  ;;  %3573 = vmatprep.mubr.bf16.mxu1 %v5613_v54 }
 0x36a   : > { %3877 = vmatprep.subr.bf16.mxu1 %v5529_v17 }
 0x36d   : > { %3878 = vmatpush1.bf16.msra.mxu1 %v5527_v22 }
 0x36e   : > { %3879 = vmatprep.subr.bf16.mxu1 %v5532_v58 }
 0x370   : > { %4667 = vmatmul.mubr.msk.bf16.gmra.mrb[92].mxu1 %vm3443_vm7, %v7170_v51 }
 0x371   : > { %3880 = vmatpush1.bf16.msra.mxu1 %v5530_v38  ;;  %3903 = vmatprep.mubr.bf16.mxu1 %v7072_v30  ;;  %v5542_v30 = vld [vmem:[%s7324_s4 + $0x1f8] ss:$8 sps:$4 sm:$0xff]  }
 0x372   : > { %3881 = vmatprep.subr.bf16.mxu1 %v5535_v16 }
 0x375   : > { %3882 = vmatpush1.bf16.msra.mxu1 %v5533_v55 }
 0x376   : > { %3883 = vmatprep.subr.bf16.mxu1 %v5538_v53 }
 0x379   : > { %3884 = vmatpush1.bf16.msra.mxu1 %v5536_v7 }
 0x37a   : > { %3885 = vmatprep.subr.bf16.mxu1 %v5541_v59 }
 0x37d   : > { %3886 = vmatpush1.bf16.msra.mxu1 %v5539_v26 }
 0x37e   : > { %3887 = vmatprep.subr.bf16.mxu1 %v5544_v40 }
 0x381   : > { %3888 = vmatpush1.bf16.msra.mxu1 %v5542_v30 }
 0x382   : > { %3889 = vmatprep.subr.bf16.mxu1 %v5547_v56 }
 0x385   : > { %3890 = vmatpush1.bf16.msra.mxu1 %v5545_v33 }
 0x386   : > { %3891 = vmatprep.subr.bf16.mxu1 %v5550_v50 }
 0x389   : > { %3892 = vmatpush1.bf16.msra.mxu1 %v5548_v6 }
 0x38a   : > { %3893 = vmatprep.subr.bf16.mxu1 %v5553_v39 }
 0x38d   : > { %3894 = vmatpush1.bf16.msra.mxu1 %v5551_v31  ;;  %v4046_v31 = vld [vmem:[%s7309_s30 + $0x20] sm:$0x11] }
 0x38e   : > { %3895 = vmatprep.subr.bf16.mxu1 %v5556_v2 }
 0x391   : > { %3896 = vmatpush1.bf16.msra.mxu1 %v5554_v15 }
 0x392   : > { %3897 = vmatprep.subr.bf16.mxu1 %v5559_v29 }
 0x395   : > { %3898 = vmatpush1.bf16.msra.mxu1 %v5557_v9 }
 0x396   : > { %3899 = vmatprep.subr.bf16.mxu1 %v5562_v4 }
 0x399   : > { %3900 = vmatpush1.bf16.msra.mxu1 %v5560_v23 }
 0x39a   : > { %3901 = vmatprep.subr.bf16.mxu1 %v5565_v27 }
 0x39d   : > { %3902 = vmatpush1.bf16.msra.mxu1 %v5563_v32 }
 0x39e   : > { %3932 = vmatprep.subr.bf16.mxu1 %v5568_v45 }
 0x3a0   : > { %3904 = vmatmul.mubr.bf16.vlgmr.msra.gmra.mrb[96].mxu1 %v7070_v46  ;;  %v5577_v46 = vld [vmem:[%s7324_s4 + $0x2ac] ss:$8 sps:$4 sm:$0xff]  }
 0x3a1   : > { %3913 = vmatprep.mubr.bf16.mxu1 %v7093_v25  ;;  %3933 = vmatpush1.bf16.msra.mxu1 %v5566_v28  ;;  %v5575_v25 = vld [vmem:[%s7324_s4 + $0x2a8] ss:$8 sps:$4 sm:$0xff]  }
 0x3a2   : > { %3934 = vmatprep.subr.bf16.mxu1 %v5571_v37 }
 0x3a5   : > { %3935 = vmatpush1.bf16.msra.mxu1 %v5569_v60 }
 0x3a6   : > { %3936 = vmatprep.subr.bf16.mxu1 %v5574_v63 }
 0x3a8   : > { %3914 = vmatmul.mubr.bf16.gmra.mrb[100].mxu1 %v7088_v13  ;;  %v5583_v13 = vld [vmem:[%s7324_s4 + $0x2cc] ss:$8 sps:$4 sm:$0xff]  }
 0x3a9   : > { %3923 = vmatprep.mubr.bf16.mxu1 %v7106_v11  ;;  %3937 = vmatpush1.bf16.msra.mxu1 %v5572_v34  ;;  %v5581_v11 = vld [vmem:[%s7324_s4 + $0x2c8] ss:$8 sps:$4 sm:$0xff]  }
 0x3aa   : > { %3938 = vmatprep.subr.bf16.mxu1 %v5577_v46 }
 0x3ad   : > { %3939 = vmatpush1.bf16.msra.mxu1 %v5575_v25 }
 0x3ae   : > { %3940 = vmatprep.subr.bf16.mxu1 %v5580_v10 }
 0x3b0   : > { %3924 = vmatmul.mubr.bf16.gmra.mrb[104].mxu1 %v7108_v44  ;;  %v5584_v44 = vld [vmem:[%s7324_s4 + $0x2d8] ss:$8 sps:$4 sm:$0xff]  }
 0x3b1   : > { %3941 = vmatpush1.bf16.msra.mxu1 %v5578_v3  ;;  %3964 = vmatprep.mubr.bf16.mxu1 %v5613_v54 }
 0x3b2   : > { %3942 = vmatprep.subr.bf16.mxu1 %v5583_v13 }
 0x3b5   : > { %3943 = vmatpush1.bf16.msra.mxu1 %v5581_v11 }
 0x3b6   : > { %3944 = vmatprep.subr.bf16.mxu1 %v5586_v42 }
 0x3b9   : > { %3945 = vmatpush1.bf16.msra.mxu1 %v5584_v44 }
 0x3ba   : > { %4763 = vmatprep.subr.msk.bf16.mxu1 %vm3453_vm6, %v4762_v49 }
 0x3bd   : > { %3947 = vmatpush1.bf16.msra.mxu1 %v3866_v61 }
 0x3c0   : > { %4764 = vmatmul.mubr.msk.bf16.vlgmr.msra.gmra.mrb[96].mxu1 %vm3443_vm7, %v7128_v1 }
 0x3c1   : > { %3974 = vmatprep.mubr.bf16.mxu1 %v5613_v54 }
 0x3c8   : > { %4765 = vmatmul.mubr.msk.bf16.gmra.mrb[100].mxu1 %vm3443_vm7, %v7138_v0 }
 0x3c9   : > { %3984 = vmatprep.mubr.bf16.mxu1 %v5613_v54 }
 0x3d0   : > { %4766 = vmatmul.mubr.msk.bf16.gmra.mrb[104].mxu1 %vm3443_vm7, %v7170_v51 }
 0x433   : > { %v3555_v24 = vpop.f32.mrb[84].mxu1 }
 0x434   : > { %v3557_v41 = vpop.f32.mrb[85].mxu1 }
 0x435   : > { %v3559_v48 = vpop.f32.mrb[86].mxu1 }
 0x436   : > { %v3561_v5 = vpop.f32.mrb[87].mxu1 }
 0x43b   : > { %v3565_v62 = vpop.f32.mrb[88].mxu1 }
 0x43c   : > { %v3567_v12 = vpop.f32.mrb[89].mxu1 }
 0x43d   : > { %v3569_v47 = vpop.f32.mrb[90].mxu1 }
 0x43e   : > { %v3571_v43 = vpop.f32.mrb[91].mxu1 }
 0x443   : > { %v3575_v1 = vpop.f32.mrb[92].mxu1 }
 0x444   : > { %v3577_v21 = vpop.f32.mrb[93].mxu1 }
 0x445   : > { %v3579_v57 = vpop.f32.mrb[94].mxu1 }
 0x446   : > { %v3580_v52 = vpop.f32.mrb[95].mxu1 }
 0x493   : > { %v3966_v20 = vpop.f32.mrb[96].mxu1 }
 0x494   : > { %v3993_v0 = vmax.f32 %v3555_v24, %v3966_v20  ;;  %v3968_v19 = vpop.f32.mrb[97].mxu1 }
 0x495   : > { %v3994_v54 = vmax.f32 %v3557_v41, %v3968_v19  ;;  %v3970_v35 = vpop.f32.mrb[98].mxu1 }
 0x496   : > { %v3995_v36 = vmax.f32 %v3559_v48, %v3970_v35  ;;  %v3972_v8 = vpop.f32.mrb[99].mxu1 }
 0x497   : > { %v4774_v17 = vpack.c.bf16 %v3994_v54, %v3993_v0  ;;  %v3996_v22 = vmax.f32 %v3561_v5, %v3972_v8 }
 0x499   : > { %4035 = vst [vmem:[%s7309_s30] sm:$0xff] %v4774_v17  ;;  %v4775_v58 = vpack.c.bf16 %v3996_v22, %v3995_v36 }
 0x49b   : > { %4036 = vst [vmem:[%s7309_s30 + $0x8] sm:$0xff] %v4775_v58  ;;  %v3976_v51 = vpop.f32.mrb[100].mxu1 }
 0x49c   : > { %v3997_v38 = vmax.f32 %v3565_v62, %v3976_v51  ;;  %v3978_v16 = vpop.f32.mrb[101].mxu1 }
 0x49d   : > { %v3998_v55 = vmax.f32 %v3567_v12, %v3978_v16  ;;  %v3980_v53 = vpop.f32.mrb[102].mxu1 }
 0x49e   : > { %v3999_v7 = vmax.f32 %v3569_v47, %v3980_v53  ;;  %v3982_v59 = vpop.f32.mrb[103].mxu1 }
 0x49f   : > { %v4776_v26 = vpack.c.bf16 %v3998_v55, %v3997_v38  ;;  %v4000_v40 = vmax.f32 %v3571_v43, %v3982_v59 }
 0x4a1   : > { %4037 = vst [vmem:[%s7309_s30 + $0x10] sm:$0xff] %v4776_v26  ;;  %v4777_v30 = vpack.c.bf16 %v4000_v40, %v3999_v7 }
 0x4a3   : > { %4038 = vst [vmem:[%s7309_s30 + $0x18] sm:$0xff] %v4777_v30  ;;  %v3986_v56 = vpop.f32.mrb[104].mxu1 }
 0x4a4   : > { %v4001_v33 = vmax.f32 %v3575_v1, %v3986_v56  ;;  %v3988_v50 = vpop.f32.mrb[105].mxu1 }
 0x4a5   : > { %v4002_v6 = vmax.f32 %v3577_v21, %v3988_v50  ;;  %v3990_v39 = vpop.f32.mrb[106].mxu1 }
 0x4a6   : > { %v3991_v2 = vpop.f32.mrb[107].mxu1 }
 0x4a7   : > { %v4778_v15 = vpack.c.bf16 %v4002_v6, %v4001_v33 }
 0x4a9   : > { %v4047_v29 = vsel %vm4045_vm14, %v4778_v15, %v4046_v31 }
 0x4aa   : > { %4048 = vst [vmem:[%s7309_s30 + $0x20] sm:$0x11] %v4047_v29 }
 0x4ab PF: > { %s15_s18 = sadd.s32 1, %s5611_s18  }
 0x4ac   : > { %p12_p4 = scmp.ge.s32.totalorder %s15_s18, 4  }
 0x4ae   :  { %14 = sbr.rel (!%p12_p4) target bundleno = 1 (0x1), region = 75 }

// kernel: net_forward.4
= control target key start
LH: loop header
LB: loop body
LE: loop exit
PB: predicated region body
PF: predicated region fallthrough
CT: control target
= control target key end

     0   :  { %s6313_s18 = smov 0   ;;  %s8077_s0 = inlined_call_operand.vmem [shape: bf16[2,33,256], index: 0, kind: input, shape index: {}]   ;;  %s8078_s1 = inlined_call_operand.vmem [shape: bf16[5,256,464], index: 1, kind: input, shape index: {}]   ;;  %s8079_s2 = inlined_call_operand.vmem [shape: f32[1,464], index: 2, kind: input, shape index: {}]   ;;  %s8080_s3 = inlined_call_operand.vmem [shape: bf16[14,27], index: 3, kind: input, shape index: {}]   ;;  %s8081_s4 = inlined_call_operand.vmem [shape: bf16[3,464,256], index: 4, kind: input, shape index: {}]   ;;  %s8082_s5 = inlined_call_operand.vmem [shape: bf16[2,14,256], index: 5, kind: output, shape index: {}]  }
   0x1 LB: > { %s4539_s19 = sadd.s32 4294967295, %s6279_s18   ;;  %p4543_p0 = scmp.ge.s32.totalorder %s6279_s18, 1  ;;  %s6279_s18 = sphi %s6313_s18, %s15_s18  }
   0x2   : > { %p187_p1 = scmp.lt.s32.totalorder %s6279_s18, 3 }
   0x4   : > { %p188_p2 = pnand %p4543_p0, %p187_p1 }
   0x5   : > { %v5519_v0 = vld [vmem:[%s8078_s1 + $0x204] ss:$16 sps:$4 sm:$0xff] (!%p188_p2)   ;;  %v5523_v2 = vld [vmem:[%s8078_s1 + $0x200] ss:$16 sps:$4 sm:$0xff] (!%p188_p2)   ;;  %p215_p3 = scmp.lt.s32.totalorder (!%p188_p2), %s4539_s19, 1  ;;  %vm1332_vm1 = vcmask (!%p188_p2), 1046528  }
   0x6   : > { %191 = sbr.rel (%p188_p2) target bundleno = 1186 (0x4a2), region = 40  ;;  %v5521_v1 = vld [vmem:[%s8078_s1 + $0x4] ss:$16 sps:$4 sm:$0xff] (!%p188_p2)   ;;  %731 = vmatprep.subr.bf16.mxu1 (!%p188_p2), %v5519_v0  ;;  %v5524_v3 = vld [vmem:[%s8078_s1] ss:$16 sps:$4 sm:$0xff] (!%p188_p2)   ;;  %vm2381_vm3 = vcmask (!%p188_p2), 1045504  }
   0x7   : > { %1161 = vmatprep.subr.bf16.mxu0 (!%p188_p2), %v5521_v1  ;;  %v5525_v4 = vld [vmem:[%s8078_s1 + $0x224] ss:$16 sps:$4 sm:$0xff] (!%p188_p2)   ;;  %732 = vmatpush1.bf16.msra.mxu1 (!%p188_p2), %v5523_v2  ;;  %v5529_v6 = vld [vmem:[%s8078_s1 + $0x220] ss:$16 sps:$4 sm:$0xff] (!%p188_p2)   ;;  %vm376_vm0 = vsmask.f32 (!%p188_p2), 7424 }
   0x8   : > { %1162 = vmatpush1.bf16.msra.mxu0 (!%p188_p2), %v5524_v3  ;;  %v5527_v5 = vld [vmem:[%s8078_s1 + $0x24] ss:$16 sps:$4 sm:$0xff] (!%p188_p2)   ;;  %733 = vmatprep.subr.bf16.mxu1 (!%p188_p2), %v5525_v4  ;;  %v5530_v7 = vld [vmem:[%s8078_s1 + $0x20] ss:$16 sps:$4 sm:$0xff] (!%p188_p2)   ;;  %vm1850_vm2 = vsmask.f32 (!%p188_p2), 6400 }
   0x9   : > { %1163 = vmatprep.subr.bf16.mxu0 (!%p188_p2), %v5527_v5  ;;  %v5531_v8 = vld [vmem:[%s8078_s1 + $0x244] ss:$16 sps:$4 sm:$0xff] (!%p188_p2)   ;;  %v5535_v10 = vld [vmem:[%s8078_s1 + $0x240] ss:$16 sps:$4 sm:$0xff] (!%p188_p2)   ;;  %vm3049_vm4 = vcmask (!%p188_p2), 1044480   ;;  %vm3045_vm5 = vcmask (!%p188_p2), 220160  }
   0xa   : > { %v5533_v9 = vld [vmem:[%s8078_s1 + $0x44] ss:$16 sps:$4 sm:$0xff] (!%p188_p2)   ;;  %v5536_v11 = vld [vmem:[%s8078_s1 + $0x40] ss:$16 sps:$4 sm:$0xff] (!%p188_p2)   ;;  %vm3502_vm6 = vcmask (!%p188_p2), 654336  }
   0xb   : > { %734 = vmatpush1.bf16.msra.mxu1 (!%p188_p2), %v5529_v6  ;;  %v5537_v12 = vld [vmem:[%s8078_s1 + $0x264] ss:$16 sps:$4 sm:$0xff] (!%p188_p2)   ;;  %v5541_v14 = vld [vmem:[%s8078_s1 + $0x260] ss:$16 sps:$4 sm:$0xff] (!%p188_p2)  }
   0xc   : > { %1164 = vmatpush1.bf16.msra.mxu0 (!%p188_p2), %v5530_v7  ;;  %735 = vmatprep.subr.bf16.mxu1 (!%p188_p2), %v5531_v8  ;;  %v5539_v13 = vld [vmem:[%s8078_s1 + $0x64] ss:$16 sps:$4 sm:$0xff] (!%p188_p2)   ;;  %v5542_v15 = vld [vmem:[%s8078_s1 + $0x60] ss:$16 sps:$4 sm:$0xff] (!%p188_p2)  }
   0xd   : > { %1165 = vmatprep.subr.bf16.mxu0 %v5533_v9  ;;  %v5543_v16 = vld [vmem:[%s8078_s1 + $0x284] ss:$16 sps:$4 sm:$0xff]   ;;  %v5547_v18 = vld [vmem:[%s8078_s1 + $0x280] ss:$16 sps:$4 sm:$0xff]   ;;  %s8084_s19 = smov (!%p215_p3, %s4539_s19), 1 }
   0xe   : > { %v5545_v17 = vld [vmem:[%s8078_s1 + $0x84] ss:$16 sps:$4 sm:$0xff]   ;;  %v5548_v19 = vld [vmem:[%s8078_s1 + $0x80] ss:$16 sps:$4 sm:$0xff]   ;;  %s5508_s10 = smul.u32 40, %s8084_s19  ;;  %s5429_s21 = sshll.u32 %s8084_s19, 4 }
   0xf   : > { %736 = vmatpush1.bf16.msra.mxu1 %v5535_v10  ;;  %v5549_v20 = vld [vmem:[%s8078_s1 + $0x2a4] ss:$16 sps:$4 sm:$0xff]   ;;  %v5553_v22 = vld [vmem:[%s8078_s1 + $0x2a0] ss:$16 sps:$4 sm:$0xff]   ;;  %s224_s25 = scalar_lea.vmem %s8082_s5, %s5429_s21 }
  0x10   : > { %1166 = vmatpush1.bf16.msra.mxu0 %v5536_v11  ;;  %737 = vmatprep.subr.bf16.mxu1 %v5537_v12  ;;  %v5551_v21 = vld [vmem:[%s8078_s1 + $0xa4] ss:$16 sps:$4 sm:$0xff]   ;;  %v5554_v23 = vld [vmem:[%s8078_s1 + $0xa0] ss:$16 sps:$4 sm:$0xff]   ;;  %s6469_s23 = scalar_lea.vmem %s8077_s0, %s5508_s10 }
  0x11   : > { %1167 = vmatprep.subr.bf16.mxu0 %v5539_v13  ;;  %v5555_v24 = vld [vmem:[%s8078_s1 + $0x2c4] ss:$16 sps:$4 sm:$0xff]   ;;  %v5559_v26 = vld [vmem:[%s8078_s1 + $0x2c0] ss:$16 sps:$4 sm:$0xff]  }
  0x12   : > { %v5557_v25 = vld [vmem:[%s8078_s1 + $0xc4] ss:$16 sps:$4 sm:$0xff]   ;;  %v5560_v27 = vld [vmem:[%s8078_s1 + $0xc0] ss:$16 sps:$4 sm:$0xff]  }
  0x13   : > { %738 = vmatpush1.bf16.msra.mxu1 %v5541_v14  ;;  %v5561_v28 = vld [vmem:[%s8078_s1 + $0x2e4] ss:$16 sps:$4 sm:$0xff]   ;;  %v5565_v30 = vld [vmem:[%s8078_s1 + $0x2e0] ss:$16 sps:$4 sm:$0xff]  }
  0x14   : > { %1168 = vmatpush1.bf16.msra.mxu0 %v5542_v15  ;;  %739 = vmatprep.subr.bf16.mxu1 %v5543_v16  ;;  %v5563_v29 = vld [vmem:[%s8078_s1 + $0xe4] ss:$16 sps:$4 sm:$0xff]   ;;  %v5566_v31 = vld [vmem:[%s8078_s1 + $0xe0] ss:$16 sps:$4 sm:$0xff]  }
  0x15   : > { %1169 = vmatprep.subr.bf16.mxu0 %v5545_v17  ;;  %v5567_v32 = vld [vmem:[%s8078_s1 + $0x304] ss:$16 sps:$4 sm:$0xff]   ;;  %v5571_v34 = vld [vmem:[%s8078_s1 + $0x300] ss:$16 sps:$4 sm:$0xff]  }
  0x16   : > { %v5569_v33 = vld [vmem:[%s8078_s1 + $0x104] ss:$16 sps:$4 sm:$0xff]   ;;  %v5572_v35 = vld [vmem:[%s8078_s1 + $0x100] ss:$16 sps:$4 sm:$0xff]  }
  0x17   : > { %740 = vmatpush1.bf16.msra.mxu1 %v5547_v18  ;;  %v5573_v36 = vld [vmem:[%s8078_s1 + $0x324] ss:$16 sps:$4 sm:$0xff]   ;;  %v5577_v38 = vld [vmem:[%s8078_s1 + $0x320] ss:$16 sps:$4 sm:$0xff]  }
  0x18   : > { %1170 = vmatpush1.bf16.msra.mxu0 %v5548_v19  ;;  %741 = vmatprep.subr.bf16.mxu1 %v5549_v20  ;;  %v5575_v37 = vld [vmem:[%s8078_s1 + $0x124] ss:$16 sps:$4 sm:$0xff]   ;;  %v5578_v39 = vld [vmem:[%s8078_s1 + $0x120] ss:$16 sps:$4 sm:$0xff]  }
  0x19   : > { %1171 = vmatprep.subr.bf16.mxu0 %v5551_v21  ;;  %v5579_v40 = vld [vmem:[%s8078_s1 + $0x344] ss:$16 sps:$4 sm:$0xff]   ;;  %v5583_v42 = vld [vmem:[%s8078_s1 + $0x340] ss:$16 sps:$4 sm:$0xff]   ;;  %v5623_v21 = vld [vmem:[%s8078_s1 + $0x20c] ss:$16 sps:$4 sm:$0xff]  }
  0x1a   : > { %v5581_v41 = vld [vmem:[%s8078_s1 + $0x144] ss:$16 sps:$4 sm:$0xff]   ;;  %v5584_v43 = vld [vmem:[%s8078_s1 + $0x140] ss:$16 sps:$4 sm:$0xff]  }
  0x1b   : > { %742 = vmatpush1.bf16.msra.mxu1 %v5553_v22  ;;  %v5585_v44 = vld [vmem:[%s8078_s1 + $0x364] ss:$16 sps:$4 sm:$0xff]   ;;  %v5589_v46 = vld [vmem:[%s8078_s1 + $0x360] ss:$16 sps:$4 sm:$0xff]  }
  0x1c   : > { %1172 = vmatpush1.bf16.msra.mxu0 %v5554_v23  ;;  %743 = vmatprep.subr.bf16.mxu1 %v5555_v24  ;;  %v5587_v45 = vld [vmem:[%s8078_s1 + $0x164] ss:$16 sps:$4 sm:$0xff]   ;;  %v5590_v47 = vld [vmem:[%s8078_s1 + $0x160] ss:$16 sps:$4 sm:$0xff]  }
  0x1d   : > { %1173 = vmatprep.subr.bf16.mxu0 %v5557_v25  ;;  %v5591_v48 = vld [vmem:[%s8078_s1 + $0x384] ss:$16 sps:$4 sm:$0xff]   ;;  %v6490_v52 = vld [vmem:[%s6469_s23 + $0x10] ss:$8 sps:$4 sm:$0xff]   ;;  %v6503_v60 = vld [vmem:[%s6469_s23] ss:$8 sps:$4 sm:$0xff]  }
  0x1e   : > { %v5593_v49 = vld [vmem:[%s8078_s1 + $0x184] ss:$16 sps:$4 sm:$0xff]   ;;  %v5595_v53 = vld [vmem:[%s8078_s1 + $0x380] ss:$16 sps:$4 sm:$0xff]   ;;  %v385_v63 = vshll.u32 %v6490_v52, 16  ;;  %v401_v4 = vshrl.u32 %v6490_v52, 16 }
  0x1f   : > { %744 = vmatpush1.bf16.msra.mxu1 %v5559_v26  ;;  %v6484_v50 = vld [vmem:[%s6469_s23 + $0x4] ss:$8 sps:$4 sm:$0xff]   ;;  %v6487_v51 = vld [vmem:[%s6469_s23 + $0x14] ss:$8 sps:$4 sm:$0xff]   ;;  %v5596_v57 = vld [vmem:[%s8078_s1 + $0x180] ss:$16 sps:$4 sm:$0xff]  }
  0x20   : > { %1174 = vmatpush1.bf16.msra.mxu0 %v5560_v27  ;;  %745 = vmatprep.subr.bf16.mxu1 %v5561_v28  ;;  %v390_v54 = vshrl.u32 %v6484_v50, 16  ;;  %v392_v55 = vshll.u32 %v6484_v50, 16  ;;  %v397_v56 = vshll.u32 %v6487_v51, 16  ;;  %v5597_v61 = vld [vmem:[%s8078_s1 + $0x3a4] ss:$16 sps:$4 sm:$0xff]   ;;  %v1855_v3 = vrot.slane %v385_v63, 2 }
  0x21   : > { %1175 = vmatprep.subr.bf16.mxu0 %v5563_v29  ;;  %1193 = vmatprep.mubr.bf16.mxu0 %v6484_v50  ;;  %v5599_v62 = vld [vmem:[%s8078_s1 + $0x1a4] ss:$16 sps:$4 sm:$0xff]   ;;  %v5601_v0 = vld [vmem:[%s8078_s1 + $0x3a0] ss:$16 sps:$4 sm:$0xff]   ;;  %v380_v7 = vshll.u32 %v6503_v60, 16  ;;  %v1854_v9 = vrot.slane %v401_v4, 1 }
  0x22   : > { %v394_v58 = vrot.slane %v392_v55, 1  ;;  %v399_v59 = vrot.slane %v397_v56, 1  ;;  %v5602_v2 = vld [vmem:[%s8078_s1 + $0x1a0] ss:$16 sps:$4 sm:$0xff]   ;;  %v5603_v5 = vld [vmem:[%s8078_s1 + $0x3c4] ss:$16 sps:$4 sm:$0xff]  }
  0x23   : > { %746 = vmatpush1.bf16.msra.mxu1 %v5565_v30  ;;  %v5605_v8 = vld [vmem:[%s8078_s1 + $0x1c4] ss:$16 sps:$4 sm:$0xff]   ;;  %v5607_v10 = vld [vmem:[%s8078_s1 + $0x3c0] ss:$16 sps:$4 sm:$0xff]   ;;  %v6538_v12 = vor.u32 %v1855_v3, %v1854_v9  ;;  %v378_v14 = vshrl.u32 %v6503_v60, 16  ;;  %v382_v15 = vrot.slane %v380_v7, 1 }
  0x24   : > { %1176 = vmatpush1.bf16.msra.mxu0 %v5566_v31  ;;  %747 = vmatprep.subr.bf16.mxu1 %v5567_v32  ;;  %v395_v1 = vor.u32 %v394_v58, %v390_v54  ;;  %v5608_v11 = vld [vmem:[%s8078_s1 + $0x1c0] ss:$16 sps:$4 sm:$0xff]   ;;  %v5609_v13 = vld [vmem:[%s8078_s1 + $0x3e4] ss:$16 sps:$4 sm:$0xff]   ;;  %v387_v20 = vrot.slane %v385_v63, 1  ;;  %v404_v22 = vshrl.u32 %v6487_v51, 16 }
  0x25   : > { %1177 = vmatprep.subr.bf16.mxu0 %v5569_v33  ;;  %v5611_v16 = vld [vmem:[%s8078_s1 + $0x1e4] ss:$16 sps:$4 sm:$0xff]   ;;  %v5613_v17 = vld [vmem:[%s8078_s1 + $0x3e0] ss:$16 sps:$4 sm:$0xff]   ;;  %v383_v19 = vor.u32 %v382_v15, %v378_v14  ;;  %v6560_v24 = vrot.slane %v378_v14, 1  ;;  %v6562_v26 = vrot.slane %v390_v54, 1 }
  0x26   : > { %v6523_v6 = vsel %vm376_vm0, %v395_v1, %v399_v59  ;;  %v5614_v18 = vld [vmem:[%s8078_s1 + $0x1e0] ss:$16 sps:$4 sm:$0xff]   ;;  %v5626_v23 = vld [vmem:[%s8078_s1 + $0x404] ss:$16 sps:$4 sm:$0xff]   ;;  %v1861_v25 = vrot.slane %v404_v22, 1  ;;  %v6570_v29 = vrot.slane %v392_v55, 2 }
  0x27   : > { %748 = vmatpush1.bf16.msra.mxu1 %v5571_v34  ;;  %763 = vmatprep.mubr.bf16.mxu1 %v6523_v6  ;;  %v5621_v27 = vld [vmem:[%s8078_s1 + $0x208] ss:$16 sps:$4 sm:$0xff]   ;;  %v5624_v28 = vld [vmem:[%s8078_s1 + $0x400] ss:$16 sps:$4 sm:$0xff]   ;;  %v6573_v30 = vsel %vm376_vm0, %v383_v19, %v387_v20  ;;  %v5629_v31 = vld [vmem:[%s8078_s1 + $0x22c] ss:$16 sps:$4 sm:$0xff]  }
  0x28   : > { %1178 = vmatpush1.bf16.msra.mxu0 %v5572_v35  ;;  %749 = vmatprep.subr.bf16.mxu1 %v5573_v36  ;;  %v1862_v32 = vrot.slane %v397_v56, 2  ;;  %v6578_v33 = vrot.slane %v380_v7, 2  ;;  %v5632_v34 = vld [vmem:[%s8078_s1 + $0x424] ss:$16 sps:$4 sm:$0xff]   ;;  %v1860_v35 = vor.u32 %v6570_v29, %v6562_v26  ;;  %v6585_v36 = vor.u32 %v404_v22, %v399_v59  ;;  %v5647_v55 = vld [vmem:[%s8078_s1 + $0x28c] ss:$16 sps:$4 sm:$0xff]  }
  0x29   : > { %1179 = vmatprep.subr.bf16.mxu0 %v5575_v37  ;;  %v5650_v56 = vld [vmem:[%s8078_s1 + $0x484] ss:$16 sps:$4 sm:$0xff]   ;;  %v5648_v58 = vld [vmem:[%s8078_s1 + $0x480] ss:$16 sps:$4 sm:$0xff]   ;;  %v5653_v59 = vld [vmem:[%s8078_s1 + $0x2ac] ss:$16 sps:$4 sm:$0xff]  }
  0x2a   : > { %v6587_v37 = vor.u32 %v1862_v32, %v1861_v25  ;;  %v5654_v63 = vld [vmem:[%s8078_s1 + $0x4a0] ss:$16 sps:$4 sm:$0xff]   ;;  %v5662_v1 = vld [vmem:[%s8078_s1 + $0x4c4] ss:$16 sps:$4 sm:$0xff]   ;;  %v5675_v15 = vld [vmem:[%s8078_s1 + $0x328] ss:$16 sps:$4 sm:$0xff]  }
  0x2b   : > { %750 = vmatpush1.bf16.msra.mxu1 %v5577_v38  ;;  %v1853_v38 = vor.u32 %v6578_v33, %v6560_v24  ;;  %v5660_v3 = vld [vmem:[%s8078_s1 + $0x4c0] ss:$16 sps:$4 sm:$0xff]   ;;  %v5674_v9 = vld [vmem:[%s8078_s1 + $0x504] ss:$16 sps:$4 sm:$0xff]   ;;  %v5681_v19 = vld [vmem:[%s8078_s1 + $0x348] ss:$16 sps:$4 sm:$0xff]  }
  0x2c   : > { %1180 = vmatpush1.bf16.msra.mxu0 %v5578_v39  ;;  %751 = vmatprep.subr.bf16.mxu1 %v5579_v40  ;;  %v5627_v39 = vld [vmem:[%s8078_s1 + $0x228] ss:$16 sps:$4 sm:$0xff]   ;;  %v5630_v40 = vld [vmem:[%s8078_s1 + $0x420] ss:$16 sps:$4 sm:$0xff]   ;;  %v5680_v14 = vld [vmem:[%s8078_s1 + $0x524] ss:$16 sps:$4 sm:$0xff]  }
  0x2d   : > { %1181 = vmatprep.subr.bf16.mxu0 %v5581_v41  ;;  %v5635_v41 = vld [vmem:[%s8078_s1 + $0x24c] ss:$16 sps:$4 sm:$0xff]   ;;  %v5666_v7 = vld [vmem:[%s8078_s1 + $0x4e0] ss:$16 sps:$4 sm:$0xff]   ;;  %v5692_v22 = vld [vmem:[%s8078_s1 + $0x564] ss:$16 sps:$4 sm:$0xff]  }
  0x2e   : > { %v5690_v25 = vld [vmem:[%s8078_s1 + $0x560] ss:$16 sps:$4 sm:$0xff]   ;;  %v5741_v26 = vld [vmem:[%s8078_s1 + $0x88] ss:$16 sps:$4 sm:$0xff]  }
  0x2f   : > { %752 = vmatpush1.bf16.msra.mxu1 %v5583_v42  ;;  %v5638_v42 = vld [vmem:[%s8078_s1 + $0x444] ss:$16 sps:$4 sm:$0xff]   ;;  %v5696_v32 = vld [vmem:[%s8078_s1 + $0x580] ss:$16 sps:$4 sm:$0xff]   ;;  %v5819_v24 = vld [vmem:[%s8078_s1 + $0x428] ss:$16 sps:$4 sm:$0xff]  }
  0x30   : > { %1182 = vmatpush1.bf16.msra.mxu0 %v5584_v43  ;;  %753 = vmatprep.subr.bf16.mxu1 %v5585_v44  ;;  %v5633_v43 = vld [vmem:[%s8078_s1 + $0x248] ss:$16 sps:$4 sm:$0xff]   ;;  %v5636_v44 = vld [vmem:[%s8078_s1 + $0x440] ss:$16 sps:$4 sm:$0xff]  }
  0x31   : > { %1183 = vmatprep.subr.bf16.mxu0 %v5587_v45  ;;  %v6615_v45 = vor.u32 %v401_v4, %v387_v20  ;;  %v5665_v4 = vld [vmem:[%s8078_s1 + $0x2ec] ss:$16 sps:$4 sm:$0xff]   ;;  %v5684_v20 = vld [vmem:[%s8078_s1 + $0x540] ss:$16 sps:$4 sm:$0xff]  }
  0x32   : > { %v5744_v29 = vld [vmem:[%s8078_s1 + $0x680] ss:$16 sps:$4 sm:$0xff]  }
  0x33   : > { %754 = vmatpush1.bf16.msra.mxu1 %v5589_v46  ;;  %v1336_v46 = vrot.slane %v6484_v50, 1  ;;  %v5822_v33 = vld [vmem:[%s8078_s1 + $0x820] ss:$16 sps:$4 sm:$0xff]  }
  0x34   : > { %1184 = vmatpush1.bf16.msra.mxu0 %v5590_v47  ;;  %755 = vmatprep.subr.bf16.mxu1 %v5591_v48  ;;  %v6619_v47 = vrot.slane %v6487_v51, 1  ;;  %v5641_v48 = vld [vmem:[%s8078_s1 + $0x26c] ss:$16 sps:$4 sm:$0xff]  }
  0x35   : > { %1185 = vmatprep.subr.bf16.mxu0 %v5593_v49  ;;  %v5644_v49 = vld [vmem:[%s8078_s1 + $0x464] ss:$16 sps:$4 sm:$0xff]  }
  0x36   : > { %v6637_v54 = vsel %vm1332_vm1, %v1336_v46, %v6619_v47  ;;  %v5708_v46 = vld [vmem:[%s8078_s1 + $0x5c0] ss:$16 sps:$4 sm:$0xff]  }
  0x37   : > { %756 = vmatpush1.bf16.msra.mxu1 %v5595_v53  ;;  %v5639_v53 = vld [vmem:[%s8078_s1 + $0x268] ss:$16 sps:$4 sm:$0xff]  }
  0x38   : > { %1186 = vmatpush1.bf16.msra.mxu0 %v5596_v57  ;;  %757 = vmatprep.subr.bf16.mxu1 %v5597_v61  ;;  %v5645_v57 = vld [vmem:[%s8078_s1 + $0x288] ss:$16 sps:$4 sm:$0xff]   ;;  %v5656_v61 = vld [vmem:[%s8078_s1 + $0x4a4] ss:$16 sps:$4 sm:$0xff]  }
  0x39   : > { %1187 = vmatprep.subr.bf16.mxu0 %v5599_v62  ;;  %v5651_v62 = vld [vmem:[%s8078_s1 + $0x2a8] ss:$16 sps:$4 sm:$0xff]  }
  0x3b   : > { %758 = vmatpush1.bf16.msra.mxu1 %v5601_v0  ;;  %v5659_v0 = vld [vmem:[%s8078_s1 + $0x2cc] ss:$16 sps:$4 sm:$0xff]  }
  0x3c   : > { %1188 = vmatpush1.bf16.msra.mxu0 %v5602_v2  ;;  %759 = vmatprep.subr.bf16.mxu1 %v5603_v5  ;;  %v5657_v2 = vld [vmem:[%s8078_s1 + $0x2c8] ss:$16 sps:$4 sm:$0xff]   ;;  %v5668_v5 = vld [vmem:[%s8078_s1 + $0x4e4] ss:$16 sps:$4 sm:$0xff]  }
  0x3d   : > { %1189 = vmatprep.subr.bf16.mxu0 %v5605_v8  ;;  %v5671_v8 = vld [vmem:[%s8078_s1 + $0x30c] ss:$16 sps:$4 sm:$0xff]  }
  0x3f   : > { %760 = vmatpush1.bf16.msra.mxu1 %v5607_v10  ;;  %v5669_v10 = vld [vmem:[%s8078_s1 + $0x308] ss:$16 sps:$4 sm:$0xff]  }
  0x40   : > { %1190 = vmatpush1.bf16.msra.mxu0 %v5608_v11  ;;  %761 = vmatprep.subr.bf16.mxu1 %v5609_v13  ;;  %v5672_v11 = vld [vmem:[%s8078_s1 + $0x500] ss:$16 sps:$4 sm:$0xff]   ;;  %v5677_v13 = vld [vmem:[%s8078_s1 + $0x32c] ss:$16 sps:$4 sm:$0xff]  }
  0x41   : > { %1191 = vmatprep.subr.bf16.mxu0 %v5611_v16  ;;  %v5678_v16 = vld [vmem:[%s8078_s1 + $0x520] ss:$16 sps:$4 sm:$0xff]  }
  0x43   : > { %762 = vmatpush1.bf16.msra.mxu1 %v5613_v17  ;;  %v5683_v17 = vld [vmem:[%s8078_s1 + $0x34c] ss:$16 sps:$4 sm:$0xff]  }
  0x44   : > { %1192 = vmatpush1.bf16.msra.mxu0 %v5614_v18  ;;  %784 = vmatprep.subr.bf16.mxu1 %v5623_v21  ;;  %v5686_v18 = vld [vmem:[%s8078_s1 + $0x544] ss:$16 sps:$4 sm:$0xff]   ;;  %v5689_v21 = vld [vmem:[%s8078_s1 + $0x36c] ss:$16 sps:$4 sm:$0xff]  }
  0x45   : > { %1663 = vmatprep.subr.bf16.mxu0 %v5626_v23  ;;  %v5687_v23 = vld [vmem:[%s8078_s1 + $0x368] ss:$16 sps:$4 sm:$0xff]  }
  0x46   : > { %764 = vmatmul.mubr.bf16.vlgmr.msra.gmra.mrb[0].mxu1 %v6573_v30 }
  0x47   : > { %1194 = vmatmul.mubr.bf16.vlgmr.msra.gmra.mrb[0].mxu0 %v6503_v60  ;;  %785 = vmatpush1.bf16.msra.mxu1 %v5621_v27  ;;  %v5695_v27 = vld [vmem:[%s8078_s1 + $0x38c] ss:$16 sps:$4 sm:$0xff]  }
  0x48   : > { %1664 = vmatpush1.bf16.msra.mxu0 %v5624_v28  ;;  %786 = vmatprep.subr.bf16.mxu1 %v5629_v31  ;;  %v5698_v28 = vld [vmem:[%s8078_s1 + $0x584] ss:$16 sps:$4 sm:$0xff]   ;;  %v5693_v31 = vld [vmem:[%s8078_s1 + $0x388] ss:$16 sps:$4 sm:$0xff]  }
  0x49   : > { %1665 = vmatprep.subr.bf16.mxu0 %v5632_v34  ;;  %773 = vmatprep.mubr.bf16.mxu1 %v6585_v36  ;;  %v5701_v34 = vld [vmem:[%s8078_s1 + $0x3ac] ss:$16 sps:$4 sm:$0xff]  }
  0x4a   : > { %1203 = vmatprep.mubr.bf16.mxu0 %v6487_v51  ;;  %v5642_v51 = vld [vmem:[%s8078_s1 + $0x460] ss:$16 sps:$4 sm:$0xff]  }
  0x4b   : > { %787 = vmatpush1.bf16.msra.mxu1 %v5627_v39  ;;  %v5704_v39 = vld [vmem:[%s8078_s1 + $0x5a4] ss:$16 sps:$4 sm:$0xff]  }
  0x4c   : > { %1666 = vmatpush1.bf16.msra.mxu0 %v5630_v40  ;;  %788 = vmatprep.subr.bf16.mxu1 %v5635_v41  ;;  %v5699_v40 = vld [vmem:[%s8078_s1 + $0x3a8] ss:$16 sps:$4 sm:$0xff]   ;;  %v5702_v41 = vld [vmem:[%s8078_s1 + $0x5a0] ss:$16 sps:$4 sm:$0xff]  }
  0x4d   : > { %1667 = vmatprep.subr.bf16.mxu0 %v5638_v42  ;;  %v5707_v42 = vld [vmem:[%s8078_s1 + $0x3cc] ss:$16 sps:$4 sm:$0xff]  }
  0x4e   : > { %774 = vmatmul.mubr.bf16.gmra.mrb[4].mxu1 %v6615_v45 }
  0x4f   : > { %1204 = vmatmul.mubr.bf16.gmra.mrb[4].mxu0 %v6490_v52  ;;  %789 = vmatpush1.bf16.msra.mxu1 %v5633_v43  ;;  %v5710_v43 = vld [vmem:[%s8078_s1 + $0x5c4] ss:$16 sps:$4 sm:$0xff]  }
  0x50   : > { %1668 = vmatpush1.bf16.msra.mxu0 %v5636_v44  ;;  %790 = vmatprep.subr.bf16.mxu1 %v5641_v48  ;;  %v5705_v44 = vld [vmem:[%s8078_s1 + $0x3c8] ss:$16 sps:$4 sm:$0xff]   ;;  %v5713_v48 = vld [vmem:[%s8078_s1 + $0x3ec] ss:$16 sps:$4 sm:$0xff]  }
  0x51   : > { %1669 = vmatprep.subr.bf16.mxu0 %v5644_v49  ;;  %816 = vmatprep.mubr.bf16.mxu1 %v6523_v6  ;;  %v5663_v6 = vld [vmem:[%s8078_s1 + $0x2e8] ss:$16 sps:$4 sm:$0xff]   ;;  %v5716_v49 = vld [vmem:[%s8078_s1 + $0x5e4] ss:$16 sps:$4 sm:$0xff]  }
  0x52   : > { %1695 = vmatprep.mubr.bf16.mxu0 %v6637_v54 }
  0x53   : > { %791 = vmatpush1.bf16.msra.mxu1 %v5639_v53  ;;  %v5711_v53 = vld [vmem:[%s8078_s1 + $0x3e8] ss:$16 sps:$4 sm:$0xff]  }
  0x54   : > { %1670 = vmatpush1.bf16.msra.mxu0 %v5642_v51  ;;  %792 = vmatprep.subr.bf16.mxu1 %v5647_v55  ;;  %v5714_v51 = vld [vmem:[%s8078_s1 + $0x5e0] ss:$16 sps:$4 sm:$0xff]   ;;  %v5719_v55 = vld [vmem:[%s8078_s1 + $0xc] ss:$16 sps:$4 sm:$0xff]  }
  0x55   : > { %1671 = vmatprep.subr.bf16.mxu0 %v5650_v56  ;;  %v1333_v56 = vrot.slane %v6503_v60, 1  ;;  %v5725_v60 = vld [vmem:[%s8078_s1 + $0x2c] ss:$16 sps:$4 sm:$0xff]  }
  0x57   : > { %793 = vmatpush1.bf16.msra.mxu1 %v5645_v57  ;;  %v6790_v57 = vrot.slane %v6490_v52, 1 }
  0x58   : > { %1672 = vmatpush1.bf16.msra.mxu0 %v5648_v58  ;;  %794 = vmatprep.subr.bf16.mxu1 %v5653_v59  ;;  %v5722_v58 = vld [vmem:[%s8078_s1 + $0x604] ss:$16 sps:$4 sm:$0xff]   ;;  %v5717_v59 = vld [vmem:[%s8078_s1 + $0x8] ss:$16 sps:$4 sm:$0xff]  }
  0x59   : > { %1673 = vmatprep.subr.bf16.mxu0 %v5656_v61  ;;  %v5720_v61 = vld [vmem:[%s8078_s1 + $0x600] ss:$16 sps:$4 sm:$0xff]   ;;  %v6803_v52 = vsel %vm1332_vm1, %v1333_v56, %v6790_v57  ;;  %v5795_v56 = vld [vmem:[%s8078_s1 + $0x1a8] ss:$16 sps:$4 sm:$0xff]  }
  0x5b   : > { %795 = vmatpush1.bf16.msra.mxu1 %v5651_v62  ;;  %v5728_v62 = vld [vmem:[%s8078_s1 + $0x624] ss:$16 sps:$4 sm:$0xff]  }
  0x5c   : > { %1674 = vmatpush1.bf16.msra.mxu0 %v5654_v63  ;;  %796 = vmatprep.subr.bf16.mxu1 %v5659_v0  ;;  %v5723_v63 = vld [vmem:[%s8078_s1 + $0x28] ss:$16 sps:$4 sm:$0xff]   ;;  %v5726_v0 = vld [vmem:[%s8078_s1 + $0x620] ss:$16 sps:$4 sm:$0xff]  }
  0x5d   : > { %1675 = vmatprep.subr.bf16.mxu0 %v5662_v1  ;;  %v5731_v1 = vld [vmem:[%s8078_s1 + $0x4c] ss:$16 sps:$4 sm:$0xff]  }
  0x5f   : > { %797 = vmatpush1.bf16.msra.mxu1 %v5657_v2  ;;  %v5729_v2 = vld [vmem:[%s8078_s1 + $0x48] ss:$16 sps:$4 sm:$0xff]  }
  0x60   : > { %1676 = vmatpush1.bf16.msra.mxu0 %v5660_v3  ;;  %798 = vmatprep.subr.bf16.mxu1 %v5665_v4  ;;  %v5732_v3 = vld [vmem:[%s8078_s1 + $0x640] ss:$16 sps:$4 sm:$0xff]   ;;  %v5737_v4 = vld [vmem:[%s8078_s1 + $0x6c] ss:$16 sps:$4 sm:$0xff]  }
  0x61   : > { %1677 = vmatprep.subr.bf16.mxu0 %v5668_v5  ;;  %v5735_v5 = vld [vmem:[%s8078_s1 + $0x68] ss:$16 sps:$4 sm:$0xff]  }
  0x63   : > { %799 = vmatpush1.bf16.msra.mxu1 %v5663_v6  ;;  %v5738_v6 = vld [vmem:[%s8078_s1 + $0x660] ss:$16 sps:$4 sm:$0xff]  }
  0x64   : > { %1678 = vmatpush1.bf16.msra.mxu0 %v5666_v7  ;;  %800 = vmatprep.subr.bf16.mxu1 %v5671_v8  ;;  %v6852_v7 = vsel %vm1850_vm2, %v1860_v35, %v6587_v37  ;;  %v5743_v8 = vld [vmem:[%s8078_s1 + $0x8c] ss:$16 sps:$4 sm:$0xff]  }
  0x65   : > { %1679 = vmatprep.subr.bf16.mxu0 %v5674_v9  ;;  %v5749_v35 = vld [vmem:[%s8078_s1 + $0xac] ss:$16 sps:$4 sm:$0xff]   ;;  %v5747_v9 = vld [vmem:[%s8078_s1 + $0xa8] ss:$16 sps:$4 sm:$0xff]  }
  0x67   : > { %801 = vmatpush1.bf16.msra.mxu1 %v5669_v10  ;;  %v5750_v10 = vld [vmem:[%s8078_s1 + $0x6a0] ss:$16 sps:$4 sm:$0xff]  }
  0x68   : > { %1680 = vmatpush1.bf16.msra.mxu0 %v5672_v11  ;;  %802 = vmatprep.subr.bf16.mxu1 %v5677_v13  ;;  %v5755_v11 = vld [vmem:[%s8078_s1 + $0xcc] ss:$16 sps:$4 sm:$0xff]   ;;  %v5758_v13 = vld [vmem:[%s8078_s1 + $0x6c4] ss:$16 sps:$4 sm:$0xff]  }
  0x69   : > { %1681 = vmatprep.subr.bf16.mxu0 %v5680_v14  ;;  %v5753_v14 = vld [vmem:[%s8078_s1 + $0xc8] ss:$16 sps:$4 sm:$0xff]  }
  0x6b   : > { %803 = vmatpush1.bf16.msra.mxu1 %v5675_v15  ;;  %v5756_v15 = vld [vmem:[%s8078_s1 + $0x6c0] ss:$16 sps:$4 sm:$0xff]  }
  0x6c   : > { %1682 = vmatpush1.bf16.msra.mxu0 %v5678_v16  ;;  %804 = vmatprep.subr.bf16.mxu1 %v5683_v17  ;;  %v5761_v16 = vld [vmem:[%s8078_s1 + $0xec] ss:$16 sps:$4 sm:$0xff]   ;;  %v5764_v17 = vld [vmem:[%s8078_s1 + $0x6e4] ss:$16 sps:$4 sm:$0xff]  }
  0x6d   : > { %1683 = vmatprep.subr.bf16.mxu0 %v5686_v18  ;;  %v5759_v18 = vld [vmem:[%s8078_s1 + $0xe8] ss:$16 sps:$4 sm:$0xff]  }
  0x6f   : > { %805 = vmatpush1.bf16.msra.mxu1 %v5681_v19  ;;  %v5762_v19 = vld [vmem:[%s8078_s1 + $0x6e0] ss:$16 sps:$4 sm:$0xff]  }
  0x70   : > { %1684 = vmatpush1.bf16.msra.mxu0 %v5684_v20  ;;  %806 = vmatprep.subr.bf16.mxu1 %v5689_v21  ;;  %v5767_v20 = vld [vmem:[%s8078_s1 + $0x10c] ss:$16 sps:$4 sm:$0xff]   ;;  %v5770_v21 = vld [vmem:[%s8078_s1 + $0x704] ss:$16 sps:$4 sm:$0xff]  }
  0x71   : > { %1685 = vmatprep.subr.bf16.mxu0 %v5692_v22  ;;  %v5765_v22 = vld [vmem:[%s8078_s1 + $0x108] ss:$16 sps:$4 sm:$0xff]  }
  0x73   : > { %807 = vmatpush1.bf16.msra.mxu1 %v5687_v23  ;;  %v5768_v23 = vld [vmem:[%s8078_s1 + $0x700] ss:$16 sps:$4 sm:$0xff]  }
  0x74   : > { %1686 = vmatpush1.bf16.msra.mxu0 %v5690_v25  ;;  %808 = vmatprep.subr.bf16.mxu1 %v5695_v27  ;;  %v5773_v25 = vld [vmem:[%s8078_s1 + $0x12c] ss:$16 sps:$4 sm:$0xff]   ;;  %v5776_v27 = vld [vmem:[%s8078_s1 + $0x724] ss:$16 sps:$4 sm:$0xff]  }
  0x75   : > { %1687 = vmatprep.subr.bf16.mxu0 %v5698_v28  ;;  %v5771_v28 = vld [vmem:[%s8078_s1 + $0x128] ss:$16 sps:$4 sm:$0xff]  }
  0x77   : > { %809 = vmatpush1.bf16.msra.mxu1 %v5693_v31  ;;  %v5774_v31 = vld [vmem:[%s8078_s1 + $0x720] ss:$16 sps:$4 sm:$0xff]  }
  0x78   : > { %1688 = vmatpush1.bf16.msra.mxu0 %v5696_v32  ;;  %810 = vmatprep.subr.bf16.mxu1 %v5701_v34  ;;  %v5779_v32 = vld [vmem:[%s8078_s1 + $0x14c] ss:$16 sps:$4 sm:$0xff]   ;;  %v5782_v34 = vld [vmem:[%s8078_s1 + $0x744] ss:$16 sps:$4 sm:$0xff]  }
  0x79   : > { %1689 = vmatprep.subr.bf16.mxu0 %v5704_v39  ;;  %v5777_v39 = vld [vmem:[%s8078_s1 + $0x148] ss:$16 sps:$4 sm:$0xff]  }
  0x7b   : > { %811 = vmatpush1.bf16.msra.mxu1 %v5699_v40  ;;  %v5780_v40 = vld [vmem:[%s8078_s1 + $0x740] ss:$16 sps:$4 sm:$0xff]  }
  0x7c   : > { %1690 = vmatpush1.bf16.msra.mxu0 %v5702_v41  ;;  %812 = vmatprep.subr.bf16.mxu1 %v5707_v42  ;;  %v5785_v41 = vld [vmem:[%s8078_s1 + $0x16c] ss:$16 sps:$4 sm:$0xff]   ;;  %v5788_v42 = vld [vmem:[%s8078_s1 + $0x764] ss:$16 sps:$4 sm:$0xff]  }
  0x7d   : > { %1691 = vmatprep.subr.bf16.mxu0 %v5710_v43  ;;  %v5783_v43 = vld [vmem:[%s8078_s1 + $0x168] ss:$16 sps:$4 sm:$0xff]  }
  0x7f   : > { %813 = vmatpush1.bf16.msra.mxu1 %v5705_v44  ;;  %v5786_v44 = vld [vmem:[%s8078_s1 + $0x760] ss:$16 sps:$4 sm:$0xff]  }
  0x80   : > { %1692 = vmatpush1.bf16.msra.mxu0 %v5708_v46  ;;  %814 = vmatprep.subr.bf16.mxu1 %v5713_v48  ;;  %v5791_v46 = vld [vmem:[%s8078_s1 + $0x18c] ss:$16 sps:$4 sm:$0xff]   ;;  %v5794_v48 = vld [vmem:[%s8078_s1 + $0x784] ss:$16 sps:$4 sm:$0xff]  }
  0x81   : > { %1693 = vmatprep.subr.bf16.mxu0 %v5716_v49  ;;  %v5789_v49 = vld [vmem:[%s8078_s1 + $0x188] ss:$16 sps:$4 sm:$0xff]  }
  0x83   : > { %815 = vmatpush1.bf16.msra.mxu1 %v5711_v53  ;;  %v5792_v53 = vld [vmem:[%s8078_s1 + $0x780] ss:$16 sps:$4 sm:$0xff]  }
  0x84   : > { %1694 = vmatpush1.bf16.msra.mxu0 %v5714_v51  ;;  %1214 = vmatprep.subr.bf16.mxu1 %v5719_v55  ;;  %v5797_v51 = vld [vmem:[%s8078_s1 + $0x1ac] ss:$16 sps:$4 sm:$0xff]   ;;  %v5800_v55 = vld [vmem:[%s8078_s1 + $0x7a4] ss:$16 sps:$4 sm:$0xff]  }
  0x85   : > { %2189 = vmatprep.subr.bf16.mxu0 %v5722_v58  ;;  %v5798_v58 = vld [vmem:[%s8078_s1 + $0x7a0] ss:$16 sps:$4 sm:$0xff]  }
  0x86   : > { %817 = vmatmul.mubr.bf16.vlgmr.msra.gmra.mrb[8].mxu1 %v6573_v30  ;;  %v5734_v30 = vld [vmem:[%s8078_s1 + $0x644] ss:$16 sps:$4 sm:$0xff]  }
  0x87   : > { %1696 = vmatmul.mubr.bf16.vlgmr.msra.gmra.mrb[0].mxu0 %v6803_v52  ;;  %1215 = vmatpush1.bf16.msra.mxu1 %v5717_v59  ;;  %v5803_v59 = vld [vmem:[%s8078_s1 + $0x1cc] ss:$16 sps:$4 sm:$0xff]  }
  0x88   : > { %2190 = vmatpush1.bf16.msra.mxu0 %v5720_v61  ;;  %1216 = vmatprep.subr.bf16.mxu1 %v5725_v60  ;;  %v5806_v61 = vld [vmem:[%s8078_s1 + $0x7c4] ss:$16 sps:$4 sm:$0xff]   ;;  %v5801_v60 = vld [vmem:[%s8078_s1 + $0x1c8] ss:$16 sps:$4 sm:$0xff]  }
  0x89   : > { %2191 = vmatprep.subr.bf16.mxu0 %v5728_v62  ;;  %826 = vmatprep.mubr.bf16.mxu1 %v6585_v36  ;;  %v5740_v36 = vld [vmem:[%s8078_s1 + $0x664] ss:$16 sps:$4 sm:$0xff]   ;;  %v5804_v62 = vld [vmem:[%s8078_s1 + $0x7c0] ss:$16 sps:$4 sm:$0xff]  }
  0x8a   : > { %1705 = vmatprep.mubr.bf16.mxu0 %v6619_v47 }
  0x8b   : > { %1217 = vmatpush1.bf16.msra.mxu1 %v5723_v63  ;;  %v5809_v63 = vld [vmem:[%s8078_s1 + $0x1ec] ss:$16 sps:$4 sm:$0xff]  }
  0x8c   : > { %2192 = vmatpush1.bf16.msra.mxu0 %v5726_v0  ;;  %1218 = vmatprep.subr.bf16.mxu1 %v5731_v1  ;;  %v5812_v0 = vld [vmem:[%s8078_s1 + $0x7e4] ss:$16 sps:$4 sm:$0xff]   ;;  %v5807_v1 = vld [vmem:[%s8078_s1 + $0x1e8] ss:$16 sps:$4 sm:$0xff]  }
  0x8d   : > { %2193 = vmatprep.subr.bf16.mxu0 %v5734_v30  ;;  %v5810_v30 = vld [vmem:[%s8078_s1 + $0x7e0] ss:$16 sps:$4 sm:$0xff]  }
  0x8e   : > { %827 = vmatmul.mubr.bf16.gmra.mrb[12].mxu1 %v6615_v45  ;;  %v5746_v45 = vld [vmem:[%s8078_s1 + $0x684] ss:$16 sps:$4 sm:$0xff]  }
  0x8f   : > { %1706 = vmatmul.mubr.bf16.gmra.mrb[4].mxu0 %v6790_v57  ;;  %1219 = vmatpush1.bf16.msra.mxu1 %v5729_v2  ;;  %v5815_v2 = vld [vmem:[%s8078_s1 + $0x40c] ss:$16 sps:$4 sm:$0xff]  }
  0x90   : > { %2194 = vmatpush1.bf16.msra.mxu0 %v5732_v3  ;;  %1220 = vmatprep.subr.bf16.mxu1 %v5737_v4  ;;  %v5818_v3 = vld [vmem:[%s8078_s1 + $0x804] ss:$16 sps:$4 sm:$0xff]   ;;  %v5813_v4 = vld [vmem:[%s8078_s1 + $0x408] ss:$16 sps:$4 sm:$0xff]  }
  0x91   : > { %2195 = vmatprep.subr.bf16.mxu0 %v5740_v36  ;;  %1246 = vmatprep.mubr.bf16.mxu1 %v6484_v50  ;;  %v5752_v50 = vld [vmem:[%s8078_s1 + $0x6a4] ss:$16 sps:$4 sm:$0xff]   ;;  %v5816_v36 = vld [vmem:[%s8078_s1 + $0x800] ss:$16 sps:$4 sm:$0xff]  }
  0x92   : > { %2221 = vmatprep.mubr.bf16.mxu0 %v6852_v7 }
  0x93   : > { %1221 = vmatpush1.bf16.msra.mxu1 %v5735_v5  ;;  %v7017_v5 = vsel %vm1850_vm2, %v1853_v38, %v6538_v12  ;;  %v5827_v38 = vld [vmem:[%s8078_s1 + $0x44c] ss:$16 sps:$4 sm:$0xff]  }
  0x94   : > { %2196 = vmatpush1.bf16.msra.mxu0 %v5738_v6  ;;  %1222 = vmatprep.subr.bf16.mxu1 %v5743_v8  ;;  %v5821_v6 = vld [vmem:[%s8078_s1 + $0x42c] ss:$16 sps:$4 sm:$0xff]   ;;  %v5824_v8 = vld [vmem:[%s8078_s1 + $0x824] ss:$16 sps:$4 sm:$0xff]  }
  0x95   : > { %2197 = vmatprep.subr.bf16.mxu0 %v5746_v45  ;;  %v7026_v45 = vld [vmem:[%s6469_s23] ss:$8 sps:$4 sm:$0xff]  }
  0x97   : > { %1223 = vmatpush1.bf16.msra.mxu1 %v5741_v26  ;;  %v5830_v26 = vld [vmem:[%s8078_s1 + $0x844] ss:$16 sps:$4 sm:$0xff]  }
  0x98   : > { %2198 = vmatpush1.bf16.msra.mxu0 %v5744_v29  ;;  %1224 = vmatprep.subr.bf16.mxu1 %v5749_v35  ;;  %v5825_v29 = vld [vmem:[%s8078_s1 + $0x448] ss:$16 sps:$4 sm:$0xff]   ;;  %v5828_v35 = vld [vmem:[%s8078_s1 + $0x840] ss:$16 sps:$4 sm:$0xff]  }
  0x99   : > { %2199 = vmatprep.subr.bf16.mxu0 %v5752_v50  ;;  %v7050_v50 = vld [vmem:[%s6469_s23 + $0x14] ss:$8 sps:$4 sm:$0xff]  }
  0x9b   : > { %1225 = vmatpush1.bf16.msra.mxu1 %v5747_v9  ;;  %v6271_v9 = vld [vmem:[%s6469_s23 + $0x4] ss:$8 sps:$4 sm:$0xff]  }
  0x9c   : > { %2200 = vmatpush1.bf16.msra.mxu0 %v5750_v10  ;;  %1226 = vmatprep.subr.bf16.mxu1 %v5755_v11  ;;  %v2385_v10 = vrot.slane %v6271_v9, 2  ;;  %v2386_v11 = vrot.slane %v7050_v50, 2  ;;  %v5908_v9 = vld [vmem:[%s8078_s1 + $0x9e4] ss:$16 sps:$4 sm:$0xff]  }
  0x9d   : > { %2201 = vmatprep.subr.bf16.mxu0 %v5758_v13  ;;  %v5833_v13 = vld [vmem:[%s8078_s1 + $0x46c] ss:$16 sps:$4 sm:$0xff]  }
  0x9f   : > { %1227 = vmatpush1.bf16.msra.mxu1 %v5753_v14  ;;  %v5836_v14 = vld [vmem:[%s8078_s1 + $0x864] ss:$16 sps:$4 sm:$0xff]  }
  0xa0   : > { %2202 = vmatpush1.bf16.msra.mxu0 %v5756_v15  ;;  %1228 = vmatprep.subr.bf16.mxu1 %v5761_v16  ;;  %v5831_v15 = vld [vmem:[%s8078_s1 + $0x468] ss:$16 sps:$4 sm:$0xff]   ;;  %v5834_v16 = vld [vmem:[%s8078_s1 + $0x860] ss:$16 sps:$4 sm:$0xff]  }
  0xa1   : > { %2203 = vmatprep.subr.bf16.mxu0 %v5764_v17  ;;  %v7069_v17 = vld [vmem:[%s6469_s23 + $0x10] ss:$8 sps:$4 sm:$0xff]  }
  0xa3   : > { %1229 = vmatpush1.bf16.msra.mxu1 %v5759_v18  ;;  %v7075_v18 = vsel %vm2381_vm3, %v2385_v10, %v2386_v11 }
  0xa4   : > { %2204 = vmatpush1.bf16.msra.mxu0 %v5762_v19  ;;  %1230 = vmatprep.subr.bf16.mxu1 %v5767_v20  ;;  %v5839_v19 = vld [vmem:[%s8078_s1 + $0x48c] ss:$16 sps:$4 sm:$0xff]   ;;  %v5842_v20 = vld [vmem:[%s8078_s1 + $0x884] ss:$16 sps:$4 sm:$0xff]  }
  0xa5   : > { %2205 = vmatprep.subr.bf16.mxu0 %v5770_v21  ;;  %v5837_v21 = vld [vmem:[%s8078_s1 + $0x488] ss:$16 sps:$4 sm:$0xff]  }
  0xa7   : > { %1231 = vmatpush1.bf16.msra.mxu1 %v5765_v22  ;;  %v5840_v22 = vld [vmem:[%s8078_s1 + $0x880] ss:$16 sps:$4 sm:$0xff]  }
  0xa8   : > { %2206 = vmatpush1.bf16.msra.mxu0 %v5768_v23  ;;  %1232 = vmatprep.subr.bf16.mxu1 %v5773_v25  ;;  %v5845_v23 = vld [vmem:[%s8078_s1 + $0x4ac] ss:$16 sps:$4 sm:$0xff]   ;;  %v5848_v25 = vld [vmem:[%s8078_s1 + $0x8a4] ss:$16 sps:$4 sm:$0xff]  }
  0xa9   : > { %2207 = vmatprep.subr.bf16.mxu0 %v5776_v27  ;;  %v5843_v27 = vld [vmem:[%s8078_s1 + $0x4a8] ss:$16 sps:$4 sm:$0xff]  }
  0xab   : > { %1233 = vmatpush1.bf16.msra.mxu1 %v5771_v28  ;;  %v5851_v28 = vld [vmem:[%s8078_s1 + $0x4cc] ss:$16 sps:$4 sm:$0xff]  }
  0xac   : > { %2208 = vmatpush1.bf16.msra.mxu0 %v5774_v31  ;;  %1234 = vmatprep.subr.bf16.mxu1 %v5779_v32  ;;  %v5854_v31 = vld [vmem:[%s8078_s1 + $0x8c4] ss:$16 sps:$4 sm:$0xff]   ;;  %v5849_v32 = vld [vmem:[%s8078_s1 + $0x4c8] ss:$16 sps:$4 sm:$0xff]  }
  0xad   : > { %2209 = vmatprep.subr.bf16.mxu0 %v5782_v34  ;;  %v5852_v34 = vld [vmem:[%s8078_s1 + $0x8c0] ss:$16 sps:$4 sm:$0xff]  }
  0xaf   : > { %1235 = vmatpush1.bf16.msra.mxu1 %v5777_v39  ;;  %v5857_v39 = vld [vmem:[%s8078_s1 + $0x4ec] ss:$16 sps:$4 sm:$0xff]  }
  0xb0   : > { %2210 = vmatpush1.bf16.msra.mxu0 %v5780_v40  ;;  %1236 = vmatprep.subr.bf16.mxu1 %v5785_v41  ;;  %v5860_v40 = vld [vmem:[%s8078_s1 + $0x8e4] ss:$16 sps:$4 sm:$0xff]   ;;  %v5855_v41 = vld [vmem:[%s8078_s1 + $0x4e8] ss:$16 sps:$4 sm:$0xff]  }
  0xb1   : > { %2211 = vmatprep.subr.bf16.mxu0 %v5788_v42  ;;  %v5858_v42 = vld [vmem:[%s8078_s1 + $0x8e0] ss:$16 sps:$4 sm:$0xff]  }
  0xb3   : > { %1237 = vmatpush1.bf16.msra.mxu1 %v5783_v43  ;;  %v5863_v43 = vld [vmem:[%s8078_s1 + $0x50c] ss:$16 sps:$4 sm:$0xff]  }
  0xb4   : > { %2212 = vmatpush1.bf16.msra.mxu0 %v5786_v44  ;;  %1238 = vmatprep.subr.bf16.mxu1 %v5791_v46  ;;  %v5866_v44 = vld [vmem:[%s8078_s1 + $0x904] ss:$16 sps:$4 sm:$0xff]   ;;  %v5861_v46 = vld [vmem:[%s8078_s1 + $0x508] ss:$16 sps:$4 sm:$0xff]  }
  0xb5   : > { %2213 = vmatprep.subr.bf16.mxu0 %v5794_v48  ;;  %v5864_v48 = vld [vmem:[%s8078_s1 + $0x900] ss:$16 sps:$4 sm:$0xff]  }
  0xb7   : > { %1239 = vmatpush1.bf16.msra.mxu1 %v5789_v49  ;;  %v5869_v49 = vld [vmem:[%s8078_s1 + $0x52c] ss:$16 sps:$4 sm:$0xff]  }
  0xb8   : > { %2214 = vmatpush1.bf16.msra.mxu0 %v5792_v53  ;;  %1240 = vmatprep.subr.bf16.mxu1 %v5797_v51  ;;  %v5872_v53 = vld [vmem:[%s8078_s1 + $0x924] ss:$16 sps:$4 sm:$0xff]   ;;  %v5867_v51 = vld [vmem:[%s8078_s1 + $0x528] ss:$16 sps:$4 sm:$0xff]  }
  0xb9   : > { %2215 = vmatprep.subr.bf16.mxu0 %v5800_v55  ;;  %v5870_v55 = vld [vmem:[%s8078_s1 + $0x920] ss:$16 sps:$4 sm:$0xff]  }
  0xbb   : > { %1241 = vmatpush1.bf16.msra.mxu1 %v5795_v56  ;;  %v5875_v56 = vld [vmem:[%s8078_s1 + $0x54c] ss:$16 sps:$4 sm:$0xff]  }
  0xbc   : > { %2216 = vmatpush1.bf16.msra.mxu0 %v5798_v58  ;;  %1242 = vmatprep.subr.bf16.mxu1 %v5803_v59  ;;  %v5878_v58 = vld [vmem:[%s8078_s1 + $0x944] ss:$16 sps:$4 sm:$0xff]   ;;  %v5873_v59 = vld [vmem:[%s8078_s1 + $0x548] ss:$16 sps:$4 sm:$0xff]  }
  0xbd   : > { %2217 = vmatprep.subr.bf16.mxu0 %v5806_v61  ;;  %v5876_v61 = vld [vmem:[%s8078_s1 + $0x940] ss:$16 sps:$4 sm:$0xff]  }
  0xbf   : > { %1243 = vmatpush1.bf16.msra.mxu1 %v5801_v60  ;;  %v5881_v60 = vld [vmem:[%s8078_s1 + $0x56c] ss:$16 sps:$4 sm:$0xff]  }
  0xc0   : > { %2218 = vmatpush1.bf16.msra.mxu0 %v5804_v62  ;;  %1244 = vmatprep.subr.bf16.mxu1 %v5809_v63  ;;  %v5884_v62 = vld [vmem:[%s8078_s1 + $0x964] ss:$16 sps:$4 sm:$0xff]   ;;  %v5879_v63 = vld [vmem:[%s8078_s1 + $0x568] ss:$16 sps:$4 sm:$0xff]  }
  0xc1   : > { %2219 = vmatprep.subr.bf16.mxu0 %v5812_v0  ;;  %v5882_v0 = vld [vmem:[%s8078_s1 + $0x960] ss:$16 sps:$4 sm:$0xff]  }
  0xc3   : > { %1245 = vmatpush1.bf16.msra.mxu1 %v5807_v1  ;;  %v5887_v1 = vld [vmem:[%s8078_s1 + $0x58c] ss:$16 sps:$4 sm:$0xff]  }
  0xc4   : > { %2220 = vmatpush1.bf16.msra.mxu0 %v5810_v30  ;;  %1716 = vmatprep.subr.bf16.mxu1 %v5815_v2  ;;  %v5890_v30 = vld [vmem:[%s8078_s1 + $0x984] ss:$16 sps:$4 sm:$0xff]   ;;  %v5885_v2 = vld [vmem:[%s8078_s1 + $0x588] ss:$16 sps:$4 sm:$0xff]  }
  0xc5   : > { %2716 = vmatprep.subr.bf16.mxu0 %v5818_v3  ;;  %v5888_v3 = vld [vmem:[%s8078_s1 + $0x980] ss:$16 sps:$4 sm:$0xff]  }
  0xc6   : > { %1247 = vmatmul.mubr.bf16.vlgmr.msra.gmra.mrb[8].mxu1 %v7026_v45 }
  0xc7   : > { %2222 = vmatmul.mubr.bf16.vlgmr.msra.gmra.mrb[0].mxu0 %v7017_v5  ;;  %1717 = vmatpush1.bf16.msra.mxu1 %v5813_v4  ;;  %v5893_v4 = vld [vmem:[%s8078_s1 + $0x5ac] ss:$16 sps:$4 sm:$0xff]  }
  0xc8   : > { %2717 = vmatpush1.bf16.msra.mxu0 %v5816_v36  ;;  %1718 = vmatprep.subr.bf16.mxu1 %v5821_v6  ;;  %v5896_v36 = vld [vmem:[%s8078_s1 + $0x9a4] ss:$16 sps:$4 sm:$0xff]   ;;  %v5891_v6 = vld [vmem:[%s8078_s1 + $0x5a8] ss:$16 sps:$4 sm:$0xff]  }
  0xc9   : > { %2718 = vmatprep.subr.bf16.mxu0 %v5824_v8  ;;  %2231 = vmatprep.mubr.bf16.mxu0 %v6587_v37  ;;  %v5894_v8 = vld [vmem:[%s8078_s1 + $0x9a0] ss:$16 sps:$4 sm:$0xff]  }
  0xca   : > { %1256 = vmatprep.mubr.bf16.mxu1 %v7050_v50  ;;  %v5916_v50 = vld [vmem:[%s8078_s1 + $0x648] ss:$16 sps:$4 sm:$0xff]  }
  0xcb   : > { %1719 = vmatpush1.bf16.msra.mxu1 %v5819_v24  ;;  %v5899_v24 = vld [vmem:[%s8078_s1 + $0x5cc] ss:$16 sps:$4 sm:$0xff]  }
  0xcc   : > { %2719 = vmatpush1.bf16.msra.mxu0 %v5822_v33  ;;  %1720 = vmatprep.subr.bf16.mxu1 %v5827_v38  ;;  %v5902_v33 = vld [vmem:[%s8078_s1 + $0x9c4] ss:$16 sps:$4 sm:$0xff]  }
  0xcd   : > { %2720 = vmatprep.subr.bf16.mxu0 %v5830_v26  ;;  %v230_v38 = vld [vmem:[%s6469_s23 + $0x20] sm:$0x11]  ;;  %v5897_v26 = vld [vmem:[%s8078_s1 + $0x5c8] ss:$16 sps:$4 sm:$0xff]  }
  0xce   : > { %1257 = vmatmul.mubr.bf16.gmra.mrb[12].mxu1 %v7069_v17  ;;  %v5064_v10 = vcombine.high %v230_v38, %v230_v38 }
  0xcf   : > { %2232 = vmatmul.mubr.bf16.gmra.mrb[4].mxu0 %v6538_v12  ;;  %1721 = vmatpush1.bf16.msra.mxu1 %v5825_v29  ;;  %v5900_v29 = vld [vmem:[%s8078_s1 + $0x9c0] ss:$16 sps:$4 sm:$0xff]  }
  0xd0   : > { %2721 = vmatpush1.bf16.msra.mxu0 %v5828_v35  ;;  %1722 = vmatprep.subr.bf16.mxu1 %v5833_v13  ;;  %v5905_v35 = vld [vmem:[%s8078_s1 + $0x5ec] ss:$16 sps:$4 sm:$0xff]   ;;  %v5903_v13 = vld [vmem:[%s8078_s1 + $0x5e8] ss:$16 sps:$4 sm:$0xff]  }
  0xd1   : > { %2722 = vmatprep.subr.bf16.mxu0 %v5836_v14  ;;  %2748 = vmatprep.mubr.bf16.mxu0 %v7075_v18  ;;  %v2382_v14 = vrot.slane %v7026_v45, 2  ;;  %v5914_v45 = vld [vmem:[%s8078_s1 + $0x62c] ss:$16 sps:$4 sm:$0xff]  }
  0xd2   : > { %1748 = vmatprep.mubr.bf16.mxu1 %v6637_v54  ;;  %v5846_v54 = vld [vmem:[%s8078_s1 + $0x8a0] ss:$16 sps:$4 sm:$0xff]  }
  0xd3   : > { %1723 = vmatpush1.bf16.msra.mxu1 %v5831_v15  ;;  %v5906_v15 = vld [vmem:[%s8078_s1 + $0x9e0] ss:$16 sps:$4 sm:$0xff]  }
  0xd4   : > { %2723 = vmatpush1.bf16.msra.mxu0 %v5834_v16  ;;  %1724 = vmatprep.subr.bf16.mxu1 %v5839_v19  ;;  %v5911_v16 = vld [vmem:[%s8078_s1 + $0x60c] ss:$16 sps:$4 sm:$0xff]   ;;  %v2383_v19 = vrot.slane %v7069_v17, 2 }
  0xd5   : > { %2724 = vmatprep.subr.bf16.mxu0 %v5842_v20  ;;  %v2390_v20 = vrot.slane %v5064_v10, 2  ;;  %v5977_v10 = vld [vmem:[%s8078_s1 + $0x8c8] ss:$16 sps:$4 sm:$0xff]  }
  0xd7   : > { %1725 = vmatpush1.bf16.msra.mxu1 %v5837_v21  ;;  %v5909_v21 = vld [vmem:[%s8078_s1 + $0x608] ss:$16 sps:$4 sm:$0xff]   ;;  %v7241_v17 = vsel %vm2381_vm3, %v2386_v11, %v2390_v20  ;;  %v5922_v11 = vld [vmem:[%s8078_s1 + $0x66c] ss:$16 sps:$4 sm:$0xff]  }
  0xd8   : > { %2725 = vmatpush1.bf16.msra.mxu0 %v5840_v22  ;;  %1726 = vmatprep.subr.bf16.mxu1 %v5845_v23  ;;  %v7236_v22 = vsel %vm2381_vm3, %v2382_v14, %v2383_v19  ;;  %v5063_v23 = vcombine.low %v230_v38, %v230_v38  ;;  %v5967_v38 = vld [vmem:[%s8078_s1 + $0x84c] ss:$16 sps:$4 sm:$0xff]   ;;  %v5980_v14 = vld [vmem:[%s8078_s1 + $0x8e8] ss:$16 sps:$4 sm:$0xff]  }
  0xd9   : > { %2726 = vmatprep.subr.bf16.mxu0 %v5848_v25  ;;  %v5912_v25 = vld [vmem:[%s8078_s1 + $0x628] ss:$16 sps:$4 sm:$0xff]  }
  0xda   : > { %v5986_v20 = vld [vmem:[%s8078_s1 + $0x928] ss:$16 sps:$4 sm:$0xff]  }
  0xdb   : > { %1727 = vmatpush1.bf16.msra.mxu1 %v5843_v27  ;;  %v5918_v27 = vld [vmem:[%s8078_s1 + $0x64c] ss:$16 sps:$4 sm:$0xff]  }
  0xdc   : > { %2727 = vmatpush1.bf16.msra.mxu0 %v5846_v54  ;;  %1728 = vmatprep.subr.bf16.mxu1 %v5851_v28  ;;  %v2388_v54 = vrot.slane %v5063_v23, 2  ;;  %v5920_v28 = vld [vmem:[%s8078_s1 + $0x668] ss:$16 sps:$4 sm:$0xff]   ;;  %v5994_v23 = vld [vmem:[%s8078_s1 + $0x96c] ss:$16 sps:$4 sm:$0xff]  }
  0xdd   : > { %2728 = vmatprep.subr.bf16.mxu0 %v5854_v31  ;;  %v5923_v31 = vld [vmem:[%s8078_s1 + $0x688] ss:$16 sps:$4 sm:$0xff]  }
  0xdf   : > { %1729 = vmatpush1.bf16.msra.mxu1 %v5849_v32  ;;  %v5928_v32 = vld [vmem:[%s8078_s1 + $0x6ac] ss:$16 sps:$4 sm:$0xff]  }
  0xe0   : > { %2729 = vmatpush1.bf16.msra.mxu0 %v5852_v34  ;;  %1730 = vmatprep.subr.bf16.mxu1 %v5857_v39  ;;  %v5926_v34 = vld [vmem:[%s8078_s1 + $0x6a8] ss:$16 sps:$4 sm:$0xff]  }
  0xe1   : > { %2730 = vmatprep.subr.bf16.mxu0 %v5860_v40 }
  0xe3   : > { %1731 = vmatpush1.bf16.msra.mxu1 %v5855_v41  ;;  %v5929_v41 = vld [vmem:[%s8078_s1 + $0x6c8] ss:$16 sps:$4 sm:$0xff]  }
  0xe4   : > { %2731 = vmatpush1.bf16.msra.mxu0 %v5858_v42  ;;  %1732 = vmatprep.subr.bf16.mxu1 %v5863_v43  ;;  %v5934_v43 = vld [vmem:[%s8078_s1 + $0x6ec] ss:$16 sps:$4 sm:$0xff]  }
  0xe5   : > { %2732 = vmatprep.subr.bf16.mxu0 %v5866_v44  ;;  %v5932_v44 = vld [vmem:[%s8078_s1 + $0x6e8] ss:$16 sps:$4 sm:$0xff]  }
  0xe7   : > { %1733 = vmatpush1.bf16.msra.mxu1 %v5861_v46  ;;  %v5937_v46 = vld [vmem:[%s8078_s1 + $0x70c] ss:$16 sps:$4 sm:$0xff]  }
  0xe8   : > { %2733 = vmatpush1.bf16.msra.mxu0 %v5864_v48  ;;  %1734 = vmatprep.subr.bf16.mxu1 %v5869_v49 }
  0xe9   : > { %2734 = vmatprep.subr.bf16.mxu0 %v5872_v53  ;;  %v5935_v53 = vld [vmem:[%s8078_s1 + $0x708] ss:$16 sps:$4 sm:$0xff]  }
  0xeb   : > { %1735 = vmatpush1.bf16.msra.mxu1 %v5867_v51 }
  0xec   : > { %2735 = vmatpush1.bf16.msra.mxu0 %v5870_v55  ;;  %1736 = vmatprep.subr.bf16.mxu1 %v5875_v56  ;;  %v5940_v55 = vld [vmem:[%s8078_s1 + $0x72c] ss:$16 sps:$4 sm:$0xff]  }
  0xed   : > { %2736 = vmatprep.subr.bf16.mxu0 %v5878_v58  ;;  %v5938_v58 = vld [vmem:[%s8078_s1 + $0x728] ss:$16 sps:$4 sm:$0xff]  }
  0xef   : > { %1737 = vmatpush1.bf16.msra.mxu1 %v5873_v59  ;;  %v5943_v59 = vld [vmem:[%s8078_s1 + $0x74c] ss:$16 sps:$4 sm:$0xff]  }
  0xf0   : > { %2737 = vmatpush1.bf16.msra.mxu0 %v5876_v61  ;;  %1738 = vmatprep.subr.bf16.mxu1 %v5881_v60  ;;  %v5941_v61 = vld [vmem:[%s8078_s1 + $0x748] ss:$16 sps:$4 sm:$0xff]   ;;  %v5946_v60 = vld [vmem:[%s8078_s1 + $0x76c] ss:$16 sps:$4 sm:$0xff]  }
  0xf1   : > { %2738 = vmatprep.subr.bf16.mxu0 %v5884_v62  ;;  %v5944_v62 = vld [vmem:[%s8078_s1 + $0x768] ss:$16 sps:$4 sm:$0xff]  }
  0xf3   : > { %1739 = vmatpush1.bf16.msra.mxu1 %v5879_v63  ;;  %v5949_v63 = vld [vmem:[%s8078_s1 + $0x78c] ss:$16 sps:$4 sm:$0xff]  }
  0xf4   : > { %2739 = vmatpush1.bf16.msra.mxu0 %v5882_v0  ;;  %1740 = vmatprep.subr.bf16.mxu1 %v5887_v1  ;;  %v5947_v0 = vld [vmem:[%s8078_s1 + $0x788] ss:$16 sps:$4 sm:$0xff]   ;;  %v5952_v1 = vld [vmem:[%s8078_s1 + $0x7ac] ss:$16 sps:$4 sm:$0xff]  }
  0xf5   : > { %2740 = vmatprep.subr.bf16.mxu0 %v5890_v30  ;;  %v5950_v30 = vld [vmem:[%s8078_s1 + $0x7a8] ss:$16 sps:$4 sm:$0xff]  }
  0xf7   : > { %1741 = vmatpush1.bf16.msra.mxu1 %v5885_v2  ;;  %v5955_v2 = vld [vmem:[%s8078_s1 + $0x7cc] ss:$16 sps:$4 sm:$0xff]  }
  0xf8   : > { %2741 = vmatpush1.bf16.msra.mxu0 %v5888_v3  ;;  %1742 = vmatprep.subr.bf16.mxu1 %v5893_v4  ;;  %v5953_v3 = vld [vmem:[%s8078_s1 + $0x7c8] ss:$16 sps:$4 sm:$0xff]   ;;  %v5958_v4 = vld [vmem:[%s8078_s1 + $0x7ec] ss:$16 sps:$4 sm:$0xff]  }
  0xf9   : > { %2742 = vmatprep.subr.bf16.mxu0 %v5896_v36  ;;  %v5956_v36 = vld [vmem:[%s8078_s1 + $0x7e8] ss:$16 sps:$4 sm:$0xff]  }
  0xfb   : > { %1743 = vmatpush1.bf16.msra.mxu1 %v5891_v6  ;;  %v5961_v6 = vld [vmem:[%s8078_s1 + $0x80c] ss:$16 sps:$4 sm:$0xff]  }
  0xfc   : > { %2743 = vmatpush1.bf16.msra.mxu0 %v5894_v8  ;;  %1744 = vmatprep.subr.bf16.mxu1 %v5899_v24  ;;  %v5959_v8 = vld [vmem:[%s8078_s1 + $0x808] ss:$16 sps:$4 sm:$0xff]   ;;  %v5964_v24 = vld [vmem:[%s8078_s1 + $0x82c] ss:$16 sps:$4 sm:$0xff]  }
  0xfd   : > { %2744 = vmatprep.subr.bf16.mxu0 %v5902_v33  ;;  %v5962_v33 = vld [vmem:[%s8078_s1 + $0x828] ss:$16 sps:$4 sm:$0xff]  }
  0xff   : > { %1745 = vmatpush1.bf16.msra.mxu1 %v5897_v26  ;;  %v5965_v26 = vld [vmem:[%s8078_s1 + $0x848] ss:$16 sps:$4 sm:$0xff]  }
 0x100   : > { %2745 = vmatpush1.bf16.msra.mxu0 %v5900_v29  ;;  %1746 = vmatprep.subr.bf16.mxu1 %v5905_v35  ;;  %v5973_v29 = vld [vmem:[%s8078_s1 + $0x88c] ss:$16 sps:$4 sm:$0xff]   ;;  %v5971_v35 = vld [vmem:[%s8078_s1 + $0x888] ss:$16 sps:$4 sm:$0xff]  }
 0x101   : > { %2746 = vmatprep.subr.bf16.mxu0 %v5908_v9  ;;  %v5979_v9 = vld [vmem:[%s8078_s1 + $0x8cc] ss:$16 sps:$4 sm:$0xff]  }
 0x103   : > { %1747 = vmatpush1.bf16.msra.mxu1 %v5903_v13  ;;  %v5982_v13 = vld [vmem:[%s8078_s1 + $0x8ec] ss:$16 sps:$4 sm:$0xff]  }
 0x104   : > { %2747 = vmatpush1.bf16.msra.mxu0 %v5906_v15  ;;  %2242 = vmatprep.subr.bf16.mxu1 %v5911_v16  ;;  %v5985_v15 = vld [vmem:[%s8078_s1 + $0x90c] ss:$16 sps:$4 sm:$0xff]   ;;  %v5983_v16 = vld [vmem:[%s8078_s1 + $0x908] ss:$16 sps:$4 sm:$0xff]  }
 0x106   : > { %1749 = vmatmul.mubr.bf16.vlgmr.msra.gmra.mrb[8].mxu1 %v6803_v52  ;;  %v7260_v52 = vsel %vm2381_vm3, %v2383_v19, %v2388_v54  ;;  %v5988_v19 = vld [vmem:[%s8078_s1 + $0x92c] ss:$16 sps:$4 sm:$0xff]   ;;  %v5995_v54 = vld [vmem:[%s8078_s1 + $0x988] ss:$16 sps:$4 sm:$0xff]  }
 0x107   : > { %2749 = vmatmul.mubr.bf16.vlgmr.msra.gmra.mrb[0].mxu0 %v7236_v22  ;;  %2243 = vmatpush1.bf16.msra.mxu1 %v5909_v21  ;;  %v5991_v21 = vld [vmem:[%s8078_s1 + $0x94c] ss:$16 sps:$4 sm:$0xff]  }
 0x108   : > { %2758 = vmatprep.mubr.bf16.mxu0 %v7241_v17  ;;  %2244 = vmatprep.subr.bf16.mxu1 %v5914_v45  ;;  %v5989_v45 = vld [vmem:[%s8078_s1 + $0x948] ss:$16 sps:$4 sm:$0xff]  }
 0x109   : > { %1758 = vmatprep.mubr.bf16.mxu1 %v6619_v47  ;;  %v5925_v47 = vld [vmem:[%s8078_s1 + $0x68c] ss:$16 sps:$4 sm:$0xff]  }
 0x10b   : > { %2245 = vmatpush1.bf16.msra.mxu1 %v5912_v25  ;;  %v5992_v25 = vld [vmem:[%s8078_s1 + $0x968] ss:$16 sps:$4 sm:$0xff]  }
 0x10c   : > { %2246 = vmatprep.subr.bf16.mxu1 %v5918_v27  ;;  %v5997_v27 = vld [vmem:[%s8078_s1 + $0x98c] ss:$16 sps:$4 sm:$0xff]  }
 0x10e   : > { %1759 = vmatmul.mubr.bf16.gmra.mrb[12].mxu1 %v6790_v57  ;;  %v5931_v57 = vld [vmem:[%s8078_s1 + $0x6cc] ss:$16 sps:$4 sm:$0xff]  }
 0x10f   : > { %2759 = vmatmul.mubr.bf16.gmra.mrb[4].mxu0 %v7260_v52  ;;  %2247 = vmatpush1.bf16.msra.mxu1 %v5916_v50  ;;  %v6000_v50 = vld [vmem:[%s8078_s1 + $0x9ac] ss:$16 sps:$4 sm:$0xff]  }
 0x110   : > { %2274 = vmatprep.mubr.bf16.mxu1 %v6852_v7  ;;  %2248 = vmatprep.subr.bf16.mxu1 %v5922_v11  ;;  %v5998_v11 = vld [vmem:[%s8078_s1 + $0x9a8] ss:$16 sps:$4 sm:$0xff]  }
 0x113   : > { %2249 = vmatpush1.bf16.msra.mxu1 %v5920_v28  ;;  %v6003_v28 = vld [vmem:[%s8078_s1 + $0x9cc] ss:$16 sps:$4 sm:$0xff]  }
 0x114   : > { %2250 = vmatprep.subr.bf16.mxu1 %v5925_v47  ;;  %v6281_v47 = vmov 0  }
 0x115   : > { %3096 = vmatprep.mubr.bf16.mxu0 %v6281_v47 }
 0x117   : > { %2251 = vmatpush1.bf16.msra.mxu1 %v5923_v31  ;;  %v6001_v31 = vld [vmem:[%s8078_s1 + $0x9c8] ss:$16 sps:$4 sm:$0xff]  }
 0x118   : > { %2252 = vmatprep.subr.bf16.mxu1 %v5928_v32  ;;  %v6006_v32 = vld [vmem:[%s8078_s1 + $0x9ec] ss:$16 sps:$4 sm:$0xff]  }
 0x119   : > { %v7283_v7 = vpop.f32.mrb[0].mxu1 }
 0x11a   : > { %v7285_v39 = vpop.f32.mrb[1].mxu1 }
 0x11b   : > { %v7287_v40 = vpop.f32.mrb[2].mxu1  ;;  %2253 = vmatpush1.bf16.msra.mxu1 %v5926_v34  ;;  %v6004_v34 = vld [vmem:[%s8078_s1 + $0x9e8] ss:$16 sps:$4 sm:$0xff]  }
 0x11c   : > { %v7292_v42 = vpop.f32.mrb[3].mxu1  ;;  %2254 = vmatprep.subr.bf16.mxu1 %v5931_v57  ;;  %v2840_v57 = vlaneseq }
 0x11f   : > { %2255 = vmatpush1.bf16.msra.mxu1 %v5929_v41  ;;  %v7460_v41 = vshrl.u32 %v2840_v57, 7 }
 0x120   : > { %2256 = vmatprep.subr.bf16.mxu1 %v5934_v43 }
 0x121   : > { %v7303_v48 = vpop.f32.mrb[4].mxu1  ;;  %v2842_v43 = vsub.s32 0, %v7460_v41 }
 0x122   : > { %v7305_v49 = vpop.f32.mrb[5].mxu1 }
 0x123   : > { %2257 = vmatpush1.bf16.msra.mxu1 %v5932_v44  ;;  %v7310_v51 = vpop.f32.mrb[6].mxu1  ;;  %v7466_v44 = vld [vmem:[%s8079_s2] sm:$0xf] }
 0x124   : > { %2258 = vmatprep.subr.bf16.mxu1 %v5937_v46  ;;  %v7315_v56 = vpop.f32.mrb[7].mxu1  ;;  %v2846_v46 = vsub.s32 1, %v7460_v41 }
 0x127   : > { %2259 = vmatpush1.bf16.msra.mxu1 %v5935_v53  ;;  %v2843_v53 = vrot.slane %v7466_v44, %v2842_v43 }
 0x128   : > { %2260 = vmatprep.subr.bf16.mxu1 %v5940_v55 }
 0x12b   : > { %2261 = vmatpush1.bf16.msra.mxu1 %v5938_v58 }
 0x12c   : > { %2262 = vmatprep.subr.bf16.mxu1 %v5943_v59 }
 0x12f   : > { %2263 = vmatpush1.bf16.msra.mxu1 %v5941_v61 }
 0x130   : > { %2264 = vmatprep.subr.bf16.mxu1 %v5946_v60 }
 0x133   : > { %2265 = vmatpush1.bf16.msra.mxu1 %v5944_v62 }
 0x134   : > { %2266 = vmatprep.subr.bf16.mxu1 %v5949_v63 }
 0x137   : > { %2267 = vmatpush1.bf16.msra.mxu1 %v5947_v0 }
 0x138   : > { %2268 = vmatprep.subr.bf16.mxu1 %v5952_v1 }
 0x13b   : > { %2269 = vmatpush1.bf16.msra.mxu1 %v5950_v30 }
 0x13c   : > { %2270 = vmatprep.subr.bf16.mxu1 %v5955_v2 }
 0x13f   : > { %2271 = vmatpush1.bf16.msra.mxu1 %v5953_v3 }
 0x140   : > { %2272 = vmatprep.subr.bf16.mxu1 %v5958_v4 }
 0x143   : > { %2273 = vmatpush1.bf16.msra.mxu1 %v5956_v36 }
 0x144   : > { %2769 = vmatprep.subr.bf16.mxu1 %v5961_v6 }
 0x146   : > { %2275 = vmatmul.mubr.bf16.vlgmr.msra.gmra.mrb[8].mxu1 %v7017_v5  ;;  %v5970_v5 = vld [vmem:[%s8078_s1 + $0x86c] ss:$16 sps:$4 sm:$0xff]  }
 0x147   : > { %2770 = vmatpush1.bf16.msra.mxu1 %v5959_v8  ;;  %2284 = vmatprep.mubr.bf16.mxu1 %v6587_v37  ;;  %v5968_v37 = vld [vmem:[%s8078_s1 + $0x868] ss:$16 sps:$4 sm:$0xff]  }
 0x148   : > { %2771 = vmatprep.subr.bf16.mxu1 %v5964_v24 }
 0x14b   : > { %2772 = vmatpush1.bf16.msra.mxu1 %v5962_v33 }
 0x14c   : > { %2773 = vmatprep.subr.bf16.mxu1 %v5967_v38 }
 0x14e   : > { %2285 = vmatmul.mubr.bf16.gmra.mrb[12].mxu1 %v6538_v12  ;;  %v5976_v12 = vld [vmem:[%s8078_s1 + $0x8ac] ss:$16 sps:$4 sm:$0xff]  }
 0x14f   : > { %2774 = vmatpush1.bf16.msra.mxu1 %v5965_v26  ;;  %2801 = vmatprep.mubr.bf16.mxu1 %v7075_v18  ;;  %v5974_v18 = vld [vmem:[%s8078_s1 + $0x8a8] ss:$16 sps:$4 sm:$0xff]  }
 0x150   : > { %2775 = vmatprep.subr.bf16.mxu1 %v5970_v5 }
 0x153   : > { %2776 = vmatpush1.bf16.msra.mxu1 %v5968_v37 }
 0x154   : > { %2777 = vmatprep.subr.bf16.mxu1 %v5973_v29 }
 0x157   : > { %2778 = vmatpush1.bf16.msra.mxu1 %v5971_v35 }
 0x158   : > { %2779 = vmatprep.subr.bf16.mxu1 %v5976_v12 }
 0x15b   : > { %2780 = vmatpush1.bf16.msra.mxu1 %v5974_v18 }
 0x15c   : > { %2781 = vmatprep.subr.bf16.mxu1 %v5979_v9 }
 0x15f   : > { %2782 = vmatpush1.bf16.msra.mxu1 %v5977_v10 }
 0x160   : > { %2783 = vmatprep.subr.bf16.mxu1 %v5982_v13 }
 0x163   : > { %2784 = vmatpush1.bf16.msra.mxu1 %v5980_v14 }
 0x164   : > { %2785 = vmatprep.subr.bf16.mxu1 %v5985_v15 }
 0x167   : > { %2786 = vmatpush1.bf16.msra.mxu1 %v5983_v16 }
 0x168   : > { %2787 = vmatprep.subr.bf16.mxu1 %v5988_v19 }
 0x16b   : > { %2788 = vmatpush1.bf16.msra.mxu1 %v5986_v20 }
 0x16c   : > { %2789 = vmatprep.subr.bf16.mxu1 %v5991_v21 }
 0x16f   : > { %2790 = vmatpush1.bf16.msra.mxu1 %v5989_v45 }
 0x170   : > { %2791 = vmatprep.subr.bf16.mxu1 %v5994_v23  ;;  %v6282_v23 = vmov 65535  }
 0x173   : > { %2792 = vmatpush1.bf16.msra.mxu1 %v5992_v25  ;;  %v3050_v25 = vsel %vm3049_vm4, 4294967295, %v6282_v23  ;;  %v6073_v23 = vld [vmem:[%s8081_s4 + $0x274] ss:$8 sps:$4 sm:$0xff]  }
 0x174   : > { %2793 = vmatprep.subr.bf16.mxu1 %v5997_v27 }
 0x177   : > { %2794 = vmatpush1.bf16.msra.mxu1 %v5995_v54 }
 0x178   : > { %2795 = vmatprep.subr.bf16.mxu1 %v6000_v50 }
 0x17b   : > { %2796 = vmatpush1.bf16.msra.mxu1 %v5998_v11 }
 0x17c   : > { %2797 = vmatprep.subr.bf16.mxu1 %v6003_v28 }
 0x17f   : > { %2798 = vmatpush1.bf16.msra.mxu1 %v6001_v31 }
 0x180   : > { %2799 = vmatprep.subr.bf16.mxu1 %v6006_v32 }
 0x183   : > { %2800 = vmatpush1.bf16.msra.mxu1 %v6004_v34 }
 0x186   : > { %2802 = vmatmul.mubr.bf16.vlgmr.msra.gmra.mrb[8].mxu1 %v7236_v22  ;;  %v2847_v22 = vrot.slane %v7466_v44, %v2846_v46 }
 0x187   : > { %2811 = vmatprep.mubr.bf16.mxu1 %v7241_v17 }
 0x18e   : > { %2812 = vmatmul.mubr.bf16.gmra.mrb[12].mxu1 %v7260_v52 }
 0x1da   : > { %v2750_v55 = vpop.f32.mrb[0].mxu0 }
 0x1db   : > { %v5432_v17 = vadd.f32 %v2750_v55, %v7283_v7  ;;  %v2752_v52 = vpop.f32.mrb[1].mxu0 }
 0x1dc   : > { %v5433_v58 = vadd.f32 %v2752_v52, %v7285_v39  ;;  %v2754_v59 = vpop.f32.mrb[2].mxu0 }
 0x1dd   : > { %v2860_v61 = vadd.f32 %v5432_v17, %v2843_v53  ;;  %v5434_v60 = vadd.f32 %v2754_v59, %v7287_v40  ;;  %v2756_v62 = vpop.f32.mrb[3].mxu0 }
 0x1de   : > { %v2861_v63 = vadd.f32 %v5433_v58, %v2847_v22  ;;  %v5435_v0 = vadd.f32 %v2756_v62, %v7292_v42 }
 0x1df   : > { %v2876_v1 = vmax.f32 %v2860_v61, 0.0  ;;  %v2864_v30 = vadd.f32 %v5434_v60, %v2843_v53 }
 0x1e0   : > { %v2877_v2 = vmax.f32 %v2861_v63, 0.0  ;;  %v2865_v3 = vadd.f32 %v5435_v0, %v2847_v22 }
 0x1e1   : > { %v2880_v4 = vmax.f32 %v2864_v30, 0.0  ;;  %v2909_v36 = vrot.slane %v2876_v1, 1  ;;  %v2970_v6 = vrot.slane %v2876_v1, 2 }
 0x1e2   : > { %v2881_v7 = vmax.f32 %v2865_v3, 0.0  ;;  %v2760_v8 = vpop.f32.mrb[4].mxu0  ;;  %v2912_v24 = vrot.slane %v2877_v2, 1  ;;  %v2973_v26 = vrot.slane %v2877_v2, 2 }
 0x1e3   : > { %v2910_v39 = vrot.slane %v2880_v4, 1  ;;  %v2971_v33 = vrot.slane %v2880_v4, 2  ;;  %v5436_v38 = vadd.f32 %v2760_v8, %v7303_v48  ;;  %v2762_v40 = vpop.f32.mrb[5].mxu0 }
 0x1e4   : > { %v2913_v5 = vrot.slane %v2881_v7, 1  ;;  %v2974_v37 = vrot.slane %v2881_v7, 2  ;;  %v5437_v42 = vadd.f32 %v2762_v40, %v7305_v49  ;;  %v2764_v29 = vpop.f32.mrb[6].mxu0 }
 0x1e5   : > { %v2911_v35 = vsel %vm1332_vm1, %v2909_v36, %v2910_v39  ;;  %v2868_v12 = vadd.f32 %v5436_v38, %v2843_v53  ;;  %v5438_v18 = vadd.f32 %v2764_v29, %v7310_v51  ;;  %v2766_v9 = vpop.f32.mrb[7].mxu0  ;;  %v2972_v10 = vsel %vm2381_vm3, %v2970_v6, %v2971_v33  ;;  %v6017_v29 = vld [vmem:[%s8081_s4 + $0x1e0] ss:$8 sps:$4 sm:$0xff]  }
 0x1e6   : > { %v2869_v13 = vadd.f32 %v5437_v42, %v2847_v22  ;;  %v5439_v14 = vadd.f32 %v2766_v9, %v7315_v56  ;;  %v2914_v48 = vsel %vm1332_vm1, %v2912_v24, %v2913_v5  ;;  %v2975_v15 = vsel %vm2381_vm3, %v2973_v26, %v2974_v37  ;;  %v7500_v26 = vld [vmem:[%s8080_s3] sm:$0x7f]   ;;  %v6037_v9 = vld [vmem:[%s8081_s4 + $0x214] ss:$8 sps:$4 sm:$0xff]  }
 0x1e7   : > { %v2884_v16 = vmax.f32 %v2868_v12, 0.0  ;;  %v2872_v19 = vadd.f32 %v5438_v18, %v2843_v53  ;;  %v2954_v20 = vmax.f32 %v2877_v2, %v2914_v48  ;;  %v2953_v49 = vmax.f32 %v2876_v1, %v2911_v35  ;;  %v6019_v42 = vld [vmem:[%s8081_s4 + $0x1e4] ss:$8 sps:$4 sm:$0xff]   ;;  %v6025_v35 = vld [vmem:[%s8081_s4 + $0x1f4] ss:$8 sps:$4 sm:$0xff]  }
 0x1e8   : > { %v2885_v21 = vmax.f32 %v2869_v13, 0.0  ;;  %v2873_v45 = vadd.f32 %v5439_v14, %v2847_v22  ;;  %v6023_v12 = vld [vmem:[%s8081_s4 + $0x1f0] ss:$8 sps:$4 sm:$0xff]   ;;  %v6029_v18 = vld [vmem:[%s8081_s4 + $0x200] ss:$8 sps:$4 sm:$0xff]  }
 0x1e9   : > { %v2921_v51 = vrot.slane %v2884_v16, 1  ;;  %v2982_v27 = vrot.slane %v2884_v16, 2  ;;  %v2888_v54 = vmax.f32 %v2872_v19, 0.0  ;;  %v3015_v50 = vmax.f32 %v2954_v20, %v2975_v15  ;;  %v6043_v13 = vld [vmem:[%s8081_s4 + $0x224] ss:$8 sps:$4 sm:$0xff]  }
 0x1ea   : > { %v2923_v11 = vrot.slane %v2885_v21, 1  ;;  %v2984_v28 = vrot.slane %v2885_v21, 2  ;;  %v2889_v56 = vmax.f32 %v2873_v45, 0.0  ;;  %v3014_v31 = vmax.f32 %v2953_v49, %v2972_v10  ;;  %v6035_v10 = vld [vmem:[%s8081_s4 + $0x210] ss:$8 sps:$4 sm:$0xff]  }
 0x1eb   : > { %v2922_v32 = vsel %vm1332_vm1, %v2910_v39, %v2921_v51  ;;  %v2929_v34 = vrot.slane %v2888_v54, 1  ;;  %v2990_v57 = vrot.slane %v2888_v54, 2  ;;  %v2983_v43 = vsel %vm2381_vm3, %v2971_v33, %v2982_v27  ;;  %v6041_v14 = vld [vmem:[%s8081_s4 + $0x220] ss:$8 sps:$4 sm:$0xff]   ;;  %v6049_v48 = vld [vmem:[%s8081_s4 + $0x234] ss:$8 sps:$4 sm:$0xff]  }
 0x1ec   : > { %v2931_v46 = vrot.slane %v2889_v56, 1  ;;  %v2992_v53 = vrot.slane %v2889_v56, 2  ;;  %v2924_v55 = vsel %vm1332_vm1, %v2913_v5, %v2923_v11  ;;  %v2985_v22 = vsel %vm2381_vm3, %v2974_v37, %v2984_v28  ;;  %v6011_v5 = vld [vmem:[%s8081_s4 + $0x1d0] ss:$8 sps:$4 sm:$0xff]   ;;  %v6013_v37 = vld [vmem:[%s8081_s4 + $0x1d4] ss:$8 sps:$4 sm:$0xff]  }
 0x1ed   : > { %v2930_v17 = vsel %vm1332_vm1, %v2921_v51, %v2929_v34  ;;  %v2965_v52 = vmax.f32 %v2888_v54, %v2929_v34  ;;  %v2991_v58 = vsel %vm2381_vm3, %v2982_v27, %v2990_v57  ;;  %v2958_v59 = vmax.f32 %v2881_v7, %v2924_v55  ;;  %3941 = vmatprep.subr.bf16.mxu1 %v6013_v37  ;;  %v6047_v15 = vld [vmem:[%s8081_s4 + $0x230] ss:$8 sps:$4 sm:$0xff]   ;;  %v6053_v19 = vld [vmem:[%s8081_s4 + $0x240] ss:$8 sps:$4 sm:$0xff]   ;;  %v6061_v20 = vld [vmem:[%s8081_s4 + $0x254] ss:$8 sps:$4 sm:$0xff]  }
 0x1ee   : > { %v2961_v61 = vmax.f32 %v2884_v16, %v2930_v17  ;;  %v2966_v60 = vmax.f32 %v2889_v56, %v2931_v46  ;;  %v2957_v62 = vmax.f32 %v2880_v4, %v2922_v32  ;;  %v2932_v63 = vsel %vm1332_vm1, %v2923_v11, %v2931_v46  ;;  %3942 = vmatpush1.bf16.msra.mxu1 %v6011_v5  ;;  %v6055_v16 = vld [vmem:[%s8081_s4 + $0x244] ss:$8 sps:$4 sm:$0xff]   ;;  %v6059_v49 = vld [vmem:[%s8081_s4 + $0x250] ss:$8 sps:$4 sm:$0xff]   ;;  %v6065_v45 = vld [vmem:[%s8081_s4 + $0x260] ss:$8 sps:$4 sm:$0xff]  }
 0x1ef   : > { %v3026_v0 = vmax.f32 %v2965_v52, %v2990_v57  ;;  %v3019_v1 = vmax.f32 %v2958_v59, %v2985_v22  ;;  %v2962_v30 = vmax.f32 %v2885_v21, %v2932_v63  ;;  %v2993_v2 = vsel %vm2381_vm3, %v2984_v28, %v2992_v53  ;;  %3943 = vmatprep.subr.bf16.mxu1 %v6019_v42  ;;  %v6067_v21 = vld [vmem:[%s8081_s4 + $0x264] ss:$8 sps:$4 sm:$0xff]   ;;  %v6077_v27 = vld [vmem:[%s8081_s4 + $0x280] ss:$8 sps:$4 sm:$0xff]   ;;  %v6085_v54 = vld [vmem:[%s8081_s4 + $0x294] ss:$8 sps:$4 sm:$0xff]  }
 0x1f0   : > { %v3018_v3 = vmax.f32 %v2957_v62, %v2983_v43  ;;  %v3027_v36 = vmax.f32 %v2966_v60, %v2992_v53  ;;  %v3022_v6 = vmax.f32 %v2961_v61, %v2991_v58  ;;  %v7493_v33 = vsel %vm2381_vm3, %v3050_v25, 0  ;;  %v6071_v25 = vld [vmem:[%s8081_s4 + $0x270] ss:$8 sps:$4 sm:$0xff]   ;;  %v6079_v51 = vld [vmem:[%s8081_s4 + $0x284] ss:$8 sps:$4 sm:$0xff]  }
 0x1f1   : > { %v3031_v8 = vpack.c.bf16 %v3019_v1, %v3015_v50  ;;  %v3023_v24 = vmax.f32 %v2962_v30, %v2993_v2  ;;  %v6083_v50 = vld [vmem:[%s8081_s4 + $0x290] ss:$8 sps:$4 sm:$0xff]   ;;  %v6091_v11 = vld [vmem:[%s8081_s4 + $0x2a4] ss:$8 sps:$4 sm:$0xff]   ;;  %v6089_v28 = vld [vmem:[%s8081_s4 + $0x2a0] ss:$8 sps:$4 sm:$0xff]  }
 0x1f2   : > { %v3030_v39 = vpack.c.bf16 %v3018_v3, %v3014_v31  ;;  %v3034_v7 = vpack.c.bf16 %v3026_v0, %v3022_v6  ;;  %3944 = vmatpush1.bf16.msra.mxu1 %v6017_v29  ;;  %v6097_v56 = vld [vmem:[%s8081_s4 + $0x2b4] ss:$8 sps:$4 sm:$0xff]   ;;  %v6095_v31 = vld [vmem:[%s8081_s4 + $0x2b0] ss:$8 sps:$4 sm:$0xff]   ;;  %v6101_v32 = vld [vmem:[%s8081_s4 + $0x2c0] ss:$8 sps:$4 sm:$0xff]  }
 0x1f3   : > { %3064 = vmatprep.subr.bf16.mxu0 %v3031_v8  ;;  %v3035_v38 = vpack.c.bf16 %v3027_v36, %v3023_v24  ;;  %3945 = vmatprep.subr.bf16.mxu1 %v6025_v35  ;;  %v2850_v34 = vsub.s32 2, %v7460_v41  ;;  %v6103_v57 = vld [vmem:[%s8081_s4 + $0x2c4] ss:$8 sps:$4 sm:$0xff]   ;;  %v2854_v43 = vsub.s32 3, %v7460_v41  ;;  %v6109_v46 = vld [vmem:[%s8081_s4 + $0x2d4] ss:$8 sps:$4 sm:$0xff]  }
 0x1f4   : > { %3065 = vmatpush1.bf16.msra.mxu0 %v3030_v39  ;;  %v3053_v40 = vand.u32 %v7493_v33, %v3034_v7 }
 0x1f5   : > { %v3056_v4 = vand.u32 %v7493_v33, %v3035_v38  ;;  %v2851_v53 = vrot.slane %v7466_v44, %v2850_v34  ;;  %v2855_v55 = vrot.slane %v7466_v44, %v2854_v43 }
 0x1f6   : > { %3946 = vmatpush1.bf16.msra.mxu1 %v6023_v12 }
 0x1f7   : > { %3066 = vmatprep.subr.bf16.mxu0 %v3056_v4 }
 0x1f8   : > { %3067 = vmatpush1.bf16.msra.mxu0 %v3053_v40 }
 0x1fb   : > { %5130 = vmatmul.mubr.msk.bf16.vlgmr.msra.gmra.mrb[8].mxu0 %vm3045_vm5, %v7500_v26 }
 0x1fc   : > { %3139 = vmatprep.mubr.bf16.mxu0 %v6281_v47  ;;  %v6031_v47 = vld [vmem:[%s8081_s4 + $0x204] ss:$8 sps:$4 sm:$0xff]  }
 0x1fd   : > { %3947 = vmatprep.subr.bf16.mxu1 %v6031_v47 }
 0x1fe   : > { %3948 = vmatpush1.bf16.msra.mxu1 %v6029_v18 }
 0x1ff   : > { %3949 = vmatprep.subr.bf16.mxu1 %v6037_v9 }
 0x202   : > { %3950 = vmatpush1.bf16.msra.mxu1 %v6035_v10 }
 0x203   : > { %3951 = vmatprep.subr.bf16.mxu1 %v6043_v13 }
 0x206   : > { %3952 = vmatpush1.bf16.msra.mxu1 %v6041_v14 }
 0x207   : > { %3953 = vmatprep.subr.bf16.mxu1 %v6049_v48 }
 0x20a   : > { %3954 = vmatpush1.bf16.msra.mxu1 %v6047_v15 }
 0x20b   : > { %3955 = vmatprep.subr.bf16.mxu1 %v6055_v16 }
 0x20e   : > { %3956 = vmatpush1.bf16.msra.mxu1 %v6053_v19 }
 0x20f   : > { %3957 = vmatprep.subr.bf16.mxu1 %v6061_v20 }
 0x212   : > { %3958 = vmatpush1.bf16.msra.mxu1 %v6059_v49 }
 0x213   : > { %3959 = vmatprep.subr.bf16.mxu1 %v6067_v21 }
 0x216   : > { %3960 = vmatpush1.bf16.msra.mxu1 %v6065_v45 }
 0x217   : > { %3961 = vmatprep.subr.bf16.mxu1 %v6073_v23 }
 0x21a   : > { %3962 = vmatpush1.bf16.msra.mxu1 %v6071_v25 }
 0x21b   : > { %3963 = vmatprep.subr.bf16.mxu1 %v6079_v51 }
 0x21e   : > { %3964 = vmatpush1.bf16.msra.mxu1 %v6077_v27 }
 0x21f   : > { %3965 = vmatprep.subr.bf16.mxu1 %v6085_v54 }
 0x222   : > { %3966 = vmatpush1.bf16.msra.mxu1 %v6083_v50 }
 0x223   : > { %3967 = vmatprep.subr.bf16.mxu1 %v6091_v11 }
 0x226   : > { %3968 = vmatpush1.bf16.msra.mxu1 %v6089_v28 }
 0x227   : > { %3969 = vmatprep.subr.bf16.mxu1 %v6097_v56 }
 0x22a   : > { %3970 = vmatpush1.bf16.msra.mxu1 %v6095_v31 }
 0x22b   : > { %3971 = vmatprep.subr.bf16.mxu1 %v6103_v57 }
 0x22e   : > { %3972 = vmatpush1.bf16.msra.mxu1 %v6101_v32 }
 0x22f   : > { %3984 = vmatprep.subr.bf16.mxu1 %v6109_v46 }
 0x259   : > { %v2803_v22 = vpop.f32.mrb[8].mxu1 }
 0x25a   : > { %v2862_v17 = vadd.f32 %v2851_v53, %v2803_v22  ;;  %v2805_v52 = vpop.f32.mrb[9].mxu1 }
 0x25b   : > { %v2863_v58 = vadd.f32 %v2855_v55, %v2805_v52  ;;  %v2807_v59 = vpop.f32.mrb[10].mxu1 }
 0x25c   : > { %v2878_v61 = vmax.f32 %v2862_v17, 0.0  ;;  %v2866_v60 = vadd.f32 %v2851_v53, %v2807_v59  ;;  %v2809_v62 = vpop.f32.mrb[11].mxu1 }
 0x25d   : > { %v2879_v41 = vmax.f32 %v2863_v58, 0.0  ;;  %v2867_v63 = vadd.f32 %v2855_v55, %v2809_v62 }
 0x25e   : > { %v2882_v0 = vmax.f32 %v2866_v60, 0.0  ;;  %v2915_v30 = vrot.slane %v2878_v61, 1  ;;  %v2976_v2 = vrot.slane %v2878_v61, 2 }
 0x25f   : > { %v2883_v1 = vmax.f32 %v2867_v63, 0.0  ;;  %v2918_v6 = vrot.slane %v2879_v41, 1  ;;  %v2979_v8 = vrot.slane %v2879_v41, 2 }
 0x260   : > { %v2916_v3 = vrot.slane %v2882_v0, 1  ;;  %v2977_v36 = vrot.slane %v2882_v0, 2 }
 0x261   : > { %v2919_v44 = vrot.slane %v2883_v1, 1  ;;  %v2980_v24 = vrot.slane %v2883_v1, 2  ;;  %v2813_v39 = vpop.f32.mrb[12].mxu1 }
 0x262   : > { %v2917_v7 = vsel %vm1332_vm1, %v2915_v30, %v2916_v3  ;;  %v2978_v38 = vsel %vm2381_vm3, %v2976_v2, %v2977_v36  ;;  %v2870_v4 = vadd.f32 %v2851_v53, %v2813_v39  ;;  %v2815_v40 = vpop.f32.mrb[13].mxu1  ;;  %v6008_v2 = vld [vmem:[%s8081_s4] ss:$8 sps:$4 sm:$0xff]   ;;  %v6040_v39 = vld [vmem:[%s8081_s4 + $0x54] ss:$8 sps:$4 sm:$0xff]  }
 0x263   : > { %v2955_v5 = vmax.f32 %v2878_v61, %v2917_v7  ;;  %v2871_v37 = vadd.f32 %v2855_v55, %v2815_v40  ;;  %v2817_v42 = vpop.f32.mrb[14].mxu1  ;;  %v2920_v29 = vsel %vm1332_vm1, %v2918_v6, %v2919_v44  ;;  %v2981_v35 = vsel %vm2381_vm3, %v2979_v8, %v2980_v24  ;;  %v6020_v6 = vld [vmem:[%s8081_s4 + $0x20] ss:$8 sps:$4 sm:$0xff]   ;;  %v6026_v8 = vld [vmem:[%s8081_s4 + $0x30] ss:$8 sps:$4 sm:$0xff]  }
 0x264   : > { %v2886_v12 = vmax.f32 %v2870_v4, 0.0  ;;  %v2874_v47 = vadd.f32 %v2851_v53, %v2817_v42  ;;  %v2819_v18 = vpop.f32.mrb[15].mxu1  ;;  %v2956_v9 = vmax.f32 %v2879_v41, %v2920_v29  ;;  %v6038_v7 = vld [vmem:[%s8081_s4 + $0x50] ss:$8 sps:$4 sm:$0xff]   ;;  %v6044_v4 = vld [vmem:[%s8081_s4 + $0x60] ss:$8 sps:$4 sm:$0xff]  }
 0x265   : > { %v2887_v10 = vmax.f32 %v2871_v37, 0.0  ;;  %v2875_v13 = vadd.f32 %v2855_v55, %v2819_v18  ;;  %v3016_v14 = vmax.f32 %v2955_v5, %v2978_v38  ;;  %v6046_v38 = vld [vmem:[%s8081_s4 + $0x64] ss:$8 sps:$4 sm:$0xff]   ;;  %v6052_v40 = vld [vmem:[%s8081_s4 + $0x74] ss:$8 sps:$4 sm:$0xff]  }
 0x266   : > { %v2925_v48 = vrot.slane %v2886_v12, 1  ;;  %v2986_v15 = vrot.slane %v2886_v12, 2  ;;  %v2890_v16 = vmax.f32 %v2874_v47, 0.0  ;;  %v3017_v19 = vmax.f32 %v2956_v9, %v2981_v35  ;;  %v6050_v5 = vld [vmem:[%s8081_s4 + $0x70] ss:$8 sps:$4 sm:$0xff]  }
 0x267   : > { %v2927_v20 = vrot.slane %v2887_v10, 1  ;;  %v2988_v49 = vrot.slane %v2887_v10, 2  ;;  %v2891_v21 = vmax.f32 %v2875_v13, 0.0  ;;  %v6058_v37 = vld [vmem:[%s8081_s4 + $0x84] ss:$8 sps:$4 sm:$0xff]  }
 0x268   : > { %v2926_v45 = vsel %vm1332_vm1, %v2916_v3, %v2925_v48  ;;  %v2987_v23 = vsel %vm2381_vm3, %v2977_v36, %v2986_v15  ;;  %v2933_v25 = vrot.slane %v2890_v16, 1  ;;  %v2994_v51 = vrot.slane %v2890_v16, 2  ;;  %v6016_v3 = vld [vmem:[%s8081_s4 + $0x14] ss:$8 sps:$4 sm:$0xff]   ;;  %v6014_v36 = vld [vmem:[%s8081_s4 + $0x10] ss:$8 sps:$4 sm:$0xff]  }
 0x269   : > { %v2959_v27 = vmax.f32 %v2882_v0, %v2926_v45  ;;  %v2935_v54 = vrot.slane %v2891_v21, 1  ;;  %v2996_v50 = vrot.slane %v2891_v21, 2  ;;  %v2928_v11 = vsel %vm1332_vm1, %v2919_v44, %v2927_v20  ;;  %v6034_v44 = vld [vmem:[%s8081_s4 + $0x44] ss:$8 sps:$4 sm:$0xff]   ;;  %v6056_v42 = vld [vmem:[%s8081_s4 + $0x80] ss:$8 sps:$4 sm:$0xff]  }
 0x26a   : > { %v2934_v28 = vsel %vm1332_vm1, %v2925_v48, %v2933_v25  ;;  %v2967_v56 = vmax.f32 %v2890_v16, %v2933_v25  ;;  %v2995_v31 = vsel %vm2381_vm3, %v2986_v15, %v2994_v51  ;;  %v2960_v32 = vmax.f32 %v2883_v1, %v2928_v11  ;;  %v6010_v1 = vld [vmem:[%s8081_s4 + $0x4] ss:$8 sps:$4 sm:$0xff]   ;;  %v6064_v29 = vld [vmem:[%s8081_s4 + $0x94] ss:$8 sps:$4 sm:$0xff]   ;;  %v6062_v35 = vld [vmem:[%s8081_s4 + $0x90] ss:$8 sps:$4 sm:$0xff]  }
 0x26b   : > { %v2963_v34 = vmax.f32 %v2886_v12, %v2934_v28  ;;  %v2936_v57 = vsel %vm1332_vm1, %v2927_v20, %v2935_v54  ;;  %v2968_v43 = vmax.f32 %v2891_v21, %v2935_v54  ;;  %v2989_v46 = vsel %vm2381_vm3, %v2980_v24, %v2988_v49  ;;  %v6032_v24 = vld [vmem:[%s8081_s4 + $0x40] ss:$8 sps:$4 sm:$0xff]   ;;  %v6070_v12 = vld [vmem:[%s8081_s4 + $0xa4] ss:$8 sps:$4 sm:$0xff]   ;;  %v6076_v18 = vld [vmem:[%s8081_s4 + $0xb4] ss:$8 sps:$4 sm:$0xff]  }
 0x26c   : > { %v3028_v53 = vmax.f32 %v2967_v56, %v2994_v51  ;;  %v3021_v55 = vmax.f32 %v2960_v32, %v2989_v46  ;;  %v3020_v22 = vmax.f32 %v2959_v27, %v2987_v23  ;;  %v2964_v17 = vmax.f32 %v2887_v10, %v2936_v57  ;;  %v6068_v47 = vld [vmem:[%s8081_s4 + $0xa0] ss:$8 sps:$4 sm:$0xff]   ;;  %v6074_v9 = vld [vmem:[%s8081_s4 + $0xb0] ss:$8 sps:$4 sm:$0xff]   ;;  %v6082_v10 = vld [vmem:[%s8081_s4 + $0xc4] ss:$8 sps:$4 sm:$0xff]  }
 0x26d   : > { %v3024_v52 = vmax.f32 %v2963_v34, %v2995_v31  ;;  %v3029_v58 = vmax.f32 %v2968_v43, %v2996_v50  ;;  %v2997_v59 = vsel %vm2381_vm3, %v2988_v49, %v2996_v50  ;;  %v6080_v13 = vld [vmem:[%s8081_s4 + $0xc0] ss:$8 sps:$4 sm:$0xff]   ;;  %v6086_v48 = vld [vmem:[%s8081_s4 + $0xd0] ss:$8 sps:$4 sm:$0xff]   ;;  %v6094_v15 = vld [vmem:[%s8081_s4 + $0xe4] ss:$8 sps:$4 sm:$0xff]  }
 0x26e   : > { %v3033_v61 = vpack.c.bf16 %v3021_v55, %v3017_v19  ;;  %v3032_v60 = vpack.c.bf16 %v3020_v22, %v3016_v14  ;;  %v3025_v62 = vmax.f32 %v2964_v17, %v2997_v59  ;;  %v6088_v14 = vld [vmem:[%s8081_s4 + $0xd4] ss:$8 sps:$4 sm:$0xff]   ;;  %v6092_v16 = vld [vmem:[%s8081_s4 + $0xe0] ss:$8 sps:$4 sm:$0xff]   ;;  %v6098_v20 = vld [vmem:[%s8081_s4 + $0xf0] ss:$8 sps:$4 sm:$0xff]  }
 0x26f   : > { %v3036_v41 = vpack.c.bf16 %v3028_v53, %v3024_v52  ;;  %v6100_v19 = vld [vmem:[%s8081_s4 + $0xf4] ss:$8 sps:$4 sm:$0xff]   ;;  %v6106_v49 = vld [vmem:[%s8081_s4 + $0x104] ss:$8 sps:$4 sm:$0xff]   ;;  %v6104_v54 = vld [vmem:[%s8081_s4 + $0x100] ss:$8 sps:$4 sm:$0xff]  }
 0x270   : > { %3107 = vmatprep.subr.bf16.mxu0 %v3033_v61  ;;  %v3037_v63 = vpack.c.bf16 %v3029_v58, %v3025_v62  ;;  %v6107_v50 = vld [vmem:[%s8081_s4 + $0x2d0] ss:$8 sps:$4 sm:$0xff]   ;;  %v6112_v11 = vld [vmem:[%s8081_s4 + $0x114] ss:$8 sps:$4 sm:$0xff]   ;;  %v6115_v28 = vld [vmem:[%s8081_s4 + $0x2e4] ss:$8 sps:$4 sm:$0xff]  }
 0x271   : > { %3108 = vmatpush1.bf16.msra.mxu0 %v3032_v60  ;;  %v3059_v30 = vand.u32 %v7493_v33, %v3036_v41  ;;  %v6110_v56 = vld [vmem:[%s8081_s4 + $0x110] ss:$8 sps:$4 sm:$0xff]   ;;  %v6113_v31 = vld [vmem:[%s8081_s4 + $0x2e0] ss:$8 sps:$4 sm:$0xff]   ;;  %v6118_v32 = vld [vmem:[%s8081_s4 + $0x124] ss:$8 sps:$4 sm:$0xff]  }
 0x272   : > { %v3062_v0 = vand.u32 %v7493_v33, %v3037_v63  ;;  %v6022_v33 = vld [vmem:[%s8081_s4 + $0x24] ss:$8 sps:$4 sm:$0xff]   ;;  %v6121_v34 = vld [vmem:[%s8081_s4 + $0x2f4] ss:$8 sps:$4 sm:$0xff]   ;;  %v6116_v57 = vld [vmem:[%s8081_s4 + $0x120] ss:$8 sps:$4 sm:$0xff]  }
 0x273   : > { %v6119_v43 = vld [vmem:[%s8081_s4 + $0x2f0] ss:$8 sps:$4 sm:$0xff]   ;;  %v6124_v46 = vld [vmem:[%s8081_s4 + $0x134] ss:$8 sps:$4 sm:$0xff]   ;;  %v6127_v53 = vld [vmem:[%s8081_s4 + $0x304] ss:$8 sps:$4 sm:$0xff]  }
 0x274   : > { %3109 = vmatprep.subr.bf16.mxu0 %v3062_v0  ;;  %v6122_v55 = vld [vmem:[%s8081_s4 + $0x130] ss:$8 sps:$4 sm:$0xff]   ;;  %v6125_v22 = vld [vmem:[%s8081_s4 + $0x300] ss:$8 sps:$4 sm:$0xff]   ;;  %v6130_v17 = vld [vmem:[%s8081_s4 + $0x144] ss:$8 sps:$4 sm:$0xff]  }
 0x275   : > { %3110 = vmatpush1.bf16.msra.mxu0 %v3059_v30  ;;  %v6133_v52 = vld [vmem:[%s8081_s4 + $0x314] ss:$8 sps:$4 sm:$0xff]   ;;  %v6128_v58 = vld [vmem:[%s8081_s4 + $0x140] ss:$8 sps:$4 sm:$0xff]   ;;  %v6131_v59 = vld [vmem:[%s8081_s4 + $0x310] ss:$8 sps:$4 sm:$0xff]  }
 0x276   : > { %3506 = vmatprep.subr.bf16.mxu0 %v6010_v1  ;;  %v6136_v61 = vld [vmem:[%s8081_s4 + $0x154] ss:$8 sps:$4 sm:$0xff]   ;;  %v6139_v60 = vld [vmem:[%s8081_s4 + $0x324] ss:$8 sps:$4 sm:$0xff]   ;;  %v6134_v62 = vld [vmem:[%s8081_s4 + $0x150] ss:$8 sps:$4 sm:$0xff]  }
 0x277   : > { %v6137_v41 = vld [vmem:[%s8081_s4 + $0x320] ss:$8 sps:$4 sm:$0xff]   ;;  %v6142_v63 = vld [vmem:[%s8081_s4 + $0x164] ss:$8 sps:$4 sm:$0xff]   ;;  %v6145_v0 = vld [vmem:[%s8081_s4 + $0x334] ss:$8 sps:$4 sm:$0xff]  }
 0x278   : > { %5131 = vmatmul.mubr.msk.bf16.vlgmr.msra.gmra.mrb[12].mxu0 %vm3045_vm5, %v7500_v26  ;;  %v6028_v26 = vld [vmem:[%s8081_s4 + $0x34] ss:$8 sps:$4 sm:$0xff]   ;;  %v6140_v1 = vld [vmem:[%s8081_s4 + $0x160] ss:$8 sps:$4 sm:$0xff]   ;;  %v6143_v30 = vld [vmem:[%s8081_s4 + $0x330] ss:$8 sps:$4 sm:$0xff]  }
 0x279   : > { %3507 = vmatpush1.bf16.msra.mxu0 %v6008_v2  ;;  %v6148_v2 = vld [vmem:[%s8081_s4 + $0x174] ss:$8 sps:$4 sm:$0xff]  }
 0x27a   : > { %3508 = vmatprep.subr.bf16.mxu0 %v6016_v3  ;;  %v6151_v3 = vld [vmem:[%s8081_s4 + $0x344] ss:$8 sps:$4 sm:$0xff]  }
 0x27d   : > { %3509 = vmatpush1.bf16.msra.mxu0 %v6014_v36  ;;  %v6146_v36 = vld [vmem:[%s8081_s4 + $0x170] ss:$8 sps:$4 sm:$0xff]  }
 0x27e   : > { %3510 = vmatprep.subr.bf16.mxu0 %v6022_v33  ;;  %v6149_v33 = vld [vmem:[%s8081_s4 + $0x340] ss:$8 sps:$4 sm:$0xff]  }
 0x281   : > { %3511 = vmatpush1.bf16.msra.mxu0 %v6020_v6  ;;  %v6154_v6 = vld [vmem:[%s8081_s4 + $0x184] ss:$8 sps:$4 sm:$0xff]  }
 0x282   : > { %3512 = vmatprep.subr.bf16.mxu0 %v6028_v26  ;;  %v6157_v26 = vld [vmem:[%s8081_s4 + $0x354] ss:$8 sps:$4 sm:$0xff]  }
 0x285   : > { %3513 = vmatpush1.bf16.msra.mxu0 %v6026_v8  ;;  %v6152_v8 = vld [vmem:[%s8081_s4 + $0x180] ss:$8 sps:$4 sm:$0xff]  }
 0x286   : > { %3514 = vmatprep.subr.bf16.mxu0 %v6034_v44  ;;  %v6155_v44 = vld [vmem:[%s8081_s4 + $0x350] ss:$8 sps:$4 sm:$0xff]  }
 0x289   : > { %3515 = vmatpush1.bf16.msra.mxu0 %v6032_v24  ;;  %v6160_v24 = vld [vmem:[%s8081_s4 + $0x194] ss:$8 sps:$4 sm:$0xff]  }
 0x28a   : > { %3516 = vmatprep.subr.bf16.mxu0 %v6040_v39  ;;  %v6163_v39 = vld [vmem:[%s8081_s4 + $0x364] ss:$8 sps:$4 sm:$0xff]  }
 0x28d   : > { %3517 = vmatpush1.bf16.msra.mxu0 %v6038_v7  ;;  %v6158_v7 = vld [vmem:[%s8081_s4 + $0x190] ss:$8 sps:$4 sm:$0xff]  }
 0x28e   : > { %3518 = vmatprep.subr.bf16.mxu0 %v6046_v38  ;;  %v6161_v38 = vld [vmem:[%s8081_s4 + $0x360] ss:$8 sps:$4 sm:$0xff]  }
 0x291   : > { %3519 = vmatpush1.bf16.msra.mxu0 %v6044_v4  ;;  %v6166_v4 = vld [vmem:[%s8081_s4 + $0x1a4] ss:$8 sps:$4 sm:$0xff]  }
 0x292   : > { %3520 = vmatprep.subr.bf16.mxu0 %v6052_v40  ;;  %v6169_v40 = vld [vmem:[%s8081_s4 + $0x374] ss:$8 sps:$4 sm:$0xff]  }
 0x295   : > { %3521 = vmatpush1.bf16.msra.mxu0 %v6050_v5  ;;  %v6164_v5 = vld [vmem:[%s8081_s4 + $0x1a0] ss:$8 sps:$4 sm:$0xff]  }
 0x296   : > { %3522 = vmatprep.subr.bf16.mxu0 %v6058_v37  ;;  %v6167_v37 = vld [vmem:[%s8081_s4 + $0x370] ss:$8 sps:$4 sm:$0xff]  }
 0x299   : > { %3523 = vmatpush1.bf16.msra.mxu0 %v6056_v42  ;;  %v6172_v42 = vld [vmem:[%s8081_s4 + $0x1b4] ss:$8 sps:$4 sm:$0xff]  }
 0x29a   : > { %3524 = vmatprep.subr.bf16.mxu0 %v6064_v29  ;;  %v6175_v29 = vld [vmem:[%s8081_s4 + $0x384] ss:$8 sps:$4 sm:$0xff]  }
 0x29d   : > { %3525 = vmatpush1.bf16.msra.mxu0 %v6062_v35  ;;  %v6170_v35 = vld [vmem:[%s8081_s4 + $0x1b0] ss:$8 sps:$4 sm:$0xff]  }
 0x29e   : > { %3526 = vmatprep.subr.bf16.mxu0 %v6070_v12  ;;  %v6173_v12 = vld [vmem:[%s8081_s4 + $0x380] ss:$8 sps:$4 sm:$0xff]  }
 0x2a1   : > { %3527 = vmatpush1.bf16.msra.mxu0 %v6068_v47  ;;  %v6178_v47 = vld [vmem:[%s8081_s4 + $0x1c4] ss:$8 sps:$4 sm:$0xff]  }
 0x2a2   : > { %3528 = vmatprep.subr.bf16.mxu0 %v6076_v18  ;;  %v6181_v18 = vld [vmem:[%s8081_s4 + $0x394] ss:$8 sps:$4 sm:$0xff]  }
 0x2a5   : > { %3529 = vmatpush1.bf16.msra.mxu0 %v6074_v9  ;;  %v6176_v9 = vld [vmem:[%s8081_s4 + $0x1c0] ss:$8 sps:$4 sm:$0xff]  }
 0x2a6   : > { %3530 = vmatprep.subr.bf16.mxu0 %v6082_v10  ;;  %v6179_v10 = vld [vmem:[%s8081_s4 + $0x390] ss:$8 sps:$4 sm:$0xff]  }
 0x2a9   : > { %3531 = vmatpush1.bf16.msra.mxu0 %v6080_v13  ;;  %v6184_v13 = vld [vmem:[%s8081_s4 + $0x3a4] ss:$8 sps:$4 sm:$0xff]  }
 0x2aa   : > { %3532 = vmatprep.subr.bf16.mxu0 %v6088_v14 }
 0x2ad   : > { %3533 = vmatpush1.bf16.msra.mxu0 %v6086_v48 }
 0x2ae   : > { %3534 = vmatprep.subr.bf16.mxu0 %v6094_v15 }
 0x2b1   : > { %3535 = vmatpush1.bf16.msra.mxu0 %v6092_v16 }
 0x2b2   : > { %3536 = vmatprep.subr.bf16.mxu0 %v6100_v19 }
 0x2b5   : > { %3537 = vmatpush1.bf16.msra.mxu0 %v6098_v20 }
 0x2b6   : > { %3549 = vmatprep.subr.bf16.mxu0 %v6106_v49  ;;  %v6182_v49 = vld [vmem:[%s8081_s4 + $0x3a0] ss:$8 sps:$4 sm:$0xff]  }
 0x2ce   : > { %v3098_v21 = vpop.f32.mrb[8].mxu0 }
 0x2cf   : > { %v3100_v45 = vpop.f32.mrb[9].mxu0 }
 0x2d0   : > { %v3102_v23 = vpop.f32.mrb[10].mxu0 }
 0x2d1   : > { %v7723_v25 = vpack.c.bf16 %v3102_v23, %v3098_v21  ;;  %v3104_v51 = vpop.f32.mrb[11].mxu0  ;;  %v6187_v21 = vld [vmem:[%s8081_s4 + $0x3b4] ss:$8 sps:$4 sm:$0xff]   ;;  %v6190_v23 = vld [vmem:[%s8081_s4 + $0x3c4] ss:$8 sps:$4 sm:$0xff]  }
 0x2d2   : > { %v7725_v27 = vpack.c.bf16 %v3104_v51, %v3100_v45  ;;  %v6185_v45 = vld [vmem:[%s8081_s4 + $0x3b0] ss:$8 sps:$4 sm:$0xff]   ;;  %v6188_v51 = vld [vmem:[%s8081_s4 + $0x3c0] ss:$8 sps:$4 sm:$0xff]  }
 0x2d4   : > { %3538 = vmatprep.mubr.bf16.mxu0 %v7725_v27  ;;  %3973 = vmatprep.mubr.bf16.mxu1 %v7725_v27 }
 0x2d5   : > { %3539 = vmatmul.mubr.bf16.vlgmr.msra.gmra.mrb[16].mxu0 %v7723_v25  ;;  %3974 = vmatmul.mubr.bf16.vlgmr.msra.gmra.mrb[16].mxu1 %v7723_v25 }
 0x2d6   : > { %3550 = vmatpush1.bf16.msra.mxu0 %v6104_v54  ;;  %3985 = vmatpush1.bf16.msra.mxu1 %v6107_v50  ;;  %v6193_v54 = vld [vmem:[%s8081_s4 + $0x3d4] ss:$8 sps:$4 sm:$0xff]   ;;  %v6196_v50 = vld [vmem:[%s8081_s4 + $0x3e4] ss:$8 sps:$4 sm:$0xff]  }
 0x2d7   : > { %3551 = vmatprep.subr.bf16.mxu0 %v6112_v11  ;;  %3986 = vmatprep.subr.bf16.mxu1 %v6115_v28  ;;  %v6194_v11 = vld [vmem:[%s8081_s4 + $0x3e0] ss:$8 sps:$4 sm:$0xff]   ;;  %v6199_v28 = vld [vmem:[%s8081_s4 + $0x3f4] ss:$8 sps:$4 sm:$0xff]  }
 0x2da   : > { %3552 = vmatpush1.bf16.msra.mxu0 %v6110_v56  ;;  %3987 = vmatpush1.bf16.msra.mxu1 %v6113_v31  ;;  %v6197_v56 = vld [vmem:[%s8081_s4 + $0x3f0] ss:$8 sps:$4 sm:$0xff]   ;;  %v6202_v31 = vld [vmem:[%s8081_s4 + $0x404] ss:$8 sps:$4 sm:$0xff]  }
 0x2db   : > { %3553 = vmatprep.subr.bf16.mxu0 %v6118_v32  ;;  %3988 = vmatprep.subr.bf16.mxu1 %v6121_v34  ;;  %v6200_v32 = vld [vmem:[%s8081_s4 + $0x400] ss:$8 sps:$4 sm:$0xff]   ;;  %v6205_v34 = vld [vmem:[%s8081_s4 + $0x414] ss:$8 sps:$4 sm:$0xff]  }
 0x2de   : > { %3554 = vmatpush1.bf16.msra.mxu0 %v6116_v57  ;;  %3989 = vmatpush1.bf16.msra.mxu1 %v6119_v43  ;;  %v6203_v57 = vld [vmem:[%s8081_s4 + $0x410] ss:$8 sps:$4 sm:$0xff]   ;;  %v6208_v43 = vld [vmem:[%s8081_s4 + $0x424] ss:$8 sps:$4 sm:$0xff]  }
 0x2df   : > { %3555 = vmatprep.subr.bf16.mxu0 %v6124_v46  ;;  %3990 = vmatprep.subr.bf16.mxu1 %v6127_v53  ;;  %v6206_v46 = vld [vmem:[%s8081_s4 + $0x420] ss:$8 sps:$4 sm:$0xff]   ;;  %v6211_v53 = vld [vmem:[%s8081_s4 + $0x434] ss:$8 sps:$4 sm:$0xff]  }
 0x2e2   : > { %3556 = vmatpush1.bf16.msra.mxu0 %v6122_v55  ;;  %3991 = vmatpush1.bf16.msra.mxu1 %v6125_v22  ;;  %v6209_v55 = vld [vmem:[%s8081_s4 + $0x430] ss:$8 sps:$4 sm:$0xff]   ;;  %v6214_v22 = vld [vmem:[%s8081_s4 + $0x444] ss:$8 sps:$4 sm:$0xff]  }
 0x2e3   : > { %3557 = vmatprep.subr.bf16.mxu0 %v6130_v17  ;;  %3992 = vmatprep.subr.bf16.mxu1 %v6133_v52  ;;  %v6212_v17 = vld [vmem:[%s8081_s4 + $0x440] ss:$8 sps:$4 sm:$0xff]   ;;  %v6217_v52 = vld [vmem:[%s8081_s4 + $0x454] ss:$8 sps:$4 sm:$0xff]  }
 0x2e6   : > { %3558 = vmatpush1.bf16.msra.mxu0 %v6128_v58  ;;  %3993 = vmatpush1.bf16.msra.mxu1 %v6131_v59  ;;  %v6215_v58 = vld [vmem:[%s8081_s4 + $0x450] ss:$8 sps:$4 sm:$0xff]   ;;  %v6220_v59 = vld [vmem:[%s8081_s4 + $0x464] ss:$8 sps:$4 sm:$0xff]  }
 0x2e7   : > { %3559 = vmatprep.subr.bf16.mxu0 %v6136_v61  ;;  %3994 = vmatprep.subr.bf16.mxu1 %v6139_v60  ;;  %v6218_v61 = vld [vmem:[%s8081_s4 + $0x460] ss:$8 sps:$4 sm:$0xff]   ;;  %v6223_v60 = vld [vmem:[%s8081_s4 + $0x474] ss:$8 sps:$4 sm:$0xff]  }
 0x2ea   : > { %3560 = vmatpush1.bf16.msra.mxu0 %v6134_v62  ;;  %3995 = vmatpush1.bf16.msra.mxu1 %v6137_v41  ;;  %v6221_v62 = vld [vmem:[%s8081_s4 + $0x470] ss:$8 sps:$4 sm:$0xff]   ;;  %v6226_v41 = vld [vmem:[%s8081_s4 + $0x484] ss:$8 sps:$4 sm:$0xff]  }
 0x2eb   : > { %3561 = vmatprep.subr.bf16.mxu0 %v6142_v63  ;;  %3996 = vmatprep.subr.bf16.mxu1 %v6145_v0  ;;  %v6224_v63 = vld [vmem:[%s8081_s4 + $0x480] ss:$8 sps:$4 sm:$0xff]   ;;  %v6229_v0 = vld [vmem:[%s8081_s4 + $0x494] ss:$8 sps:$4 sm:$0xff]  }
 0x2ee   : > { %3562 = vmatpush1.bf16.msra.mxu0 %v6140_v1  ;;  %3997 = vmatpush1.bf16.msra.mxu1 %v6143_v30  ;;  %v6227_v1 = vld [vmem:[%s8081_s4 + $0x490] ss:$8 sps:$4 sm:$0xff]   ;;  %v6232_v30 = vld [vmem:[%s8081_s4 + $0x4a4] ss:$8 sps:$4 sm:$0xff]  }
 0x2ef   : > { %3563 = vmatprep.subr.bf16.mxu0 %v6148_v2  ;;  %3998 = vmatprep.subr.bf16.mxu1 %v6151_v3  ;;  %v6230_v2 = vld [vmem:[%s8081_s4 + $0x4a0] ss:$8 sps:$4 sm:$0xff]   ;;  %v6235_v3 = vld [vmem:[%s8081_s4 + $0x4b4] ss:$8 sps:$4 sm:$0xff]  }
 0x2f2   : > { %3564 = vmatpush1.bf16.msra.mxu0 %v6146_v36  ;;  %3999 = vmatpush1.bf16.msra.mxu1 %v6149_v33  ;;  %v6233_v36 = vld [vmem:[%s8081_s4 + $0x4b0] ss:$8 sps:$4 sm:$0xff]   ;;  %v6238_v33 = vld [vmem:[%s8081_s4 + $0x4c4] ss:$8 sps:$4 sm:$0xff]  }
 0x2f3   : > { %3565 = vmatprep.subr.bf16.mxu0 %v6154_v6  ;;  %4000 = vmatprep.subr.bf16.mxu1 %v6157_v26  ;;  %v6236_v6 = vld [vmem:[%s8081_s4 + $0x4c0] ss:$8 sps:$4 sm:$0xff]   ;;  %v6239_v26 = vld [vmem:[%s8081_s4 + $0x4d0] ss:$8 sps:$4 sm:$0xff]  }
 0x2f6   : > { %3566 = vmatpush1.bf16.msra.mxu0 %v6152_v8  ;;  %4001 = vmatpush1.bf16.msra.mxu1 %v6155_v44  ;;  %v6244_v8 = vld [vmem:[%s8081_s4 + $0x4e4] ss:$8 sps:$4 sm:$0xff]   ;;  %v6242_v44 = vld [vmem:[%s8081_s4 + $0x4e0] ss:$8 sps:$4 sm:$0xff]  }
 0x2f7   : > { %3567 = vmatprep.subr.bf16.mxu0 %v6160_v24  ;;  %4002 = vmatprep.subr.bf16.mxu1 %v6163_v39  ;;  %v6247_v24 = vld [vmem:[%s8081_s4 + $0x4f4] ss:$8 sps:$4 sm:$0xff]   ;;  %v6245_v39 = vld [vmem:[%s8081_s4 + $0x4f0] ss:$8 sps:$4 sm:$0xff]  }
 0x2fa   : > { %3568 = vmatpush1.bf16.msra.mxu0 %v6158_v7  ;;  %4003 = vmatpush1.bf16.msra.mxu1 %v6161_v38  ;;  %v6250_v7 = vld [vmem:[%s8081_s4 + $0x504] ss:$8 sps:$4 sm:$0xff]   ;;  %v6248_v38 = vld [vmem:[%s8081_s4 + $0x500] ss:$8 sps:$4 sm:$0xff]  }
 0x2fb   : > { %3569 = vmatprep.subr.bf16.mxu0 %v6166_v4  ;;  %4004 = vmatprep.subr.bf16.mxu1 %v6169_v40  ;;  %v6253_v4 = vld [vmem:[%s8081_s4 + $0x514] ss:$8 sps:$4 sm:$0xff]   ;;  %v6251_v40 = vld [vmem:[%s8081_s4 + $0x510] ss:$8 sps:$4 sm:$0xff]  }
 0x2fe   : > { %3570 = vmatpush1.bf16.msra.mxu0 %v6164_v5  ;;  %4005 = vmatpush1.bf16.msra.mxu1 %v6167_v37  ;;  %v6256_v5 = vld [vmem:[%s8081_s4 + $0x524] ss:$8 sps:$4 sm:$0xff]   ;;  %v6254_v37 = vld [vmem:[%s8081_s4 + $0x520] ss:$8 sps:$4 sm:$0xff]  }
 0x2ff   : > { %3571 = vmatprep.subr.bf16.mxu0 %v6172_v42  ;;  %4006 = vmatprep.subr.bf16.mxu1 %v6175_v29  ;;  %v6259_v42 = vld [vmem:[%s8081_s4 + $0x534] ss:$8 sps:$4 sm:$0xff]   ;;  %v6257_v29 = vld [vmem:[%s8081_s4 + $0x530] ss:$8 sps:$4 sm:$0xff]  }
 0x302   : > { %3572 = vmatpush1.bf16.msra.mxu0 %v6170_v35  ;;  %4007 = vmatpush1.bf16.msra.mxu1 %v6173_v12  ;;  %v6262_v35 = vld [vmem:[%s8081_s4 + $0x544] ss:$8 sps:$4 sm:$0xff]   ;;  %v6260_v12 = vld [vmem:[%s8081_s4 + $0x540] ss:$8 sps:$4 sm:$0xff]  }
 0x303   : > { %3573 = vmatprep.subr.bf16.mxu0 %v6178_v47  ;;  %4008 = vmatprep.subr.bf16.mxu1 %v6181_v18  ;;  %v6265_v47 = vld [vmem:[%s8081_s4 + $0x554] ss:$8 sps:$4 sm:$0xff]   ;;  %v6263_v18 = vld [vmem:[%s8081_s4 + $0x550] ss:$8 sps:$4 sm:$0xff]  }
 0x306   : > { %3574 = vmatpush1.bf16.msra.mxu0 %v6176_v9  ;;  %4009 = vmatpush1.bf16.msra.mxu1 %v6179_v10  ;;  %v6268_v9 = vld [vmem:[%s8081_s4 + $0x564] ss:$8 sps:$4 sm:$0xff]   ;;  %v6266_v10 = vld [vmem:[%s8081_s4 + $0x560] ss:$8 sps:$4 sm:$0xff]  }
 0x307   : > { %4380 = vmatprep.subr.bf16.mxu0 %v6184_v13 }
 0x34b   : > { %v3141_v14 = vpop.f32.mrb[12].mxu0 }
 0x34c   : > { %v3143_v48 = vpop.f32.mrb[13].mxu0 }
 0x34d   : > { %v3145_v15 = vpop.f32.mrb[14].mxu0 }
 0x34e   : > { %v7884_v16 = vpack.c.bf16 %v3145_v15, %v3141_v14  ;;  %v3147_v19 = vpop.f32.mrb[15].mxu0 }
 0x34f   : > { %v7886_v20 = vpack.c.bf16 %v3147_v19, %v3143_v48 }
 0x351   : > { %5190 = vmatprep.mubr.msk.bf16.mxu0 %vm3502_vm6, %v7886_v20  ;;  %5307 = vmatprep.mubr.msk.bf16.mxu1 %vm3502_vm6, %v7886_v20 }
 0x352   : > { %3582 = vmatmul.mubr.bf16.vlgmr.msra.gmra.mrb[16].mxu0 %v7884_v16  ;;  %4017 = vmatmul.mubr.bf16.vlgmr.msra.gmra.mrb[16].mxu1 %v7884_v16 }
 0x353   : > { %4381 = vmatpush1.bf16.msra.mxu0 %v6182_v49  ;;  %4412 = vmatprep.mubr.bf16.mxu0 %v7725_v27  ;;  %v6191_v27 = vld [vmem:[%s8081_s4 + $0x3d0] ss:$8 sps:$4 sm:$0xff]  }
 0x354   : > { %4382 = vmatprep.subr.bf16.mxu0 %v6187_v21 }
 0x357   : > { %4383 = vmatpush1.bf16.msra.mxu0 %v6185_v45 }
 0x358   : > { %4384 = vmatprep.subr.bf16.mxu0 %v6190_v23 }
 0x35b   : > { %4385 = vmatpush1.bf16.msra.mxu0 %v6188_v51 }
 0x35c   : > { %4386 = vmatprep.subr.bf16.mxu0 %v6193_v54 }
 0x35f   : > { %4387 = vmatpush1.bf16.msra.mxu0 %v6191_v27 }
 0x360   : > { %4388 = vmatprep.subr.bf16.mxu0 %v6196_v50 }
 0x363   : > { %4389 = vmatpush1.bf16.msra.mxu0 %v6194_v11 }
 0x364   : > { %4390 = vmatprep.subr.bf16.mxu0 %v6199_v28 }
 0x367   : > { %4391 = vmatpush1.bf16.msra.mxu0 %v6197_v56 }
 0x368   : > { %4392 = vmatprep.subr.bf16.mxu0 %v6202_v31 }
 0x36b   : > { %4393 = vmatpush1.bf16.msra.mxu0 %v6200_v32 }
 0x36c   : > { %4394 = vmatprep.subr.bf16.mxu0 %v6205_v34 }
 0x36f   : > { %4395 = vmatpush1.bf16.msra.mxu0 %v6203_v57 }
 0x370   : > { %4396 = vmatprep.subr.bf16.mxu0 %v6208_v43 }
 0x373   : > { %4397 = vmatpush1.bf16.msra.mxu0 %v6206_v46 }
 0x374   : > { %4398 = vmatprep.subr.bf16.mxu0 %v6211_v53 }
 0x377   : > { %4399 = vmatpush1.bf16.msra.mxu0 %v6209_v55 }
 0x378   : > { %4400 = vmatprep.subr.bf16.mxu0 %v6214_v22 }
 0x37b   : > { %4401 = vmatpush1.bf16.msra.mxu0 %v6212_v17 }
 0x37c   : > { %4402 = vmatprep.subr.bf16.mxu0 %v6217_v52 }
 0x37f   : > { %4403 = vmatpush1.bf16.msra.mxu0 %v6215_v58 }
 0x380   : > { %4404 = vmatprep.subr.bf16.mxu0 %v6220_v59 }
 0x383   : > { %4405 = vmatpush1.bf16.msra.mxu0 %v6218_v61 }
 0x384   : > { %4406 = vmatprep.subr.bf16.mxu0 %v6223_v60 }
 0x387   : > { %4407 = vmatpush1.bf16.msra.mxu0 %v6221_v62 }
 0x388   : > { %4408 = vmatprep.subr.bf16.mxu0 %v6226_v41 }
 0x38b   : > { %4409 = vmatpush1.bf16.msra.mxu0 %v6224_v63 }
 0x38c   : > { %4410 = vmatprep.subr.bf16.mxu0 %v6229_v0 }
 0x38f   : > { %4411 = vmatpush1.bf16.msra.mxu0 %v6227_v1 }
 0x390   : > { %4423 = vmatprep.subr.bf16.mxu0 %v6232_v30 }
 0x392   : > { %4413 = vmatmul.mubr.bf16.vlgmr.msra.gmra.mrb[20].mxu0 %v7723_v25  ;;  %v6241_v25 = vld [vmem:[%s8081_s4 + $0x4d4] ss:$8 sps:$4 sm:$0xff]  }
 0x393   : > { %4424 = vmatpush1.bf16.msra.mxu0 %v6230_v2  ;;  %5424 = vmatprep.mubr.msk.bf16.mxu0 %vm3502_vm6, %v7886_v20 }
 0x394   : > { %4425 = vmatprep.subr.bf16.mxu0 %v6235_v3 }
 0x397   : > { %4426 = vmatpush1.bf16.msra.mxu0 %v6233_v36 }
 0x398   : > { %4427 = vmatprep.subr.bf16.mxu0 %v6238_v33 }
 0x39b   : > { %4428 = vmatpush1.bf16.msra.mxu0 %v6236_v6 }
 0x39c   : > { %4429 = vmatprep.subr.bf16.mxu0 %v6241_v25 }
 0x39f   : > { %4430 = vmatpush1.bf16.msra.mxu0 %v6239_v26 }
 0x3a0   : > { %4431 = vmatprep.subr.bf16.mxu0 %v6244_v8 }
 0x3a3   : > { %4432 = vmatpush1.bf16.msra.mxu0 %v6242_v44 }
 0x3a4   : > { %4433 = vmatprep.subr.bf16.mxu0 %v6247_v24 }
 0x3a7   : > { %4434 = vmatpush1.bf16.msra.mxu0 %v6245_v39 }
 0x3a8   : > { %4435 = vmatprep.subr.bf16.mxu0 %v6250_v7 }
 0x3ab   : > { %4436 = vmatpush1.bf16.msra.mxu0 %v6248_v38 }
 0x3ac   : > { %4437 = vmatprep.subr.bf16.mxu0 %v6253_v4 }
 0x3af   : > { %4438 = vmatpush1.bf16.msra.mxu0 %v6251_v40 }
 0x3b0   : > { %4439 = vmatprep.subr.bf16.mxu0 %v6256_v5 }
 0x3b3   : > { %4440 = vmatpush1.bf16.msra.mxu0 %v6254_v37 }
 0x3b4   : > { %4441 = vmatprep.subr.bf16.mxu0 %v6259_v42 }
 0x3b7   : > { %4442 = vmatpush1.bf16.msra.mxu0 %v6257_v29 }
 0x3b8   : > { %4443 = vmatprep.subr.bf16.mxu0 %v6262_v35 }
 0x3bb   : > { %4444 = vmatpush1.bf16.msra.mxu0 %v6260_v12 }
 0x3bc   : > { %4445 = vmatprep.subr.bf16.mxu0 %v6265_v47 }
 0x3bf   : > { %4446 = vmatpush1.bf16.msra.mxu0 %v6263_v18 }
 0x3c0   : > { %4447 = vmatprep.subr.bf16.mxu0 %v6268_v9 }
 0x3c3   : > { %4448 = vmatpush1.bf16.msra.mxu0 %v6266_v10 }
 0x3c6   : > { %4456 = vmatmul.mubr.bf16.vlgmr.msra.gmra.mrb[20].mxu0 %v7884_v16 }
 0x425   : > { %v3583_v13 = vpop.f32.mrb[16].mxu0  ;;  %v4018_v14 = vpop.f32.mrb[16].mxu1 }
 0x426   : > { %v4027_v48 = vmax.f32 %v3583_v13, %v4018_v14  ;;  %v3585_v15 = vpop.f32.mrb[17].mxu0  ;;  %v4020_v19 = vpop.f32.mrb[17].mxu1 }
 0x427   : > { %v4028_v20 = vmax.f32 %v3585_v15, %v4020_v19  ;;  %v3587_v49 = vpop.f32.mrb[18].mxu0  ;;  %v4022_v21 = vpop.f32.mrb[18].mxu1 }
 0x428   : > { %v4029_v45 = vmax.f32 %v3587_v49, %v4022_v21  ;;  %v3589_v23 = vpop.f32.mrb[19].mxu0  ;;  %v4024_v51 = vpop.f32.mrb[19].mxu1 }
 0x429   : > { %v4030_v54 = vmax.f32 %v3589_v23, %v4024_v51 }
 0x499   : > { %v4457_v27 = vpop.f32.mrb[20].mxu0 }
 0x49a   : > { %v4466_v50 = vmax.f32 %v4027_v48, %v4457_v27  ;;  %v4459_v11 = vpop.f32.mrb[21].mxu0 }
 0x49b   : > { %v4467_v28 = vmax.f32 %v4028_v20, %v4459_v11  ;;  %v4461_v56 = vpop.f32.mrb[22].mxu0 }
 0x49c   : > { %v4468_v16 = vmax.f32 %v4029_v45, %v4461_v56  ;;  %v4463_v31 = vpop.f32.mrb[23].mxu0 }
 0x49d   : > { %v5430_v32 = vpack.c.bf16 %v4467_v28, %v4466_v50  ;;  %v4469_v34 = vmax.f32 %v4030_v54, %v4463_v31 }
 0x49f   : > { %4482 = vst [vmem:[%s224_s25] sm:$0xff] %v5430_v32  ;;  %v5431_v57 = vpack.c.bf16 %v4469_v34, %v4468_v16 }
 0x4a1   : > { %4483 = vst [vmem:[%s224_s25 + $0x8] sm:$0x77] %v5431_v57 }
 0x4a2 PF: > { %s15_s18 = sadd.s32 1, %s6279_s18  }
 0x4a3   : > { %p12_p4 = scmp.ge.s32.totalorder %s15_s18, 4  }
 0x4a5   :  { %14 = sbr.rel (!%p12_p4) target bundleno = 1 (0x1), region = 76 }

// kernel: net_forward.5
= control target key start
LH: loop header
LB: loop body
LE: loop exit
PB: predicated region body
PF: predicated region fallthrough
CT: control target
= control target key end

     0   :  { %v495_v28 = vlaneseq  ;;  %v3733_v36 = vmov 1966171168   ;;  %s4585_s0 = inlined_call_operand.vmem [shape: bf16[2,3584], index: 0, kind: input, shape index: {}]   ;;  %s4586_s1 = inlined_call_operand.vmem [shape: bf16[3584,128], index: 1, kind: input, shape index: {}]   ;;  %s4587_s2 = inlined_call_operand.vmem [shape: f32[1,128], index: 2, kind: input, shape index: {}]   ;;  %s4588_s3 = inlined_call_operand.vmem [shape: bf16[128,128], index: 3, kind: input, shape index: {}]   ;;  %s4589_s4 = inlined_call_operand.vmem [shape: f32[1,128], index: 4, kind: input, shape index: {}]   ;;  %s4590_s5 = inlined_call_operand.vmem [shape: bf16[128,128], index: 5, kind: input, shape index: {}]   ;;  %s4591_s6 = inlined_call_operand.vmem [shape: f32[1,128], index: 6, kind: input, shape index: {}]   ;;  %s4592_s7 = inlined_call_operand.hbm [shape: f32[2,128], index: 7, kind: output, shape index: {}]  }
   0x1   :  { %v3462_v0 = vld [vmem:[%s4586_s1 + $0x40] sm:$0xff]   ;;  %v3466_v4 = vld [vmem:[%s4586_s1 + $0x48] sm:$0xff]   ;;  %v3470_v8 = vld [vmem:[%s4586_s1 + $0x50] sm:$0xff]   ;;  %v493_v37 = vunpack.c.l.s4 %v3733_v36 }
   0x2   :  { %v3463_v1 = vld [vmem:[%s4586_s1 + $0xc0] sm:$0xff]   ;;  %3092 = vmatprep.subr.bf16.mxu0 %v3462_v0  ;;  %v3467_v5 = vld [vmem:[%s4586_s1 + $0xc8] sm:$0xff]   ;;  %v3471_v9 = vld [vmem:[%s4586_s1 + $0xd0] sm:$0xff]   ;;  %v496_v33 = vshrl.u32 %v495_v28, 7 }
   0x3   :  { %v3464_v2 = vld [vmem:[%s4586_s1] sm:$0xff]   ;;  %3114 = vmatprep.subr.bf16.mxu1 %v3463_v1  ;;  %v3468_v6 = vld [vmem:[%s4586_s1 + $0x8] sm:$0xff]   ;;  %v3472_v10 = vld [vmem:[%s4586_s1 + $0x10] sm:$0xff]   ;;  %v494_v40 = vunpack.c.0.s8 %v493_v37 }
   0x4   :  { %v3465_v3 = vld [vmem:[%s4586_s1 + $0x80] sm:$0xff]   ;;  %3093 = vmatpush3.bf16.msra.mxu0 %v3464_v2  ;;  %v3469_v7 = vld [vmem:[%s4586_s1 + $0x88] sm:$0xff]   ;;  %v3473_v11 = vld [vmem:[%s4586_s1 + $0x90] sm:$0xff]  }
   0x5   :  { %3115 = vmatpush3.bf16.msra.mxu1 %v3465_v3  ;;  %3094 = vmatprep.subr.bf16.mxu0 %v3466_v4  ;;  %v3474_v12 = vld [vmem:[%s4586_s1 + $0x58] sm:$0xff]   ;;  %v3478_v16 = vld [vmem:[%s4586_s1 + $0x60] sm:$0xff]   ;;  %v3482_v20 = vld [vmem:[%s4586_s1 + $0x68] sm:$0xff]   ;;  %v3882_v41 = vsub.s32 %v494_v40, %v496_v33 }
   0x6   :  { %3116 = vmatprep.subr.bf16.mxu1 %v3467_v5  ;;  %v3475_v13 = vld [vmem:[%s4586_s1 + $0xd8] sm:$0xff]   ;;  %v3479_v17 = vld [vmem:[%s4586_s1 + $0xe0] sm:$0xff]   ;;  %v3483_v21 = vld [vmem:[%s4586_s1 + $0xe8] sm:$0xff]  }
   0x7   :  { %v3476_v14 = vld [vmem:[%s4586_s1 + $0x18] sm:$0xff]   ;;  %v3480_v18 = vld [vmem:[%s4586_s1 + $0x20] sm:$0xff]   ;;  %v3484_v22 = vld [vmem:[%s4586_s1 + $0x28] sm:$0xff]  }
   0x8   :  { %3095 = vmatpush3.bf16.msra.mxu0 %v3468_v6  ;;  %v3477_v15 = vld [vmem:[%s4586_s1 + $0x98] sm:$0xff]   ;;  %v3481_v19 = vld [vmem:[%s4586_s1 + $0xa0] sm:$0xff]   ;;  %v3485_v23 = vld [vmem:[%s4586_s1 + $0xa8] sm:$0xff]  }
   0x9   :  { %3117 = vmatpush3.bf16.msra.mxu1 %v3469_v7  ;;  %3096 = vmatprep.subr.bf16.mxu0 %v3470_v8  ;;  %v3486_v24 = vld [vmem:[%s4586_s1 + $0x70] sm:$0xff]   ;;  %v3490_v29 = vld [vmem:[%s4586_s1 + $0x78] sm:$0xff]   ;;  %v28_v34 = vld [vmem:[%s4585_s0] sm:$0xff] }
   0xa   :  { %3118 = vmatprep.subr.bf16.mxu1 %v3471_v9  ;;  %v3487_v25 = vld [vmem:[%s4586_s1 + $0xf0] sm:$0xff]   ;;  %v3491_v30 = vld [vmem:[%s4586_s1 + $0xf8] sm:$0xff]   ;;  %v3495_v35 = vld [vmem:[%s4586_s1 + $0x140] sm:$0xff]   ;;  %v491_v39 = vcombine.high %v28_v34, %v28_v34  ;;  %v498_v42 = vrot.slane %v28_v34, %v3882_v41 }
   0xb   :  { %v3488_v26 = vld [vmem:[%s4586_s1 + $0x30] sm:$0xff]   ;;  %v3492_v31 = vld [vmem:[%s4586_s1 + $0x38] sm:$0xff]   ;;  %v3496_v38 = vld [vmem:[%s4586_s1 + $0x1c0] sm:$0xff]  }
   0xc   :  { %3097 = vmatpush3.bf16.msra.mxu0 %v3472_v10  ;;  %v3489_v27 = vld [vmem:[%s4586_s1 + $0xb0] sm:$0xff]   ;;  %v3493_v32 = vld [vmem:[%s4586_s1 + $0xb8] sm:$0xff]   ;;  %v3886_v43 = vrot.slane %v491_v39, %v3882_v41  ;;  %v506_v44 = vcombine.high %v498_v42, %v498_v42  ;;  %v514_v45 = vrot.slane %v498_v42, %v3882_v41  ;;  %v3497_v47 = vld [vmem:[%s4586_s1 + $0x100] sm:$0xff]  }
   0xd   :  { %3119 = vmatpush3.bf16.msra.mxu1 %v3473_v11  ;;  %3098 = vmatprep.subr.bf16.mxu0 %v3474_v12  ;;  %v3498_v49 = vld [vmem:[%s4586_s1 + $0x180] sm:$0xff]   ;;  %v3499_v52 = vld [vmem:[%s4586_s1 + $0x148] sm:$0xff]   ;;  %v3503_v58 = vld [vmem:[%s4586_s1 + $0x150] sm:$0xff]  }
   0xe   :  { %3120 = vmatprep.subr.bf16.mxu1 %v3475_v13  ;;  %v507_v46 = vcombine.high %v3886_v43, %v3886_v43  ;;  %v528_v48 = vrot.slane %v506_v44, %v3882_v41  ;;  %v536_v51 = vcombine.high %v514_v45, %v514_v45  ;;  %v3500_v54 = vld [vmem:[%s4586_s1 + $0x1c8] sm:$0xff]   ;;  %v3504_v59 = vld [vmem:[%s4586_s1 + $0x1d0] sm:$0xff]   ;;  %v3507_v62 = vld [vmem:[%s4586_s1 + $0x158] sm:$0xff]  }
   0xf   :  { %v3501_v55 = vld [vmem:[%s4586_s1 + $0x108] sm:$0xff]   ;;  %v3505_v60 = vld [vmem:[%s4586_s1 + $0x110] sm:$0xff]   ;;  %v3508_v63 = vld [vmem:[%s4586_s1 + $0x1d8] sm:$0xff]  }
  0x10   :  { %3099 = vmatpush3.bf16.msra.mxu0 %v3476_v14  ;;  %v535_v50 = vrot.slane %v507_v46, %v3882_v41  ;;  %2066 = vmatprep.mubr.bf16.mxu0 %v528_v48  ;;  %v538_v53 = vcombine.high %v528_v48, %v528_v48  ;;  %v3502_v57 = vld [vmem:[%s4586_s1 + $0x188] sm:$0xff]   ;;  %v3506_v61 = vld [vmem:[%s4586_s1 + $0x190] sm:$0xff]   ;;  %v3509_v0 = vld [vmem:[%s4586_s1 + $0x118] sm:$0xff]  }
  0x11   :  { %3121 = vmatpush3.bf16.msra.mxu1 %v3477_v15  ;;  %3100 = vmatprep.subr.bf16.mxu0 %v3478_v16  ;;  %v3510_v1 = vld [vmem:[%s4586_s1 + $0x198] sm:$0xff]   ;;  %v3511_v2 = vld [vmem:[%s4586_s1 + $0x160] sm:$0xff]   ;;  %v3515_v6 = vld [vmem:[%s4586_s1 + $0x168] sm:$0xff]  }
  0x12   :  { %3122 = vmatprep.subr.bf16.mxu1 %v3479_v17  ;;  %v539_v56 = vcombine.high %v535_v50, %v535_v50  ;;  %2106 = vmatprep.mubr.bf16.mxu1 %v538_v53  ;;  %v3512_v3 = vld [vmem:[%s4586_s1 + $0x1e0] sm:$0xff]   ;;  %v3516_v7 = vld [vmem:[%s4586_s1 + $0x1e8] sm:$0xff]   ;;  %v3519_v10 = vld [vmem:[%s4586_s1 + $0x170] sm:$0xff]  }
  0x13   :  { %v3513_v4 = vld [vmem:[%s4586_s1 + $0x120] sm:$0xff]   ;;  %v3517_v8 = vld [vmem:[%s4586_s1 + $0x128] sm:$0xff]   ;;  %v3520_v11 = vld [vmem:[%s4586_s1 + $0x1f0] sm:$0xff]  }
  0x14   :  { %3101 = vmatpush3.bf16.msra.mxu0 %v3480_v18  ;;  %v3514_v5 = vld [vmem:[%s4586_s1 + $0x1a0] sm:$0xff]   ;;  %v3518_v9 = vld [vmem:[%s4586_s1 + $0x1a8] sm:$0xff]   ;;  %v3521_v12 = vld [vmem:[%s4586_s1 + $0x130] sm:$0xff]   ;;  %v521_v18 = vrot.slane %v3886_v43, %v3882_v41 }
  0x15   :  { %3123 = vmatpush3.bf16.msra.mxu1 %v3481_v19  ;;  %3102 = vmatprep.subr.bf16.mxu0 %v3482_v20  ;;  %v3522_v13 = vld [vmem:[%s4586_s1 + $0x1b0] sm:$0xff]   ;;  %v3523_v14 = vld [vmem:[%s4586_s1 + $0x178] sm:$0xff]   ;;  %v3527_v19 = vld [vmem:[%s4586_s1 + $0x240] sm:$0xff]  }
  0x16   :  { %3124 = vmatprep.subr.bf16.mxu1 %v3483_v21  ;;  %v3524_v15 = vld [vmem:[%s4586_s1 + $0x1f8] sm:$0xff]   ;;  %v3528_v20 = vld [vmem:[%s4586_s1 + $0x2c0] sm:$0xff]   ;;  %v3535_v28 = vld [vmem:[%s4586_s1 + $0x250] sm:$0xff]  }
  0x17   :  { %v3525_v16 = vld [vmem:[%s4586_s1 + $0x138] sm:$0xff]   ;;  %v3529_v21 = vld [vmem:[%s4586_s1 + $0x200] sm:$0xff]   ;;  %v3547_v40 = vld [vmem:[%s4586_s1 + $0x268] sm:$0xff]  }
  0x18   :  { %3103 = vmatpush3.bf16.msra.mxu0 %v3484_v22  ;;  %v3526_v17 = vld [vmem:[%s4586_s1 + $0x1b8] sm:$0xff]   ;;  %v3530_v22 = vld [vmem:[%s4586_s1 + $0x280] sm:$0xff]   ;;  %v3548_v42 = vld [vmem:[%s4586_s1 + $0x2e8] sm:$0xff]  }
  0x19   :  { %3125 = vmatpush3.bf16.msra.mxu1 %v3485_v23  ;;  %3104 = vmatprep.subr.bf16.mxu0 %v3486_v24  ;;  %v537_v23 = vcombine.high %v521_v18, %v521_v18  ;;  %v3531_v24 = vld [vmem:[%s4586_s1 + $0x248] sm:$0xff]   ;;  %v3540_v33 = vld [vmem:[%s4586_s1 + $0x2d8] sm:$0xff]   ;;  %v3543_v36 = vld [vmem:[%s4586_s1 + $0x260] sm:$0xff]  }
  0x1a   :  { %3126 = vmatprep.subr.bf16.mxu1 %v3487_v25  ;;  %v3532_v25 = vld [vmem:[%s4586_s1 + $0x2c8] sm:$0xff]   ;;  %v3541_v34 = vld [vmem:[%s4586_s1 + $0x218] sm:$0xff]   ;;  %v3544_v37 = vld [vmem:[%s4586_s1 + $0x2e0] sm:$0xff]  }
  0x1b   :  { %v3546_v39 = vld [vmem:[%s4586_s1 + $0x2a0] sm:$0xff]   ;;  %v3549_v43 = vld [vmem:[%s4586_s1 + $0x228] sm:$0xff]  }
  0x1c   :  { %3105 = vmatpush3.bf16.msra.mxu0 %v3488_v26  ;;  %v3533_v26 = vld [vmem:[%s4586_s1 + $0x208] sm:$0xff]  }
  0x1d   :  { %3127 = vmatpush3.bf16.msra.mxu1 %v3489_v27  ;;  %3106 = vmatprep.subr.bf16.mxu0 %v3490_v29  ;;  %v3534_v27 = vld [vmem:[%s4586_s1 + $0x288] sm:$0xff]   ;;  %v3536_v29 = vld [vmem:[%s4586_s1 + $0x2d0] sm:$0xff]  }
  0x1e   :  { %3128 = vmatprep.subr.bf16.mxu1 %v3491_v30  ;;  %v3537_v30 = vld [vmem:[%s4586_s1 + $0x210] sm:$0xff]   ;;  %v3550_v44 = vld [vmem:[%s4586_s1 + $0x2a8] sm:$0xff]  }
  0x1f   :  { %v29_v46 = vld [vmem:[%s4585_s0 + $0x8] sm:$0xff] }
  0x20   :  { %3107 = vmatpush3.bf16.msra.mxu0 %v3492_v31  ;;  %v3538_v31 = vld [vmem:[%s4586_s1 + $0x290] sm:$0xff]   ;;  %v547_v48 = vrot.slane %v29_v46, %v3882_v41 }
  0x21   :  { %3129 = vmatpush3.bf16.msra.mxu1 %v3493_v32  ;;  %3136 = vmatprep.subr.bf16.mxu0 %v3495_v35  ;;  %v3539_v32 = vld [vmem:[%s4586_s1 + $0x258] sm:$0xff]  }
  0x22   :  { %3158 = vmatprep.subr.bf16.mxu1 %v3496_v38  ;;  %v3542_v35 = vld [vmem:[%s4586_s1 + $0x298] sm:$0xff]   ;;  %v3545_v38 = vld [vmem:[%s4586_s1 + $0x220] sm:$0xff]  }
  0x23   :  { %2067 = vmatmul.mubr.bf16.vlgmr.msra.gmra.mrb[0].mxu0 %v514_v45  ;;  %v3551_v45 = vld [vmem:[%s4586_s1 + $0x270] sm:$0xff]  }
  0x24   :  { %3137 = vmatpush3.bf16.msra.mxu0 %v3497_v47  ;;  %2107 = vmatmul.mubr.bf16.vlgmr.msra.gmra.mrb[0].mxu1 %v536_v51  ;;  %v3552_v47 = vld [vmem:[%s4586_s1 + $0x2f0] sm:$0xff]  }
  0x25   :  { %3138 = vmatprep.subr.bf16.mxu0 %v3499_v52  ;;  %3159 = vmatpush3.bf16.msra.mxu1 %v3498_v49  ;;  %v540_v49 = vcombine.high %v29_v46, %v29_v46  ;;  %v3554_v51 = vld [vmem:[%s4586_s1 + $0x2b0] sm:$0xff]   ;;  %v555_v52 = vcombine.high %v547_v48, %v547_v48 }
  0x26   :  { %2146 = vmatprep.mubr.bf16.mxu0 %v535_v50  ;;  %3160 = vmatprep.subr.bf16.mxu1 %v3500_v54  ;;  %v3553_v50 = vld [vmem:[%s4586_s1 + $0x230] sm:$0xff]   ;;  %v3555_v54 = vld [vmem:[%s4586_s1 + $0x278] sm:$0xff]  }
  0x27   :  { %2186 = vmatprep.mubr.bf16.mxu1 %v539_v56  ;;  %v4074_v53 = vrot.slane %v540_v49, %v3882_v41  ;;  %v577_v56 = vrot.slane %v555_v52, %v3882_v41  ;;  %v3602_v46 = vld [vmem:[%s4586_s1 + $0x410] sm:$0xff]   ;;  %v3605_v49 = vld [vmem:[%s4586_s1 + $0x4d8] sm:$0xff]   ;;  %v3608_v52 = vld [vmem:[%s4586_s1 + $0x460] sm:$0xff]  }
  0x28   :  { %3139 = vmatpush3.bf16.msra.mxu0 %v3501_v55  ;;  %v3556_v55 = vld [vmem:[%s4586_s1 + $0x2f8] sm:$0xff]  }
  0x29   :  { %3140 = vmatprep.subr.bf16.mxu0 %v3503_v58  ;;  %3161 = vmatpush3.bf16.msra.mxu1 %v3502_v57  ;;  %v556_v57 = vcombine.high %v4074_v53, %v4074_v53  ;;  %v3557_v58 = vld [vmem:[%s4586_s1 + $0x238] sm:$0xff]  }
  0x2a   :  { %3162 = vmatprep.subr.bf16.mxu1 %v3504_v59  ;;  %v3558_v59 = vld [vmem:[%s4586_s1 + $0x2b8] sm:$0xff]  }
  0x2c   :  { %3141 = vmatpush3.bf16.msra.mxu0 %v3505_v60  ;;  %v587_v60 = vcombine.high %v577_v56, %v577_v56 }
  0x2d   :  { %3142 = vmatprep.subr.bf16.mxu0 %v3507_v62  ;;  %3163 = vmatpush3.bf16.msra.mxu1 %v3506_v61  ;;  %v563_v61 = vrot.slane %v547_v48, %v3882_v41  ;;  %v3559_v62 = vld [vmem:[%s4586_s1 + $0x340] sm:$0xff]   ;;  %v3604_v48 = vld [vmem:[%s4586_s1 + $0x458] sm:$0xff]  }
  0x2e   :  { %3164 = vmatprep.subr.bf16.mxu1 %v3508_v63  ;;  %v3560_v63 = vld [vmem:[%s4586_s1 + $0x3c0] sm:$0xff]  }
  0x30   :  { %3143 = vmatpush3.bf16.msra.mxu0 %v3509_v0  ;;  %v584_v0 = vrot.slane %v556_v57, %v3882_v41  ;;  %v3613_v57 = vld [vmem:[%s4586_s1 + $0x4e8] sm:$0xff]  }
  0x31   :  { %3144 = vmatprep.subr.bf16.mxu0 %v3511_v2  ;;  %3165 = vmatpush3.bf16.msra.mxu1 %v3510_v1  ;;  %v3561_v1 = vld [vmem:[%s4586_s1 + $0x300] sm:$0xff]  }
  0x32   :  { %3166 = vmatprep.subr.bf16.mxu1 %v3512_v3  ;;  %v3562_v2 = vld [vmem:[%s4586_s1 + $0x380] sm:$0xff]   ;;  %v585_v3 = vcombine.high %v563_v61, %v563_v61 }
  0x34   :  { %3145 = vmatpush3.bf16.msra.mxu0 %v3513_v4  ;;  %v3563_v4 = vld [vmem:[%s4586_s1 + $0x348] sm:$0xff]  }
  0x35   :  { %3146 = vmatprep.subr.bf16.mxu0 %v3515_v6  ;;  %3167 = vmatpush3.bf16.msra.mxu1 %v3514_v5  ;;  %v3564_v5 = vld [vmem:[%s4586_s1 + $0x3c8] sm:$0xff]   ;;  %v588_v6 = vcombine.high %v584_v0, %v584_v0 }
  0x36   :  { %3168 = vmatprep.subr.bf16.mxu1 %v3516_v7  ;;  %v3565_v7 = vld [vmem:[%s4586_s1 + $0x308] sm:$0xff]  }
  0x38   :  { %3147 = vmatpush3.bf16.msra.mxu0 %v3517_v8  ;;  %v3566_v8 = vld [vmem:[%s4586_s1 + $0x388] sm:$0xff]  }
  0x39   :  { %3148 = vmatprep.subr.bf16.mxu0 %v3519_v10  ;;  %3169 = vmatpush3.bf16.msra.mxu1 %v3518_v9  ;;  %v3567_v9 = vld [vmem:[%s4586_s1 + $0x350] sm:$0xff]  }
  0x3a   :  { %3170 = vmatprep.subr.bf16.mxu1 %v3520_v11  ;;  %v3568_v10 = vld [vmem:[%s4586_s1 + $0x3d0] sm:$0xff]  }
  0x3b   :  { %v3569_v11 = vld [vmem:[%s4586_s1 + $0x310] sm:$0xff]  }
  0x3c   :  { %3149 = vmatpush3.bf16.msra.mxu0 %v3521_v12  ;;  %v3570_v12 = vld [vmem:[%s4586_s1 + $0x390] sm:$0xff]  }
  0x3d   :  { %3150 = vmatprep.subr.bf16.mxu0 %v3523_v14  ;;  %3171 = vmatpush3.bf16.msra.mxu1 %v3522_v13  ;;  %v3571_v13 = vld [vmem:[%s4586_s1 + $0x358] sm:$0xff]  }
  0x3e   :  { %3172 = vmatprep.subr.bf16.mxu1 %v3524_v15  ;;  %v3572_v14 = vld [vmem:[%s4586_s1 + $0x3d8] sm:$0xff]  }
  0x3f   :  { %v3573_v15 = vld [vmem:[%s4586_s1 + $0x318] sm:$0xff]  }
  0x40   :  { %3151 = vmatpush3.bf16.msra.mxu0 %v3525_v16  ;;  %v3574_v16 = vld [vmem:[%s4586_s1 + $0x398] sm:$0xff]  }
  0x41   :  { %3180 = vmatprep.subr.bf16.mxu0 %v3527_v19  ;;  %3173 = vmatpush3.bf16.msra.mxu1 %v3526_v17  ;;  %v3575_v17 = vld [vmem:[%s4586_s1 + $0x360] sm:$0xff]  }
  0x42   :  { %3202 = vmatprep.subr.bf16.mxu1 %v3528_v20  ;;  %v3577_v19 = vld [vmem:[%s4586_s1 + $0x320] sm:$0xff]  }
  0x43   :  { %2147 = vmatmul.mubr.bf16.vlgmr.msra.gmra.mrb[4].mxu0 %v521_v18  ;;  %v3576_v18 = vld [vmem:[%s4586_s1 + $0x3e0] sm:$0xff]  }
  0x44   :  { %3181 = vmatpush3.bf16.msra.mxu0 %v3529_v21  ;;  %2187 = vmatmul.mubr.bf16.vlgmr.msra.gmra.mrb[4].mxu1 %v537_v23  ;;  %v3578_v20 = vld [vmem:[%s4586_s1 + $0x3a0] sm:$0xff]   ;;  %v3579_v21 = vld [vmem:[%s4586_s1 + $0x368] sm:$0xff]  }
  0x45   :  { %3182 = vmatprep.subr.bf16.mxu0 %v3531_v24  ;;  %3203 = vmatpush3.bf16.msra.mxu1 %v3530_v22  ;;  %v3580_v22 = vld [vmem:[%s4586_s1 + $0x3e8] sm:$0xff]  }
  0x46   :  { %3204 = vmatprep.subr.bf16.mxu1 %v3532_v25  ;;  %2226 = vmatprep.mubr.bf16.mxu0 %v577_v56  ;;  %v3581_v23 = vld [vmem:[%s4586_s1 + $0x328] sm:$0xff]   ;;  %v3583_v25 = vld [vmem:[%s4586_s1 + $0x370] sm:$0xff]  }
  0x47   :  { %2266 = vmatprep.mubr.bf16.mxu1 %v587_v60  ;;  %v3582_v24 = vld [vmem:[%s4586_s1 + $0x3a8] sm:$0xff]   ;;  %v3616_v60 = vld [vmem:[%s4586_s1 + $0x470] sm:$0xff]  }
  0x48   :  { %3183 = vmatpush3.bf16.msra.mxu0 %v3533_v26  ;;  %v3584_v26 = vld [vmem:[%s4586_s1 + $0x3f0] sm:$0xff]   ;;  %v3612_v56 = vld [vmem:[%s4586_s1 + $0x468] sm:$0xff]  }
  0x49   :  { %3184 = vmatprep.subr.bf16.mxu0 %v3535_v28  ;;  %3205 = vmatpush3.bf16.msra.mxu1 %v3534_v27  ;;  %v3585_v27 = vld [vmem:[%s4586_s1 + $0x330] sm:$0xff]  }
  0x4a   :  { %3206 = vmatprep.subr.bf16.mxu1 %v3536_v29  ;;  %v3586_v28 = vld [vmem:[%s4586_s1 + $0x3b0] sm:$0xff]   ;;  %v3587_v29 = vld [vmem:[%s4586_s1 + $0x378] sm:$0xff]  }
  0x4c   :  { %3185 = vmatpush3.bf16.msra.mxu0 %v3537_v30  ;;  %v3588_v30 = vld [vmem:[%s4586_s1 + $0x3f8] sm:$0xff]  }
  0x4d   :  { %3186 = vmatprep.subr.bf16.mxu0 %v3539_v32  ;;  %3207 = vmatpush3.bf16.msra.mxu1 %v3538_v31  ;;  %v3589_v31 = vld [vmem:[%s4586_s1 + $0x338] sm:$0xff]  }
  0x4e   :  { %3208 = vmatprep.subr.bf16.mxu1 %v3540_v33  ;;  %v3590_v32 = vld [vmem:[%s4586_s1 + $0x3b8] sm:$0xff]   ;;  %v570_v33 = vrot.slane %v4074_v53, %v3882_v41  ;;  %v3609_v53 = vld [vmem:[%s4586_s1 + $0x4e0] sm:$0xff]  }
  0x50   :  { %3187 = vmatpush3.bf16.msra.mxu0 %v3541_v34  ;;  %v3592_v34 = vld [vmem:[%s4586_s1 + $0x440] sm:$0xff]  }
  0x51   :  { %3188 = vmatprep.subr.bf16.mxu0 %v3543_v36  ;;  %3209 = vmatpush3.bf16.msra.mxu1 %v3542_v35  ;;  %v3593_v35 = vld [vmem:[%s4586_s1 + $0x4c0] sm:$0xff]  }
  0x52   :  { %3210 = vmatprep.subr.bf16.mxu1 %v3544_v37  ;;  %v3594_v36 = vld [vmem:[%s4586_s1 + $0x400] sm:$0xff]  }
  0x53   :  { %v3595_v37 = vld [vmem:[%s4586_s1 + $0x480] sm:$0xff]  }
  0x54   :  { %3189 = vmatpush3.bf16.msra.mxu0 %v3545_v38  ;;  %v586_v38 = vcombine.high %v570_v33, %v570_v33 }
  0x55   :  { %3190 = vmatprep.subr.bf16.mxu0 %v3547_v40  ;;  %3211 = vmatpush3.bf16.msra.mxu1 %v3546_v39  ;;  %v3596_v39 = vld [vmem:[%s4586_s1 + $0x448] sm:$0xff]  }
  0x56   :  { %3212 = vmatprep.subr.bf16.mxu1 %v3548_v42  ;;  %v3597_v40 = vld [vmem:[%s4586_s1 + $0x4c8] sm:$0xff]  }
  0x57   :  { %v3598_v42 = vld [vmem:[%s4586_s1 + $0x408] sm:$0xff]  }
  0x58   :  { %3191 = vmatpush3.bf16.msra.mxu0 %v3549_v43  ;;  %v3599_v43 = vld [vmem:[%s4586_s1 + $0x488] sm:$0xff]  }
  0x59   :  { %3192 = vmatprep.subr.bf16.mxu0 %v3551_v45  ;;  %3213 = vmatpush3.bf16.msra.mxu1 %v3550_v44  ;;  %v3600_v44 = vld [vmem:[%s4586_s1 + $0x450] sm:$0xff]  }
  0x5a   :  { %3214 = vmatprep.subr.bf16.mxu1 %v3552_v47  ;;  %v3601_v45 = vld [vmem:[%s4586_s1 + $0x4d0] sm:$0xff]  }
  0x5b   :  { %v3603_v47 = vld [vmem:[%s4586_s1 + $0x490] sm:$0xff]  }
  0x5c   :  { %3193 = vmatpush3.bf16.msra.mxu0 %v3553_v50  ;;  %v3606_v50 = vld [vmem:[%s4586_s1 + $0x418] sm:$0xff]  }
  0x5d   :  { %3194 = vmatprep.subr.bf16.mxu0 %v3555_v54  ;;  %3215 = vmatpush3.bf16.msra.mxu1 %v3554_v51  ;;  %v3607_v51 = vld [vmem:[%s4586_s1 + $0x498] sm:$0xff]   ;;  %v3610_v54 = vld [vmem:[%s4586_s1 + $0x420] sm:$0xff]  }
  0x5e   :  { %3216 = vmatprep.subr.bf16.mxu1 %v3556_v55  ;;  %v3611_v55 = vld [vmem:[%s4586_s1 + $0x4a0] sm:$0xff]  }
  0x60   :  { %3195 = vmatpush3.bf16.msra.mxu0 %v3557_v58  ;;  %v3614_v58 = vld [vmem:[%s4586_s1 + $0x428] sm:$0xff]  }
  0x61   :  { %3224 = vmatprep.subr.bf16.mxu0 %v3559_v62  ;;  %3217 = vmatpush3.bf16.msra.mxu1 %v3558_v59  ;;  %v3615_v59 = vld [vmem:[%s4586_s1 + $0x4a8] sm:$0xff]   ;;  %v3617_v62 = vld [vmem:[%s4586_s1 + $0x4f0] sm:$0xff]  }
  0x62   :  { %3246 = vmatprep.subr.bf16.mxu1 %v3560_v63 }
  0x63   :  { %2227 = vmatmul.mubr.bf16.vlgmr.msra.gmra.mrb[8].mxu0 %v563_v61  ;;  %v30_v61 = vld [vmem:[%s4585_s0 + $0x10] sm:$0xff] }
  0x64   :  { %3225 = vmatpush3.bf16.msra.mxu0 %v3561_v1  ;;  %2306 = vmatprep.mubr.bf16.mxu0 %v584_v0  ;;  %v596_v63 = vrot.slane %v30_v61, %v3882_v41  ;;  %v589_v0 = vcombine.high %v30_v61, %v30_v61  ;;  %v3618_v1 = vld [vmem:[%s4586_s1 + $0x430] sm:$0xff]  }
  0x65   :  { %2267 = vmatmul.mubr.bf16.vlgmr.msra.gmra.mrb[8].mxu1 %v585_v3  ;;  %3226 = vmatprep.subr.bf16.mxu0 %v3563_v4  ;;  %v3667_v61 = vld [vmem:[%s4586_s1 + $0x610] sm:$0xff]  }
  0x66   :  { %3247 = vmatpush3.bf16.msra.mxu1 %v3562_v2  ;;  %2346 = vmatprep.mubr.bf16.mxu1 %v588_v6  ;;  %v3619_v2 = vld [vmem:[%s4586_s1 + $0x4b0] sm:$0xff]   ;;  %v604_v3 = vcombine.high %v596_v63, %v596_v63  ;;  %v4280_v4 = vrot.slane %v589_v0, %v3882_v41  ;;  %v3621_v6 = vld [vmem:[%s4586_s1 + $0x4f8] sm:$0xff]  }
  0x67   :  { %3248 = vmatprep.subr.bf16.mxu1 %v3564_v5  ;;  %v3620_v5 = vld [vmem:[%s4586_s1 + $0x478] sm:$0xff]  }
  0x68   :  { %3227 = vmatpush3.bf16.msra.mxu0 %v3565_v7  ;;  %v626_v7 = vrot.slane %v604_v3, %v3882_v41  ;;  %v3670_v0 = vld [vmem:[%s4586_s1 + $0x6d8] sm:$0xff]   ;;  %v3673_v3 = vld [vmem:[%s4586_s1 + $0x660] sm:$0xff]  }
  0x69   :  { %3228 = vmatprep.subr.bf16.mxu0 %v3567_v9  ;;  %v3622_v9 = vld [vmem:[%s4586_s1 + $0x438] sm:$0xff]  }
  0x6a   :  { %3249 = vmatpush3.bf16.msra.mxu1 %v3566_v8  ;;  %v605_v8 = vcombine.high %v4280_v4, %v4280_v4 }
  0x6b   :  { %3250 = vmatprep.subr.bf16.mxu1 %v3568_v10  ;;  %v3623_v10 = vld [vmem:[%s4586_s1 + $0x4b8] sm:$0xff]  }
  0x6c   :  { %3229 = vmatpush3.bf16.msra.mxu0 %v3569_v11  ;;  %v636_v11 = vcombine.high %v626_v7, %v626_v7 }
  0x6d   :  { %3230 = vmatprep.subr.bf16.mxu0 %v3571_v13  ;;  %v3624_v13 = vld [vmem:[%s4586_s1 + $0x540] sm:$0xff]  }
  0x6e   :  { %3251 = vmatpush3.bf16.msra.mxu1 %v3570_v12  ;;  %v612_v12 = vrot.slane %v596_v63, %v3882_v41  ;;  %v3669_v63 = vld [vmem:[%s4586_s1 + $0x658] sm:$0xff]  }
  0x6f   :  { %3252 = vmatprep.subr.bf16.mxu1 %v3572_v14  ;;  %v3625_v14 = vld [vmem:[%s4586_s1 + $0x5c0] sm:$0xff]  }
  0x70   :  { %3231 = vmatpush3.bf16.msra.mxu0 %v3573_v15  ;;  %v633_v15 = vrot.slane %v605_v8, %v3882_v41  ;;  %v3678_v8 = vld [vmem:[%s4586_s1 + $0x6e8] sm:$0xff]  }
  0x71   :  { %3232 = vmatprep.subr.bf16.mxu0 %v3575_v17  ;;  %v3627_v17 = vld [vmem:[%s4586_s1 + $0x580] sm:$0xff]  }
  0x72   :  { %3253 = vmatpush3.bf16.msra.mxu1 %v3574_v16  ;;  %v3626_v16 = vld [vmem:[%s4586_s1 + $0x500] sm:$0xff]  }
  0x73   :  { %3254 = vmatprep.subr.bf16.mxu1 %v3576_v18  ;;  %v634_v18 = vcombine.high %v612_v12, %v612_v12 }
  0x74   :  { %3233 = vmatpush3.bf16.msra.mxu0 %v3577_v19  ;;  %v3628_v19 = vld [vmem:[%s4586_s1 + $0x548] sm:$0xff]  }
  0x75   :  { %3234 = vmatprep.subr.bf16.mxu0 %v3579_v21  ;;  %v637_v21 = vcombine.high %v633_v15, %v633_v15 }
  0x76   :  { %3255 = vmatpush3.bf16.msra.mxu1 %v3578_v20  ;;  %v3629_v20 = vld [vmem:[%s4586_s1 + $0x5c8] sm:$0xff]  }
  0x77   :  { %3256 = vmatprep.subr.bf16.mxu1 %v3580_v22  ;;  %v3630_v22 = vld [vmem:[%s4586_s1 + $0x508] sm:$0xff]  }
  0x78   :  { %3235 = vmatpush3.bf16.msra.mxu0 %v3581_v23  ;;  %v3631_v23 = vld [vmem:[%s4586_s1 + $0x588] sm:$0xff]  }
  0x79   :  { %3236 = vmatprep.subr.bf16.mxu0 %v3583_v25  ;;  %v3633_v25 = vld [vmem:[%s4586_s1 + $0x5d0] sm:$0xff]  }
  0x7a   :  { %3257 = vmatpush3.bf16.msra.mxu1 %v3582_v24  ;;  %v3632_v24 = vld [vmem:[%s4586_s1 + $0x550] sm:$0xff]  }
  0x7b   :  { %3258 = vmatprep.subr.bf16.mxu1 %v3584_v26  ;;  %v3634_v26 = vld [vmem:[%s4586_s1 + $0x510] sm:$0xff]  }
  0x7c   :  { %3237 = vmatpush3.bf16.msra.mxu0 %v3585_v27  ;;  %v3635_v27 = vld [vmem:[%s4586_s1 + $0x590] sm:$0xff]  }
  0x7d   :  { %3238 = vmatprep.subr.bf16.mxu0 %v3587_v29  ;;  %v3637_v29 = vld [vmem:[%s4586_s1 + $0x5d8] sm:$0xff]  }
  0x7e   :  { %3259 = vmatpush3.bf16.msra.mxu1 %v3586_v28  ;;  %v3636_v28 = vld [vmem:[%s4586_s1 + $0x558] sm:$0xff]  }
  0x7f   :  { %3260 = vmatprep.subr.bf16.mxu1 %v3588_v30  ;;  %v3638_v30 = vld [vmem:[%s4586_s1 + $0x518] sm:$0xff]  }
  0x80   :  { %3239 = vmatpush3.bf16.msra.mxu0 %v3589_v31  ;;  %v3639_v31 = vld [vmem:[%s4586_s1 + $0x598] sm:$0xff]  }
  0x81   :  { %3268 = vmatprep.subr.bf16.mxu0 %v3592_v34  ;;  %v3642_v34 = vld [vmem:[%s4586_s1 + $0x520] sm:$0xff]  }
  0x82   :  { %3261 = vmatpush3.bf16.msra.mxu1 %v3590_v32  ;;  %v3640_v32 = vld [vmem:[%s4586_s1 + $0x560] sm:$0xff]  }
  0x83   :  { %2307 = vmatmul.mubr.bf16.vlgmr.msra.gmra.mrb[12].mxu0 %v570_v33  ;;  %3290 = vmatprep.subr.bf16.mxu1 %v3593_v35  ;;  %v3641_v33 = vld [vmem:[%s4586_s1 + $0x5e0] sm:$0xff]  }
  0x84   :  { %3269 = vmatpush3.bf16.msra.mxu0 %v3594_v36  ;;  %2386 = vmatprep.mubr.bf16.mxu0 %v626_v7  ;;  %v3643_v35 = vld [vmem:[%s4586_s1 + $0x5a0] sm:$0xff]   ;;  %v3644_v36 = vld [vmem:[%s4586_s1 + $0x568] sm:$0xff]  }
  0x85   :  { %2347 = vmatmul.mubr.bf16.vlgmr.msra.gmra.mrb[12].mxu1 %v586_v38  ;;  %3270 = vmatprep.subr.bf16.mxu0 %v3596_v39  ;;  %v3646_v38 = vld [vmem:[%s4586_s1 + $0x528] sm:$0xff]  }
  0x86   :  { %3291 = vmatpush3.bf16.msra.mxu1 %v3595_v37  ;;  %2426 = vmatprep.mubr.bf16.mxu1 %v636_v11  ;;  %v3645_v37 = vld [vmem:[%s4586_s1 + $0x5e8] sm:$0xff]   ;;  %v3681_v11 = vld [vmem:[%s4586_s1 + $0x670] sm:$0xff]  }
  0x87   :  { %3292 = vmatprep.subr.bf16.mxu1 %v3597_v40  ;;  %v3647_v39 = vld [vmem:[%s4586_s1 + $0x5a8] sm:$0xff]   ;;  %v3648_v40 = vld [vmem:[%s4586_s1 + $0x570] sm:$0xff]  }
  0x88   :  { %3271 = vmatpush3.bf16.msra.mxu0 %v3598_v42  ;;  %v3649_v42 = vld [vmem:[%s4586_s1 + $0x5f0] sm:$0xff]   ;;  %v3677_v7 = vld [vmem:[%s4586_s1 + $0x668] sm:$0xff]  }
  0x89   :  { %3272 = vmatprep.subr.bf16.mxu0 %v3600_v44  ;;  %v3651_v44 = vld [vmem:[%s4586_s1 + $0x5b0] sm:$0xff]  }
  0x8a   :  { %3293 = vmatpush3.bf16.msra.mxu1 %v3599_v43  ;;  %v3650_v43 = vld [vmem:[%s4586_s1 + $0x530] sm:$0xff]  }
  0x8b   :  { %3294 = vmatprep.subr.bf16.mxu1 %v3601_v45  ;;  %v3652_v45 = vld [vmem:[%s4586_s1 + $0x578] sm:$0xff]  }
  0x8c   :  { %3273 = vmatpush3.bf16.msra.mxu0 %v3602_v46  ;;  %v3653_v46 = vld [vmem:[%s4586_s1 + $0x5f8] sm:$0xff]  }
  0x8d   :  { %3274 = vmatprep.subr.bf16.mxu0 %v3604_v48  ;;  %v3655_v48 = vld [vmem:[%s4586_s1 + $0x5b8] sm:$0xff]  }
  0x8e   :  { %3295 = vmatpush3.bf16.msra.mxu1 %v3603_v47  ;;  %v3654_v47 = vld [vmem:[%s4586_s1 + $0x538] sm:$0xff]  }
  0x8f   :  { %3296 = vmatprep.subr.bf16.mxu1 %v3605_v49  ;;  %v619_v49 = vrot.slane %v4280_v4, %v3882_v41  ;;  %v3674_v4 = vld [vmem:[%s4586_s1 + $0x6e0] sm:$0xff]  }
  0x90   :  { %3275 = vmatpush3.bf16.msra.mxu0 %v3606_v50  ;;  %v3657_v50 = vld [vmem:[%s4586_s1 + $0x640] sm:$0xff]  }
  0x91   :  { %3276 = vmatprep.subr.bf16.mxu0 %v3608_v52  ;;  %v3659_v52 = vld [vmem:[%s4586_s1 + $0x600] sm:$0xff]  }
  0x92   :  { %3297 = vmatpush3.bf16.msra.mxu1 %v3607_v51  ;;  %v3658_v51 = vld [vmem:[%s4586_s1 + $0x6c0] sm:$0xff]  }
  0x93   :  { %3298 = vmatprep.subr.bf16.mxu1 %v3609_v53  ;;  %v3660_v53 = vld [vmem:[%s4586_s1 + $0x680] sm:$0xff]  }
  0x94   :  { %3277 = vmatpush3.bf16.msra.mxu0 %v3610_v54  ;;  %v635_v54 = vcombine.high %v619_v49, %v619_v49 }
  0x95   :  { %3278 = vmatprep.subr.bf16.mxu0 %v3612_v56  ;;  %v3662_v56 = vld [vmem:[%s4586_s1 + $0x6c8] sm:$0xff]  }
  0x96   :  { %3299 = vmatpush3.bf16.msra.mxu1 %v3611_v55  ;;  %v3661_v55 = vld [vmem:[%s4586_s1 + $0x648] sm:$0xff]  }
  0x97   :  { %3300 = vmatprep.subr.bf16.mxu1 %v3613_v57  ;;  %v3663_v57 = vld [vmem:[%s4586_s1 + $0x608] sm:$0xff]  }
  0x98   :  { %3279 = vmatpush3.bf16.msra.mxu0 %v3614_v58  ;;  %v3664_v58 = vld [vmem:[%s4586_s1 + $0x688] sm:$0xff]  }
  0x99   :  { %3280 = vmatprep.subr.bf16.mxu0 %v3616_v60  ;;  %v3666_v60 = vld [vmem:[%s4586_s1 + $0x6d0] sm:$0xff]  }
  0x9a   :  { %3301 = vmatpush3.bf16.msra.mxu1 %v3615_v59  ;;  %v3665_v59 = vld [vmem:[%s4586_s1 + $0x650] sm:$0xff]  }
  0x9b   :  { %3302 = vmatprep.subr.bf16.mxu1 %v3617_v62  ;;  %v3668_v62 = vld [vmem:[%s4586_s1 + $0x690] sm:$0xff]  }
  0x9c   :  { %3281 = vmatpush3.bf16.msra.mxu0 %v3618_v1  ;;  %v3671_v1 = vld [vmem:[%s4586_s1 + $0x618] sm:$0xff]  }
  0x9d   :  { %3282 = vmatprep.subr.bf16.mxu0 %v3620_v5  ;;  %v3675_v5 = vld [vmem:[%s4586_s1 + $0x620] sm:$0xff]  }
  0x9e   :  { %3303 = vmatpush3.bf16.msra.mxu1 %v3619_v2  ;;  %v3672_v2 = vld [vmem:[%s4586_s1 + $0x698] sm:$0xff]  }
  0x9f   :  { %3304 = vmatprep.subr.bf16.mxu1 %v3621_v6  ;;  %v3676_v6 = vld [vmem:[%s4586_s1 + $0x6a0] sm:$0xff]  }
  0xa0   :  { %3283 = vmatpush3.bf16.msra.mxu0 %v3622_v9  ;;  %v3679_v9 = vld [vmem:[%s4586_s1 + $0x628] sm:$0xff]  }
  0xa1   :  { %3312 = vmatprep.subr.bf16.mxu0 %v3624_v13  ;;  %v3683_v13 = vld [vmem:[%s4586_s1 + $0x630] sm:$0xff]  }
  0xa2   :  { %3305 = vmatpush3.bf16.msra.mxu1 %v3623_v10  ;;  %v3680_v10 = vld [vmem:[%s4586_s1 + $0x6a8] sm:$0xff]  }
  0xa3   :  { %2387 = vmatmul.mubr.bf16.vlgmr.msra.gmra.mrb[16].mxu0 %v612_v12  ;;  %3334 = vmatprep.subr.bf16.mxu1 %v3625_v14  ;;  %v3682_v12 = vld [vmem:[%s4586_s1 + $0x6f0] sm:$0xff]   ;;  %v2849_v14 = vld.sshfl [vmem:[%s4585_s0 + $0x18] sm:$0x33 pattern:$0x75316420] }
  0xa4   :  { %3313 = vmatpush3.bf16.msra.mxu0 %v3626_v16  ;;  %2466 = vmatprep.mubr.bf16.mxu0 %v633_v15  ;;  %v3685_v15 = vld [vmem:[%s4586_s1 + $0x678] sm:$0xff]   ;;  %v645_v16 = vcombine.high %v2849_v14, %v2849_v14 }
  0xa5   :  { %2427 = vmatmul.mubr.bf16.vlgmr.msra.gmra.mrb[16].mxu1 %v634_v18  ;;  %3314 = vmatprep.subr.bf16.mxu0 %v3628_v19  ;;  %v3686_v18 = vld [vmem:[%s4586_s1 + $0x6f8] sm:$0xff]  }
  0xa6   :  { %3335 = vmatpush3.bf16.msra.mxu1 %v3627_v17  ;;  %2506 = vmatprep.mubr.bf16.mxu1 %v637_v21  ;;  %v3684_v17 = vld [vmem:[%s4586_s1 + $0x6b0] sm:$0xff]   ;;  %v659_v19 = vrot.slane %v645_v16, %v3882_v41 }
  0xa7   :  { %3336 = vmatprep.subr.bf16.mxu1 %v3629_v20  ;;  %v3687_v20 = vld [vmem:[%s4586_s1 + $0x638] sm:$0xff]  }
  0xa8   :  { %3315 = vmatpush3.bf16.msra.mxu0 %v3630_v22  ;;  %v661_v21 = vcombine.high %v659_v19, %v659_v19  ;;  %v3688_v22 = vld [vmem:[%s4586_s1 + $0x6b8] sm:$0xff]  }
  0xa9   :  { %3316 = vmatprep.subr.bf16.mxu0 %v3632_v24 }
  0xaa   :  { %3337 = vmatpush3.bf16.msra.mxu1 %v3631_v23  ;;  %v652_v23 = vrot.slane %v2849_v14, %v3882_v41 }
  0xab   :  { %3338 = vmatprep.subr.bf16.mxu1 %v3633_v25 }
  0xac   :  { %3317 = vmatpush3.bf16.msra.mxu0 %v3634_v26  ;;  %v660_v24 = vcombine.high %v652_v23, %v652_v23 }
  0xad   :  { %3318 = vmatprep.subr.bf16.mxu0 %v3636_v28 }
  0xae   :  { %3339 = vmatpush3.bf16.msra.mxu1 %v3635_v27 }
  0xaf   :  { %3340 = vmatprep.subr.bf16.mxu1 %v3637_v29 }
  0xb0   :  { %3319 = vmatpush3.bf16.msra.mxu0 %v3638_v30 }
  0xb1   :  { %3320 = vmatprep.subr.bf16.mxu0 %v3640_v32 }
  0xb2   :  { %3341 = vmatpush3.bf16.msra.mxu1 %v3639_v31 }
  0xb3   :  { %3342 = vmatprep.subr.bf16.mxu1 %v3641_v33 }
  0xb4   :  { %3321 = vmatpush3.bf16.msra.mxu0 %v3642_v34 }
  0xb5   :  { %3322 = vmatprep.subr.bf16.mxu0 %v3644_v36 }
  0xb6   :  { %3343 = vmatpush3.bf16.msra.mxu1 %v3643_v35 }
  0xb7   :  { %3344 = vmatprep.subr.bf16.mxu1 %v3645_v37 }
  0xb8   :  { %3323 = vmatpush3.bf16.msra.mxu0 %v3646_v38 }
  0xb9   :  { %3324 = vmatprep.subr.bf16.mxu0 %v3648_v40 }
  0xba   :  { %3345 = vmatpush3.bf16.msra.mxu1 %v3647_v39 }
  0xbb   :  { %3346 = vmatprep.subr.bf16.mxu1 %v3649_v42 }
  0xbc   :  { %3325 = vmatpush3.bf16.msra.mxu0 %v3650_v43 }
  0xbd   :  { %3326 = vmatprep.subr.bf16.mxu0 %v3652_v45 }
  0xbe   :  { %3347 = vmatpush3.bf16.msra.mxu1 %v3651_v44 }
  0xbf   :  { %3348 = vmatprep.subr.bf16.mxu1 %v3653_v46 }
  0xc0   :  { %3327 = vmatpush3.bf16.msra.mxu0 %v3654_v47 }
  0xc1   :  { %3356 = vmatprep.subr.bf16.mxu0 %v3657_v50 }
  0xc2   :  { %3349 = vmatpush3.bf16.msra.mxu1 %v3655_v48 }
  0xc3   :  { %2467 = vmatmul.mubr.bf16.vlgmr.msra.gmra.mrb[20].mxu0 %v619_v49  ;;  %3378 = vmatprep.subr.bf16.mxu1 %v3658_v51 }
  0xc4   :  { %3357 = vmatpush3.bf16.msra.mxu0 %v3659_v52  ;;  %2546 = vmatprep.mubr.bf16.mxu0 %v659_v19 }
  0xc5   :  { %2507 = vmatmul.mubr.bf16.vlgmr.msra.gmra.mrb[20].mxu1 %v635_v54  ;;  %3358 = vmatprep.subr.bf16.mxu0 %v3661_v55 }
  0xc6   :  { %3379 = vmatpush3.bf16.msra.mxu1 %v3660_v53  ;;  %2586 = vmatprep.mubr.bf16.mxu1 %v661_v21 }
  0xc7   :  { %3380 = vmatprep.subr.bf16.mxu1 %v3662_v56 }
  0xc8   :  { %3359 = vmatpush3.bf16.msra.mxu0 %v3663_v57 }
  0xc9   :  { %3360 = vmatprep.subr.bf16.mxu0 %v3665_v59 }
  0xca   :  { %3381 = vmatpush3.bf16.msra.mxu1 %v3664_v58 }
  0xcb   :  { %3382 = vmatprep.subr.bf16.mxu1 %v3666_v60 }
  0xcc   :  { %3361 = vmatpush3.bf16.msra.mxu0 %v3667_v61 }
  0xcd   :  { %3362 = vmatprep.subr.bf16.mxu0 %v3669_v63 }
  0xce   :  { %3383 = vmatpush3.bf16.msra.mxu1 %v3668_v62 }
  0xcf   :  { %3384 = vmatprep.subr.bf16.mxu1 %v3670_v0 }
  0xd0   :  { %3363 = vmatpush3.bf16.msra.mxu0 %v3671_v1 }
  0xd1   :  { %3364 = vmatprep.subr.bf16.mxu0 %v3673_v3 }
  0xd2   :  { %3385 = vmatpush3.bf16.msra.mxu1 %v3672_v2 }
  0xd3   :  { %3386 = vmatprep.subr.bf16.mxu1 %v3674_v4 }
  0xd4   :  { %3365 = vmatpush3.bf16.msra.mxu0 %v3675_v5 }
  0xd5   :  { %3366 = vmatprep.subr.bf16.mxu0 %v3677_v7 }
  0xd6   :  { %3387 = vmatpush3.bf16.msra.mxu1 %v3676_v6 }
  0xd7   :  { %3388 = vmatprep.subr.bf16.mxu1 %v3678_v8 }
  0xd8   :  { %3367 = vmatpush3.bf16.msra.mxu0 %v3679_v9 }
  0xd9   :  { %3368 = vmatprep.subr.bf16.mxu0 %v3681_v11 }
  0xda   :  { %3389 = vmatpush3.bf16.msra.mxu1 %v3680_v10 }
  0xdb   :  { %3390 = vmatprep.subr.bf16.mxu1 %v3682_v12 }
  0xdc   :  { %3369 = vmatpush3.bf16.msra.mxu0 %v3683_v13 }
  0xdd   :  { %3370 = vmatprep.subr.bf16.mxu0 %v3685_v15 }
  0xde   :  { %3391 = vmatpush3.bf16.msra.mxu1 %v3684_v17 }
  0xdf   :  { %3392 = vmatprep.subr.bf16.mxu1 %v3686_v18 }
  0xe0   :  { %3371 = vmatpush3.bf16.msra.mxu0 %v3687_v20 }
  0xe1   :  { %12 = vsyncpa [#allocation3], 0  ;;  %v2848_v26 = vld [vmem:[%s4587_s2] ss:$0 sm:$0xff]  ;;  %v3734_v51 = vmov 0.0   ;;  %v3690_v52 = vld [vmem:[%s4588_s3 + $0x8] sm:$0xff]  }
  0xe2   :  { %3393 = vmatpush3.bf16.msra.mxu1 %v3688_v22  ;;  %v3689_v50 = vld [vmem:[%s4588_s3] sm:$0xff]   ;;  %3418 = vmatprep.subr.bf16.mxu0 %v3734_v51  ;;  %v3691_v53 = vld [vmem:[%s4588_s3 + $0x10] sm:$0xff]   ;;  %v3692_v54 = vld [vmem:[%s4588_s3 + $0x18] sm:$0xff]   ;;  %vm3735_vm0 = vmmov 0   ;;  %vm2820_vm1 = vcmask 1041408  }
  0xe3   :  { %2547 = vmatmul.mubr.bf16.vlgmr.msra.gmra.mrb[24].mxu0 %v652_v23  ;;  %3438 = vmatprep.subr.bf16.mxu1 %v3734_v51  ;;  %v3693_v55 = vld [vmem:[%s4588_s3 + $0x20] sm:$0xff]   ;;  %v3694_v58 = vld [vmem:[%s4588_s3 + $0x28] sm:$0xff]   ;;  %v3695_v4 = vld [vmem:[%s4588_s3 + $0x30] sm:$0xff]  }
  0xe4   :  { %3419 = vmatpush3.bf16.msra.mxu0 %v3689_v50  ;;  %v3696_v6 = vld [vmem:[%s4588_s3 + $0x38] sm:$0xff]   ;;  %3434 = vmatprep.mubr.msk.bf16.mxu0 %vm3735_vm0, %v3734_v51  ;;  %v3697_v7 = vld [vmem:[%s4590_s5] sm:$0xff]   ;;  %v3698_v8 = vld [vmem:[%s4590_s5 + $0x8] sm:$0xff]  }
  0xe5   :  { %2587 = vmatmul.mubr.bf16.vlgmr.msra.gmra.mrb[24].mxu1 %v660_v24  ;;  %3420 = vmatprep.subr.bf16.mxu0 %v3734_v51  ;;  %v3699_v9 = vld [vmem:[%s4590_s5 + $0x10] sm:$0xff]   ;;  %v3700_v10 = vld [vmem:[%s4590_s5 + $0x18] sm:$0xff]   ;;  %v3701_v11 = vld [vmem:[%s4590_s5 + $0x20] sm:$0xff]  }
  0xe6   :  { %3454 = vmatprep.mubr.msk.bf16.mxu1 %vm3735_vm0, %v3734_v51  ;;  %3439 = vmatpush3.bf16.msra.mxu1 %v3697_v7  ;;  %v3702_v12 = vld [vmem:[%s4590_s5 + $0x28] sm:$0xff]  }
  0xe7   :  { %3440 = vmatprep.subr.bf16.mxu1 %v3734_v51 }
  0xe8   :  { %3421 = vmatpush3.bf16.msra.mxu0 %v3690_v52 }
  0xe9   :  { %3422 = vmatprep.subr.bf16.mxu0 %v3734_v51 }
  0xea   :  { %3441 = vmatpush3.bf16.msra.mxu1 %v3698_v8 }
  0xeb   :  { %3442 = vmatprep.subr.bf16.mxu1 %v3734_v51 }
  0xec   :  { %3423 = vmatpush3.bf16.msra.mxu0 %v3691_v53 }
  0xed   :  { %3424 = vmatprep.subr.bf16.mxu0 %v3734_v51 }
  0xee   :  { %3443 = vmatpush3.bf16.msra.mxu1 %v3699_v9 }
  0xef   :  { %3444 = vmatprep.subr.bf16.mxu1 %v3734_v51 }
  0xf0   :  { %3425 = vmatpush3.bf16.msra.mxu0 %v3692_v54 }
  0xf1   :  { %3426 = vmatprep.subr.bf16.mxu0 %v3734_v51 }
  0xf2   :  { %3445 = vmatpush3.bf16.msra.mxu1 %v3700_v10 }
  0xf3   :  { %3446 = vmatprep.subr.bf16.mxu1 %v3734_v51 }
  0xf4   :  { %3427 = vmatpush3.bf16.msra.mxu0 %v3693_v55 }
  0xf5   :  { %3428 = vmatprep.subr.bf16.mxu0 %v3734_v51 }
  0xf6   :  { %v3108_v25 = vpop.f32.mrb[0].mxu0  ;;  %3447 = vmatpush3.bf16.msra.mxu1 %v3701_v11 }
  0xf7   :  { %v3109_v27 = vpop.f32.mrb[1].mxu0  ;;  %v3130_v28 = vpop.f32.mrb[0].mxu1  ;;  %3448 = vmatprep.subr.bf16.mxu1 %v3734_v51 }
  0xf8   :  { %v3110_v29 = vadd.f32 %v3109_v27, %v3108_v25  ;;  %v3111_v30 = vpop.f32.mrb[2].mxu0  ;;  %v3131_v31 = vpop.f32.mrb[1].mxu1  ;;  %3429 = vmatpush3.bf16.msra.mxu0 %v3694_v58 }
  0xf9   :  { %v3112_v32 = vpop.f32.mrb[3].mxu0  ;;  %v3132_v33 = vadd.f32 %v3131_v31, %v3130_v28  ;;  %v3133_v34 = vpop.f32.mrb[2].mxu1  ;;  %3430 = vmatprep.subr.bf16.mxu0 %v3734_v51 }
  0xfa   :  { %v2069_v41 = vadd.f32 %v3110_v29, %v2848_v26  ;;  %v3134_v35 = vpop.f32.mrb[3].mxu1  ;;  %3449 = vmatpush3.bf16.msra.mxu1 %v3702_v12 }
  0xfb   :  { %3450 = vmatprep.subr.bf16.mxu1 %v3734_v51 }
  0xfc   :  { %v2109_v36 = vadd.f32 %v3132_v33, %v2069_v41  ;;  %3431 = vmatpush3.bf16.msra.mxu0 %v3695_v4 }
  0xfd   :  { %3432 = vmatprep.subr.bf16.mxu0 %v3734_v51 }
 0x100   :  { %3433 = vmatpush3.bf16.msra.mxu0 %v3696_v6 }
 0x116   :  { %v3152_v37 = vpop.f32.mrb[4].mxu0 }
 0x117   :  { %v3153_v38 = vpop.f32.mrb[5].mxu0  ;;  %v3174_v39 = vpop.f32.mrb[4].mxu1 }
 0x118   :  { %v3154_v40 = vadd.f32 %v3153_v38, %v3152_v37  ;;  %v3155_v42 = vpop.f32.mrb[6].mxu0  ;;  %v3175_v43 = vpop.f32.mrb[5].mxu1 }
 0x119   :  { %v3156_v44 = vpop.f32.mrb[7].mxu0  ;;  %v3176_v46 = vadd.f32 %v3175_v43, %v3174_v39  ;;  %v3177_v47 = vpop.f32.mrb[6].mxu1 }
 0x11a   :  { %v2149_v45 = vadd.f32 %v3154_v40, %v2109_v36  ;;  %v3178_v48 = vpop.f32.mrb[7].mxu1 }
 0x11c   :  { %v2189_v49 = vadd.f32 %v3176_v46, %v2149_v45 }
 0x136   :  { %v3196_v56 = vpop.f32.mrb[8].mxu0 }
 0x137   :  { %v3197_v57 = vpop.f32.mrb[9].mxu0 }
 0x138   :  { %v3218_v59 = vpop.f32.mrb[8].mxu1  ;;  %v3198_v60 = vadd.f32 %v3197_v57, %v3196_v56  ;;  %v3199_v61 = vpop.f32.mrb[10].mxu0 }
 0x139   :  { %v3219_v62 = vpop.f32.mrb[9].mxu1  ;;  %v3200_v63 = vpop.f32.mrb[11].mxu0 }
 0x13a   :  { %v2229_v0 = vadd.f32 %v3198_v60, %v2189_v49  ;;  %v3220_v1 = vadd.f32 %v3219_v62, %v3218_v59  ;;  %v3221_v2 = vpop.f32.mrb[10].mxu1 }
 0x13b   :  { %v3222_v3 = vpop.f32.mrb[11].mxu1  ;;  %v3074_v2 = vld [vmem:[%s4589_s4] ss:$0 sm:$0xff]  ;;  %s3736_s4 = smov [#allocation2]  }
 0x13c   :  { %v2269_v5 = vadd.f32 %v3220_v1, %v2229_v0  ;;  %v3703_v0 = vld [vmem:[%s4590_s5 + $0x30] sm:$0xff]   ;;  %v3704_v1 = vld [vmem:[%s4590_s5 + $0x38] sm:$0xff]   ;;  %s2840_s5 = sshll.u32 %s3736_s4, 4  ;;  %s2841_s5 = int_to_ptr.vmem [resolvable:$true] %s2840_s5 }
 0x13d   :  { %3451 = vmatpush3.bf16.msra.mxu1 %v3703_v0  ;;  %p3714_p1 = scmp.lt.s32.totalorder %s2841_s5, %s2841_s5 }
 0x13e   :  { %3452 = vmatprep.subr.bf16.mxu1 %v3734_v51  ;;  %v3083_v51 = vld [vmem:[%s4591_s6] ss:$0 sm:$0xff]  ;;  %s3709_s6 = scalar_lea.vmem %s2841_s5, 32 }
 0x13f   :  { %p3710_p0 = scmp.ne.s32.totalorder %s2841_s5, %s3709_s6  ;;  %p3715_p2 = scmp.lt.s32.totalorder %s3709_s6, %s3709_s6 }
 0x141   :  { %3453 = vmatpush3.bf16.msra.mxu1 %v3704_v1  ;;  %p3716_p3 = por %p3715_p2, %p3714_p1 }
 0x143   :  { %p3717_p4 = pnand %p3716_p3, %p3710_p0 }
 0x156   :  { %v3240_v13 = vpop.f32.mrb[12].mxu0 }
 0x157   :  { %v3241_v14 = vpop.f32.mrb[13].mxu0 }
 0x158   :  { %v3262_v15 = vpop.f32.mrb[12].mxu1  ;;  %v3242_v16 = vadd.f32 %v3241_v14, %v3240_v13  ;;  %v3243_v17 = vpop.f32.mrb[14].mxu0 }
 0x159   :  { %v3263_v18 = vpop.f32.mrb[13].mxu1  ;;  %v3244_v19 = vpop.f32.mrb[15].mxu0 }
 0x15a   :  { %v2309_v20 = vadd.f32 %v3242_v16, %v2269_v5  ;;  %v3264_v21 = vadd.f32 %v3263_v18, %v3262_v15  ;;  %v3265_v22 = vpop.f32.mrb[14].mxu1 }
 0x15b   :  { %v3266_v23 = vpop.f32.mrb[15].mxu1 }
 0x15c   :  { %v2349_v24 = vadd.f32 %v3264_v21, %v2309_v20 }
 0x176   :  { %v3284_v25 = vpop.f32.mrb[16].mxu0 }
 0x177   :  { %v3285_v26 = vpop.f32.mrb[17].mxu0 }
 0x178   :  { %v3306_v27 = vpop.f32.mrb[16].mxu1  ;;  %v3286_v28 = vadd.f32 %v3285_v26, %v3284_v25  ;;  %v3287_v29 = vpop.f32.mrb[18].mxu0 }
 0x179   :  { %v3307_v30 = vpop.f32.mrb[17].mxu1  ;;  %v3288_v31 = vpop.f32.mrb[19].mxu0 }
 0x17a   :  { %v2389_v32 = vadd.f32 %v3286_v28, %v2349_v24  ;;  %v3308_v41 = vadd.f32 %v3307_v30, %v3306_v27  ;;  %v3309_v33 = vpop.f32.mrb[18].mxu1 }
 0x17b   :  { %v3310_v34 = vpop.f32.mrb[19].mxu1 }
 0x17c   :  { %v2429_v35 = vadd.f32 %v3308_v41, %v2389_v32 }
 0x196   :  { %v3328_v36 = vpop.f32.mrb[20].mxu0 }
 0x197   :  { %v3329_v37 = vpop.f32.mrb[21].mxu0 }
 0x198   :  { %v3350_v38 = vpop.f32.mrb[20].mxu1  ;;  %v3330_v39 = vadd.f32 %v3329_v37, %v3328_v36  ;;  %v3331_v40 = vpop.f32.mrb[22].mxu0 }
 0x199   :  { %v3351_v42 = vpop.f32.mrb[21].mxu1  ;;  %v3332_v43 = vpop.f32.mrb[23].mxu0 }
 0x19a   :  { %v2469_v44 = vadd.f32 %v3330_v39, %v2429_v35  ;;  %v3352_v45 = vadd.f32 %v3351_v42, %v3350_v38  ;;  %v3353_v46 = vpop.f32.mrb[22].mxu1 }
 0x19b   :  { %v3354_v47 = vpop.f32.mrb[23].mxu1 }
 0x19c   :  { %v2509_v48 = vadd.f32 %v3352_v45, %v2469_v44 }
 0x1b6   :  { %v3372_v49 = vpop.f32.mrb[24].mxu0 }
 0x1b7   :  { %v3373_v50 = vpop.f32.mrb[25].mxu0 }
 0x1b8   :  { %v3394_v52 = vpop.f32.mrb[24].mxu1  ;;  %v3374_v53 = vadd.f32 %v3373_v50, %v3372_v49  ;;  %v3375_v54 = vpop.f32.mrb[26].mxu0 }
 0x1b9   :  { %v3395_v55 = vpop.f32.mrb[25].mxu1  ;;  %v3376_v56 = vpop.f32.mrb[27].mxu0 }
 0x1ba   :  { %v2549_v57 = vadd.f32 %v3374_v53, %v2509_v48  ;;  %v3396_v58 = vadd.f32 %v3395_v55, %v3394_v52  ;;  %v3397_v59 = vpop.f32.mrb[26].mxu1 }
 0x1bb   :  { %v3398_v60 = vpop.f32.mrb[27].mxu1 }
 0x1bc   :  { %v2589_v61 = vadd.f32 %v3396_v58, %v2549_v57 }
 0x1be   :  { %v2594_v62 = vmax.f32 %v2589_v61, 0.0 }
 0x1c0   :  { %v2595_v63 = vpack.c.bf16 %v2594_v62, %v2594_v62 }
 0x1c2   :  { %3435 = vmatmul.mubr.bf16.vlgmr.msra.gmra.mrb[28].mxu0 %v2595_v63 }
 0x295   :  { %v2701_v3 = vpop.f32.mrb[28].mxu0 }
 0x296   :  { %v2702_v4 = vadd.f32 %v3074_v2, %v2701_v3  ;;  %v3436_v5 = vpop.f32.mrb[29].mxu0 }
 0x297   :  { %v2704_v6 = vpop.f32.mrb[30].mxu0 }
 0x298   :  { %v2707_v7 = vmax.f32 %v2702_v4, 0.0  ;;  %v3437_v8 = vpop.f32.mrb[31].mxu0 }
 0x29a   :  { %v2708_v9 = vpack.c.bf16 %v2707_v7, %v2707_v7 }
 0x29c   :  { %3455 = vmatmul.mubr.bf16.vlgmr.msra.gmra.mrb[28].mxu1 %v2708_v9 }
 0x36f   :  { %v2814_v10 = vpop.f32.mrb[28].mxu1 }
 0x370   :  { %v2815_v11 = vadd.f32 %v3083_v51, %v2814_v10  ;;  %v3456_v12 = vpop.f32.mrb[29].mxu1 }
 0x371   :  { %v2817_v13 = vpop.f32.mrb[30].mxu1 }
 0x372   :  { %v3457_v14 = vpop.f32.mrb[31].mxu1  ;;  %v2821_v15 = vsel %vm2820_vm1, %v2815_v11, -inf }
 0x373   :  { %2822 = vmax.xlane.f32.xlu0 %v2821_v15 }
 0x400   :  { %v2823_v16 = vpop.xlane.xlu0 %2822 }
 0x401   :  { %v2824_v17 = vsub.f32 %v2815_v11, %v2823_v16 }
 0x403   :  { %v2825_v18 = vmul.f32 1.442695, %v2824_v17 }
 0x405   :  { %3705 = vpow2.f32 %v2825_v18 }
 0x40f   :  { %v3706_v19 = vpop.eup %3705 }
 0x410   :  { %v2827_v20 = vsel %vm2820_vm1, %v3706_v19, 0.0 }
 0x411   :  { %2828 = vadd.xlane.f32.xlu0 %v2827_v20 }
 0x49e   :  { %v2829_v21 = vpop.xlane.xlu0 %2828 }
 0x49f   :  { %3707 = vlog2.f32 %v2829_v21 }
 0x4a9   :  { %v3708_v22 = vpop.eup %3707 }
 0x4aa   :  { %v2831_v23 = vmul.f32 0.6931472, %v3708_v22 }
 0x4ac   :  { %v2832_v24 = vsub.f32 %v2824_v17, %v2831_v23 }
 0x4ae   :  { %2833 = vst [vmem:[#allocation2] sm:$0x3] %v2832_v24 }
 0x4af   :  { %3720 = shalt.err (!%p3717_p4)
}
 0x4b0   :  { %s3721_s30 = scalar_lea.hbm %s4592_s7, 32 }
 0x4b1   :  { %p3722_p5 = scmp.ne.s32.totalorder %s4592_s7, %s3721_s30  ;;  %p3725_p6 = scmp.lt.u32.totalorder %s3721_s30, %s4592_s7 }
 0x4b3   :  { %p3727_p7 = pnand %p3725_p6, %p3722_p5 }
 0x4b5   :  { %3730 = shalt.err (!%p3727_p7)
}
 0x4b6   :  { %2843 = dma.vmem_to_hbm [thread:$0]  %s2841_s5, 32, %s4592_s7, [#allocation3]  }
 0x4b7   :  { %3731 = dma.done.wait [#allocation3], 32  }
 0x4b8   :  { %3732 = vsyncadd [#allocation3], 4294967264 }
 0x4b9   :  { %2847 = vsyncpa [#allocation3], 1 }

</bundles_post_ra>
